<compile_context>
chip_gen: v6e
topology: v6e:2x2x1
jax: 0.10.0
libtpu: 0.0.40
codegen_flags: <defaults>
</compile_context>

<pallas_src>
import functools

import jax
import jax.numpy as jnp
from jax.experimental import pallas as pl
from jax.experimental.pallas import tpu as pltpu

LEAKY = 0.1


def _default_vmem_limit():
    # Generation-aware scoped-VMEM request (v7x only has 64 MiB physical).
    try:
        cap = int(pltpu.get_tpu_info().vmem_capacity_bytes)
    except Exception:
        cap = 64 * 1024 * 1024
    return min((3 * cap) // 4, 96 * 1024 * 1024)


_VMEM_LIMIT = _default_vmem_limit()


def _compiler_params():
    return pltpu.CompilerParams(dimension_semantics=("arbitrary",),
                                vmem_limit_bytes=_VMEM_LIMIT)


def _full_spec(shape):
    zeros = (0,) * len(shape)
    return pl.BlockSpec(shape, lambda i: zeros)


def _leaky(x, slope):
    return jnp.where(x >= 0, x, slope * x)


# ----------------------------- Pallas kernels ------------------------------

def _block_kernel(p_ref, x_ref, wl_ref, bl_ref, sr_ref, br_ref,
                  yl_ref, yr_ref, *, slope):
    """Fused early-stage block (input spatial >= 4).

    Left : 3x3/s2/p1 conv as an im2col GEMM (BN scale folded into the bf16
           weight) + bias + LeakyReLU.
    Right: grouped 1x1 conv (per-channel scale, BN folded) + LeakyReLU +
           3x3/s2/p1 max-pool, computed lane-dense (Cin in lanes) once per
           sub-channel j; interleaving to channel order k=c*e+j is a tiny XLA
           transpose+reshape outside the kernel.
    """
    # ------------------------------ left -------------------------------
    yl = jnp.dot(p_ref[...].astype(jnp.bfloat16), wl_ref[...],
                 preferred_element_type=jnp.float32) + bl_ref[...]
    yl_ref[...] = _leaky(yl, slope)

    # ------------------------------ right ------------------------------
    e, _, Ho, Wo, Cin = yr_ref.shape
    _, H, W, _ = x_ref.shape
    x = x_ref[...]                                       # (N, H, W, Cin)
    for j in range(e):                                   # e is tiny & static
        s = sr_ref[j:j + 1, :].reshape(1, 1, 1, Cin)
        b = br_ref[j:j + 1, :].reshape(1, 1, 1, Cin)
        a = _leaky(x * s + b, slope)                     # (N, H, W, Cin)

        # Max pool over H (outer dim): window 3, stride 2, pad 1 (pad rows
        # simply dropped from the window -> implicit -inf padding).
        rows = []
        for oh in range(Ho):
            win = [a[:, r:r + 1] for r in (2 * oh - 1, 2 * oh, 2 * oh + 1)
                   if 0 <= r < H]
            m = win[0]
            for piece in win[1:]:
                m = jnp.maximum(m, piece)
            rows.append(m)
        t = jnp.concatenate(rows, axis=1)                # (N, Ho, W, Cin)

        # Max pool over W: one store per output column (static slices only).
        for ow in range(Wo):
            win = [t[:, :, c:c + 1, :] for c in (2 * ow - 1, 2 * ow, 2 * ow + 1)
                   if 0 <= c < W]
            m = win[0]
            for piece in win[1:]:
                m = jnp.maximum(m, piece)
            yr_ref[j:j + 1, :, :, ow:ow + 1, :] = m[None]


def _tail_kernel(x3p_ref, x3s_ref,
                 w4l_ref, b4l_ref, e4_ref, b4r_ref,
                 w5l_ref, b5l_ref, s5_ref, b5r_ref,
                 w6_ref, b6_ref, w7_ref, b7_ref,
                 x4_ref, x5_ref, out_ref, *, slope, hw4):
    """Fused blocks 4 & 5 (spatial 2x2 -> 1x1 -> 1x1) + avg-pool + fc6/ReLU/fc7.

    The zero im2col taps were already dropped from the weights (4 of 9 taps
    kept at stage 4, 1 of 9 at stage 5), so both "convs" are plain GEMMs; the
    stage-5 max-pool and the 1x1 global average pool are identities.
    """
    n_img = x4_ref.shape[0]
    c4 = x4_ref.shape[1] // 2
    c5 = x5_ref.shape[1] // 2

    # ---- block 4, left: 3x3/s2/p1 conv on a 2x2 input (4 valid taps) ----
    yl4 = jnp.dot(x3p_ref[...].astype(jnp.bfloat16), w4l_ref[...],
                  preferred_element_type=jnp.float32) + b4l_ref[...]
    x4_ref[:, :c4] = _leaky(yl4, slope)

    # ---- block 4, right: grouped 1x1 conv via a sparse (Cin, Cout) expansion
    #      matrix (f32, exact per-channel scale), then 3x3/s2/p1 max-pool on a
    #      2x2 input == max over the 4 spatial rows of each image.
    a4 = jnp.dot(x3s_ref[...], e4_ref[...],
                 preferred_element_type=jnp.float32) + b4r_ref[...]
    a4 = _leaky(a4, slope)                               # (N*4, 2*Cin4)
    for n in range(n_img):
        m = a4[n * hw4:n * hw4 + 1]
        for r in range(1, hw4):
            m = jnp.maximum(m, a4[n * hw4 + r:n * hw4 + r + 1])
        x4_ref[n:n + 1, c4:] = m
    x4 = x4_ref[...]                                     # (N, 768)

    # ---- block 5 (1x1 spatial: conv == centre-tap GEMM, max-pool == id) ----
    yl5 = jnp.dot(x4.astype(jnp.bfloat16), w5l_ref[...],
                  preferred_element_type=jnp.float32) + b5l_ref[...]
    x5_ref[:, :c5] = _leaky(yl5, slope)
    x5_ref[:, c5:] = _leaky(x4 * s5_ref[...] + b5r_ref[...], slope)
    x5 = x5_ref[...]                                     # (N, 1536)

    # ---- head: AdaptiveAvgPool2d((1,1)) on 1x1 == identity, fc6+ReLU+fc7 ----
    h = jnp.dot(x5.astype(jnp.bfloat16), w6_ref[...],
                preferred_element_type=jnp.float32) + b6_ref[...]
    h = jnp.maximum(h, 0.0)
    # TODO(synk): Dropout(p=0.5) is identity here (eval/inference semantics).
    out_ref[...] = jnp.dot(h.astype(jnp.bfloat16), w7_ref[...],
                           preferred_element_type=jnp.float32) + b7_ref[...]


# --------------------------- pallas_call wrappers ---------------------------

def _shifted_strided_slices(xp, Ho, Wo):
    cols = []
    for kh in range(3):
        for kw in range(3):
            cols.append(xp[:, kh:kh + 2 * Ho - 1:2, kw:kw + 2 * Wo - 1:2, :])
    return cols


def im2col_3x3_s2(x):
    """NHWC, kernel 3, stride 2, pad 1 -> (N*Ho*Wo, 9*C) patch matrix (XLA)."""
    N, H, W, C = x.shape
    Ho = (H - 1) // 2 + 1
    Wo = (W - 1) // 2 + 1
    xp = jnp.pad(x, ((0, 0), (1, 1), (1, 1), (0, 0)))
    patches = jnp.stack(_shifted_strided_slices(xp, Ho, Wo), axis=3)
    return patches.reshape(N * Ho * Wo, 9 * C), (Ho, Wo)


def binocular_block(x, p):
    """One early-stage (conv_left || conv_right + maxpool) -> concat block."""
    N, H, W, Cin = x.shape
    e = p['s_right'].shape[0]
    Cout = p['w_left'].shape[1]
    patches, (Ho, Wo) = im2col_3x3_s2(x)
    M = patches.shape[0]
    yl2d, yr5d = pl.pallas_call(
        functools.partial(_block_kernel, slope=LEAKY),
        out_shape=(jax.ShapeDtypeStruct((M, Cout), jnp.float32),
                   jax.ShapeDtypeStruct((e, N, Ho, Wo, Cin), jnp.float32)),
        grid=(1,),
        in_specs=[_full_spec(patches.shape), _full_spec(x.shape),
                  _full_spec(p['w_left'].shape), _full_spec(p['b_left'].shape),
                  _full_spec(p['s_right'].shape), _full_spec(p['b_right'].shape)],
        out_specs=(_full_spec((M, Cout)), _full_spec((e, N, Ho, Wo, Cin))),
        compiler_params=_compiler_params(),
    )(patches, x, p['w_left'], p['b_left'], p['s_right'], p['b_right'])
    yl = yl2d.reshape(N, Ho, Wo, Cout)
    # (e, N, Ho, Wo, Cin) -> channel order k = c*e + j (matches grouped conv).
    yr = jnp.transpose(yr5d, (1, 2, 3, 4, 0)).reshape(N, Ho, Wo, Cin * e)
    return jnp.concatenate([yl, yr], axis=-1)            # (N, Ho, Wo, 2*Cout)


def tail_forward(x3, tp):
    """Fused blocks 4+5 + avg-pool + fc6/ReLU/fc7 in one pallas_call."""
    N, H4, W4, Cin4 = x3.shape
    hw4 = H4 * W4
    x3_p = x3.reshape(N, hw4 * Cin4)     # row-major pixels == valid-tap patches
    x3_s = x3.reshape(N * hw4, Cin4)     # per-pixel rows for the right branch
    c4 = tp['w4_left'].shape[1]
    c5 = tp['w5_left'].shape[1]
    nc = tp['w7'].shape[1]
    args = (x3_p, x3_s,
            tp['w4_left'], tp['b4_left'], tp['e4_right'], tp['b4_right'],
            tp['w5_left'], tp['b5_left'], tp['s5_right'], tp['b5_right'],
            tp['w6'], tp['b6'], tp['w7'], tp['b7'])
    x4_2d, x5_2d, logits = pl.pallas_call(
        functools.partial(_tail_kernel, slope=LEAKY, hw4=hw4),
        out_shape=(jax.ShapeDtypeStruct((N, 2 * c4), jnp.float32),
                   jax.ShapeDtypeStruct((N, 2 * c5), jnp.float32),
                   jax.ShapeDtypeStruct((N, nc), jnp.float32)),
        grid=(1,),
        in_specs=[_full_spec(a.shape) for a in args],
        out_specs=(_full_spec((N, 2 * c4)), _full_spec((N, 2 * c5)),
                   _full_spec((N, nc))),
        compiler_params=_compiler_params(),
    )(*args)
    x4 = x4_2d.reshape(N, 1, 1, 2 * c4)
    x5 = x5_2d.reshape(N, 1, 1, 2 * c5)
    return logits, x4, x5


# ------------------------------- JAX glue -----------------------------------

def fold_bn(bn, eps=1e-5):
    scale = bn['gamma'] / jnp.sqrt(bn['var'] + eps)
    bias = bn['beta'] - bn['mean'] * scale
    return scale, bias


def prepare_params(raw, input_hw=16):
    """One-time weight prep: fold BN, flatten conv weights for im2col GEMMs,
    drop zero-padding im2col taps for the 2x2 / 1x1 stages, cast matmul
    weights to bf16."""
    blocks = []
    tail = {}
    H = input_hw
    for p in raw['blocks']:
        cout, cin, _, _ = p['wl'].shape
        e = p['expansion']
        # Left branch: BN scale folded into the (9*cin, cout) GEMM weight.
        sl, bl = fold_bn(p['bn_l'])
        wmat = jnp.transpose(p['wl'], (2, 3, 1, 0)).reshape(9 * cin, cout)
        wmat = wmat * sl[None, :]
        bl = bl.reshape(1, cout)
        # Right branch: depthwise weight * BN scale -> per-channel affine.
        sr, br = fold_bn(p['bn_r'])
        s_full = p['wr'].reshape(cout) * sr
        b_full = br
        if H >= 4:                 # early stages: all 9 taps touch real pixels
            blocks.append(dict(
                w_left=wmat.astype(jnp.bfloat16), b_left=bl,
                s_right=s_full.reshape(cin, e).T,        # (e, cin)
                b_right=b_full.reshape(cin, e).T))
        elif H == 2:               # stage 4: only (kh,kw) in {1,2}x{1,2} valid
            taps = (4, 5, 7, 8)                          # kh*3+kw, 2x2 row-major
            w4 = jnp.concatenate([wmat[t * cin:(t + 1) * cin] for t in taps],
                                 axis=0)
            expand = (jnp.arange(cout)[None, :] // e ==
                      jnp.arange(cin)[:, None]).astype(jnp.float32)
            tail.update(w4_left=w4.astype(jnp.bfloat16), b4_left=bl,
                        e4_right=expand * s_full[None, :],
                        b4_right=b_full.reshape(1, cout))
        else:                      # stage 5 (1x1): only the centre tap valid
            tail.update(w5_left=wmat[4 * cin:5 * cin].astype(jnp.bfloat16),
                        b5_left=bl,
                        s5_right=s_full.reshape(1, cout),
                        b5_right=b_full.reshape(1, cout))
        H = (H - 1) // 2 + 1
    tail.update(w6=raw['fc6_w'].T.astype(jnp.bfloat16),
                b6=raw['fc6_b'].reshape(1, -1),
                w7=raw['fc7_w'].T.astype(jnp.bfloat16),
                b7=raw['fc7_b'].reshape(1, -1))
    return dict(blocks=blocks, tail=tail)


def binocular_net_forward(x, params):
    """x: (N, H, W, 3) NHWC float32. Returns (logits, [x3, x4, x5] in NHWC)."""
    h = x
    for blk in params['blocks']:       # blocks 1..3 (one pallas_call each)
        h = binocular_block(h, blk)
    x3 = h                             # (N, 2, 2, 192)
    logits, x4, x5 = tail_forward(x3, params['tail'])   # blocks 4+5+head fused
    return logits, [x3, x4, x5]


# ------------------------- deterministic parameters -------------------------

def _init_bn(keys, c):
    return dict(gamma=1.0 + 0.1 * jax.random.normal(keys[0], (c,), jnp.float32),
                beta=0.05 * jax.random.normal(keys[1], (c,), jnp.float32),
                mean=0.05 * jax.random.normal(keys[2], (c,), jnp.float32),
                var=0.5 + jax.random.uniform(keys[3], (c,), jnp.float32))


def init_params(key, num_classes):
    # (Cin, expansion) per stage, matching the PyTorch __init__.
    stages = [(3, 2), (12, 2), (48, 2), (192, 2), (768, 1)]
    blocks = []
    for cin, e in stages:
        cout = cin * e
        key, *ks = jax.random.split(key, 11)
        blocks.append(dict(
            expansion=e,
            wl=0.1 * jax.random.normal(ks[0], (cout, cin, 3, 3), jnp.float32),
            bn_l=_init_bn(ks[1:5], cout),
            wr=1.0 + 0.2 * jax.random.normal(ks[5], (cout, 1, 1, 1), jnp.float32),
            bn_r=_init_bn(ks[6:10], cout),
        ))
    key, k6w, k6b, k7w, k7b = jax.random.split(key, 5)
    return dict(
        blocks=blocks,
        fc6_w=0.02 * jax.random.normal(k6w, (640, 1536), jnp.float32),
        fc6_b=0.02 * jax.random.normal(k6b, (640,), jnp.float32),
        fc7_w=0.02 * jax.random.normal(k7w, (num_classes, 640), jnp.float32),
        fc7_b=0.02 * jax.random.normal(k7b, (num_classes,), jnp.float32),
    )


if __name__ == "__main__":
    key = jax.random.PRNGKey(0)
    pkey, xkey = jax.random.split(key)
    num_classes = 10
    raw_params = init_params(pkey, num_classes)
    params = prepare_params(raw_params, input_hw=16)  # one-time weight prep

    # NHWC input; equivalent PyTorch NCHW input shape is (2, 3, 16, 16).
    x = jax.random.normal(xkey, (2, 16, 16, 3), jnp.float32)

    fwd = jax.jit(binocular_net_forward)
    logits, feature_list = fwd(x, params)
    logits = jax.block_until_ready(logits)
    feature_list = [jax.block_until_ready(f) for f in feature_list]

    assert logits.shape == (2, num_classes)
    assert feature_list[0].shape == (2, 2, 2, 192)    # x3 (NHWC)
    assert feature_list[1].shape == (2, 1, 1, 768)    # x4 (NHWC)
    assert feature_list[2].shape == (2, 1, 1, 1536)   # x5 (NHWC)
    print("KERNEL_OK")
</pallas_src>

<mosaic_0001>
module attributes {stable_mosaic.version = 11 : i64} {
  func.func @_block_kernel(%arg0: i32, %arg1: memref<128x27xf32, #tpu.memory_space<vmem>>, %arg2: memref<2x16x16x3xf32, #tpu.memory_space<vmem>>, %arg3: memref<27x6xbf16, #tpu.memory_space<vmem>>, %arg4: memref<1x6xf32, #tpu.memory_space<vmem>>, %arg5: memref<2x3xf32, #tpu.memory_space<vmem>>, %arg6: memref<2x3xf32, #tpu.memory_space<vmem>>, %arg7: memref<128x6xf32, #tpu.memory_space<vmem>>, %arg8: memref<2x2x8x8x3xf32, #tpu.memory_space<vmem>>) attributes {dimension_semantics = [#tpu.dimension_semantics<arbitrary>], iteration_bounds = array<i64: 1>, scalar_prefetch = 0 : i64, scratch_operands = 0 : i64, tpu.core_type = #tpu.core_type<tc>, window_params = [{pipeline_mode = #tpu.pipeline_mode<synchronous>, transform_indices = @transform_0, window_bounds = array<i64: 128, 27>}, {pipeline_mode = #tpu.pipeline_mode<synchronous>, transform_indices = @transform_1, window_bounds = array<i64: 2, 16, 16, 3>}, {pipeline_mode = #tpu.pipeline_mode<synchronous>, transform_indices = @transform_2, window_bounds = array<i64: 27, 6>}, {pipeline_mode = #tpu.pipeline_mode<synchronous>, transform_indices = @transform_3, window_bounds = array<i64: 1, 6>}, {pipeline_mode = #tpu.pipeline_mode<synchronous>, transform_indices = @transform_4, window_bounds = array<i64: 2, 3>}, {pipeline_mode = #tpu.pipeline_mode<synchronous>, transform_indices = @transform_5, window_bounds = array<i64: 2, 3>}, {pipeline_mode = #tpu.pipeline_mode<synchronous>, transform_indices = @transform_6, window_bounds = array<i64: 128, 6>}, {pipeline_mode = #tpu.pipeline_mode<synchronous>, transform_indices = @transform_7, window_bounds = array<i64: 2, 2, 8, 8, 3>}]} {
    %c0 = arith.constant 0 : index
    %c0_0 = arith.constant 0 : index
    %0 = vector.load %arg1[%c0, %c0_0] : memref<128x27xf32, #tpu.memory_space<vmem>>, vector<128x27xf32>
    %1 = arith.truncf %0 : vector<128x27xf32> to vector<128x27xbf16>
    %c0_1 = arith.constant 0 : index
    %c0_2 = arith.constant 0 : index
    %2 = vector.load %arg3[%c0_1, %c0_2] : memref<27x6xbf16, #tpu.memory_space<vmem>>, vector<27x6xbf16>
    %cst = arith.constant dense<0.000000e+00> : vector<128x6xf32>
    %3 = tpu.matmul %1, %2, %cst {dimension_numbers = #tpu.dot_dimension_numbers<[1], [0], [0], [1], [0, 0, 1, 1], [], []>} : vector<128x27xbf16>, vector<27x6xbf16>, vector<128x6xf32> -> vector<128x6xf32>
    %c0_3 = arith.constant 0 : index
    %c0_4 = arith.constant 0 : index
    %4 = vector.load %arg4[%c0_3, %c0_4] : memref<1x6xf32, #tpu.memory_space<vmem>>, vector<1x6xf32>
    %5 = vector.broadcast %4 : vector<1x6xf32> to vector<128x6xf32>
    %6 = arith.addf %3, %5 : vector<128x6xf32>
    %cst_5 = arith.constant 0.000000e+00 : f32
    %7 = vector.broadcast %cst_5 : f32 to vector<128x6xf32>
    %8 = arith.cmpf oge, %6, %7 : vector<128x6xf32>
    %cst_6 = arith.constant 1.000000e-01 : f32
    %9 = vector.broadcast %cst_6 : f32 to vector<128x6xf32>
    %10 = arith.mulf %9, %6 : vector<128x6xf32>
    %11 = arith.select %8, %6, %10 : vector<128x6xi1>, vector<128x6xf32>
    %c0_7 = arith.constant 0 : index
    %c0_8 = arith.constant 0 : index
    %12 = vector.load %arg7[%c0_7, %c0_8] : memref<128x6xf32, #tpu.memory_space<vmem>>, vector<128x6xf32>
    tpu.vector_store %arg7[%c0_7, %c0_8], %11 {strides = array<i32>} : memref<128x6xf32, #tpu.memory_space<vmem>>, vector<128x6xf32>,
    %c0_9 = arith.constant 0 : index
    %c0_10 = arith.constant 0 : index
    %c0_11 = arith.constant 0 : index
    %c0_12 = arith.constant 0 : index
    %13 = vector.load %arg2[%c0_9, %c0_10, %c0_11, %c0_12] : memref<2x16x16x3xf32, #tpu.memory_space<vmem>>, vector<2x16x16x3xf32>
    %c0_13 = arith.constant 0 : index
    %c0_14 = arith.constant 0 : index
    %14 = vector.load %arg5[%c0_13, %c0_14] : memref<2x3xf32, #tpu.memory_space<vmem>>, vector<1x3xf32>
    %15 = vector.shape_cast %14 : vector<1x3xf32> to vector<1x1x1x3xf32>
    %c0_15 = arith.constant 0 : index
    %c0_16 = arith.constant 0 : index
    %16 = vector.load %arg6[%c0_15, %c0_16] : memref<2x3xf32, #tpu.memory_space<vmem>>, vector<1x3xf32>
    %17 = vector.shape_cast %16 : vector<1x3xf32> to vector<1x1x1x3xf32>
    %18 = vector.broadcast %15 : vector<1x1x1x3xf32> to vector<2x16x16x3xf32>
    %19 = arith.mulf %13, %18 : vector<2x16x16x3xf32>
    %20 = vector.broadcast %17 : vector<1x1x1x3xf32> to vector<2x16x16x3xf32>
    %21 = arith.addf %19, %20 : vector<2x16x16x3xf32>
    %cst_17 = arith.constant 0.000000e+00 : f32
    %22 = vector.broadcast %cst_17 : f32 to vector<2x16x16x3xf32>
    %23 = arith.cmpf oge, %21, %22 : vector<2x16x16x3xf32>
    %cst_18 = arith.constant 1.000000e-01 : f32
    %24 = vector.broadcast %cst_18 : f32 to vector<2x16x16x3xf32>
    %25 = arith.mulf %24, %21 : vector<2x16x16x3xf32>
    %26 = arith.select %23, %21, %25 : vector<2x16x16x3xi1>, vector<2x16x16x3xf32>
    %27 = vector.extract_strided_slice %26 {offsets = [0, 0, 0, 0], sizes = [2, 1, 16, 3], strides = [1, 1, 1, 1]} : vector<2x16x16x3xf32> to vector<2x1x16x3xf32>
    %28 = vector.extract_strided_slice %26 {offsets = [0, 1, 0, 0], sizes = [2, 1, 16, 3], strides = [1, 1, 1, 1]} : vector<2x16x16x3xf32> to vector<2x1x16x3xf32>
    %29 = arith.maximumf %27, %28 : vector<2x1x16x3xf32>
    %30 = vector.extract_strided_slice %26 {offsets = [0, 1, 0, 0], sizes = [2, 1, 16, 3], strides = [1, 1, 1, 1]} : vector<2x16x16x3xf32> to vector<2x1x16x3xf32>
    %31 = vector.extract_strided_slice %26 {offsets = [0, 2, 0, 0], sizes = [2, 1, 16, 3], strides = [1, 1, 1, 1]} : vector<2x16x16x3xf32> to vector<2x1x16x3xf32>
    %32 = vector.extract_strided_slice %26 {offsets = [0, 3, 0, 0], sizes = [2, 1, 16, 3], strides = [1, 1, 1, 1]} : vector<2x16x16x3xf32> to vector<2x1x16x3xf32>
    %33 = arith.maximumf %30, %31 : vector<2x1x16x3xf32>
    %34 = arith.maximumf %33, %32 : vector<2x1x16x3xf32>
    %35 = vector.extract_strided_slice %26 {offsets = [0, 3, 0, 0], sizes = [2, 1, 16, 3], strides = [1, 1, 1, 1]} : vector<2x16x16x3xf32> to vector<2x1x16x3xf32>
    %36 = vector.extract_strided_slice %26 {offsets = [0, 4, 0, 0], sizes = [2, 1, 16, 3], strides = [1, 1, 1, 1]} : vector<2x16x16x3xf32> to vector<2x1x16x3xf32>
    %37 = vector.extract_strided_slice %26 {offsets = [0, 5, 0, 0], sizes = [2, 1, 16, 3], strides = [1, 1, 1, 1]} : vector<2x16x16x3xf32> to vector<2x1x16x3xf32>
    %38 = arith.maximumf %35, %36 : vector<2x1x16x3xf32>
    %39 = arith.maximumf %38, %37 : vector<2x1x16x3xf32>
    %40 = vector.extract_strided_slice %26 {offsets = [0, 5, 0, 0], sizes = [2, 1, 16, 3], strides = [1, 1, 1, 1]} : vector<2x16x16x3xf32> to vector<2x1x16x3xf32>
    %41 = vector.extract_strided_slice %26 {offsets = [0, 6, 0, 0], sizes = [2, 1, 16, 3], strides = [1, 1, 1, 1]} : vector<2x16x16x3xf32> to vector<2x1x16x3xf32>
    %42 = vector.extract_strided_slice %26 {offsets = [0, 7, 0, 0], sizes = [2, 1, 16, 3], strides = [1, 1, 1, 1]} : vector<2x16x16x3xf32> to vector<2x1x16x3xf32>
    %43 = arith.maximumf %40, %41 : vector<2x1x16x3xf32>
    %44 = arith.maximumf %43, %42 : vector<2x1x16x3xf32>
    %45 = vector.extract_strided_slice %26 {offsets = [0, 7, 0, 0], sizes = [2, 1, 16, 3], strides = [1, 1, 1, 1]} : vector<2x16x16x3xf32> to vector<2x1x16x3xf32>
    %46 = vector.extract_strided_slice %26 {offsets = [0, 8, 0, 0], sizes = [2, 1, 16, 3], strides = [1, 1, 1, 1]} : vector<2x16x16x3xf32> to vector<2x1x16x3xf32>
    %47 = vector.extract_strided_slice %26 {offsets = [0, 9, 0, 0], sizes = [2, 1, 16, 3], strides = [1, 1, 1, 1]} : vector<2x16x16x3xf32> to vector<2x1x16x3xf32>
    %48 = arith.maximumf %45, %46 : vector<2x1x16x3xf32>
    %49 = arith.maximumf %48, %47 : vector<2x1x16x3xf32>
    %50 = vector.extract_strided_slice %26 {offsets = [0, 9, 0, 0], sizes = [2, 1, 16, 3], strides = [1, 1, 1, 1]} : vector<2x16x16x3xf32> to vector<2x1x16x3xf32>
    %51 = vector.extract_strided_slice %26 {offsets = [0, 10, 0, 0], sizes = [2, 1, 16, 3], strides = [1, 1, 1, 1]} : vector<2x16x16x3xf32> to vector<2x1x16x3xf32>
    %52 = vector.extract_strided_slice %26 {offsets = [0, 11, 0, 0], sizes = [2, 1, 16, 3], strides = [1, 1, 1, 1]} : vector<2x16x16x3xf32> to vector<2x1x16x3xf32>
    %53 = arith.maximumf %50, %51 : vector<2x1x16x3xf32>
    %54 = arith.maximumf %53, %52 : vector<2x1x16x3xf32>
    %55 = vector.extract_strided_slice %26 {offsets = [0, 11, 0, 0], sizes = [2, 1, 16, 3], strides = [1, 1, 1, 1]} : vector<2x16x16x3xf32> to vector<2x1x16x3xf32>
    %56 = vector.extract_strided_slice %26 {offsets = [0, 12, 0, 0], sizes = [2, 1, 16, 3], strides = [1, 1, 1, 1]} : vector<2x16x16x3xf32> to vector<2x1x16x3xf32>
    %57 = vector.extract_strided_slice %26 {offsets = [0, 13, 0, 0], sizes = [2, 1, 16, 3], strides = [1, 1, 1, 1]} : vector<2x16x16x3xf32> to vector<2x1x16x3xf32>
    %58 = arith.maximumf %55, %56 : vector<2x1x16x3xf32>
    %59 = arith.maximumf %58, %57 : vector<2x1x16x3xf32>
    %60 = vector.extract_strided_slice %26 {offsets = [0, 13, 0, 0], sizes = [2, 1, 16, 3], strides = [1, 1, 1, 1]} : vector<2x16x16x3xf32> to vector<2x1x16x3xf32>
    %61 = vector.extract_strided_slice %26 {offsets = [0, 14, 0, 0], sizes = [2, 1, 16, 3], strides = [1, 1, 1, 1]} : vector<2x16x16x3xf32> to vector<2x1x16x3xf32>
    %62 = vector.extract_strided_slice %26 {offsets = [0, 15, 0, 0], sizes = [2, 1, 16, 3], strides = [1, 1, 1, 1]} : vector<2x16x16x3xf32> to vector<2x1x16x3xf32>
    %63 = arith.maximumf %60, %61 : vector<2x1x16x3xf32>
    %64 = arith.maximumf %63, %62 : vector<2x1x16x3xf32>
    %65 = tpu.concatenate %29, %34, %39, %44, %49, %54, %59, %64 in 1 : vector<2x1x16x3xf32>, vector<2x1x16x3xf32>, vector<2x1x16x3xf32>, vector<2x1x16x3xf32>, vector<2x1x16x3xf32>, vector<2x1x16x3xf32>, vector<2x1x16x3xf32>, vector<2x1x16x3xf32> -> vector<2x8x16x3xf32>
    %66 = vector.extract_strided_slice %65 {offsets = [0, 0, 0, 0], sizes = [2, 8, 1, 3], strides = [1, 1, 1, 1]} : vector<2x8x16x3xf32> to vector<2x8x1x3xf32>
    %67 = vector.extract_strided_slice %65 {offsets = [0, 0, 1, 0], sizes = [2, 8, 1, 3], strides = [1, 1, 1, 1]} : vector<2x8x16x3xf32> to vector<2x8x1x3xf32>
    %68 = arith.maximumf %66, %67 : vector<2x8x1x3xf32>
    %69 = vector.shape_cast %68 : vector<2x8x1x3xf32> to vector<1x2x8x1x3xf32>
    %c0_19 = arith.constant 0 : index
    %c0_20 = arith.constant 0 : index
    %c0_21 = arith.constant 0 : index
    %c0_22 = arith.constant 0 : index
    %c0_23 = arith.constant 0 : index
    %70 = vector.load %arg8[%c0_19, %c0_20, %c0_21, %c0_22, %c0_23] : memref<2x2x8x8x3xf32, #tpu.memory_space<vmem>>, vector<1x2x8x1x3xf32>
    tpu.vector_store %arg8[%c0_19, %c0_20, %c0_21, %c0_22, %c0_23], %69 {strides = array<i32>} : memref<2x2x8x8x3xf32, #tpu.memory_space<vmem>>, vector<1x2x8x1x3xf32>,
    %71 = vector.extract_strided_slice %65 {offsets = [0, 0, 1, 0], sizes = [2, 8, 1, 3], strides = [1, 1, 1, 1]} : vector<2x8x16x3xf32> to vector<2x8x1x3xf32>
    %72 = vector.extract_strided_slice %65 {offsets = [0, 0, 2, 0], sizes = [2, 8, 1, 3], strides = [1, 1, 1, 1]} : vector<2x8x16x3xf32> to vector<2x8x1x3xf32>
    %73 = vector.extract_strided_slice %65 {offsets = [0, 0, 3, 0], sizes = [2, 8, 1, 3], strides = [1, 1, 1, 1]} : vector<2x8x16x3xf32> to vector<2x8x1x3xf32>
    %74 = arith.maximumf %71, %72 : vector<2x8x1x3xf32>
    %75 = arith.maximumf %74, %73 : vector<2x8x1x3xf32>
    %76 = vector.shape_cast %75 : vector<2x8x1x3xf32> to vector<1x2x8x1x3xf32>
    %c0_24 = arith.constant 0 : index
    %c0_25 = arith.constant 0 : index
    %c0_26 = arith.constant 0 : index
    %c1 = arith.constant 1 : index
    %c0_27 = arith.constant 0 : index
    %77 = vector.load %arg8[%c0_24, %c0_25, %c0_26, %c1, %c0_27] : memref<2x2x8x8x3xf32, #tpu.memory_space<vmem>>, vector<1x2x8x1x3xf32>
    tpu.vector_store %arg8[%c0_24, %c0_25, %c0_26, %c1, %c0_27], %76 {strides = array<i32>} : memref<2x2x8x8x3xf32, #tpu.memory_space<vmem>>, vector<1x2x8x1x3xf32>,
    %78 = vector.extract_strided_slice %65 {offsets = [0, 0, 3, 0], sizes = [2, 8, 1, 3], strides = [1, 1, 1, 1]} : vector<2x8x16x3xf32> to vector<2x8x1x3xf32>
    %79 = vector.extract_strided_slice %65 {offsets = [0, 0, 4, 0], sizes = [2, 8, 1, 3], strides = [1, 1, 1, 1]} : vector<2x8x16x3xf32> to vector<2x8x1x3xf32>
    %80 = vector.extract_strided_slice %65 {offsets = [0, 0, 5, 0], sizes = [2, 8, 1, 3], strides = [1, 1, 1, 1]} : vector<2x8x16x3xf32> to vector<2x8x1x3xf32>
    %81 = arith.maximumf %78, %79 : vector<2x8x1x3xf32>
    %82 = arith.maximumf %81, %80 : vector<2x8x1x3xf32>
    %83 = vector.shape_cast %82 : vector<2x8x1x3xf32> to vector<1x2x8x1x3xf32>
    %c0_28 = arith.constant 0 : index
    %c0_29 = arith.constant 0 : index
    %c0_30 = arith.constant 0 : index
    %c2 = arith.constant 2 : index
    %c0_31 = arith.constant 0 : index
    %84 = vector.load %arg8[%c0_28, %c0_29, %c0_30, %c2, %c0_31] : memref<2x2x8x8x3xf32, #tpu.memory_space<vmem>>, vector<1x2x8x1x3xf32>
    tpu.vector_store %arg8[%c0_28, %c0_29, %c0_30, %c2, %c0_31], %83 {strides = array<i32>} : memref<2x2x8x8x3xf32, #tpu.memory_space<vmem>>, vector<1x2x8x1x3xf32>,
    %85 = vector.extract_strided_slice %65 {offsets = [0, 0, 5, 0], sizes = [2, 8, 1, 3], strides = [1, 1, 1, 1]} : vector<2x8x16x3xf32> to vector<2x8x1x3xf32>
    %86 = vector.extract_strided_slice %65 {offsets = [0, 0, 6, 0], sizes = [2, 8, 1, 3], strides = [1, 1, 1, 1]} : vector<2x8x16x3xf32> to vector<2x8x1x3xf32>
    %87 = vector.extract_strided_slice %65 {offsets = [0, 0, 7, 0], sizes = [2, 8, 1, 3], strides = [1, 1, 1, 1]} : vector<2x8x16x3xf32> to vector<2x8x1x3xf32>
    %88 = arith.maximumf %85, %86 : vector<2x8x1x3xf32>
    %89 = arith.maximumf %88, %87 : vector<2x8x1x3xf32>
    %90 = vector.shape_cast %89 : vector<2x8x1x3xf32> to vector<1x2x8x1x3xf32>
    %c0_32 = arith.constant 0 : index
    %c0_33 = arith.constant 0 : index
    %c0_34 = arith.constant 0 : index
    %c3 = arith.constant 3 : index
    %c0_35 = arith.constant 0 : index
    %91 = vector.load %arg8[%c0_32, %c0_33, %c0_34, %c3, %c0_35] : memref<2x2x8x8x3xf32, #tpu.memory_space<vmem>>, vector<1x2x8x1x3xf32>
    tpu.vector_store %arg8[%c0_32, %c0_33, %c0_34, %c3, %c0_35], %90 {strides = array<i32>} : memref<2x2x8x8x3xf32, #tpu.memory_space<vmem>>, vector<1x2x8x1x3xf32>,
    %92 = vector.extract_strided_slice %65 {offsets = [0, 0, 7, 0], sizes = [2, 8, 1, 3], strides = [1, 1, 1, 1]} : vector<2x8x16x3xf32> to vector<2x8x1x3xf32>
    %93 = vector.extract_strided_slice %65 {offsets = [0, 0, 8, 0], sizes = [2, 8, 1, 3], strides = [1, 1, 1, 1]} : vector<2x8x16x3xf32> to vector<2x8x1x3xf32>
    %94 = vector.extract_strided_slice %65 {offsets = [0, 0, 9, 0], sizes = [2, 8, 1, 3], strides = [1, 1, 1, 1]} : vector<2x8x16x3xf32> to vector<2x8x1x3xf32>
    %95 = arith.maximumf %92, %93 : vector<2x8x1x3xf32>
    %96 = arith.maximumf %95, %94 : vector<2x8x1x3xf32>
    %97 = vector.shape_cast %96 : vector<2x8x1x3xf32> to vector<1x2x8x1x3xf32>
    %c0_36 = arith.constant 0 : index
    %c0_37 = arith.constant 0 : index
    %c0_38 = arith.constant 0 : index
    %c4 = arith.constant 4 : index
    %c0_39 = arith.constant 0 : index
    %98 = vector.load %arg8[%c0_36, %c0_37, %c0_38, %c4, %c0_39] : memref<2x2x8x8x3xf32, #tpu.memory_space<vmem>>, vector<1x2x8x1x3xf32>
    tpu.vector_store %arg8[%c0_36, %c0_37, %c0_38, %c4, %c0_39], %97 {strides = array<i32>} : memref<2x2x8x8x3xf32, #tpu.memory_space<vmem>>, vector<1x2x8x1x3xf32>,
    %99 = vector.extract_strided_slice %65 {offsets = [0, 0, 9, 0], sizes = [2, 8, 1, 3], strides = [1, 1, 1, 1]} : vector<2x8x16x3xf32> to vector<2x8x1x3xf32>
    %100 = vector.extract_strided_slice %65 {offsets = [0, 0, 10, 0], sizes = [2, 8, 1, 3], strides = [1, 1, 1, 1]} : vector<2x8x16x3xf32> to vector<2x8x1x3xf32>
    %101 = vector.extract_strided_slice %65 {offsets = [0, 0, 11, 0], sizes = [2, 8, 1, 3], strides = [1, 1, 1, 1]} : vector<2x8x16x3xf32> to vector<2x8x1x3xf32>
    %102 = arith.maximumf %99, %100 : vector<2x8x1x3xf32>
    %103 = arith.maximumf %102, %101 : vector<2x8x1x3xf32>
    %104 = vector.shape_cast %103 : vector<2x8x1x3xf32> to vector<1x2x8x1x3xf32>
    %c0_40 = arith.constant 0 : index
    %c0_41 = arith.constant 0 : index
    %c0_42 = arith.constant 0 : index
    %c5 = arith.constant 5 : index
    %c0_43 = arith.constant 0 : index
    %105 = vector.load %arg8[%c0_40, %c0_41, %c0_42, %c5, %c0_43] : memref<2x2x8x8x3xf32, #tpu.memory_space<vmem>>, vector<1x2x8x1x3xf32>
    tpu.vector_store %arg8[%c0_40, %c0_41, %c0_42, %c5, %c0_43], %104 {strides = array<i32>} : memref<2x2x8x8x3xf32, #tpu.memory_space<vmem>>, vector<1x2x8x1x3xf32>,
    %106 = vector.extract_strided_slice %65 {offsets = [0, 0, 11, 0], sizes = [2, 8, 1, 3], strides = [1, 1, 1, 1]} : vector<2x8x16x3xf32> to vector<2x8x1x3xf32>
    %107 = vector.extract_strided_slice %65 {offsets = [0, 0, 12, 0], sizes = [2, 8, 1, 3], strides = [1, 1, 1, 1]} : vector<2x8x16x3xf32> to vector<2x8x1x3xf32>
    %108 = vector.extract_strided_slice %65 {offsets = [0, 0, 13, 0], sizes = [2, 8, 1, 3], strides = [1, 1, 1, 1]} : vector<2x8x16x3xf32> to vector<2x8x1x3xf32>
    %109 = arith.maximumf %106, %107 : vector<2x8x1x3xf32>
    %110 = arith.maximumf %109, %108 : vector<2x8x1x3xf32>
    %111 = vector.shape_cast %110 : vector<2x8x1x3xf32> to vector<1x2x8x1x3xf32>
    %c0_44 = arith.constant 0 : index
    %c0_45 = arith.constant 0 : index
    %c0_46 = arith.constant 0 : index
    %c6 = arith.constant 6 : index
    %c0_47 = arith.constant 0 : index
    %112 = vector.load %arg8[%c0_44, %c0_45, %c0_46, %c6, %c0_47] : memref<2x2x8x8x3xf32, #tpu.memory_space<vmem>>, vector<1x2x8x1x3xf32>
    tpu.vector_store %arg8[%c0_44, %c0_45, %c0_46, %c6, %c0_47], %111 {strides = array<i32>} : memref<2x2x8x8x3xf32, #tpu.memory_space<vmem>>, vector<1x2x8x1x3xf32>,
    %113 = vector.extract_strided_slice %65 {offsets = [0, 0, 13, 0], sizes = [2, 8, 1, 3], strides = [1, 1, 1, 1]} : vector<2x8x16x3xf32> to vector<2x8x1x3xf32>
    %114 = vector.extract_strided_slice %65 {offsets = [0, 0, 14, 0], sizes = [2, 8, 1, 3], strides = [1, 1, 1, 1]} : vector<2x8x16x3xf32> to vector<2x8x1x3xf32>
    %115 = vector.extract_strided_slice %65 {offsets = [0, 0, 15, 0], sizes = [2, 8, 1, 3], strides = [1, 1, 1, 1]} : vector<2x8x16x3xf32> to vector<2x8x1x3xf32>
    %116 = arith.maximumf %113, %114 : vector<2x8x1x3xf32>
    %117 = arith.maximumf %116, %115 : vector<2x8x1x3xf32>
    %118 = vector.shape_cast %117 : vector<2x8x1x3xf32> to vector<1x2x8x1x3xf32>
    %c0_48 = arith.constant 0 : index
    %c0_49 = arith.constant 0 : index
    %c0_50 = arith.constant 0 : index
    %c7 = arith.constant 7 : index
    %c0_51 = arith.constant 0 : index
    %119 = vector.load %arg8[%c0_48, %c0_49, %c0_50, %c7, %c0_51] : memref<2x2x8x8x3xf32, #tpu.memory_space<vmem>>, vector<1x2x8x1x3xf32>
    tpu.vector_store %arg8[%c0_48, %c0_49, %c0_50, %c7, %c0_51], %118 {strides = array<i32>} : memref<2x2x8x8x3xf32, #tpu.memory_space<vmem>>, vector<1x2x8x1x3xf32>,
    %c1_52 = arith.constant 1 : index
    %c0_53 = arith.constant 0 : index
    %120 = vector.load %arg5[%c1_52, %c0_53] : memref<2x3xf32, #tpu.memory_space<vmem>>, vector<1x3xf32>
    %121 = vector.shape_cast %120 : vector<1x3xf32> to vector<1x1x1x3xf32>
    %c1_54 = arith.constant 1 : index
    %c0_55 = arith.constant 0 : index
    %122 = vector.load %arg6[%c1_54, %c0_55] : memref<2x3xf32, #tpu.memory_space<vmem>>, vector<1x3xf32>
    %123 = vector.shape_cast %122 : vector<1x3xf32> to vector<1x1x1x3xf32>
    %124 = vector.broadcast %121 : vector<1x1x1x3xf32> to vector<2x16x16x3xf32>
    %125 = arith.mulf %13, %124 : vector<2x16x16x3xf32>
    %126 = vector.broadcast %123 : vector<1x1x1x3xf32> to vector<2x16x16x3xf32>
    %127 = arith.addf %125, %126 : vector<2x16x16x3xf32>
    %cst_56 = arith.constant 0.000000e+00 : f32
    %128 = vector.broadcast %cst_56 : f32 to vector<2x16x16x3xf32>
    %129 = arith.cmpf oge, %127, %128 : vector<2x16x16x3xf32>
    %cst_57 = arith.constant 1.000000e-01 : f32
    %130 = vector.broadcast %cst_57 : f32 to vector<2x16x16x3xf32>
    %131 = arith.mulf %130, %127 : vector<2x16x16x3xf32>
    %132 = arith.select %129, %127, %131 : vector<2x16x16x3xi1>, vector<2x16x16x3xf32>
    %133 = vector.extract_strided_slice %132 {offsets = [0, 0, 0, 0], sizes = [2, 1, 16, 3], strides = [1, 1, 1, 1]} : vector<2x16x16x3xf32> to vector<2x1x16x3xf32>
    %134 = vector.extract_strided_slice %132 {offsets = [0, 1, 0, 0], sizes = [2, 1, 16, 3], strides = [1, 1, 1, 1]} : vector<2x16x16x3xf32> to vector<2x1x16x3xf32>
    %135 = arith.maximumf %133, %134 : vector<2x1x16x3xf32>
    %136 = vector.extract_strided_slice %132 {offsets = [0, 1, 0, 0], sizes = [2, 1, 16, 3], strides = [1, 1, 1, 1]} : vector<2x16x16x3xf32> to vector<2x1x16x3xf32>
    %137 = vector.extract_strided_slice %132 {offsets = [0, 2, 0, 0], sizes = [2, 1, 16, 3], strides = [1, 1, 1, 1]} : vector<2x16x16x3xf32> to vector<2x1x16x3xf32>
    %138 = vector.extract_strided_slice %132 {offsets = [0, 3, 0, 0], sizes = [2, 1, 16, 3], strides = [1, 1, 1, 1]} : vector<2x16x16x3xf32> to vector<2x1x16x3xf32>
    %139 = arith.maximumf %136, %137 : vector<2x1x16x3xf32>
    %140 = arith.maximumf %139, %138 : vector<2x1x16x3xf32>
    %141 = vector.extract_strided_slice %132 {offsets = [0, 3, 0, 0], sizes = [2, 1, 16, 3], strides = [1, 1, 1, 1]} : vector<2x16x16x3xf32> to vector<2x1x16x3xf32>
    %142 = vector.extract_strided_slice %132 {offsets = [0, 4, 0, 0], sizes = [2, 1, 16, 3], strides = [1, 1, 1, 1]} : vector<2x16x16x3xf32> to vector<2x1x16x3xf32>
    %143 = vector.extract_strided_slice %132 {offsets = [0, 5, 0, 0], sizes = [2, 1, 16, 3], strides = [1, 1, 1, 1]} : vector<2x16x16x3xf32> to vector<2x1x16x3xf32>
    %144 = arith.maximumf %141, %142 : vector<2x1x16x3xf32>
    %145 = arith.maximumf %144, %143 : vector<2x1x16x3xf32>
    %146 = vector.extract_strided_slice %132 {offsets = [0, 5, 0, 0], sizes = [2, 1, 16, 3], strides = [1, 1, 1, 1]} : vector<2x16x16x3xf32> to vector<2x1x16x3xf32>
    %147 = vector.extract_strided_slice %132 {offsets = [0, 6, 0, 0], sizes = [2, 1, 16, 3], strides = [1, 1, 1, 1]} : vector<2x16x16x3xf32> to vector<2x1x16x3xf32>
    %148 = vector.extract_strided_slice %132 {offsets = [0, 7, 0, 0], sizes = [2, 1, 16, 3], strides = [1, 1, 1, 1]} : vector<2x16x16x3xf32> to vector<2x1x16x3xf32>
    %149 = arith.maximumf %146, %147 : vector<2x1x16x3xf32>
    %150 = arith.maximumf %149, %148 : vector<2x1x16x3xf32>
    %151 = vector.extract_strided_slice %132 {offsets = [0, 7, 0, 0], sizes = [2, 1, 16, 3], strides = [1, 1, 1, 1]} : vector<2x16x16x3xf32> to vector<2x1x16x3xf32>
    %152 = vector.extract_strided_slice %132 {offsets = [0, 8, 0, 0], sizes = [2, 1, 16, 3], strides = [1, 1, 1, 1]} : vector<2x16x16x3xf32> to vector<2x1x16x3xf32>
    %153 = vector.extract_strided_slice %132 {offsets = [0, 9, 0, 0], sizes = [2, 1, 16, 3], strides = [1, 1, 1, 1]} : vector<2x16x16x3xf32> to vector<2x1x16x3xf32>
    %154 = arith.maximumf %151, %152 : vector<2x1x16x3xf32>
    %155 = arith.maximumf %154, %153 : vector<2x1x16x3xf32>
    %156 = vector.extract_strided_slice %132 {offsets = [0, 9, 0, 0], sizes = [2, 1, 16, 3], strides = [1, 1, 1, 1]} : vector<2x16x16x3xf32> to vector<2x1x16x3xf32>
    %157 = vector.extract_strided_slice %132 {offsets = [0, 10, 0, 0], sizes = [2, 1, 16, 3], strides = [1, 1, 1, 1]} : vector<2x16x16x3xf32> to vector<2x1x16x3xf32>
    %158 = vector.extract_strided_slice %132 {offsets = [0, 11, 0, 0], sizes = [2, 1, 16, 3], strides = [1, 1, 1, 1]} : vector<2x16x16x3xf32> to vector<2x1x16x3xf32>
    %159 = arith.maximumf %156, %157 : vector<2x1x16x3xf32>
    %160 = arith.maximumf %159, %158 : vector<2x1x16x3xf32>
    %161 = vector.extract_strided_slice %132 {offsets = [0, 11, 0, 0], sizes = [2, 1, 16, 3], strides = [1, 1, 1, 1]} : vector<2x16x16x3xf32> to vector<2x1x16x3xf32>
    %162 = vector.extract_strided_slice %132 {offsets = [0, 12, 0, 0], sizes = [2, 1, 16, 3], strides = [1, 1, 1, 1]} : vector<2x16x16x3xf32> to vector<2x1x16x3xf32>
    %163 = vector.extract_strided_slice %132 {offsets = [0, 13, 0, 0], sizes = [2, 1, 16, 3], strides = [1, 1, 1, 1]} : vector<2x16x16x3xf32> to vector<2x1x16x3xf32>
    %164 = arith.maximumf %161, %162 : vector<2x1x16x3xf32>
    %165 = arith.maximumf %164, %163 : vector<2x1x16x3xf32>
    %166 = vector.extract_strided_slice %132 {offsets = [0, 13, 0, 0], sizes = [2, 1, 16, 3], strides = [1, 1, 1, 1]} : vector<2x16x16x3xf32> to vector<2x1x16x3xf32>
    %167 = vector.extract_strided_slice %132 {offsets = [0, 14, 0, 0], sizes = [2, 1, 16, 3], strides = [1, 1, 1, 1]} : vector<2x16x16x3xf32> to vector<2x1x16x3xf32>
    %168 = vector.extract_strided_slice %132 {offsets = [0, 15, 0, 0], sizes = [2, 1, 16, 3], strides = [1, 1, 1, 1]} : vector<2x16x16x3xf32> to vector<2x1x16x3xf32>
    %169 = arith.maximumf %166, %167 : vector<2x1x16x3xf32>
    %170 = arith.maximumf %169, %168 : vector<2x1x16x3xf32>
    %171 = tpu.concatenate %135, %140, %145, %150, %155, %160, %165, %170 in 1 : vector<2x1x16x3xf32>, vector<2x1x16x3xf32>, vector<2x1x16x3xf32>, vector<2x1x16x3xf32>, vector<2x1x16x3xf32>, vector<2x1x16x3xf32>, vector<2x1x16x3xf32>, vector<2x1x16x3xf32> -> vector<2x8x16x3xf32>
    %172 = vector.extract_strided_slice %171 {offsets = [0, 0, 0, 0], sizes = [2, 8, 1, 3], strides = [1, 1, 1, 1]} : vector<2x8x16x3xf32> to vector<2x8x1x3xf32>
    %173 = vector.extract_strided_slice %171 {offsets = [0, 0, 1, 0], sizes = [2, 8, 1, 3], strides = [1, 1, 1, 1]} : vector<2x8x16x3xf32> to vector<2x8x1x3xf32>
    %174 = arith.maximumf %172, %173 : vector<2x8x1x3xf32>
    %175 = vector.shape_cast %174 : vector<2x8x1x3xf32> to vector<1x2x8x1x3xf32>
    %c1_58 = arith.constant 1 : index
    %c0_59 = arith.constant 0 : index
    %c0_60 = arith.constant 0 : index
    %c0_61 = arith.constant 0 : index
    %c0_62 = arith.constant 0 : index
    %176 = vector.load %arg8[%c1_58, %c0_59, %c0_60, %c0_61, %c0_62] : memref<2x2x8x8x3xf32, #tpu.memory_space<vmem>>, vector<1x2x8x1x3xf32>
    tpu.vector_store %arg8[%c1_58, %c0_59, %c0_60, %c0_61, %c0_62], %175 {strides = array<i32>} : memref<2x2x8x8x3xf32, #tpu.memory_space<vmem>>, vector<1x2x8x1x3xf32>,
    %177 = vector.extract_strided_slice %171 {offsets = [0, 0, 1, 0], sizes = [2, 8, 1, 3], strides = [1, 1, 1, 1]} : vector<2x8x16x3xf32> to vector<2x8x1x3xf32>
    %178 = vector.extract_strided_slice %171 {offsets = [0, 0, 2, 0], sizes = [2, 8, 1, 3], strides = [1, 1, 1, 1]} : vector<2x8x16x3xf32> to vector<2x8x1x3xf32>
    %179 = vector.extract_strided_slice %171 {offsets = [0, 0, 3, 0], sizes = [2, 8, 1, 3], strides = [1, 1, 1, 1]} : vector<2x8x16x3xf32> to vector<2x8x1x3xf32>
    %180 = arith.maximumf %177, %178 : vector<2x8x1x3xf32>
    %181 = arith.maximumf %180, %179 : vector<2x8x1x3xf32>
    %182 = vector.shape_cast %181 : vector<2x8x1x3xf32> to vector<1x2x8x1x3xf32>
    %c1_63 = arith.constant 1 : index
    %c0_64 = arith.constant 0 : index
    %c0_65 = arith.constant 0 : index
    %c1_66 = arith.constant 1 : index
    %c0_67 = arith.constant 0 : index
    %183 = vector.load %arg8[%c1_63, %c0_64, %c0_65, %c1_66, %c0_67] : memref<2x2x8x8x3xf32, #tpu.memory_space<vmem>>, vector<1x2x8x1x3xf32>
    tpu.vector_store %arg8[%c1_63, %c0_64, %c0_65, %c1_66, %c0_67], %182 {strides = array<i32>} : memref<2x2x8x8x3xf32, #tpu.memory_space<vmem>>, vector<1x2x8x1x3xf32>,
    %184 = vector.extract_strided_slice %171 {offsets = [0, 0, 3, 0], sizes = [2, 8, 1, 3], strides = [1, 1, 1, 1]} : vector<2x8x16x3xf32> to vector<2x8x1x3xf32>
    %185 = vector.extract_strided_slice %171 {offsets = [0, 0, 4, 0], sizes = [2, 8, 1, 3], strides = [1, 1, 1, 1]} : vector<2x8x16x3xf32> to vector<2x8x1x3xf32>
    %186 = vector.extract_strided_slice %171 {offsets = [0, 0, 5, 0], sizes = [2, 8, 1, 3], strides = [1, 1, 1, 1]} : vector<2x8x16x3xf32> to vector<2x8x1x3xf32>
    %187 = arith.maximumf %184, %185 : vector<2x8x1x3xf32>
    %188 = arith.maximumf %187, %186 : vector<2x8x1x3xf32>
    %189 = vector.shape_cast %188 : vector<2x8x1x3xf32> to vector<1x2x8x1x3xf32>
    %c1_68 = arith.constant 1 : index
    %c0_69 = arith.constant 0 : index
    %c0_70 = arith.constant 0 : index
    %c2_71 = arith.constant 2 : index
    %c0_72 = arith.constant 0 : index
    %190 = vector.load %arg8[%c1_68, %c0_69, %c0_70, %c2_71, %c0_72] : memref<2x2x8x8x3xf32, #tpu.memory_space<vmem>>, vector<1x2x8x1x3xf32>
    tpu.vector_store %arg8[%c1_68, %c0_69, %c0_70, %c2_71, %c0_72], %189 {strides = array<i32>} : memref<2x2x8x8x3xf32, #tpu.memory_space<vmem>>, vector<1x2x8x1x3xf32>,
    %191 = vector.extract_strided_slice %171 {offsets = [0, 0, 5, 0], sizes = [2, 8, 1, 3], strides = [1, 1, 1, 1]} : vector<2x8x16x3xf32> to vector<2x8x1x3xf32>
    %192 = vector.extract_strided_slice %171 {offsets = [0, 0, 6, 0], sizes = [2, 8, 1, 3], strides = [1, 1, 1, 1]} : vector<2x8x16x3xf32> to vector<2x8x1x3xf32>
    %193 = vector.extract_strided_slice %171 {offsets = [0, 0, 7, 0], sizes = [2, 8, 1, 3], strides = [1, 1, 1, 1]} : vector<2x8x16x3xf32> to vector<2x8x1x3xf32>
    %194 = arith.maximumf %191, %192 : vector<2x8x1x3xf32>
    %195 = arith.maximumf %194, %193 : vector<2x8x1x3xf32>
    %196 = vector.shape_cast %195 : vector<2x8x1x3xf32> to vector<1x2x8x1x3xf32>
    %c1_73 = arith.constant 1 : index
    %c0_74 = arith.constant 0 : index
    %c0_75 = arith.constant 0 : index
    %c3_76 = arith.constant 3 : index
    %c0_77 = arith.constant 0 : index
    %197 = vector.load %arg8[%c1_73, %c0_74, %c0_75, %c3_76, %c0_77] : memref<2x2x8x8x3xf32, #tpu.memory_space<vmem>>, vector<1x2x8x1x3xf32>
    tpu.vector_store %arg8[%c1_73, %c0_74, %c0_75, %c3_76, %c0_77], %196 {strides = array<i32>} : memref<2x2x8x8x3xf32, #tpu.memory_space<vmem>>, vector<1x2x8x1x3xf32>,
    %198 = vector.extract_strided_slice %171 {offsets = [0, 0, 7, 0], sizes = [2, 8, 1, 3], strides = [1, 1, 1, 1]} : vector<2x8x16x3xf32> to vector<2x8x1x3xf32>
    %199 = vector.extract_strided_slice %171 {offsets = [0, 0, 8, 0], sizes = [2, 8, 1, 3], strides = [1, 1, 1, 1]} : vector<2x8x16x3xf32> to vector<2x8x1x3xf32>
    %200 = vector.extract_strided_slice %171 {offsets = [0, 0, 9, 0], sizes = [2, 8, 1, 3], strides = [1, 1, 1, 1]} : vector<2x8x16x3xf32> to vector<2x8x1x3xf32>
    %201 = arith.maximumf %198, %199 : vector<2x8x1x3xf32>
    %202 = arith.maximumf %201, %200 : vector<2x8x1x3xf32>
    %203 = vector.shape_cast %202 : vector<2x8x1x3xf32> to vector<1x2x8x1x3xf32>
    %c1_78 = arith.constant 1 : index
    %c0_79 = arith.constant 0 : index
    %c0_80 = arith.constant 0 : index
    %c4_81 = arith.constant 4 : index
    %c0_82 = arith.constant 0 : index
    %204 = vector.load %arg8[%c1_78, %c0_79, %c0_80, %c4_81, %c0_82] : memref<2x2x8x8x3xf32, #tpu.memory_space<vmem>>, vector<1x2x8x1x3xf32>
    tpu.vector_store %arg8[%c1_78, %c0_79, %c0_80, %c4_81, %c0_82], %203 {strides = array<i32>} : memref<2x2x8x8x3xf32, #tpu.memory_space<vmem>>, vector<1x2x8x1x3xf32>,
    %205 = vector.extract_strided_slice %171 {offsets = [0, 0, 9, 0], sizes = [2, 8, 1, 3], strides = [1, 1, 1, 1]} : vector<2x8x16x3xf32> to vector<2x8x1x3xf32>
    %206 = vector.extract_strided_slice %171 {offsets = [0, 0, 10, 0], sizes = [2, 8, 1, 3], strides = [1, 1, 1, 1]} : vector<2x8x16x3xf32> to vector<2x8x1x3xf32>
    %207 = vector.extract_strided_slice %171 {offsets = [0, 0, 11, 0], sizes = [2, 8, 1, 3], strides = [1, 1, 1, 1]} : vector<2x8x16x3xf32> to vector<2x8x1x3xf32>
    %208 = arith.maximumf %205, %206 : vector<2x8x1x3xf32>
    %209 = arith.maximumf %208, %207 : vector<2x8x1x3xf32>
    %210 = vector.shape_cast %209 : vector<2x8x1x3xf32> to vector<1x2x8x1x3xf32>
    %c1_83 = arith.constant 1 : index
    %c0_84 = arith.constant 0 : index
    %c0_85 = arith.constant 0 : index
    %c5_86 = arith.constant 5 : index
    %c0_87 = arith.constant 0 : index
    %211 = vector.load %arg8[%c1_83, %c0_84, %c0_85, %c5_86, %c0_87] : memref<2x2x8x8x3xf32, #tpu.memory_space<vmem>>, vector<1x2x8x1x3xf32>
    tpu.vector_store %arg8[%c1_83, %c0_84, %c0_85, %c5_86, %c0_87], %210 {strides = array<i32>} : memref<2x2x8x8x3xf32, #tpu.memory_space<vmem>>, vector<1x2x8x1x3xf32>,
    %212 = vector.extract_strided_slice %171 {offsets = [0, 0, 11, 0], sizes = [2, 8, 1, 3], strides = [1, 1, 1, 1]} : vector<2x8x16x3xf32> to vector<2x8x1x3xf32>
    %213 = vector.extract_strided_slice %171 {offsets = [0, 0, 12, 0], sizes = [2, 8, 1, 3], strides = [1, 1, 1, 1]} : vector<2x8x16x3xf32> to vector<2x8x1x3xf32>
    %214 = vector.extract_strided_slice %171 {offsets = [0, 0, 13, 0], sizes = [2, 8, 1, 3], strides = [1, 1, 1, 1]} : vector<2x8x16x3xf32> to vector<2x8x1x3xf32>
    %215 = arith.maximumf %212, %213 : vector<2x8x1x3xf32>
    %216 = arith.maximumf %215, %214 : vector<2x8x1x3xf32>
    %217 = vector.shape_cast %216 : vector<2x8x1x3xf32> to vector<1x2x8x1x3xf32>
    %c1_88 = arith.constant 1 : index
    %c0_89 = arith.constant 0 : index
    %c0_90 = arith.constant 0 : index
    %c6_91 = arith.constant 6 : index
    %c0_92 = arith.constant 0 : index
    %218 = vector.load %arg8[%c1_88, %c0_89, %c0_90, %c6_91, %c0_92] : memref<2x2x8x8x3xf32, #tpu.memory_space<vmem>>, vector<1x2x8x1x3xf32>
    tpu.vector_store %arg8[%c1_88, %c0_89, %c0_90, %c6_91, %c0_92], %217 {strides = array<i32>} : memref<2x2x8x8x3xf32, #tpu.memory_space<vmem>>, vector<1x2x8x1x3xf32>,
    %219 = vector.extract_strided_slice %171 {offsets = [0, 0, 13, 0], sizes = [2, 8, 1, 3], strides = [1, 1, 1, 1]} : vector<2x8x16x3xf32> to vector<2x8x1x3xf32>
    %220 = vector.extract_strided_slice %171 {offsets = [0, 0, 14, 0], sizes = [2, 8, 1, 3], strides = [1, 1, 1, 1]} : vector<2x8x16x3xf32> to vector<2x8x1x3xf32>
    %221 = vector.extract_strided_slice %171 {offsets = [0, 0, 15, 0], sizes = [2, 8, 1, 3], strides = [1, 1, 1, 1]} : vector<2x8x16x3xf32> to vector<2x8x1x3xf32>
    %222 = arith.maximumf %219, %220 : vector<2x8x1x3xf32>
    %223 = arith.maximumf %222, %221 : vector<2x8x1x3xf32>
    %224 = vector.shape_cast %223 : vector<2x8x1x3xf32> to vector<1x2x8x1x3xf32>
    %c1_93 = arith.constant 1 : index
    %c0_94 = arith.constant 0 : index
    %c0_95 = arith.constant 0 : index
    %c7_96 = arith.constant 7 : index
    %c0_97 = arith.constant 0 : index
    %225 = vector.load %arg8[%c1_93, %c0_94, %c0_95, %c7_96, %c0_97] : memref<2x2x8x8x3xf32, #tpu.memory_space<vmem>>, vector<1x2x8x1x3xf32>
    tpu.vector_store %arg8[%c1_93, %c0_94, %c0_95, %c7_96, %c0_97], %224 {strides = array<i32>} : memref<2x2x8x8x3xf32, #tpu.memory_space<vmem>>, vector<1x2x8x1x3xf32>,
    return
  }
  func.func @transform_0(%arg0: i32) -> (i32, i32) {
    %c0_i32 = arith.constant 0 : i32
    %c0_i32_0 = arith.constant 0 : i32
    %c0_i32_1 = arith.constant 0 : i32
    return %c0_i32, %c0_i32_0 : i32, i32
  }
  func.func @transform_1(%arg0: i32) -> (i32, i32, i32, i32) {
    %c0_i32 = arith.constant 0 : i32
    %c0_i32_0 = arith.constant 0 : i32
    %c0_i32_1 = arith.constant 0 : i32
    %c0_i32_2 = arith.constant 0 : i32
    %c0_i32_3 = arith.constant 0 : i32
    return %c0_i32, %c0_i32_0, %c0_i32_1, %c0_i32_2 : i32, i32, i32, i32
  }
  func.func @transform_2(%arg0: i32) -> (i32, i32) {
    %c0_i32 = arith.constant 0 : i32
    %c0_i32_0 = arith.constant 0 : i32
    %c0_i32_1 = arith.constant 0 : i32
    return %c0_i32, %c0_i32_0 : i32, i32
  }
  func.func @transform_3(%arg0: i32) -> (i32, i32) {
    %c0_i32 = arith.constant 0 : i32
    %c0_i32_0 = arith.constant 0 : i32
    %c0_i32_1 = arith.constant 0 : i32
    return %c0_i32, %c0_i32_0 : i32, i32
  }
  func.func @transform_4(%arg0: i32) -> (i32, i32) {
    %c0_i32 = arith.constant 0 : i32
    %c0_i32_0 = arith.constant 0 : i32
    %c0_i32_1 = arith.constant 0 : i32
    return %c0_i32, %c0_i32_0 : i32, i32
  }
  func.func @transform_5(%arg0: i32) -> (i32, i32) {
    %c0_i32 = arith.constant 0 : i32
    %c0_i32_0 = arith.constant 0 : i32
    %c0_i32_1 = arith.constant 0 : i32
    return %c0_i32, %c0_i32_0 : i32, i32
  }
  func.func @transform_6(%arg0: i32) -> (i32, i32) {
    %c0_i32 = arith.constant 0 : i32
    %c0_i32_0 = arith.constant 0 : i32
    %c0_i32_1 = arith.constant 0 : i32
    return %c0_i32, %c0_i32_0 : i32, i32
  }
  func.func @transform_7(%arg0: i32) -> (i32, i32, i32, i32, i32) {
    %c0_i32 = arith.constant 0 : i32
    %c0_i32_0 = arith.constant 0 : i32
    %c0_i32_1 = arith.constant 0 : i32
    %c0_i32_2 = arith.constant 0 : i32
    %c0_i32_3 = arith.constant 0 : i32
    %c0_i32_4 = arith.constant 0 : i32
    return %c0_i32, %c0_i32_0, %c0_i32_1, %c0_i32_2, %c0_i32_3 : i32, i32, i32, i32, i32
  }
}

module attributes {stable_mosaic.version = 11 : i64} {
  func.func @_block_kernel(%arg0: i32, %arg1: memref<32x108xf32, #tpu.memory_space<vmem>>, %arg2: memref<2x8x8x12xf32, #tpu.memory_space<vmem>>, %arg3: memref<108x24xbf16, #tpu.memory_space<vmem>>, %arg4: memref<1x24xf32, #tpu.memory_space<vmem>>, %arg5: memref<2x12xf32, #tpu.memory_space<vmem>>, %arg6: memref<2x12xf32, #tpu.memory_space<vmem>>, %arg7: memref<32x24xf32, #tpu.memory_space<vmem>>, %arg8: memref<2x2x4x4x12xf32, #tpu.memory_space<vmem>>) attributes {dimension_semantics = [#tpu.dimension_semantics<arbitrary>], iteration_bounds = array<i64: 1>, scalar_prefetch = 0 : i64, scratch_operands = 0 : i64, tpu.core_type = #tpu.core_type<tc>, window_params = [{pipeline_mode = #tpu.pipeline_mode<synchronous>, transform_indices = @transform_0, window_bounds = array<i64: 32, 108>}, {pipeline_mode = #tpu.pipeline_mode<synchronous>, transform_indices = @transform_1, window_bounds = array<i64: 2, 8, 8, 12>}, {pipeline_mode = #tpu.pipeline_mode<synchronous>, transform_indices = @transform_2, window_bounds = array<i64: 108, 24>}, {pipeline_mode = #tpu.pipeline_mode<synchronous>, transform_indices = @transform_3, window_bounds = array<i64: 1, 24>}, {pipeline_mode = #tpu.pipeline_mode<synchronous>, transform_indices = @transform_4, window_bounds = array<i64: 2, 12>}, {pipeline_mode = #tpu.pipeline_mode<synchronous>, transform_indices = @transform_5, window_bounds = array<i64: 2, 12>}, {pipeline_mode = #tpu.pipeline_mode<synchronous>, transform_indices = @transform_6, window_bounds = array<i64: 32, 24>}, {pipeline_mode = #tpu.pipeline_mode<synchronous>, transform_indices = @transform_7, window_bounds = array<i64: 2, 2, 4, 4, 12>}]} {
    %c0 = arith.constant 0 : index
    %c0_0 = arith.constant 0 : index
    %0 = vector.load %arg1[%c0, %c0_0] : memref<32x108xf32, #tpu.memory_space<vmem>>, vector<32x108xf32>
    %1 = arith.truncf %0 : vector<32x108xf32> to vector<32x108xbf16>
    %c0_1 = arith.constant 0 : index
    %c0_2 = arith.constant 0 : index
    %2 = vector.load %arg3[%c0_1, %c0_2] : memref<108x24xbf16, #tpu.memory_space<vmem>>, vector<108x24xbf16>
    %cst = arith.constant dense<0.000000e+00> : vector<32x24xf32>
    %3 = tpu.matmul %1, %2, %cst {dimension_numbers = #tpu.dot_dimension_numbers<[1], [0], [0], [1], [0, 0, 1, 1], [], []>} : vector<32x108xbf16>, vector<108x24xbf16>, vector<32x24xf32> -> vector<32x24xf32>
    %c0_3 = arith.constant 0 : index
    %c0_4 = arith.constant 0 : index
    %4 = vector.load %arg4[%c0_3, %c0_4] : memref<1x24xf32, #tpu.memory_space<vmem>>, vector<1x24xf32>
    %5 = vector.broadcast %4 : vector<1x24xf32> to vector<32x24xf32>
    %6 = arith.addf %3, %5 : vector<32x24xf32>
    %cst_5 = arith.constant 0.000000e+00 : f32
    %7 = vector.broadcast %cst_5 : f32 to vector<32x24xf32>
    %8 = arith.cmpf oge, %6, %7 : vector<32x24xf32>
    %cst_6 = arith.constant 1.000000e-01 : f32
    %9 = vector.broadcast %cst_6 : f32 to vector<32x24xf32>
    %10 = arith.mulf %9, %6 : vector<32x24xf32>
    %11 = arith.select %8, %6, %10 : vector<32x24xi1>, vector<32x24xf32>
    %c0_7 = arith.constant 0 : index
    %c0_8 = arith.constant 0 : index
    %12 = vector.load %arg7[%c0_7, %c0_8] : memref<32x24xf32, #tpu.memory_space<vmem>>, vector<32x24xf32>
    tpu.vector_store %arg7[%c0_7, %c0_8], %11 {strides = array<i32>} : memref<32x24xf32, #tpu.memory_space<vmem>>, vector<32x24xf32>,
    %c0_9 = arith.constant 0 : index
    %c0_10 = arith.constant 0 : index
    %c0_11 = arith.constant 0 : index
    %c0_12 = arith.constant 0 : index
    %13 = vector.load %arg2[%c0_9, %c0_10, %c0_11, %c0_12] : memref<2x8x8x12xf32, #tpu.memory_space<vmem>>, vector<2x8x8x12xf32>
    %c0_13 = arith.constant 0 : index
    %c0_14 = arith.constant 0 : index
    %14 = vector.load %arg5[%c0_13, %c0_14] : memref<2x12xf32, #tpu.memory_space<vmem>>, vector<1x12xf32>
    %15 = vector.shape_cast %14 : vector<1x12xf32> to vector<1x1x1x12xf32>
    %c0_15 = arith.constant 0 : index
    %c0_16 = arith.constant 0 : index
    %16 = vector.load %arg6[%c0_15, %c0_16] : memref<2x12xf32, #tpu.memory_space<vmem>>, vector<1x12xf32>
    %17 = vector.shape_cast %16 : vector<1x12xf32> to vector<1x1x1x12xf32>
    %18 = vector.broadcast %15 : vector<1x1x1x12xf32> to vector<2x8x8x12xf32>
    %19 = arith.mulf %13, %18 : vector<2x8x8x12xf32>
    %20 = vector.broadcast %17 : vector<1x1x1x12xf32> to vector<2x8x8x12xf32>
    %21 = arith.addf %19, %20 : vector<2x8x8x12xf32>
    %cst_17 = arith.constant 0.000000e+00 : f32
    %22 = vector.broadcast %cst_17 : f32 to vector<2x8x8x12xf32>
    %23 = arith.cmpf oge, %21, %22 : vector<2x8x8x12xf32>
    %cst_18 = arith.constant 1.000000e-01 : f32
    %24 = vector.broadcast %cst_18 : f32 to vector<2x8x8x12xf32>
    %25 = arith.mulf %24, %21 : vector<2x8x8x12xf32>
    %26 = arith.select %23, %21, %25 : vector<2x8x8x12xi1>, vector<2x8x8x12xf32>
    %27 = vector.extract_strided_slice %26 {offsets = [0, 0, 0, 0], sizes = [2, 1, 8, 12], strides = [1, 1, 1, 1]} : vector<2x8x8x12xf32> to vector<2x1x8x12xf32>
    %28 = vector.extract_strided_slice %26 {offsets = [0, 1, 0, 0], sizes = [2, 1, 8, 12], strides = [1, 1, 1, 1]} : vector<2x8x8x12xf32> to vector<2x1x8x12xf32>
    %29 = arith.maximumf %27, %28 : vector<2x1x8x12xf32>
    %30 = vector.extract_strided_slice %26 {offsets = [0, 1, 0, 0], sizes = [2, 1, 8, 12], strides = [1, 1, 1, 1]} : vector<2x8x8x12xf32> to vector<2x1x8x12xf32>
    %31 = vector.extract_strided_slice %26 {offsets = [0, 2, 0, 0], sizes = [2, 1, 8, 12], strides = [1, 1, 1, 1]} : vector<2x8x8x12xf32> to vector<2x1x8x12xf32>
    %32 = vector.extract_strided_slice %26 {offsets = [0, 3, 0, 0], sizes = [2, 1, 8, 12], strides = [1, 1, 1, 1]} : vector<2x8x8x12xf32> to vector<2x1x8x12xf32>
    %33 = arith.maximumf %30, %31 : vector<2x1x8x12xf32>
    %34 = arith.maximumf %33, %32 : vector<2x1x8x12xf32>
    %35 = vector.extract_strided_slice %26 {offsets = [0, 3, 0, 0], sizes = [2, 1, 8, 12], strides = [1, 1, 1, 1]} : vector<2x8x8x12xf32> to vector<2x1x8x12xf32>
    %36 = vector.extract_strided_slice %26 {offsets = [0, 4, 0, 0], sizes = [2, 1, 8, 12], strides = [1, 1, 1, 1]} : vector<2x8x8x12xf32> to vector<2x1x8x12xf32>
    %37 = vector.extract_strided_slice %26 {offsets = [0, 5, 0, 0], sizes = [2, 1, 8, 12], strides = [1, 1, 1, 1]} : vector<2x8x8x12xf32> to vector<2x1x8x12xf32>
    %38 = arith.maximumf %35, %36 : vector<2x1x8x12xf32>
    %39 = arith.maximumf %38, %37 : vector<2x1x8x12xf32>
    %40 = vector.extract_strided_slice %26 {offsets = [0, 5, 0, 0], sizes = [2, 1, 8, 12], strides = [1, 1, 1, 1]} : vector<2x8x8x12xf32> to vector<2x1x8x12xf32>
    %41 = vector.extract_strided_slice %26 {offsets = [0, 6, 0, 0], sizes = [2, 1, 8, 12], strides = [1, 1, 1, 1]} : vector<2x8x8x12xf32> to vector<2x1x8x12xf32>
    %42 = vector.extract_strided_slice %26 {offsets = [0, 7, 0, 0], sizes = [2, 1, 8, 12], strides = [1, 1, 1, 1]} : vector<2x8x8x12xf32> to vector<2x1x8x12xf32>
    %43 = arith.maximumf %40, %41 : vector<2x1x8x12xf32>
    %44 = arith.maximumf %43, %42 : vector<2x1x8x12xf32>
    %45 = tpu.concatenate %29, %34, %39, %44 in 1 : vector<2x1x8x12xf32>, vector<2x1x8x12xf32>, vector<2x1x8x12xf32>, vector<2x1x8x12xf32> -> vector<2x4x8x12xf32>
    %46 = vector.extract_strided_slice %45 {offsets = [0, 0, 0, 0], sizes = [2, 4, 1, 12], strides = [1, 1, 1, 1]} : vector<2x4x8x12xf32> to vector<2x4x1x12xf32>
    %47 = vector.extract_strided_slice %45 {offsets = [0, 0, 1, 0], sizes = [2, 4, 1, 12], strides = [1, 1, 1, 1]} : vector<2x4x8x12xf32> to vector<2x4x1x12xf32>
    %48 = arith.maximumf %46, %47 : vector<2x4x1x12xf32>
    %49 = vector.shape_cast %48 : vector<2x4x1x12xf32> to vector<1x2x4x1x12xf32>
    %c0_19 = arith.constant 0 : index
    %c0_20 = arith.constant 0 : index
    %c0_21 = arith.constant 0 : index
    %c0_22 = arith.constant 0 : index
    %c0_23 = arith.constant 0 : index
    %50 = vector.load %arg8[%c0_19, %c0_20, %c0_21, %c0_22, %c0_23] : memref<2x2x4x4x12xf32, #tpu.memory_space<vmem>>, vector<1x2x4x1x12xf32>
    tpu.vector_store %arg8[%c0_19, %c0_20, %c0_21, %c0_22, %c0_23], %49 {strides = array<i32>} : memref<2x2x4x4x12xf32, #tpu.memory_space<vmem>>, vector<1x2x4x1x12xf32>,
    %51 = vector.extract_strided_slice %45 {offsets = [0, 0, 1, 0], sizes = [2, 4, 1, 12], strides = [1, 1, 1, 1]} : vector<2x4x8x12xf32> to vector<2x4x1x12xf32>
    %52 = vector.extract_strided_slice %45 {offsets = [0, 0, 2, 0], sizes = [2, 4, 1, 12], strides = [1, 1, 1, 1]} : vector<2x4x8x12xf32> to vector<2x4x1x12xf32>
    %53 = vector.extract_strided_slice %45 {offsets = [0, 0, 3, 0], sizes = [2, 4, 1, 12], strides = [1, 1, 1, 1]} : vector<2x4x8x12xf32> to vector<2x4x1x12xf32>
    %54 = arith.maximumf %51, %52 : vector<2x4x1x12xf32>
    %55 = arith.maximumf %54, %53 : vector<2x4x1x12xf32>
    %56 = vector.shape_cast %55 : vector<2x4x1x12xf32> to vector<1x2x4x1x12xf32>
    %c0_24 = arith.constant 0 : index
    %c0_25 = arith.constant 0 : index
    %c0_26 = arith.constant 0 : index
    %c1 = arith.constant 1 : index
    %c0_27 = arith.constant 0 : index
    %57 = vector.load %arg8[%c0_24, %c0_25, %c0_26, %c1, %c0_27] : memref<2x2x4x4x12xf32, #tpu.memory_space<vmem>>, vector<1x2x4x1x12xf32>
    tpu.vector_store %arg8[%c0_24, %c0_25, %c0_26, %c1, %c0_27], %56 {strides = array<i32>} : memref<2x2x4x4x12xf32, #tpu.memory_space<vmem>>, vector<1x2x4x1x12xf32>,
    %58 = vector.extract_strided_slice %45 {offsets = [0, 0, 3, 0], sizes = [2, 4, 1, 12], strides = [1, 1, 1, 1]} : vector<2x4x8x12xf32> to vector<2x4x1x12xf32>
    %59 = vector.extract_strided_slice %45 {offsets = [0, 0, 4, 0], sizes = [2, 4, 1, 12], strides = [1, 1, 1, 1]} : vector<2x4x8x12xf32> to vector<2x4x1x12xf32>
    %60 = vector.extract_strided_slice %45 {offsets = [0, 0, 5, 0], sizes = [2, 4, 1, 12], strides = [1, 1, 1, 1]} : vector<2x4x8x12xf32> to vector<2x4x1x12xf32>
    %61 = arith.maximumf %58, %59 : vector<2x4x1x12xf32>
    %62 = arith.maximumf %61, %60 : vector<2x4x1x12xf32>
    %63 = vector.shape_cast %62 : vector<2x4x1x12xf32> to vector<1x2x4x1x12xf32>
    %c0_28 = arith.constant 0 : index
    %c0_29 = arith.constant 0 : index
    %c0_30 = arith.constant 0 : index
    %c2 = arith.constant 2 : index
    %c0_31 = arith.constant 0 : index
    %64 = vector.load %arg8[%c0_28, %c0_29, %c0_30, %c2, %c0_31] : memref<2x2x4x4x12xf32, #tpu.memory_space<vmem>>, vector<1x2x4x1x12xf32>
    tpu.vector_store %arg8[%c0_28, %c0_29, %c0_30, %c2, %c0_31], %63 {strides = array<i32>} : memref<2x2x4x4x12xf32, #tpu.memory_space<vmem>>, vector<1x2x4x1x12xf32>,
    %65 = vector.extract_strided_slice %45 {offsets = [0, 0, 5, 0], sizes = [2, 4, 1, 12], strides = [1, 1, 1, 1]} : vector<2x4x8x12xf32> to vector<2x4x1x12xf32>
    %66 = vector.extract_strided_slice %45 {offsets = [0, 0, 6, 0], sizes = [2, 4, 1, 12], strides = [1, 1, 1, 1]} : vector<2x4x8x12xf32> to vector<2x4x1x12xf32>
    %67 = vector.extract_strided_slice %45 {offsets = [0, 0, 7, 0], sizes = [2, 4, 1, 12], strides = [1, 1, 1, 1]} : vector<2x4x8x12xf32> to vector<2x4x1x12xf32>
    %68 = arith.maximumf %65, %66 : vector<2x4x1x12xf32>
    %69 = arith.maximumf %68, %67 : vector<2x4x1x12xf32>
    %70 = vector.shape_cast %69 : vector<2x4x1x12xf32> to vector<1x2x4x1x12xf32>
    %c0_32 = arith.constant 0 : index
    %c0_33 = arith.constant 0 : index
    %c0_34 = arith.constant 0 : index
    %c3 = arith.constant 3 : index
    %c0_35 = arith.constant 0 : index
    %71 = vector.load %arg8[%c0_32, %c0_33, %c0_34, %c3, %c0_35] : memref<2x2x4x4x12xf32, #tpu.memory_space<vmem>>, vector<1x2x4x1x12xf32>
    tpu.vector_store %arg8[%c0_32, %c0_33, %c0_34, %c3, %c0_35], %70 {strides = array<i32>} : memref<2x2x4x4x12xf32, #tpu.memory_space<vmem>>, vector<1x2x4x1x12xf32>,
    %c1_36 = arith.constant 1 : index
    %c0_37 = arith.constant 0 : index
    %72 = vector.load %arg5[%c1_36, %c0_37] : memref<2x12xf32, #tpu.memory_space<vmem>>, vector<1x12xf32>
    %73 = vector.shape_cast %72 : vector<1x12xf32> to vector<1x1x1x12xf32>
    %c1_38 = arith.constant 1 : index
    %c0_39 = arith.constant 0 : index
    %74 = vector.load %arg6[%c1_38, %c0_39] : memref<2x12xf32, #tpu.memory_space<vmem>>, vector<1x12xf32>
    %75 = vector.shape_cast %74 : vector<1x12xf32> to vector<1x1x1x12xf32>
    %76 = vector.broadcast %73 : vector<1x1x1x12xf32> to vector<2x8x8x12xf32>
    %77 = arith.mulf %13, %76 : vector<2x8x8x12xf32>
    %78 = vector.broadcast %75 : vector<1x1x1x12xf32> to vector<2x8x8x12xf32>
    %79 = arith.addf %77, %78 : vector<2x8x8x12xf32>
    %cst_40 = arith.constant 0.000000e+00 : f32
    %80 = vector.broadcast %cst_40 : f32 to vector<2x8x8x12xf32>
    %81 = arith.cmpf oge, %79, %80 : vector<2x8x8x12xf32>
    %cst_41 = arith.constant 1.000000e-01 : f32
    %82 = vector.broadcast %cst_41 : f32 to vector<2x8x8x12xf32>
    %83 = arith.mulf %82, %79 : vector<2x8x8x12xf32>
    %84 = arith.select %81, %79, %83 : vector<2x8x8x12xi1>, vector<2x8x8x12xf32>
    %85 = vector.extract_strided_slice %84 {offsets = [0, 0, 0, 0], sizes = [2, 1, 8, 12], strides = [1, 1, 1, 1]} : vector<2x8x8x12xf32> to vector<2x1x8x12xf32>
    %86 = vector.extract_strided_slice %84 {offsets = [0, 1, 0, 0], sizes = [2, 1, 8, 12], strides = [1, 1, 1, 1]} : vector<2x8x8x12xf32> to vector<2x1x8x12xf32>
    %87 = arith.maximumf %85, %86 : vector<2x1x8x12xf32>
    %88 = vector.extract_strided_slice %84 {offsets = [0, 1, 0, 0], sizes = [2, 1, 8, 12], strides = [1, 1, 1, 1]} : vector<2x8x8x12xf32> to vector<2x1x8x12xf32>
    %89 = vector.extract_strided_slice %84 {offsets = [0, 2, 0, 0], sizes = [2, 1, 8, 12], strides = [1, 1, 1, 1]} : vector<2x8x8x12xf32> to vector<2x1x8x12xf32>
    %90 = vector.extract_strided_slice %84 {offsets = [0, 3, 0, 0], sizes = [2, 1, 8, 12], strides = [1, 1, 1, 1]} : vector<2x8x8x12xf32> to vector<2x1x8x12xf32>
    %91 = arith.maximumf %88, %89 : vector<2x1x8x12xf32>
    %92 = arith.maximumf %91, %90 : vector<2x1x8x12xf32>
    %93 = vector.extract_strided_slice %84 {offsets = [0, 3, 0, 0], sizes = [2, 1, 8, 12], strides = [1, 1, 1, 1]} : vector<2x8x8x12xf32> to vector<2x1x8x12xf32>
    %94 = vector.extract_strided_slice %84 {offsets = [0, 4, 0, 0], sizes = [2, 1, 8, 12], strides = [1, 1, 1, 1]} : vector<2x8x8x12xf32> to vector<2x1x8x12xf32>
    %95 = vector.extract_strided_slice %84 {offsets = [0, 5, 0, 0], sizes = [2, 1, 8, 12], strides = [1, 1, 1, 1]} : vector<2x8x8x12xf32> to vector<2x1x8x12xf32>
    %96 = arith.maximumf %93, %94 : vector<2x1x8x12xf32>
    %97 = arith.maximumf %96, %95 : vector<2x1x8x12xf32>
    %98 = vector.extract_strided_slice %84 {offsets = [0, 5, 0, 0], sizes = [2, 1, 8, 12], strides = [1, 1, 1, 1]} : vector<2x8x8x12xf32> to vector<2x1x8x12xf32>
    %99 = vector.extract_strided_slice %84 {offsets = [0, 6, 0, 0], sizes = [2, 1, 8, 12], strides = [1, 1, 1, 1]} : vector<2x8x8x12xf32> to vector<2x1x8x12xf32>
    %100 = vector.extract_strided_slice %84 {offsets = [0, 7, 0, 0], sizes = [2, 1, 8, 12], strides = [1, 1, 1, 1]} : vector<2x8x8x12xf32> to vector<2x1x8x12xf32>
    %101 = arith.maximumf %98, %99 : vector<2x1x8x12xf32>
    %102 = arith.maximumf %101, %100 : vector<2x1x8x12xf32>
    %103 = tpu.concatenate %87, %92, %97, %102 in 1 : vector<2x1x8x12xf32>, vector<2x1x8x12xf32>, vector<2x1x8x12xf32>, vector<2x1x8x12xf32> -> vector<2x4x8x12xf32>
    %104 = vector.extract_strided_slice %103 {offsets = [0, 0, 0, 0], sizes = [2, 4, 1, 12], strides = [1, 1, 1, 1]} : vector<2x4x8x12xf32> to vector<2x4x1x12xf32>
    %105 = vector.extract_strided_slice %103 {offsets = [0, 0, 1, 0], sizes = [2, 4, 1, 12], strides = [1, 1, 1, 1]} : vector<2x4x8x12xf32> to vector<2x4x1x12xf32>
    %106 = arith.maximumf %104, %105 : vector<2x4x1x12xf32>
    %107 = vector.shape_cast %106 : vector<2x4x1x12xf32> to vector<1x2x4x1x12xf32>
    %c1_42 = arith.constant 1 : index
    %c0_43 = arith.constant 0 : index
    %c0_44 = arith.constant 0 : index
    %c0_45 = arith.constant 0 : index
    %c0_46 = arith.constant 0 : index
    %108 = vector.load %arg8[%c1_42, %c0_43, %c0_44, %c0_45, %c0_46] : memref<2x2x4x4x12xf32, #tpu.memory_space<vmem>>, vector<1x2x4x1x12xf32>
    tpu.vector_store %arg8[%c1_42, %c0_43, %c0_44, %c0_45, %c0_46], %107 {strides = array<i32>} : memref<2x2x4x4x12xf32, #tpu.memory_space<vmem>>, vector<1x2x4x1x12xf32>,
    %109 = vector.extract_strided_slice %103 {offsets = [0, 0, 1, 0], sizes = [2, 4, 1, 12], strides = [1, 1, 1, 1]} : vector<2x4x8x12xf32> to vector<2x4x1x12xf32>
    %110 = vector.extract_strided_slice %103 {offsets = [0, 0, 2, 0], sizes = [2, 4, 1, 12], strides = [1, 1, 1, 1]} : vector<2x4x8x12xf32> to vector<2x4x1x12xf32>
    %111 = vector.extract_strided_slice %103 {offsets = [0, 0, 3, 0], sizes = [2, 4, 1, 12], strides = [1, 1, 1, 1]} : vector<2x4x8x12xf32> to vector<2x4x1x12xf32>
    %112 = arith.maximumf %109, %110 : vector<2x4x1x12xf32>
    %113 = arith.maximumf %112, %111 : vector<2x4x1x12xf32>
    %114 = vector.shape_cast %113 : vector<2x4x1x12xf32> to vector<1x2x4x1x12xf32>
    %c1_47 = arith.constant 1 : index
    %c0_48 = arith.constant 0 : index
    %c0_49 = arith.constant 0 : index
    %c1_50 = arith.constant 1 : index
    %c0_51 = arith.constant 0 : index
    %115 = vector.load %arg8[%c1_47, %c0_48, %c0_49, %c1_50, %c0_51] : memref<2x2x4x4x12xf32, #tpu.memory_space<vmem>>, vector<1x2x4x1x12xf32>
    tpu.vector_store %arg8[%c1_47, %c0_48, %c0_49, %c1_50, %c0_51], %114 {strides = array<i32>} : memref<2x2x4x4x12xf32, #tpu.memory_space<vmem>>, vector<1x2x4x1x12xf32>,
    %116 = vector.extract_strided_slice %103 {offsets = [0, 0, 3, 0], sizes = [2, 4, 1, 12], strides = [1, 1, 1, 1]} : vector<2x4x8x12xf32> to vector<2x4x1x12xf32>
    %117 = vector.extract_strided_slice %103 {offsets = [0, 0, 4, 0], sizes = [2, 4, 1, 12], strides = [1, 1, 1, 1]} : vector<2x4x8x12xf32> to vector<2x4x1x12xf32>
    %118 = vector.extract_strided_slice %103 {offsets = [0, 0, 5, 0], sizes = [2, 4, 1, 12], strides = [1, 1, 1, 1]} : vector<2x4x8x12xf32> to vector<2x4x1x12xf32>
    %119 = arith.maximumf %116, %117 : vector<2x4x1x12xf32>
    %120 = arith.maximumf %119, %118 : vector<2x4x1x12xf32>
    %121 = vector.shape_cast %120 : vector<2x4x1x12xf32> to vector<1x2x4x1x12xf32>
    %c1_52 = arith.constant 1 : index
    %c0_53 = arith.constant 0 : index
    %c0_54 = arith.constant 0 : index
    %c2_55 = arith.constant 2 : index
    %c0_56 = arith.constant 0 : index
    %122 = vector.load %arg8[%c1_52, %c0_53, %c0_54, %c2_55, %c0_56] : memref<2x2x4x4x12xf32, #tpu.memory_space<vmem>>, vector<1x2x4x1x12xf32>
    tpu.vector_store %arg8[%c1_52, %c0_53, %c0_54, %c2_55, %c0_56], %121 {strides = array<i32>} : memref<2x2x4x4x12xf32, #tpu.memory_space<vmem>>, vector<1x2x4x1x12xf32>,
    %123 = vector.extract_strided_slice %103 {offsets = [0, 0, 5, 0], sizes = [2, 4, 1, 12], strides = [1, 1, 1, 1]} : vector<2x4x8x12xf32> to vector<2x4x1x12xf32>
    %124 = vector.extract_strided_slice %103 {offsets = [0, 0, 6, 0], sizes = [2, 4, 1, 12], strides = [1, 1, 1, 1]} : vector<2x4x8x12xf32> to vector<2x4x1x12xf32>
    %125 = vector.extract_strided_slice %103 {offsets = [0, 0, 7, 0], sizes = [2, 4, 1, 12], strides = [1, 1, 1, 1]} : vector<2x4x8x12xf32> to vector<2x4x1x12xf32>
    %126 = arith.maximumf %123, %124 : vector<2x4x1x12xf32>
    %127 = arith.maximumf %126, %125 : vector<2x4x1x12xf32>
    %128 = vector.shape_cast %127 : vector<2x4x1x12xf32> to vector<1x2x4x1x12xf32>
    %c1_57 = arith.constant 1 : index
    %c0_58 = arith.constant 0 : index
    %c0_59 = arith.constant 0 : index
    %c3_60 = arith.constant 3 : index
    %c0_61 = arith.constant 0 : index
    %129 = vector.load %arg8[%c1_57, %c0_58, %c0_59, %c3_60, %c0_61] : memref<2x2x4x4x12xf32, #tpu.memory_space<vmem>>, vector<1x2x4x1x12xf32>
    tpu.vector_store %arg8[%c1_57, %c0_58, %c0_59, %c3_60, %c0_61], %128 {strides = array<i32>} : memref<2x2x4x4x12xf32, #tpu.memory_space<vmem>>, vector<1x2x4x1x12xf32>,
    return
  }
  func.func @transform_0(%arg0: i32) -> (i32, i32) {
    %c0_i32 = arith.constant 0 : i32
    %c0_i32_0 = arith.constant 0 : i32
    %c0_i32_1 = arith.constant 0 : i32
    return %c0_i32, %c0_i32_0 : i32, i32
  }
  func.func @transform_1(%arg0: i32) -> (i32, i32, i32, i32) {
    %c0_i32 = arith.constant 0 : i32
    %c0_i32_0 = arith.constant 0 : i32
    %c0_i32_1 = arith.constant 0 : i32
    %c0_i32_2 = arith.constant 0 : i32
    %c0_i32_3 = arith.constant 0 : i32
    return %c0_i32, %c0_i32_0, %c0_i32_1, %c0_i32_2 : i32, i32, i32, i32
  }
  func.func @transform_2(%arg0: i32) -> (i32, i32) {
    %c0_i32 = arith.constant 0 : i32
    %c0_i32_0 = arith.constant 0 : i32
    %c0_i32_1 = arith.constant 0 : i32
    return %c0_i32, %c0_i32_0 : i32, i32
  }
  func.func @transform_3(%arg0: i32) -> (i32, i32) {
    %c0_i32 = arith.constant 0 : i32
    %c0_i32_0 = arith.constant 0 : i32
    %c0_i32_1 = arith.constant 0 : i32
    return %c0_i32, %c0_i32_0 : i32, i32
  }
  func.func @transform_4(%arg0: i32) -> (i32, i32) {
    %c0_i32 = arith.constant 0 : i32
    %c0_i32_0 = arith.constant 0 : i32
    %c0_i32_1 = arith.constant 0 : i32
    return %c0_i32, %c0_i32_0 : i32, i32
  }
  func.func @transform_5(%arg0: i32) -> (i32, i32) {
    %c0_i32 = arith.constant 0 : i32
    %c0_i32_0 = arith.constant 0 : i32
    %c0_i32_1 = arith.constant 0 : i32
    return %c0_i32, %c0_i32_0 : i32, i32
  }
  func.func @transform_6(%arg0: i32) -> (i32, i32) {
    %c0_i32 = arith.constant 0 : i32
    %c0_i32_0 = arith.constant 0 : i32
    %c0_i32_1 = arith.constant 0 : i32
    return %c0_i32, %c0_i32_0 : i32, i32
  }
  func.func @transform_7(%arg0: i32) -> (i32, i32, i32, i32, i32) {
    %c0_i32 = arith.constant 0 : i32
    %c0_i32_0 = arith.constant 0 : i32
    %c0_i32_1 = arith.constant 0 : i32
    %c0_i32_2 = arith.constant 0 : i32
    %c0_i32_3 = arith.constant 0 : i32
    %c0_i32_4 = arith.constant 0 : i32
    return %c0_i32, %c0_i32_0, %c0_i32_1, %c0_i32_2, %c0_i32_3 : i32, i32, i32, i32, i32
  }
}

module attributes {stable_mosaic.version = 11 : i64} {
  func.func @_block_kernel(%arg0: i32, %arg1: memref<8x432xf32, #tpu.memory_space<vmem>>, %arg2: memref<2x4x4x48xf32, #tpu.memory_space<vmem>>, %arg3: memref<432x96xbf16, #tpu.memory_space<vmem>>, %arg4: memref<1x96xf32, #tpu.memory_space<vmem>>, %arg5: memref<2x48xf32, #tpu.memory_space<vmem>>, %arg6: memref<2x48xf32, #tpu.memory_space<vmem>>, %arg7: memref<8x96xf32, #tpu.memory_space<vmem>>, %arg8: memref<2x2x2x2x48xf32, #tpu.memory_space<vmem>>) attributes {dimension_semantics = [#tpu.dimension_semantics<arbitrary>], iteration_bounds = array<i64: 1>, scalar_prefetch = 0 : i64, scratch_operands = 0 : i64, tpu.core_type = #tpu.core_type<tc>, window_params = [{pipeline_mode = #tpu.pipeline_mode<synchronous>, transform_indices = @transform_0, window_bounds = array<i64: 8, 432>}, {pipeline_mode = #tpu.pipeline_mode<synchronous>, transform_indices = @transform_1, window_bounds = array<i64: 2, 4, 4, 48>}, {pipeline_mode = #tpu.pipeline_mode<synchronous>, transform_indices = @transform_2, window_bounds = array<i64: 432, 96>}, {pipeline_mode = #tpu.pipeline_mode<synchronous>, transform_indices = @transform_3, window_bounds = array<i64: 1, 96>}, {pipeline_mode = #tpu.pipeline_mode<synchronous>, transform_indices = @transform_4, window_bounds = array<i64: 2, 48>}, {pipeline_mode = #tpu.pipeline_mode<synchronous>, transform_indices = @transform_5, window_bounds = array<i64: 2, 48>}, {pipeline_mode = #tpu.pipeline_mode<synchronous>, transform_indices = @transform_6, window_bounds = array<i64: 8, 96>}, {pipeline_mode = #tpu.pipeline_mode<synchronous>, transform_indices = @transform_7, window_bounds = array<i64: 2, 2, 2, 2, 48>}]} {
    %c0 = arith.constant 0 : index
    %c0_0 = arith.constant 0 : index
    %0 = vector.load %arg1[%c0, %c0_0] : memref<8x432xf32, #tpu.memory_space<vmem>>, vector<8x432xf32>
    %1 = arith.truncf %0 : vector<8x432xf32> to vector<8x432xbf16>
    %c0_1 = arith.constant 0 : index
    %c0_2 = arith.constant 0 : index
    %2 = vector.load %arg3[%c0_1, %c0_2] : memref<432x96xbf16, #tpu.memory_space<vmem>>, vector<432x96xbf16>
    %cst = arith.constant dense<0.000000e+00> : vector<8x96xf32>
    %3 = tpu.matmul %1, %2, %cst {dimension_numbers = #tpu.dot_dimension_numbers<[1], [0], [0], [1], [0, 0, 1, 1], [], []>} : vector<8x432xbf16>, vector<432x96xbf16>, vector<8x96xf32> -> vector<8x96xf32>
    %c0_3 = arith.constant 0 : index
    %c0_4 = arith.constant 0 : index
    %4 = vector.load %arg4[%c0_3, %c0_4] : memref<1x96xf32, #tpu.memory_space<vmem>>, vector<1x96xf32>
    %5 = vector.broadcast %4 : vector<1x96xf32> to vector<8x96xf32>
    %6 = arith.addf %3, %5 : vector<8x96xf32>
    %cst_5 = arith.constant 0.000000e+00 : f32
    %7 = vector.broadcast %cst_5 : f32 to vector<8x96xf32>
    %8 = arith.cmpf oge, %6, %7 : vector<8x96xf32>
    %cst_6 = arith.constant 1.000000e-01 : f32
    %9 = vector.broadcast %cst_6 : f32 to vector<8x96xf32>
    %10 = arith.mulf %9, %6 : vector<8x96xf32>
    %11 = arith.select %8, %6, %10 : vector<8x96xi1>, vector<8x96xf32>
    %c0_7 = arith.constant 0 : index
    %c0_8 = arith.constant 0 : index
    %12 = vector.load %arg7[%c0_7, %c0_8] : memref<8x96xf32, #tpu.memory_space<vmem>>, vector<8x96xf32>
    tpu.vector_store %arg7[%c0_7, %c0_8], %11 {strides = array<i32>} : memref<8x96xf32, #tpu.memory_space<vmem>>, vector<8x96xf32>,
    %c0_9 = arith.constant 0 : index
    %c0_10 = arith.constant 0 : index
    %c0_11 = arith.constant 0 : index
    %c0_12 = arith.constant 0 : index
    %13 = vector.load %arg2[%c0_9, %c0_10, %c0_11, %c0_12] : memref<2x4x4x48xf32, #tpu.memory_space<vmem>>, vector<2x4x4x48xf32>
    %c0_13 = arith.constant 0 : index
    %c0_14 = arith.constant 0 : index
    %14 = vector.load %arg5[%c0_13, %c0_14] : memref<2x48xf32, #tpu.memory_space<vmem>>, vector<1x48xf32>
    %15 = vector.shape_cast %14 : vector<1x48xf32> to vector<1x1x1x48xf32>
    %c0_15 = arith.constant 0 : index
    %c0_16 = arith.constant 0 : index
    %16 = vector.load %arg6[%c0_15, %c0_16] : memref<2x48xf32, #tpu.memory_space<vmem>>, vector<1x48xf32>
    %17 = vector.shape_cast %16 : vector<1x48xf32> to vector<1x1x1x48xf32>
    %18 = vector.broadcast %15 : vector<1x1x1x48xf32> to vector<2x4x4x48xf32>
    %19 = arith.mulf %13, %18 : vector<2x4x4x48xf32>
    %20 = vector.broadcast %17 : vector<1x1x1x48xf32> to vector<2x4x4x48xf32>
    %21 = arith.addf %19, %20 : vector<2x4x4x48xf32>
    %cst_17 = arith.constant 0.000000e+00 : f32
    %22 = vector.broadcast %cst_17 : f32 to vector<2x4x4x48xf32>
    %23 = arith.cmpf oge, %21, %22 : vector<2x4x4x48xf32>
    %cst_18 = arith.constant 1.000000e-01 : f32
    %24 = vector.broadcast %cst_18 : f32 to vector<2x4x4x48xf32>
    %25 = arith.mulf %24, %21 : vector<2x4x4x48xf32>
    %26 = arith.select %23, %21, %25 : vector<2x4x4x48xi1>, vector<2x4x4x48xf32>
    %27 = vector.extract_strided_slice %26 {offsets = [0, 0, 0, 0], sizes = [2, 1, 4, 48], strides = [1, 1, 1, 1]} : vector<2x4x4x48xf32> to vector<2x1x4x48xf32>
    %28 = vector.extract_strided_slice %26 {offsets = [0, 1, 0, 0], sizes = [2, 1, 4, 48], strides = [1, 1, 1, 1]} : vector<2x4x4x48xf32> to vector<2x1x4x48xf32>
    %29 = arith.maximumf %27, %28 : vector<2x1x4x48xf32>
    %30 = vector.extract_strided_slice %26 {offsets = [0, 1, 0, 0], sizes = [2, 1, 4, 48], strides = [1, 1, 1, 1]} : vector<2x4x4x48xf32> to vector<2x1x4x48xf32>
    %31 = vector.extract_strided_slice %26 {offsets = [0, 2, 0, 0], sizes = [2, 1, 4, 48], strides = [1, 1, 1, 1]} : vector<2x4x4x48xf32> to vector<2x1x4x48xf32>
    %32 = vector.extract_strided_slice %26 {offsets = [0, 3, 0, 0], sizes = [2, 1, 4, 48], strides = [1, 1, 1, 1]} : vector<2x4x4x48xf32> to vector<2x1x4x48xf32>
    %33 = arith.maximumf %30, %31 : vector<2x1x4x48xf32>
    %34 = arith.maximumf %33, %32 : vector<2x1x4x48xf32>
    %35 = tpu.concatenate %29, %34 in 1 : vector<2x1x4x48xf32>, vector<2x1x4x48xf32> -> vector<2x2x4x48xf32>
    %36 = vector.extract_strided_slice %35 {offsets = [0, 0, 0, 0], sizes = [2, 2, 1, 48], strides = [1, 1, 1, 1]} : vector<2x2x4x48xf32> to vector<2x2x1x48xf32>
    %37 = vector.extract_strided_slice %35 {offsets = [0, 0, 1, 0], sizes = [2, 2, 1, 48], strides = [1, 1, 1, 1]} : vector<2x2x4x48xf32> to vector<2x2x1x48xf32>
    %38 = arith.maximumf %36, %37 : vector<2x2x1x48xf32>
    %39 = vector.shape_cast %38 : vector<2x2x1x48xf32> to vector<1x2x2x1x48xf32>
    %c0_19 = arith.constant 0 : index
    %c0_20 = arith.constant 0 : index
    %c0_21 = arith.constant 0 : index
    %c0_22 = arith.constant 0 : index
    %c0_23 = arith.constant 0 : index
    %40 = vector.load %arg8[%c0_19, %c0_20, %c0_21, %c0_22, %c0_23] : memref<2x2x2x2x48xf32, #tpu.memory_space<vmem>>, vector<1x2x2x1x48xf32>
    tpu.vector_store %arg8[%c0_19, %c0_20, %c0_21, %c0_22, %c0_23], %39 {strides = array<i32>} : memref<2x2x2x2x48xf32, #tpu.memory_space<vmem>>, vector<1x2x2x1x48xf32>,
    %41 = vector.extract_strided_slice %35 {offsets = [0, 0, 1, 0], sizes = [2, 2, 1, 48], strides = [1, 1, 1, 1]} : vector<2x2x4x48xf32> to vector<2x2x1x48xf32>
    %42 = vector.extract_strided_slice %35 {offsets = [0, 0, 2, 0], sizes = [2, 2, 1, 48], strides = [1, 1, 1, 1]} : vector<2x2x4x48xf32> to vector<2x2x1x48xf32>
    %43 = vector.extract_strided_slice %35 {offsets = [0, 0, 3, 0], sizes = [2, 2, 1, 48], strides = [1, 1, 1, 1]} : vector<2x2x4x48xf32> to vector<2x2x1x48xf32>
    %44 = arith.maximumf %41, %42 : vector<2x2x1x48xf32>
    %45 = arith.maximumf %44, %43 : vector<2x2x1x48xf32>
    %46 = vector.shape_cast %45 : vector<2x2x1x48xf32> to vector<1x2x2x1x48xf32>
    %c0_24 = arith.constant 0 : index
    %c0_25 = arith.constant 0 : index
    %c0_26 = arith.constant 0 : index
    %c1 = arith.constant 1 : index
    %c0_27 = arith.constant 0 : index
    %47 = vector.load %arg8[%c0_24, %c0_25, %c0_26, %c1, %c0_27] : memref<2x2x2x2x48xf32, #tpu.memory_space<vmem>>, vector<1x2x2x1x48xf32>
    tpu.vector_store %arg8[%c0_24, %c0_25, %c0_26, %c1, %c0_27], %46 {strides = array<i32>} : memref<2x2x2x2x48xf32, #tpu.memory_space<vmem>>, vector<1x2x2x1x48xf32>,
    %c1_28 = arith.constant 1 : index
    %c0_29 = arith.constant 0 : index
    %48 = vector.load %arg5[%c1_28, %c0_29] : memref<2x48xf32, #tpu.memory_space<vmem>>, vector<1x48xf32>
    %49 = vector.shape_cast %48 : vector<1x48xf32> to vector<1x1x1x48xf32>
    %c1_30 = arith.constant 1 : index
    %c0_31 = arith.constant 0 : index
    %50 = vector.load %arg6[%c1_30, %c0_31] : memref<2x48xf32, #tpu.memory_space<vmem>>, vector<1x48xf32>
    %51 = vector.shape_cast %50 : vector<1x48xf32> to vector<1x1x1x48xf32>
    %52 = vector.broadcast %49 : vector<1x1x1x48xf32> to vector<2x4x4x48xf32>
    %53 = arith.mulf %13, %52 : vector<2x4x4x48xf32>
    %54 = vector.broadcast %51 : vector<1x1x1x48xf32> to vector<2x4x4x48xf32>
    %55 = arith.addf %53, %54 : vector<2x4x4x48xf32>
    %cst_32 = arith.constant 0.000000e+00 : f32
    %56 = vector.broadcast %cst_32 : f32 to vector<2x4x4x48xf32>
    %57 = arith.cmpf oge, %55, %56 : vector<2x4x4x48xf32>
    %cst_33 = arith.constant 1.000000e-01 : f32
    %58 = vector.broadcast %cst_33 : f32 to vector<2x4x4x48xf32>
    %59 = arith.mulf %58, %55 : vector<2x4x4x48xf32>
    %60 = arith.select %57, %55, %59 : vector<2x4x4x48xi1>, vector<2x4x4x48xf32>
    %61 = vector.extract_strided_slice %60 {offsets = [0, 0, 0, 0], sizes = [2, 1, 4, 48], strides = [1, 1, 1, 1]} : vector<2x4x4x48xf32> to vector<2x1x4x48xf32>
    %62 = vector.extract_strided_slice %60 {offsets = [0, 1, 0, 0], sizes = [2, 1, 4, 48], strides = [1, 1, 1, 1]} : vector<2x4x4x48xf32> to vector<2x1x4x48xf32>
    %63 = arith.maximumf %61, %62 : vector<2x1x4x48xf32>
    %64 = vector.extract_strided_slice %60 {offsets = [0, 1, 0, 0], sizes = [2, 1, 4, 48], strides = [1, 1, 1, 1]} : vector<2x4x4x48xf32> to vector<2x1x4x48xf32>
    %65 = vector.extract_strided_slice %60 {offsets = [0, 2, 0, 0], sizes = [2, 1, 4, 48], strides = [1, 1, 1, 1]} : vector<2x4x4x48xf32> to vector<2x1x4x48xf32>
    %66 = vector.extract_strided_slice %60 {offsets = [0, 3, 0, 0], sizes = [2, 1, 4, 48], strides = [1, 1, 1, 1]} : vector<2x4x4x48xf32> to vector<2x1x4x48xf32>
    %67 = arith.maximumf %64, %65 : vector<2x1x4x48xf32>
    %68 = arith.maximumf %67, %66 : vector<2x1x4x48xf32>
    %69 = tpu.concatenate %63, %68 in 1 : vector<2x1x4x48xf32>, vector<2x1x4x48xf32> -> vector<2x2x4x48xf32>
    %70 = vector.extract_strided_slice %69 {offsets = [0, 0, 0, 0], sizes = [2, 2, 1, 48], strides = [1, 1, 1, 1]} : vector<2x2x4x48xf32> to vector<2x2x1x48xf32>
    %71 = vector.extract_strided_slice %69 {offsets = [0, 0, 1, 0], sizes = [2, 2, 1, 48], strides = [1, 1, 1, 1]} : vector<2x2x4x48xf32> to vector<2x2x1x48xf32>
    %72 = arith.maximumf %70, %71 : vector<2x2x1x48xf32>
    %73 = vector.shape_cast %72 : vector<2x2x1x48xf32> to vector<1x2x2x1x48xf32>
    %c1_34 = arith.constant 1 : index
    %c0_35 = arith.constant 0 : index
    %c0_36 = arith.constant 0 : index
    %c0_37 = arith.constant 0 : index
    %c0_38 = arith.constant 0 : index
    %74 = vector.load %arg8[%c1_34, %c0_35, %c0_36, %c0_37, %c0_38] : memref<2x2x2x2x48xf32, #tpu.memory_space<vmem>>, vector<1x2x2x1x48xf32>
    tpu.vector_store %arg8[%c1_34, %c0_35, %c0_36, %c0_37, %c0_38], %73 {strides = array<i32>} : memref<2x2x2x2x48xf32, #tpu.memory_space<vmem>>, vector<1x2x2x1x48xf32>,
    %75 = vector.extract_strided_slice %69 {offsets = [0, 0, 1, 0], sizes = [2, 2, 1, 48], strides = [1, 1, 1, 1]} : vector<2x2x4x48xf32> to vector<2x2x1x48xf32>
    %76 = vector.extract_strided_slice %69 {offsets = [0, 0, 2, 0], sizes = [2, 2, 1, 48], strides = [1, 1, 1, 1]} : vector<2x2x4x48xf32> to vector<2x2x1x48xf32>
    %77 = vector.extract_strided_slice %69 {offsets = [0, 0, 3, 0], sizes = [2, 2, 1, 48], strides = [1, 1, 1, 1]} : vector<2x2x4x48xf32> to vector<2x2x1x48xf32>
    %78 = arith.maximumf %75, %76 : vector<2x2x1x48xf32>
    %79 = arith.maximumf %78, %77 : vector<2x2x1x48xf32>
    %80 = vector.shape_cast %79 : vector<2x2x1x48xf32> to vector<1x2x2x1x48xf32>
    %c1_39 = arith.constant 1 : index
    %c0_40 = arith.constant 0 : index
    %c0_41 = arith.constant 0 : index
    %c1_42 = arith.constant 1 : index
    %c0_43 = arith.constant 0 : index
    %81 = vector.load %arg8[%c1_39, %c0_40, %c0_41, %c1_42, %c0_43] : memref<2x2x2x2x48xf32, #tpu.memory_space<vmem>>, vector<1x2x2x1x48xf32>
    tpu.vector_store %arg8[%c1_39, %c0_40, %c0_41, %c1_42, %c0_43], %80 {strides = array<i32>} : memref<2x2x2x2x48xf32, #tpu.memory_space<vmem>>, vector<1x2x2x1x48xf32>,
    return
  }
  func.func @transform_0(%arg0: i32) -> (i32, i32) {
    %c0_i32 = arith.constant 0 : i32
    %c0_i32_0 = arith.constant 0 : i32
    %c0_i32_1 = arith.constant 0 : i32
    return %c0_i32, %c0_i32_0 : i32, i32
  }
  func.func @transform_1(%arg0: i32) -> (i32, i32, i32, i32) {
    %c0_i32 = arith.constant 0 : i32
    %c0_i32_0 = arith.constant 0 : i32
    %c0_i32_1 = arith.constant 0 : i32
    %c0_i32_2 = arith.constant 0 : i32
    %c0_i32_3 = arith.constant 0 : i32
    return %c0_i32, %c0_i32_0, %c0_i32_1, %c0_i32_2 : i32, i32, i32, i32
  }
  func.func @transform_2(%arg0: i32) -> (i32, i32) {
    %c0_i32 = arith.constant 0 : i32
    %c0_i32_0 = arith.constant 0 : i32
    %c0_i32_1 = arith.constant 0 : i32
    return %c0_i32, %c0_i32_0 : i32, i32
  }
  func.func @transform_3(%arg0: i32) -> (i32, i32) {
    %c0_i32 = arith.constant 0 : i32
    %c0_i32_0 = arith.constant 0 : i32
    %c0_i32_1 = arith.constant 0 : i32
    return %c0_i32, %c0_i32_0 : i32, i32
  }
  func.func @transform_4(%arg0: i32) -> (i32, i32) {
    %c0_i32 = arith.constant 0 : i32
    %c0_i32_0 = arith.constant 0 : i32
    %c0_i32_1 = arith.constant 0 : i32
    return %c0_i32, %c0_i32_0 : i32, i32
  }
  func.func @transform_5(%arg0: i32) -> (i32, i32) {
    %c0_i32 = arith.constant 0 : i32
    %c0_i32_0 = arith.constant 0 : i32
    %c0_i32_1 = arith.constant 0 : i32
    return %c0_i32, %c0_i32_0 : i32, i32
  }
  func.func @transform_6(%arg0: i32) -> (i32, i32) {
    %c0_i32 = arith.constant 0 : i32
    %c0_i32_0 = arith.constant 0 : i32
    %c0_i32_1 = arith.constant 0 : i32
    return %c0_i32, %c0_i32_0 : i32, i32
  }
  func.func @transform_7(%arg0: i32) -> (i32, i32, i32, i32, i32) {
    %c0_i32 = arith.constant 0 : i32
    %c0_i32_0 = arith.constant 0 : i32
    %c0_i32_1 = arith.constant 0 : i32
    %c0_i32_2 = arith.constant 0 : i32
    %c0_i32_3 = arith.constant 0 : i32
    %c0_i32_4 = arith.constant 0 : i32
    return %c0_i32, %c0_i32_0, %c0_i32_1, %c0_i32_2, %c0_i32_3 : i32, i32, i32, i32, i32
  }
}

module attributes {stable_mosaic.version = 11 : i64} {
  func.func @_tail_kernel(%arg0: i32, %arg1: memref<2x768xf32, #tpu.memory_space<vmem>>, %arg2: memref<8x192xf32, #tpu.memory_space<vmem>>, %arg3: memref<768x384xbf16, #tpu.memory_space<vmem>>, %arg4: memref<1x384xf32, #tpu.memory_space<vmem>>, %arg5: memref<192x384xf32, #tpu.memory_space<vmem>>, %arg6: memref<1x384xf32, #tpu.memory_space<vmem>>, %arg7: memref<768x768xbf16, #tpu.memory_space<vmem>>, %arg8: memref<1x768xf32, #tpu.memory_space<vmem>>, %arg9: memref<1x768xf32, #tpu.memory_space<vmem>>, %arg10: memref<1x768xf32, #tpu.memory_space<vmem>>, %arg11: memref<1536x640xbf16, #tpu.memory_space<vmem>>, %arg12: memref<1x640xf32, #tpu.memory_space<vmem>>, %arg13: memref<640x10xbf16, #tpu.memory_space<vmem>>, %arg14: memref<1x10xf32, #tpu.memory_space<vmem>>, %arg15: memref<2x768xf32, #tpu.memory_space<vmem>>, %arg16: memref<2x1536xf32, #tpu.memory_space<vmem>>, %arg17: memref<2x10xf32, #tpu.memory_space<vmem>>) attributes {dimension_semantics = [#tpu.dimension_semantics<arbitrary>], iteration_bounds = array<i64: 1>, scalar_prefetch = 0 : i64, scratch_operands = 0 : i64, tpu.core_type = #tpu.core_type<tc>, window_params = [{pipeline_mode = #tpu.pipeline_mode<synchronous>, transform_indices = @transform_0, window_bounds = array<i64: 2, 768>}, {pipeline_mode = #tpu.pipeline_mode<synchronous>, transform_indices = @transform_1, window_bounds = array<i64: 8, 192>}, {pipeline_mode = #tpu.pipeline_mode<synchronous>, transform_indices = @transform_2, window_bounds = array<i64: 768, 384>}, {pipeline_mode = #tpu.pipeline_mode<synchronous>, transform_indices = @transform_3, window_bounds = array<i64: 1, 384>}, {pipeline_mode = #tpu.pipeline_mode<synchronous>, transform_indices = @transform_4, window_bounds = array<i64: 192, 384>}, {pipeline_mode = #tpu.pipeline_mode<synchronous>, transform_indices = @transform_5, window_bounds = array<i64: 1, 384>}, {pipeline_mode = #tpu.pipeline_mode<synchronous>, transform_indices = @transform_6, window_bounds = array<i64: 768, 768>}, {pipeline_mode = #tpu.pipeline_mode<synchronous>, transform_indices = @transform_7, window_bounds = array<i64: 1, 768>}, {pipeline_mode = #tpu.pipeline_mode<synchronous>, transform_indices = @transform_8, window_bounds = array<i64: 1, 768>}, {pipeline_mode = #tpu.pipeline_mode<synchronous>, transform_indices = @transform_9, window_bounds = array<i64: 1, 768>}, {pipeline_mode = #tpu.pipeline_mode<synchronous>, transform_indices = @transform_10, window_bounds = array<i64: 1536, 640>}, {pipeline_mode = #tpu.pipeline_mode<synchronous>, transform_indices = @transform_11, window_bounds = array<i64: 1, 640>}, {pipeline_mode = #tpu.pipeline_mode<synchronous>, transform_indices = @transform_12, window_bounds = array<i64: 640, 10>}, {pipeline_mode = #tpu.pipeline_mode<synchronous>, transform_indices = @transform_13, window_bounds = array<i64: 1, 10>}, {pipeline_mode = #tpu.pipeline_mode<synchronous>, transform_indices = @transform_14, window_bounds = array<i64: 2, 768>}, {pipeline_mode = #tpu.pipeline_mode<synchronous>, transform_indices = @transform_15, window_bounds = array<i64: 2, 1536>}, {pipeline_mode = #tpu.pipeline_mode<synchronous>, transform_indices = @transform_16, window_bounds = array<i64: 2, 10>}]} {
    %c0 = arith.constant 0 : index
    %c0_0 = arith.constant 0 : index
    %0 = vector.load %arg1[%c0, %c0_0] : memref<2x768xf32, #tpu.memory_space<vmem>>, vector<2x768xf32>
    %1 = arith.truncf %0 : vector<2x768xf32> to vector<2x768xbf16>
    %c0_1 = arith.constant 0 : index
    %c0_2 = arith.constant 0 : index
    %2 = vector.load %arg3[%c0_1, %c0_2] : memref<768x384xbf16, #tpu.memory_space<vmem>>, vector<768x384xbf16>
    %cst = arith.constant dense<0.000000e+00> : vector<2x384xf32>
    %3 = tpu.matmul %1, %2, %cst {dimension_numbers = #tpu.dot_dimension_numbers<[1], [0], [0], [1], [0, 0, 1, 1], [], []>} : vector<2x768xbf16>, vector<768x384xbf16>, vector<2x384xf32> -> vector<2x384xf32>
    %c0_3 = arith.constant 0 : index
    %c0_4 = arith.constant 0 : index
    %4 = vector.load %arg4[%c0_3, %c0_4] : memref<1x384xf32, #tpu.memory_space<vmem>>, vector<1x384xf32>
    %5 = vector.broadcast %4 : vector<1x384xf32> to vector<2x384xf32>
    %6 = arith.addf %3, %5 : vector<2x384xf32>
    %cst_5 = arith.constant 0.000000e+00 : f32
    %7 = vector.broadcast %cst_5 : f32 to vector<2x384xf32>
    %8 = arith.cmpf oge, %6, %7 : vector<2x384xf32>
    %cst_6 = arith.constant 1.000000e-01 : f32
    %9 = vector.broadcast %cst_6 : f32 to vector<2x384xf32>
    %10 = arith.mulf %9, %6 : vector<2x384xf32>
    %11 = arith.select %8, %6, %10 : vector<2x384xi1>, vector<2x384xf32>
    %c0_7 = arith.constant 0 : index
    %c0_8 = arith.constant 0 : index
    %12 = vector.load %arg15[%c0_7, %c0_8] : memref<2x768xf32, #tpu.memory_space<vmem>>, vector<2x384xf32>
    tpu.vector_store %arg15[%c0_7, %c0_8], %11 {strides = array<i32>} : memref<2x768xf32, #tpu.memory_space<vmem>>, vector<2x384xf32>,
    %c0_9 = arith.constant 0 : index
    %c0_10 = arith.constant 0 : index
    %13 = vector.load %arg2[%c0_9, %c0_10] : memref<8x192xf32, #tpu.memory_space<vmem>>, vector<8x192xf32>
    %c0_11 = arith.constant 0 : index
    %c0_12 = arith.constant 0 : index
    %14 = vector.load %arg5[%c0_11, %c0_12] : memref<192x384xf32, #tpu.memory_space<vmem>>, vector<192x384xf32>
    %cst_13 = arith.constant dense<0.000000e+00> : vector<8x384xf32>
    %15 = tpu.matmul %13, %14, %cst_13 {dimension_numbers = #tpu.dot_dimension_numbers<[1], [0], [0], [1], [0, 0, 1, 1], [], []>} : vector<8x192xf32>, vector<192x384xf32>, vector<8x384xf32> -> vector<8x384xf32>
    %c0_14 = arith.constant 0 : index
    %c0_15 = arith.constant 0 : index
    %16 = vector.load %arg6[%c0_14, %c0_15] : memref<1x384xf32, #tpu.memory_space<vmem>>, vector<1x384xf32>
    %17 = vector.broadcast %16 : vector<1x384xf32> to vector<8x384xf32>
    %18 = arith.addf %15, %17 : vector<8x384xf32>
    %cst_16 = arith.constant 0.000000e+00 : f32
    %19 = vector.broadcast %cst_16 : f32 to vector<8x384xf32>
    %20 = arith.cmpf oge, %18, %19 : vector<8x384xf32>
    %cst_17 = arith.constant 1.000000e-01 : f32
    %21 = vector.broadcast %cst_17 : f32 to vector<8x384xf32>
    %22 = arith.mulf %21, %18 : vector<8x384xf32>
    %23 = arith.select %20, %18, %22 : vector<8x384xi1>, vector<8x384xf32>
    %24 = vector.extract_strided_slice %23 {offsets = [0, 0], sizes = [1, 384], strides = [1, 1]} : vector<8x384xf32> to vector<1x384xf32>
    %25 = vector.extract_strided_slice %23 {offsets = [1, 0], sizes = [1, 384], strides = [1, 1]} : vector<8x384xf32> to vector<1x384xf32>
    %26 = arith.maximumf %24, %25 : vector<1x384xf32>
    %27 = vector.extract_strided_slice %23 {offsets = [2, 0], sizes = [1, 384], strides = [1, 1]} : vector<8x384xf32> to vector<1x384xf32>
    %28 = arith.maximumf %26, %27 : vector<1x384xf32>
    %29 = vector.extract_strided_slice %23 {offsets = [3, 0], sizes = [1, 384], strides = [1, 1]} : vector<8x384xf32> to vector<1x384xf32>
    %30 = arith.maximumf %28, %29 : vector<1x384xf32>
    %c0_18 = arith.constant 0 : index
    %c384 = arith.constant 384 : index
    %31 = vector.load %arg15[%c0_18, %c384] : memref<2x768xf32, #tpu.memory_space<vmem>>, vector<1x384xf32>
    tpu.vector_store %arg15[%c0_18, %c384], %30 {strides = array<i32>} : memref<2x768xf32, #tpu.memory_space<vmem>>, vector<1x384xf32>,
    %32 = vector.extract_strided_slice %23 {offsets = [4, 0], sizes = [1, 384], strides = [1, 1]} : vector<8x384xf32> to vector<1x384xf32>
    %33 = vector.extract_strided_slice %23 {offsets = [5, 0], sizes = [1, 384], strides = [1, 1]} : vector<8x384xf32> to vector<1x384xf32>
    %34 = arith.maximumf %32, %33 : vector<1x384xf32>
    %35 = vector.extract_strided_slice %23 {offsets = [6, 0], sizes = [1, 384], strides = [1, 1]} : vector<8x384xf32> to vector<1x384xf32>
    %36 = arith.maximumf %34, %35 : vector<1x384xf32>
    %37 = vector.extract_strided_slice %23 {offsets = [7, 0], sizes = [1, 384], strides = [1, 1]} : vector<8x384xf32> to vector<1x384xf32>
    %38 = arith.maximumf %36, %37 : vector<1x384xf32>
    %c1 = arith.constant 1 : index
    %c384_19 = arith.constant 384 : index
    %39 = vector.load %arg15[%c1, %c384_19] : memref<2x768xf32, #tpu.memory_space<vmem>>, vector<1x384xf32>
    tpu.vector_store %arg15[%c1, %c384_19], %38 {strides = array<i32>} : memref<2x768xf32, #tpu.memory_space<vmem>>, vector<1x384xf32>,
    %c0_20 = arith.constant 0 : index
    %c0_21 = arith.constant 0 : index
    %40 = vector.load %arg15[%c0_20, %c0_21] : memref<2x768xf32, #tpu.memory_space<vmem>>, vector<2x768xf32>
    %41 = arith.truncf %40 : vector<2x768xf32> to vector<2x768xbf16>
    %c0_22 = arith.constant 0 : index
    %c0_23 = arith.constant 0 : index
    %42 = vector.load %arg7[%c0_22, %c0_23] : memref<768x768xbf16, #tpu.memory_space<vmem>>, vector<768x768xbf16>
    %cst_24 = arith.constant dense<0.000000e+00> : vector<2x768xf32>
    %43 = tpu.matmul %41, %42, %cst_24 {dimension_numbers = #tpu.dot_dimension_numbers<[1], [0], [0], [1], [0, 0, 1, 1], [], []>} : vector<2x768xbf16>, vector<768x768xbf16>, vector<2x768xf32> -> vector<2x768xf32>
    %c0_25 = arith.constant 0 : index
    %c0_26 = arith.constant 0 : index
    %44 = vector.load %arg8[%c0_25, %c0_26] : memref<1x768xf32, #tpu.memory_space<vmem>>, vector<1x768xf32>
    %45 = vector.broadcast %44 : vector<1x768xf32> to vector<2x768xf32>
    %46 = arith.addf %43, %45 : vector<2x768xf32>
    %cst_27 = arith.constant 0.000000e+00 : f32
    %47 = vector.broadcast %cst_27 : f32 to vector<2x768xf32>
    %48 = arith.cmpf oge, %46, %47 : vector<2x768xf32>
    %cst_28 = arith.constant 1.000000e-01 : f32
    %49 = vector.broadcast %cst_28 : f32 to vector<2x768xf32>
    %50 = arith.mulf %49, %46 : vector<2x768xf32>
    %51 = arith.select %48, %46, %50 : vector<2x768xi1>, vector<2x768xf32>
    %c0_29 = arith.constant 0 : index
    %c0_30 = arith.constant 0 : index
    %52 = vector.load %arg16[%c0_29, %c0_30] : memref<2x1536xf32, #tpu.memory_space<vmem>>, vector<2x768xf32>
    tpu.vector_store %arg16[%c0_29, %c0_30], %51 {strides = array<i32>} : memref<2x1536xf32, #tpu.memory_space<vmem>>, vector<2x768xf32>,
    %c0_31 = arith.constant 0 : index
    %c0_32 = arith.constant 0 : index
    %53 = vector.load %arg9[%c0_31, %c0_32] : memref<1x768xf32, #tpu.memory_space<vmem>>, vector<1x768xf32>
    %54 = vector.broadcast %53 : vector<1x768xf32> to vector<2x768xf32>
    %55 = arith.mulf %40, %54 : vector<2x768xf32>
    %c0_33 = arith.constant 0 : index
    %c0_34 = arith.constant 0 : index
    %56 = vector.load %arg10[%c0_33, %c0_34] : memref<1x768xf32, #tpu.memory_space<vmem>>, vector<1x768xf32>
    %57 = vector.broadcast %56 : vector<1x768xf32> to vector<2x768xf32>
    %58 = arith.addf %55, %57 : vector<2x768xf32>
    %cst_35 = arith.constant 0.000000e+00 : f32
    %59 = vector.broadcast %cst_35 : f32 to vector<2x768xf32>
    %60 = arith.cmpf oge, %58, %59 : vector<2x768xf32>
    %cst_36 = arith.constant 1.000000e-01 : f32
    %61 = vector.broadcast %cst_36 : f32 to vector<2x768xf32>
    %62 = arith.mulf %61, %58 : vector<2x768xf32>
    %63 = arith.select %60, %58, %62 : vector<2x768xi1>, vector<2x768xf32>
    %c0_37 = arith.constant 0 : index
    %c768 = arith.constant 768 : index
    %64 = vector.load %arg16[%c0_37, %c768] : memref<2x1536xf32, #tpu.memory_space<vmem>>, vector<2x768xf32>
    tpu.vector_store %arg16[%c0_37, %c768], %63 {strides = array<i32>} : memref<2x1536xf32, #tpu.memory_space<vmem>>, vector<2x768xf32>,
    %c0_38 = arith.constant 0 : index
    %c0_39 = arith.constant 0 : index
    %65 = vector.load %arg16[%c0_38, %c0_39] : memref<2x1536xf32, #tpu.memory_space<vmem>>, vector<2x1536xf32>
    %66 = arith.truncf %65 : vector<2x1536xf32> to vector<2x1536xbf16>
    %c0_40 = arith.constant 0 : index
    %c0_41 = arith.constant 0 : index
    %67 = vector.load %arg11[%c0_40, %c0_41] : memref<1536x640xbf16, #tpu.memory_space<vmem>>, vector<1536x640xbf16>
    %cst_42 = arith.constant dense<0.000000e+00> : vector<2x640xf32>
    %68 = tpu.matmul %66, %67, %cst_42 {dimension_numbers = #tpu.dot_dimension_numbers<[1], [0], [0], [1], [0, 0, 1, 1], [], []>} : vector<2x1536xbf16>, vector<1536x640xbf16>, vector<2x640xf32> -> vector<2x640xf32>
    %c0_43 = arith.constant 0 : index
    %c0_44 = arith.constant 0 : index
    %69 = vector.load %arg12[%c0_43, %c0_44] : memref<1x640xf32, #tpu.memory_space<vmem>>, vector<1x640xf32>
    %70 = vector.broadcast %69 : vector<1x640xf32> to vector<2x640xf32>
    %71 = arith.addf %68, %70 : vector<2x640xf32>
    %cst_45 = arith.constant 0.000000e+00 : f32
    %72 = vector.broadcast %cst_45 : f32 to vector<2x640xf32>
    %73 = arith.maximumf %71, %72 : vector<2x640xf32>
    %74 = arith.truncf %73 : vector<2x640xf32> to vector<2x640xbf16>
    %c0_46 = arith.constant 0 : index
    %c0_47 = arith.constant 0 : index
    %75 = vector.load %arg13[%c0_46, %c0_47] : memref<640x10xbf16, #tpu.memory_space<vmem>>, vector<640x10xbf16>
    %cst_48 = arith.constant dense<0.000000e+00> : vector<2x10xf32>
    %76 = tpu.matmul %74, %75, %cst_48 {dimension_numbers = #tpu.dot_dimension_numbers<[1], [0], [0], [1], [0, 0, 1, 1], [], []>} : vector<2x640xbf16>, vector<640x10xbf16>, vector<2x10xf32> -> vector<2x10xf32>
    %c0_49 = arith.constant 0 : index
    %c0_50 = arith.constant 0 : index
    %77 = vector.load %arg14[%c0_49, %c0_50] : memref<1x10xf32, #tpu.memory_space<vmem>>, vector<1x10xf32>
    %78 = vector.broadcast %77 : vector<1x10xf32> to vector<2x10xf32>
    %79 = arith.addf %76, %78 : vector<2x10xf32>
    %c0_51 = arith.constant 0 : index
    %c0_52 = arith.constant 0 : index
    %80 = vector.load %arg17[%c0_51, %c0_52] : memref<2x10xf32, #tpu.memory_space<vmem>>, vector<2x10xf32>
    tpu.vector_store %arg17[%c0_51, %c0_52], %79 {strides = array<i32>} : memref<2x10xf32, #tpu.memory_space<vmem>>, vector<2x10xf32>,
    return
  }
  func.func @transform_0(%arg0: i32) -> (i32, i32) {
    %c0_i32 = arith.constant 0 : i32
    %c0_i32_0 = arith.constant 0 : i32
    %c0_i32_1 = arith.constant 0 : i32
    return %c0_i32, %c0_i32_0 : i32, i32
  }
  func.func @transform_1(%arg0: i32) -> (i32, i32) {
    %c0_i32 = arith.constant 0 : i32
    %c0_i32_0 = arith.constant 0 : i32
    %c0_i32_1 = arith.constant 0 : i32
    return %c0_i32, %c0_i32_0 : i32, i32
  }
  func.func @transform_2(%arg0: i32) -> (i32, i32) {
    %c0_i32 = arith.constant 0 : i32
    %c0_i32_0 = arith.constant 0 : i32
    %c0_i32_1 = arith.constant 0 : i32
    return %c0_i32, %c0_i32_0 : i32, i32
  }
  func.func @transform_3(%arg0: i32) -> (i32, i32) {
    %c0_i32 = arith.constant 0 : i32
    %c0_i32_0 = arith.constant 0 : i32
    %c0_i32_1 = arith.constant 0 : i32
    return %c0_i32, %c0_i32_0 : i32, i32
  }
  func.func @transform_4(%arg0: i32) -> (i32, i32) {
    %c0_i32 = arith.constant 0 : i32
    %c0_i32_0 = arith.constant 0 : i32
    %c0_i32_1 = arith.constant 0 : i32
    return %c0_i32, %c0_i32_0 : i32, i32
  }
  func.func @transform_5(%arg0: i32) -> (i32, i32) {
    %c0_i32 = arith.constant 0 : i32
    %c0_i32_0 = arith.constant 0 : i32
    %c0_i32_1 = arith.constant 0 : i32
    return %c0_i32, %c0_i32_0 : i32, i32
  }
  func.func @transform_6(%arg0: i32) -> (i32, i32) {
    %c0_i32 = arith.constant 0 : i32
    %c0_i32_0 = arith.constant 0 : i32
    %c0_i32_1 = arith.constant 0 : i32
    return %c0_i32, %c0_i32_0 : i32, i32
  }
  func.func @transform_7(%arg0: i32) -> (i32, i32) {
    %c0_i32 = arith.constant 0 : i32
    %c0_i32_0 = arith.constant 0 : i32
    %c0_i32_1 = arith.constant 0 : i32
    return %c0_i32, %c0_i32_0 : i32, i32
  }
  func.func @transform_8(%arg0: i32) -> (i32, i32) {
    %c0_i32 = arith.constant 0 : i32
    %c0_i32_0 = arith.constant 0 : i32
    %c0_i32_1 = arith.constant 0 : i32
    return %c0_i32, %c0_i32_0 : i32, i32
  }
  func.func @transform_9(%arg0: i32) -> (i32, i32) {
    %c0_i32 = arith.constant 0 : i32
    %c0_i32_0 = arith.constant 0 : i32
    %c0_i32_1 = arith.constant 0 : i32
    return %c0_i32, %c0_i32_0 : i32, i32
  }
  func.func @transform_10(%arg0: i32) -> (i32, i32) {
    %c0_i32 = arith.constant 0 : i32
    %c0_i32_0 = arith.constant 0 : i32
    %c0_i32_1 = arith.constant 0 : i32
    return %c0_i32, %c0_i32_0 : i32, i32
  }
  func.func @transform_11(%arg0: i32) -> (i32, i32) {
    %c0_i32 = arith.constant 0 : i32
    %c0_i32_0 = arith.constant 0 : i32
    %c0_i32_1 = arith.constant 0 : i32
    return %c0_i32, %c0_i32_0 : i32, i32
  }
  func.func @transform_12(%arg0: i32) -> (i32, i32) {
    %c0_i32 = arith.constant 0 : i32
    %c0_i32_0 = arith.constant 0 : i32
    %c0_i32_1 = arith.constant 0 : i32
    return %c0_i32, %c0_i32_0 : i32, i32
  }
  func.func @transform_13(%arg0: i32) -> (i32, i32) {
    %c0_i32 = arith.constant 0 : i32
    %c0_i32_0 = arith.constant 0 : i32
    %c0_i32_1 = arith.constant 0 : i32
    return %c0_i32, %c0_i32_0 : i32, i32
  }
  func.func @transform_14(%arg0: i32) -> (i32, i32) {
    %c0_i32 = arith.constant 0 : i32
    %c0_i32_0 = arith.constant 0 : i32
    %c0_i32_1 = arith.constant 0 : i32
    return %c0_i32, %c0_i32_0 : i32, i32
  }
  func.func @transform_15(%arg0: i32) -> (i32, i32) {
    %c0_i32 = arith.constant 0 : i32
    %c0_i32_0 = arith.constant 0 : i32
    %c0_i32_1 = arith.constant 0 : i32
    return %c0_i32, %c0_i32_0 : i32, i32
  }
  func.func @transform_16(%arg0: i32) -> (i32, i32) {
    %c0_i32 = arith.constant 0 : i32
    %c0_i32_0 = arith.constant 0 : i32
    %c0_i32_1 = arith.constant 0 : i32
    return %c0_i32, %c0_i32_0 : i32, i32
  }
}

</mosaic_0001>

<bundles_post_ra>
// kernel: binocular_net_forward.5
= control target key start
LH: loop header
LB: loop body
LE: loop exit
PB: predicated region body
PF: predicated region fallthrough
CT: control target
= control target key end

     0   :  { %vm101_vm0 = vcmask 1045504   ;;  %vm94_vm1 = vcmask 883712   ;;  %s1192_s2 = inlined_call_operand.vmem [shape: bf16[108,24], index: 2, kind: input, shape index: {}]   ;;  %s1193_s0 = inlined_call_operand.vmem [shape: f32[32,108], index: 0, kind: input, shape index: {}]   ;;  %s1194_s1 = inlined_call_operand.vmem [shape: f32[2,8,8,12], index: 1, kind: input, shape index: {}]   ;;  %s1195_s4 = inlined_call_operand.vmem [shape: f32[2,12], index: 4, kind: input, shape index: {}]   ;;  %s1196_s5 = inlined_call_operand.vmem [shape: f32[2,12], index: 5, kind: input, shape index: {}]   ;;  %s1197_s7 = inlined_call_operand.vmem [shape: f32[2,2,4,4,12], index: 7, kind: output, shape index: {1}]   ;;  %s1198_s3 = inlined_call_operand.vmem [shape: f32[1,24], index: 3, kind: input, shape index: {}]   ;;  %s1199_s6 = inlined_call_operand.vmem [shape: f32[32,24], index: 6, kind: output, shape index: {0}]  }
   0x1   :  { %v658_v0 = vld [vmem:[%s1192_s2 + $0x30] sm:$0x3f]   ;;  %v659_v1 = vld [vmem:[%s1192_s2 + $0x28] sm:$0xff]   ;;  %v660_v3 = vld [vmem:[%s1192_s2 + $0x20] sm:$0xff]  }
   0x2   :  { %657 = vmatprep.subr.msk.bf16.mxu0 %vm101_vm0, %v658_v0  ;;  %v103_v2 = vsel %vm101_vm0, %v658_v0, 0  ;;  %v26_v4 = vld [vmem:[%s1193_s0] sm:$0xff]  ;;  %v27_v5 = vld [vmem:[%s1193_s0 + $0x8] sm:$0xff]  ;;  %v661_v6 = vld [vmem:[%s1192_s2 + $0x18] sm:$0xff]  }
   0x3   :  { %640 = vmatpush3.bf16.msra.mxu0 %v103_v2  ;;  %v30_v7 = vpack.c.bf16 %v27_v5, %v26_v4  ;;  %v662_v8 = vld [vmem:[%s1192_s2 + $0x10] sm:$0xff]   ;;  %v663_v9 = vld [vmem:[%s1192_s2 + $0x8] sm:$0xff]   ;;  %v664_v10 = vld [vmem:[%s1192_s2] sm:$0xff]  }
   0x4   :  { %641 = vmatprep.subr.bf16.mxu0 %v659_v1  ;;  %v28_v11 = vld [vmem:[%s1193_s0 + $0x10] sm:$0xff]  ;;  %v29_v12 = vld [vmem:[%s1193_s0 + $0x18] sm:$0xff]  ;;  %v743_v14 = vld [vmem:[%s1194_s1 + $0x8] sm:$0xff] }
   0x5   :  { %653 = vmatprep.mubr.msk.bf16.mxu0 %vm94_vm1, %v30_v7  ;;  %v31_v13 = vpack.c.bf16 %v29_v12, %v28_v11  ;;  %v748_v15 = vld [vmem:[%s1194_s1 + $0x10] sm:$0xff]  ;;  %v753_v16 = vld [vmem:[%s1194_s1 + $0x18] sm:$0xff]  ;;  %v758_v17 = vld [vmem:[%s1194_s1] sm:$0xff] }
   0x6   :  { %v763_v18 = vld [vmem:[%s1194_s1 + $0x20] sm:$0xff]  ;;  %v768_v19 = vld [vmem:[%s1194_s1 + $0x28] sm:$0xff]  ;;  %v773_v20 = vld [vmem:[%s1194_s1 + $0x30] sm:$0xff] }
   0x7   :  { %642 = vmatpush3.bf16.msra.mxu0 %v659_v1  ;;  %v778_v21 = vld [vmem:[%s1194_s1 + $0x38] sm:$0xff]  ;;  %v783_v22 = vld [vmem:[%s1194_s1 + $0x40] sm:$0xff]  ;;  %v788_v23 = vld [vmem:[%s1194_s1 + $0x48] sm:$0xff] }
   0x8   :  { %643 = vmatprep.subr.bf16.mxu0 %v660_v3  ;;  %v793_v24 = vld [vmem:[%s1194_s1 + $0x50] sm:$0xff]  ;;  %v594_v25 = vld [vmem:[%s1195_s4] ss:$0 sm:$0xff]  ;;  %v801_v26 = vld [vmem:[%s1194_s1 + $0x58] sm:$0xff] }
   0x9   :  { %v806_v27 = vld [vmem:[%s1194_s1 + $0x60] sm:$0xff]  ;;  %v811_v28 = vld [vmem:[%s1194_s1 + $0x68] sm:$0xff]  ;;  %v193_v29 = vmul.f32 %v594_v25, %v758_v17  ;;  %v194_v30 = vmul.f32 %v594_v25, %v743_v14  ;;  %v818_v31 = vld [vmem:[%s1194_s1 + $0x70] sm:$0xff]  ;;  %v195_v34 = vmul.f32 %v594_v25, %v748_v15  ;;  %v196_v35 = vmul.f32 %v594_v25, %v753_v16 }
   0xa   :  { %v823_v32 = vld [vmem:[%s1194_s1 + $0x78] sm:$0xff]  ;;  %v595_v33 = vld [vmem:[%s1196_s5] ss:$0 sm:$0xff]  ;;  %v197_v36 = vmul.f32 %v594_v25, %v763_v18  ;;  %v198_v37 = vmul.f32 %v594_v25, %v768_v19  ;;  %v199_v38 = vmul.f32 %v594_v25, %v773_v20  ;;  %v200_v39 = vmul.f32 %v594_v25, %v778_v21  ;;  %v845_v0 = vld [vmem:[%s1195_s4 + $0x1] ss:$0 sm:$0xff] }
   0xb   :  { %644 = vmatpush3.bf16.msra.mxu0 %v660_v3  ;;  %v201_v40 = vmul.f32 %v594_v25, %v783_v22  ;;  %v202_v41 = vmul.f32 %v594_v25, %v788_v23  ;;  %v203_v42 = vmul.f32 %v594_v25, %v793_v24  ;;  %v204_v43 = vmul.f32 %v594_v25, %v801_v26 }
   0xc   :  { %645 = vmatprep.subr.bf16.mxu0 %v661_v6  ;;  %v205_v44 = vmul.f32 %v594_v25, %v806_v27  ;;  %v206_v45 = vmul.f32 %v594_v25, %v811_v28  ;;  %v207_v46 = vmul.f32 %v594_v25, %v818_v31  ;;  %v208_v47 = vmul.f32 %v594_v25, %v823_v32 }
   0xd   :  { %v213_v48 = vadd.f32 %v595_v33, %v193_v29  ;;  %v214_v49 = vadd.f32 %v595_v33, %v194_v30  ;;  %v215_v50 = vadd.f32 %v595_v33, %v195_v34  ;;  %v216_v51 = vadd.f32 %v595_v33, %v196_v35 }
   0xe   :  { %v217_v52 = vadd.f32 %v595_v33, %v197_v36  ;;  %v218_v53 = vadd.f32 %v595_v33, %v198_v37  ;;  %v219_v54 = vadd.f32 %v595_v33, %v199_v38  ;;  %v220_v55 = vadd.f32 %v595_v33, %v200_v39 }
   0xf   :  { %646 = vmatpush3.bf16.msra.mxu0 %v661_v6  ;;  %v221_v56 = vadd.f32 %v595_v33, %v201_v40  ;;  %v222_v57 = vadd.f32 %v595_v33, %v202_v41  ;;  %v223_v58 = vadd.f32 %v595_v33, %v203_v42  ;;  %v224_v59 = vadd.f32 %v595_v33, %v204_v43 }
  0x10   :  { %647 = vmatprep.subr.bf16.mxu0 %v662_v8  ;;  %v225_v60 = vadd.f32 %v595_v33, %v205_v44  ;;  %v226_v61 = vadd.f32 %v595_v33, %v206_v45  ;;  %v227_v62 = vadd.f32 %v595_v33, %v207_v46  ;;  %v228_v63 = vadd.f32 %v595_v33, %v208_v47 }
  0x11   :  { %vm229_vm2 = vcmp.ge.f32.partialorder %v213_v48, 0.0  ;;  %vm230_vm3 = vcmp.ge.f32.partialorder %v214_v49, 0.0  ;;  %vm231_vm4 = vcmp.ge.f32.partialorder %v215_v50, 0.0  ;;  %vm232_vm5 = vcmp.ge.f32.partialorder %v216_v51, 0.0 }
  0x12   :  { %vm233_vm6 = vcmp.ge.f32.partialorder %v217_v52, 0.0  ;;  %vm234_vm7 = vcmp.ge.f32.partialorder %v218_v53, 0.0  ;;  %vm235_vm8 = vcmp.ge.f32.partialorder %v219_v54, 0.0  ;;  %vm236_vm9 = vcmp.ge.f32.partialorder %v220_v55, 0.0 }
  0x13   :  { %648 = vmatpush3.bf16.msra.mxu0 %v662_v8  ;;  %vm237_vm10 = vcmp.ge.f32.partialorder %v221_v56, 0.0  ;;  %vm238_vm11 = vcmp.ge.f32.partialorder %v222_v57, 0.0  ;;  %vm239_vm12 = vcmp.ge.f32.partialorder %v223_v58, 0.0  ;;  %vm240_vm13 = vcmp.ge.f32.partialorder %v224_v59, 0.0 }
  0x14   :  { %649 = vmatprep.subr.bf16.mxu0 %v663_v9  ;;  %vm241_vm14 = vcmp.ge.f32.partialorder %v225_v60, 0.0  ;;  %vm242_vm15 = vcmp.ge.f32.partialorder %v226_v61, 0.0  ;;  %vm243_vm0 = vcmp.ge.f32.partialorder %v227_v62, 0.0  ;;  %v245_v1 = vmul.f32 0.1, %v213_v48 }
  0x15   :  { %v246_v2 = vmul.f32 0.1, %v214_v49  ;;  %v247_v3 = vmul.f32 0.1, %v215_v50  ;;  %v248_v4 = vmul.f32 0.1, %v216_v51  ;;  %v849_v6 = vmul.f32 %v845_v0, %v758_v17 }
  0x16   :  { %v249_v5 = vmul.f32 0.1, %v217_v52  ;;  %v250_v7 = vmul.f32 0.1, %v218_v53  ;;  %v251_v8 = vmul.f32 0.1, %v219_v54 }
  0x17   :  { %650 = vmatpush3.bf16.msra.mxu0 %v663_v9  ;;  %v252_v9 = vmul.f32 0.1, %v220_v55  ;;  %v253_v11 = vmul.f32 0.1, %v221_v56  ;;  %v254_v12 = vmul.f32 0.1, %v222_v57  ;;  %v262_v25 = vsel %vm230_vm3, %v214_v49, %v246_v2 }
  0x18   :  { %651 = vmatprep.subr.bf16.mxu0 %v664_v10  ;;  %v256_v29 = vmul.f32 0.1, %v224_v59  ;;  %v257_v30 = vmul.f32 0.1, %v225_v60  ;;  %v258_v33 = vmul.f32 0.1, %v226_v61  ;;  %v263_v34 = vsel %vm231_vm4, %v215_v50, %v247_v3 }
  0x19   :  { %v259_v35 = vmul.f32 0.1, %v227_v62  ;;  %v260_v36 = vmul.f32 0.1, %v228_v63  ;;  %v264_v17 = vsel %vm232_vm5, %v216_v51, %v248_v4  ;;  %v265_v37 = vsel %vm233_vm6, %v217_v52, %v249_v5 }
  0x1a   :  { %v266_v38 = vsel %vm234_vm7, %v218_v53, %v250_v7  ;;  %v267_v39 = vsel %vm235_vm8, %v219_v54, %v251_v8  ;;  %v268_v40 = vsel %vm236_vm9, %v220_v55, %v252_v9  ;;  %v269_v41 = vsel %vm237_vm10, %v221_v56, %v253_v11 }
  0x1b   :  { %652 = vmatpush3.bf16.msra.mxu0 %v664_v10  ;;  %v261_v10 = vsel %vm229_vm2, %v213_v48, %v245_v1  ;;  %v270_v42 = vsel %vm238_vm11, %v222_v57, %v254_v12  ;;  %v272_v44 = vsel %vm240_vm13, %v224_v59, %v256_v29  ;;  %v273_v45 = vsel %vm241_vm14, %v225_v60, %v257_v30 }
  0x1c   :  { %v274_v46 = vsel %vm242_vm15, %v226_v61, %v258_v33  ;;  %v275_v47 = vsel %vm243_vm0, %v227_v62, %v259_v35  ;;  %vm1204_vm2 = vcmp.ge.f32.partialorder %v228_v63, 0.0  ;;  %v277_v49 = vmax.f32 %v261_v10, %v262_v25 }
  0x1d   :  { %v276_v48 = vsel %vm1204_vm2, %v228_v63, %v260_v36  ;;  %v278_v50 = vmax.f32 %v269_v41, %v270_v42  ;;  %v279_v51 = vmax.f32 %v262_v25, %v263_v34  ;;  %v283_v53 = vmax.f32 %v264_v17, %v265_v37 }
  0x1e   :  { %654 = vmatmul.mubr.msk.bf16.vlgmr.msra.gmra.mxu0 %vm94_vm1, %v31_v13  ;;  %v255_v13 = vmul.f32 0.1, %v223_v58  ;;  %vm1203_vm1 = vcmask 90112   ;;  %v284_v54 = vmax.f32 %v272_v44, %v273_v45  ;;  %v287_v55 = vmax.f32 %v266_v38, %v267_v39 }
  0x1f   :  { %v288_v56 = vmax.f32 %v274_v46, %v275_v47  ;;  %v299_v57 = vrot.slane %v277_v49, 1  ;;  %v285_v59 = vmax.f32 %v283_v53, %v266_v38  ;;  %v303_v2 = vrot.slane %v278_v50, 1 }
  0x20   :  { %v271_v43 = vsel %vm239_vm12, %v223_v58, %v255_v13  ;;  %v281_v58 = vmax.f32 %v279_v51, %v264_v17  ;;  %v286_v60 = vmax.f32 %v284_v54, %v274_v46  ;;  %v289_v3 = vmax.f32 %v287_v55, %v268_v40 }
  0x21   :  { %v280_v52 = vmax.f32 %v270_v42, %v271_v43  ;;  %v290_v61 = vmax.f32 %v288_v56, %v276_v48  ;;  %v315_v4 = vmax.f32 %v277_v49, %v299_v57  ;;  %v301_v5 = vrot.slane %v285_v59, 1 }
  0x22   :  { %v300_v62 = vrot.slane %v281_v58, 1  ;;  %v319_v7 = vmax.f32 %v278_v50, %v303_v2  ;;  %v302_v8 = vrot.slane %v289_v3, 1  ;;  %v305_v9 = vrot.slane %v286_v60, 1 }
  0x23   :  { %v282_v1 = vmax.f32 %v280_v52, %v272_v44  ;;  %v306_v10 = vrot.slane %v290_v61, 1  ;;  %324 = vst.msk [vmem:[%s1197_s7] sm:$0x1] %vm1203_vm1, %v315_v4  ;;  %v332_v11 = vrot.slane %v277_v49, 2  ;;  %v317_v13 = vmax.f32 %v285_v59, %v301_v5 }
  0x24   :  { %v316_v12 = vmax.f32 %v281_v58, %v300_v62  ;;  %328 = vst.msk [vmem:[%s1197_s7 + $0x10] sm:$0x1] %vm1203_vm1, %v319_v7  ;;  %v333_v29 = vrot.slane %v281_v58, 2  ;;  %v318_v30 = vmax.f32 %v289_v3, %v302_v8  ;;  %v321_v33 = vmax.f32 %v286_v60, %v305_v9 }
  0x25   :  { %v304_v63 = vrot.slane %v282_v1, 1  ;;  %v322_v34 = vmax.f32 %v290_v61, %v306_v10  ;;  %v334_v35 = vrot.slane %v285_v59, 2  ;;  %326 = vst.msk [vmem:[%s1197_s7 + $0x8] sm:$0x1] %vm1203_vm1, %v317_v13  ;;  %v335_v36 = vrot.slane %v289_v3, 2 }
  0x26   :  { %325 = vst.msk [vmem:[%s1197_s7 + $0x4] sm:$0x1] %vm1203_vm1, %v316_v12  ;;  %v336_v17 = vrot.slane %v278_v50, 2  ;;  %v337_v37 = vrot.slane %v282_v1, 2  ;;  %v338_v38 = vrot.slane %v286_v60, 2  ;;  %v339_v39 = vrot.slane %v290_v61, 2 }
  0x27   :  { %v320_v25 = vmax.f32 %v282_v1, %v304_v63  ;;  %327 = vst.msk [vmem:[%s1197_s7 + $0xc] sm:$0x1] %vm1203_vm1, %v318_v30  ;;  %330 = vst.msk [vmem:[%s1197_s7 + $0x18] sm:$0x1] %vm1203_vm1, %v321_v33  ;;  %v348_v40 = vmax.f32 %v315_v4, %v332_v11  ;;  %v349_v41 = vmax.f32 %v316_v12, %v333_v29  ;;  %vm1202_vm3 = vcmask 91137  }
  0x28   :  { %331 = vst.msk [vmem:[%s1197_s7 + $0x1c] sm:$0x1] %vm1203_vm1, %v322_v34  ;;  %v350_v42 = vmax.f32 %v317_v13, %v334_v35  ;;  %v351_v43 = vmax.f32 %v318_v30, %v335_v36  ;;  %v352_v44 = vmax.f32 %v319_v7, %v336_v17  ;;  %v354_v46 = vmax.f32 %v321_v33, %v338_v38 }
  0x29   :  { %329 = vst.msk [vmem:[%s1197_s7 + $0x14] sm:$0x1] %vm1203_vm1, %v320_v25  ;;  %v353_v45 = vmax.f32 %v320_v25, %v337_v37  ;;  %v355_v47 = vmax.f32 %v322_v34, %v339_v39  ;;  %vm1201_vm4 = vcmask 93187   ;;  %vm1200_vm5 = vcmask 95237  }
  0x2a   :  { %357 = vst.msk [vmem:[%s1197_s7] sm:$0x2] %vm1202_vm3, %v348_v40  ;;  %358 = vst.msk [vmem:[%s1197_s7 + $0x4] sm:$0x2] %vm1202_vm3, %v349_v41  ;;  %v390_v48 = vmul.f32 %v845_v0, %v743_v14  ;;  %v391_v49 = vmul.f32 %v845_v0, %v748_v15  ;;  %v392_v50 = vmul.f32 %v845_v0, %v753_v16  ;;  %v597_v14 = vld [vmem:[%s1196_s5 + $0x1] ss:$0 sm:$0xff] }
  0x2b   :  { %359 = vst.msk [vmem:[%s1197_s7 + $0x8] sm:$0x2] %vm1202_vm3, %v350_v42  ;;  %360 = vst.msk [vmem:[%s1197_s7 + $0xc] sm:$0x2] %vm1202_vm3, %v351_v43  ;;  %v393_v51 = vmul.f32 %v845_v0, %v763_v18  ;;  %v394_v15 = vmul.f32 %v845_v0, %v768_v19  ;;  %v395_v16 = vmul.f32 %v845_v0, %v773_v20 }
  0x2c   :  { %361 = vst.msk [vmem:[%s1197_s7 + $0x10] sm:$0x2] %vm1202_vm3, %v352_v44  ;;  %362 = vst.msk [vmem:[%s1197_s7 + $0x14] sm:$0x2] %vm1202_vm3, %v353_v45  ;;  %v396_v18 = vmul.f32 %v845_v0, %v778_v21  ;;  %v397_v52 = vmul.f32 %v845_v0, %v783_v22  ;;  %v398_v53 = vmul.f32 %v845_v0, %v788_v23 }
  0x2d   :  { %363 = vst.msk [vmem:[%s1197_s7 + $0x18] sm:$0x2] %vm1202_vm3, %v354_v46  ;;  %364 = vst.msk [vmem:[%s1197_s7 + $0x1c] sm:$0x2] %vm1202_vm3, %v355_v47  ;;  %v399_v54 = vmul.f32 %v845_v0, %v793_v24  ;;  %v400_v55 = vmul.f32 %v845_v0, %v801_v26  ;;  %v401_v19 = vmul.f32 %v845_v0, %v806_v27 }
  0x2e   :  { %366 = vst.msk [vmem:[%s1197_s7 - $0x1] sm:$0x8] %vm1201_vm4, %v348_v40  ;;  %367 = vst.msk [vmem:[%s1197_s7 + $0x3] sm:$0x8] %vm1201_vm4, %v349_v41  ;;  %v402_v20 = vmul.f32 %v845_v0, %v811_v28  ;;  %v403_v21 = vmul.f32 %v845_v0, %v818_v31  ;;  %v404_v22 = vmul.f32 %v845_v0, %v823_v32 }
  0x2f   :  { %368 = vst.msk [vmem:[%s1197_s7 + $0x7] sm:$0x8] %vm1201_vm4, %v350_v42  ;;  %369 = vst.msk [vmem:[%s1197_s7 + $0xb] sm:$0x8] %vm1201_vm4, %v351_v43  ;;  %v409_v23 = vadd.f32 %v597_v14, %v849_v6  ;;  %v410_v56 = vadd.f32 %v597_v14, %v390_v48  ;;  %v411_v57 = vadd.f32 %v597_v14, %v391_v49 }
  0x30   :  { %370 = vst.msk [vmem:[%s1197_s7 + $0xf] sm:$0x8] %vm1201_vm4, %v352_v44  ;;  %371 = vst.msk [vmem:[%s1197_s7 + $0x13] sm:$0x8] %vm1201_vm4, %v353_v45  ;;  %v412_v24 = vadd.f32 %v597_v14, %v392_v50  ;;  %v413_v58 = vadd.f32 %v597_v14, %v393_v51  ;;  %v414_v1 = vadd.f32 %v597_v14, %v394_v15 }
  0x31   :  { %372 = vst.msk [vmem:[%s1197_s7 + $0x17] sm:$0x8] %vm1201_vm4, %v354_v46  ;;  %373 = vst.msk [vmem:[%s1197_s7 + $0x1b] sm:$0x8] %vm1201_vm4, %v355_v47  ;;  %v415_v26 = vadd.f32 %v597_v14, %v395_v16  ;;  %v416_v59 = vadd.f32 %v597_v14, %v396_v18  ;;  %v417_v2 = vadd.f32 %v597_v14, %v397_v52  ;;  %vm425_vm6 = vcmp.ge.f32.partialorder %v409_v23, 0.0 }
  0x32   :  { %375 = vst.msk [vmem:[%s1197_s7 - $0x2] sm:$0x20] %vm1200_vm5, %v348_v40  ;;  %376 = vst.msk [vmem:[%s1197_s7 + $0x2] sm:$0x20] %vm1200_vm5, %v349_v41  ;;  %v418_v27 = vadd.f32 %v597_v14, %v398_v53  ;;  %v419_v60 = vadd.f32 %v597_v14, %v399_v54  ;;  %v420_v3 = vadd.f32 %v597_v14, %v400_v55  ;;  %vm426_vm7 = vcmp.ge.f32.partialorder %v410_v56, 0.0 }
  0x33   :  { %377 = vst.msk [vmem:[%s1197_s7 + $0x6] sm:$0x20] %vm1200_vm5, %v350_v42  ;;  %378 = vst.msk [vmem:[%s1197_s7 + $0xa] sm:$0x20] %vm1200_vm5, %v351_v43  ;;  %v421_v28 = vadd.f32 %v597_v14, %v401_v19  ;;  %v422_v61 = vadd.f32 %v597_v14, %v402_v20  ;;  %v423_v4 = vadd.f32 %v597_v14, %v403_v21  ;;  %vm427_vm8 = vcmp.ge.f32.partialorder %v411_v57, 0.0 }
  0x34   :  { %379 = vst.msk [vmem:[%s1197_s7 + $0xe] sm:$0x20] %vm1200_vm5, %v352_v44  ;;  %380 = vst.msk [vmem:[%s1197_s7 + $0x12] sm:$0x20] %vm1200_vm5, %v353_v45  ;;  %v424_v31 = vadd.f32 %v597_v14, %v404_v22  ;;  %vm428_vm9 = vcmp.ge.f32.partialorder %v412_v24, 0.0  ;;  %vm429_vm10 = vcmp.ge.f32.partialorder %v413_v58, 0.0 }
  0x35   :  { %381 = vst.msk [vmem:[%s1197_s7 + $0x16] sm:$0x20] %vm1200_vm5, %v354_v46  ;;  %382 = vst.msk [vmem:[%s1197_s7 + $0x1a] sm:$0x20] %vm1200_vm5, %v355_v47  ;;  %vm430_vm11 = vcmp.ge.f32.partialorder %v414_v1, 0.0  ;;  %vm431_vm12 = vcmp.ge.f32.partialorder %v415_v26, 0.0 }
  0x36   :  { %vm432_vm13 = vcmp.ge.f32.partialorder %v416_v59, 0.0  ;;  %vm433_vm14 = vcmp.ge.f32.partialorder %v417_v2, 0.0  ;;  %vm434_vm15 = vcmp.ge.f32.partialorder %v418_v27, 0.0  ;;  %vm435_vm0 = vcmp.ge.f32.partialorder %v419_v60, 0.0 }
  0x37   :  { %vm436_vm2 = vcmp.ge.f32.partialorder %v420_v3, 0.0  ;;  %vm437_vm5 = vcmp.ge.f32.partialorder %v421_v28, 0.0  ;;  %vm438_vm4 = vcmp.ge.f32.partialorder %v422_v61, 0.0  ;;  %vm439_vm3 = vcmp.ge.f32.partialorder %v423_v4, 0.0 }
  0x38   :  { %vm440_vm1 = vcmp.ge.f32.partialorder %v424_v31, 0.0  ;;  %v441_v32 = vmul.f32 0.1, %v409_v23  ;;  %v442_v0 = vmul.f32 0.1, %v410_v56 }
  0x39   :  { %v443_v6 = vmul.f32 0.1, %v411_v57  ;;  %v444_v62 = vmul.f32 0.1, %v412_v24  ;;  %v445_v5 = vmul.f32 0.1, %v413_v58 }
  0x3a   :  { %v446_v63 = vmul.f32 0.1, %v414_v1  ;;  %v447_v7 = vmul.f32 0.1, %v415_v26  ;;  %v457_v8 = vsel %vm425_vm6, %v409_v23, %v441_v32  ;;  %v448_v9 = vmul.f32 0.1, %v416_v59 }
  0x3b   :  { %v449_v10 = vmul.f32 0.1, %v417_v2  ;;  %v450_v11 = vmul.f32 0.1, %v418_v27  ;;  %v458_v12 = vsel %vm426_vm7, %v410_v56, %v442_v0  ;;  %v451_v13 = vmul.f32 0.1, %v419_v60 }
  0x3c   :  { %v452_v25 = vmul.f32 0.1, %v420_v3  ;;  %v453_v29 = vmul.f32 0.1, %v421_v28  ;;  %v459_v30 = vsel %vm427_vm8, %v411_v57, %v443_v6  ;;  %v454_v33 = vmul.f32 0.1, %v422_v61 }
  0x3d   :  { %v455_v34 = vmul.f32 0.1, %v423_v4  ;;  %v456_v35 = vmul.f32 0.1, %v424_v31  ;;  %v460_v36 = vsel %vm428_vm9, %v412_v24, %v444_v62  ;;  %v461_v17 = vsel %vm429_vm10, %v413_v58, %v445_v5 }
  0x3e   :  { %v462_v37 = vsel %vm430_vm11, %v414_v1, %v446_v63  ;;  %v463_v38 = vsel %vm431_vm12, %v415_v26, %v447_v7  ;;  %v464_v39 = vsel %vm432_vm13, %v416_v59, %v448_v9  ;;  %v465_v40 = vsel %vm433_vm14, %v417_v2, %v449_v10 }
  0x3f   :  { %v466_v41 = vsel %vm434_vm15, %v418_v27, %v450_v11  ;;  %v467_v42 = vsel %vm435_vm0, %v419_v60, %v451_v13  ;;  %v468_v43 = vsel %vm436_vm2, %v420_v3, %v452_v25  ;;  %v469_v44 = vsel %vm437_vm5, %v421_v28, %v453_v29  ;;  %v584_v29 = vld [vmem:[%s1198_s3] ss:$0 sm:$0xff] }
  0x40   :  { %v470_v45 = vsel %vm438_vm4, %v422_v61, %v454_v33  ;;  %v471_v46 = vsel %vm439_vm3, %v423_v4, %v455_v34  ;;  %v472_v47 = vsel %vm440_vm1, %v424_v31, %v456_v35  ;;  %v473_v48 = vmax.f32 %v457_v8, %v458_v12 }
  0x41   :  { %v474_v49 = vmax.f32 %v465_v40, %v466_v41  ;;  %v475_v50 = vmax.f32 %v458_v12, %v459_v30  ;;  %v476_v51 = vmax.f32 %v466_v41, %v467_v42  ;;  %v479_v14 = vmax.f32 %v460_v36, %v461_v17 }
  0x42   :  { %v480_v15 = vmax.f32 %v468_v43, %v469_v44  ;;  %v483_v16 = vmax.f32 %v462_v37, %v463_v38  ;;  %v484_v18 = vmax.f32 %v470_v45, %v471_v46  ;;  %v495_v54 = vrot.slane %v473_v48, 1 }
  0x43   :  { %v477_v52 = vmax.f32 %v475_v50, %v460_v36  ;;  %v478_v53 = vmax.f32 %v476_v51, %v468_v43  ;;  %v499_v55 = vrot.slane %v474_v49, 1  ;;  %v481_v19 = vmax.f32 %v479_v14, %v462_v37 }
  0x44   :  { %v482_v20 = vmax.f32 %v480_v15, %v470_v45  ;;  %v485_v21 = vmax.f32 %v483_v16, %v464_v39  ;;  %v486_v22 = vmax.f32 %v484_v18, %v472_v47  ;;  %v511_v57 = vmax.f32 %v473_v48, %v495_v54 }
  0x45   :  { %v496_v23 = vrot.slane %v477_v52, 1  ;;  %v500_v56 = vrot.slane %v478_v53, 1  ;;  %v515_v24 = vmax.f32 %v474_v49, %v499_v55  ;;  %v497_v58 = vrot.slane %v481_v19, 1 }
  0x46   :  { %v498_v1 = vrot.slane %v485_v21, 1  ;;  %v501_v26 = vrot.slane %v482_v20, 1  ;;  %v502_v59 = vrot.slane %v486_v22, 1  ;;  %vm1205_vm1 = vcmask 90112  }
  0x47   :  { %v512_v2 = vmax.f32 %v477_v52, %v496_v23  ;;  %v516_v27 = vmax.f32 %v478_v53, %v500_v56  ;;  %598 = vst.msk [vmem:[%s1197_s7 + $0x20] sm:$0x1] %vm1205_vm1, %v511_v57  ;;  %vm1206_vm3 = vmmov %vm1205_vm1  ;;  %v528_v60 = vrot.slane %v473_v48, 2  ;;  %v529_v3 = vrot.slane %v477_v52, 2 }
  0x48   :  { %602 = vst.msk [vmem:[%s1197_s7 + $0x30] sm:$0x1] %vm1206_vm3, %v515_v24  ;;  %v513_v28 = vmax.f32 %v481_v19, %v497_v58  ;;  %v514_v61 = vmax.f32 %v485_v21, %v498_v1  ;;  %v517_v4 = vmax.f32 %v482_v20, %v501_v26  ;;  %v518_v31 = vmax.f32 %v486_v22, %v502_v59  ;;  %vm1207_vm4 = vmmov %vm1205_vm1 }
  0x49   :  { %599 = vst.msk [vmem:[%s1197_s7 + $0x24] sm:$0x1] %vm1207_vm4, %v512_v2  ;;  %vm1208_vm5 = vmmov %vm1205_vm1  ;;  %v530_v32 = vrot.slane %v481_v19, 2  ;;  %v531_v0 = vrot.slane %v485_v21, 2  ;;  %v532_v6 = vrot.slane %v474_v49, 2  ;;  %v533_v62 = vrot.slane %v478_v53, 2 }
  0x4a   :  { %603 = vst.msk [vmem:[%s1197_s7 + $0x34] sm:$0x1] %vm1208_vm5, %v516_v27  ;;  %vm1209_vm6 = vmmov %vm1205_vm1  ;;  %v534_v5 = vrot.slane %v482_v20, 2  ;;  %v535_v63 = vrot.slane %v486_v22, 2  ;;  %v544_v7 = vmax.f32 %v511_v57, %v528_v60  ;;  %v545_v8 = vmax.f32 %v512_v2, %v529_v3 }
  0x4b   :  { %600 = vst.msk [vmem:[%s1197_s7 + $0x28] sm:$0x1] %vm1209_vm6, %v513_v28  ;;  %vm1210_vm7 = vmmov %vm1205_vm1  ;;  %v546_v9 = vmax.f32 %v513_v28, %v530_v32  ;;  %v547_v10 = vmax.f32 %v514_v61, %v531_v0  ;;  %v548_v11 = vmax.f32 %v515_v24, %v532_v6  ;;  %v549_v12 = vmax.f32 %v516_v27, %v533_v62 }
  0x4c   :  { %601 = vst.msk [vmem:[%s1197_s7 + $0x2c] sm:$0x1] %vm1210_vm7, %v514_v61  ;;  %vm1211_vm8 = vmmov %vm1205_vm1  ;;  %v550_v13 = vmax.f32 %v517_v4, %v534_v5  ;;  %v551_v25 = vmax.f32 %v518_v31, %v535_v63  ;;  %vm1213_vm10 = vcmask 91137   ;;  %vm1215_vm12 = vcmask 93187  }
  0x4d   :  { %604 = vst.msk [vmem:[%s1197_s7 + $0x38] sm:$0x1] %vm1211_vm8, %v517_v4  ;;  %vm1212_vm9 = vmmov %vm1205_vm1  ;;  %vm1217_vm14 = vcmask 95237  }
  0x4e   :  { %605 = vst.msk [vmem:[%s1197_s7 + $0x3c] sm:$0x1] %vm1212_vm9, %v518_v31  ;;  %vm1214_vm11 = vmmov %vm1213_vm10 }
  0x4f   :  { %606 = vst.msk [vmem:[%s1197_s7 + $0x20] sm:$0x2] %vm1213_vm10, %v544_v7  ;;  %vm1216_vm13 = vmmov %vm1215_vm12 }
  0x50   :  { %607 = vst.msk [vmem:[%s1197_s7 + $0x24] sm:$0x2] %vm1214_vm11, %v545_v8  ;;  %vm1218_vm15 = vmmov %vm1217_vm14 }
  0x51   :  { %614 = vst.msk [vmem:[%s1197_s7 + $0x1f] sm:$0x8] %vm1215_vm12, %v544_v7  ;;  %vm1219_vm0 = vmmov %vm1213_vm10 }
  0x52   :  { %615 = vst.msk [vmem:[%s1197_s7 + $0x23] sm:$0x8] %vm1216_vm13, %v545_v8  ;;  %vm1220_vm2 = vmmov %vm1219_vm0 }
  0x53   :  { %622 = vst.msk [vmem:[%s1197_s7 + $0x1e] sm:$0x20] %vm1217_vm14, %v544_v7  ;;  %vm1221_vm1 = vmmov %vm1219_vm0 }
  0x54   :  { %623 = vst.msk [vmem:[%s1197_s7 + $0x22] sm:$0x20] %vm1218_vm15, %v545_v8  ;;  %vm1222_vm3 = vmmov %vm1219_vm0 }
  0x55   :  { %608 = vst.msk [vmem:[%s1197_s7 + $0x28] sm:$0x2] %vm1219_vm0, %v546_v9  ;;  %vm1223_vm4 = vmmov %vm1215_vm12 }
  0x56   :  { %609 = vst.msk [vmem:[%s1197_s7 + $0x2c] sm:$0x2] %vm1220_vm2, %v547_v10  ;;  %vm1224_vm5 = vmmov %vm1223_vm4 }
  0x57   :  { %610 = vst.msk [vmem:[%s1197_s7 + $0x30] sm:$0x2] %vm1221_vm1, %v548_v11  ;;  %vm1225_vm6 = vmmov %vm1223_vm4 }
  0x58   :  { %611 = vst.msk [vmem:[%s1197_s7 + $0x34] sm:$0x2] %vm1222_vm3, %v549_v12  ;;  %vm1226_vm7 = vmmov %vm1223_vm4  ;;  %vm166_vm3 = vcmask 195584  }
  0x59   :  { %616 = vst.msk [vmem:[%s1197_s7 + $0x27] sm:$0x8] %vm1223_vm4, %v546_v9  ;;  %vm1227_vm8 = vmmov %vm1217_vm14 }
  0x5a   :  { %617 = vst.msk [vmem:[%s1197_s7 + $0x2b] sm:$0x8] %vm1224_vm5, %v547_v10  ;;  %vm1228_vm9 = vmmov %vm1227_vm8 }
  0x5b   :  { %618 = vst.msk [vmem:[%s1197_s7 + $0x2f] sm:$0x8] %vm1225_vm6, %v548_v11  ;;  %vm1229_vm10 = vmmov %vm1227_vm8 }
  0x5c   :  { %619 = vst.msk [vmem:[%s1197_s7 + $0x33] sm:$0x8] %vm1226_vm7, %v549_v12  ;;  %vm1230_vm11 = vmmov %vm1227_vm8 }
  0x5d   :  { %624 = vst.msk [vmem:[%s1197_s7 + $0x26] sm:$0x20] %vm1227_vm8, %v546_v9  ;;  %vm1231_vm12 = vmmov %vm1219_vm0 }
  0x5e   :  { %625 = vst.msk [vmem:[%s1197_s7 + $0x2a] sm:$0x20] %vm1228_vm9, %v547_v10  ;;  %vm1232_vm13 = vmmov %vm1219_vm0 }
  0x5f   :  { %626 = vst.msk [vmem:[%s1197_s7 + $0x2e] sm:$0x20] %vm1229_vm10, %v548_v11  ;;  %vm1233_vm14 = vmmov %vm1223_vm4 }
  0x60   :  { %627 = vst.msk [vmem:[%s1197_s7 + $0x32] sm:$0x20] %vm1230_vm11, %v549_v12  ;;  %vm1234_vm15 = vmmov %vm1223_vm4 }
  0x61   :  { %612 = vst.msk [vmem:[%s1197_s7 + $0x38] sm:$0x2] %vm1231_vm12, %v550_v13  ;;  %vm1235_vm0 = vmmov %vm1227_vm8 }
  0x62   :  { %613 = vst.msk [vmem:[%s1197_s7 + $0x3c] sm:$0x2] %vm1232_vm13, %v551_v25  ;;  %vm1236_vm2 = vmmov %vm1235_vm0 }
  0x63   :  { %620 = vst.msk [vmem:[%s1197_s7 + $0x37] sm:$0x8] %vm1233_vm14, %v550_v13 }
  0x64   :  { %621 = vst.msk [vmem:[%s1197_s7 + $0x3b] sm:$0x8] %vm1234_vm15, %v551_v25 }
  0x65   :  { %628 = vst.msk [vmem:[%s1197_s7 + $0x36] sm:$0x20] %vm1235_vm0, %v550_v13 }
  0x66   :  { %629 = vst.msk [vmem:[%s1197_s7 + $0x3a] sm:$0x20] %vm1236_vm2, %v551_v25 }
  0xde   :  { %v655_v30 = vpop.f32.mrf.mxu0 }
  0xdf   :  { %v148_v33 = vadd.f32 %v655_v30, %v584_v29 }
  0xe0   :  { %v139_v34 = vpop.f32.mrf.mxu0 }
  0xe1   :  { %vm156_vm1 = vcmp.ge.f32.partialorder %v148_v33, 0.0  ;;  %v160_v35 = vmul.f32 0.1, %v148_v33  ;;  %v140_v36 = vadd.f32 %v584_v29, %v139_v34 }
  0xe2   :  { %v656_v17 = vpop.f32.mrf.mxu0 }
  0xe3   :  { %v164_v37 = vsel %vm156_vm1, %v148_v33, %v160_v35  ;;  %vm154_vm4 = vcmp.ge.f32.partialorder %v140_v36, 0.0  ;;  %v158_v38 = vmul.f32 0.1, %v140_v36  ;;  %v151_v39 = vadd.f32 %v656_v17, %v584_v29 }
  0xe4   :  { %169 = vst.msk [vmem:[%s1199_s6 + $0x10] sm:$0xff] %vm166_vm3, %v164_v37  ;;  %v142_v40 = vpop.f32.mrf.mxu0 }
  0xe5   :  { %v162_v41 = vsel %vm154_vm4, %v140_v36, %v158_v38  ;;  %vm157_vm5 = vcmp.ge.f32.partialorder %v151_v39, 0.0  ;;  %v161_v42 = vmul.f32 0.1, %v151_v39  ;;  %v143_v43 = vadd.f32 %v584_v29, %v142_v40 }
  0xe6   :  { %167 = vst.msk [vmem:[%s1199_s6] sm:$0xff] %vm166_vm3, %v162_v41 }
  0xe7   :  { %v165_v44 = vsel %vm157_vm5, %v151_v39, %v161_v42  ;;  %vm155_vm6 = vcmp.ge.f32.partialorder %v143_v43, 0.0  ;;  %v159_v45 = vmul.f32 0.1, %v143_v43 }
  0xe8   :  { %170 = vst.msk [vmem:[%s1199_s6 + $0x18] sm:$0xff] %vm166_vm3, %v165_v44 }
  0xe9   :  { %v163_v46 = vsel %vm155_vm6, %v143_v43, %v159_v45 }
  0xea   :  { %168 = vst.msk [vmem:[%s1199_s6 + $0x8] sm:$0xff] %vm166_vm3, %v163_v46 }

// kernel: binocular_net_forward.4
= control target key start
LH: loop header
LB: loop body
LE: loop exit
PB: predicated region body
PF: predicated region fallthrough
CT: control target
= control target key end

     0   :  { %vm97_vm0 = vcmask 1044480   ;;  %vm98_vm1 = vcmask 1045504   ;;  %v2135_v1 = vmov 65535   ;;  %vm72_vm2 = vcmask 220160   ;;  %s6491_s2 = inlined_call_operand.vmem [shape: bf16[27,6], index: 2, kind: input, shape index: {}]   ;;  %s6492_s0 = inlined_call_operand.vmem [shape: f32[128,27], index: 0, kind: input, shape index: {}]   ;;  %s6493_s1 = inlined_call_operand.vmem [shape: f32[2,16,16,3], index: 1, kind: input, shape index: {}]   ;;  %s6494_s4 = inlined_call_operand.vmem [shape: f32[2,3], index: 4, kind: input, shape index: {}]   ;;  %s6495_s5 = inlined_call_operand.vmem [shape: f32[2,3], index: 5, kind: input, shape index: {}]   ;;  %s6496_s7 = inlined_call_operand.vmem [shape: f32[2,2,8,8,3], index: 7, kind: output, shape index: {1}]   ;;  %s6497_s3 = inlined_call_operand.vmem [shape: f32[1,6], index: 3, kind: input, shape index: {}]   ;;  %s6498_s6 = inlined_call_operand.vmem [shape: f32[128,6], index: 6, kind: output, shape index: {0}]  }
   0x1   :  { %v2070_v0 = vld [vmem:[%s6491_s2 + $0x8] sm:$0x3f]   ;;  %v99_v2 = vsel %vm97_vm0, 4294967295, %v2135_v1  ;;  %v26_v4 = vld [vmem:[%s6492_s0] sm:$0xff]  ;;  %v28_v12 = vld [vmem:[%s6492_s0 + $0x10] sm:$0xff] }
   0x2   :  { %v100_v3 = vsel %vm98_vm1, %v99_v2, 0  ;;  %v27_v5 = vld [vmem:[%s6492_s0 + $0x8] sm:$0xff]  ;;  %v34_v6 = vld [vmem:[%s6492_s0 + $0x40] sm:$0xff]  ;;  %v29_v13 = vld [vmem:[%s6492_s0 + $0x18] sm:$0xff] }
   0x3   :  { %v102_v7 = vand.u32 %v2070_v0, %v100_v3  ;;  %v2071_v8 = vld [vmem:[%s6491_s2] sm:$0xff]   ;;  %v35_v9 = vld [vmem:[%s6492_s0 + $0x48] sm:$0xff]  ;;  %v42_v10 = vpack.c.bf16 %v27_v5, %v26_v4  ;;  %v36_v14 = vld [vmem:[%s6492_s0 + $0x50] sm:$0xff]  ;;  %v43_v20 = vpack.c.bf16 %v29_v13, %v28_v12 }
   0x4   :  { %v46_v11 = vpack.c.bf16 %v35_v9, %v34_v6  ;;  %v37_v15 = vld [vmem:[%s6492_s0 + $0x58] sm:$0xff]  ;;  %v30_v16 = vld [vmem:[%s6492_s0 + $0x20] sm:$0xff]  ;;  %v31_v17 = vld [vmem:[%s6492_s0 + $0x28] sm:$0xff] }
   0x5   :  { %2045 = vmatprep.subr.bf16.mxu0 %v102_v7  ;;  %2065 = vmatprep.subr.bf16.mxu1 %v102_v7  ;;  %v38_v18 = vld [vmem:[%s6492_s0 + $0x60] sm:$0xff]  ;;  %v39_v19 = vld [vmem:[%s6492_s0 + $0x68] sm:$0xff]  ;;  %v47_v21 = vpack.c.bf16 %v37_v15, %v36_v14  ;;  %v44_v22 = vpack.c.bf16 %v31_v17, %v30_v16  ;;  %v32_v24 = vld [vmem:[%s6492_s0 + $0x30] sm:$0xff] }
   0x6   :  { %2046 = vmatpush3.bf16.msra.mxu0 %v102_v7  ;;  %2067 = vmatpush3.bf16.msra.mxu1 %v102_v7  ;;  %v48_v23 = vpack.c.bf16 %v39_v19, %v38_v18  ;;  %v33_v25 = vld [vmem:[%s6492_s0 + $0x38] sm:$0xff]  ;;  %v40_v26 = vld [vmem:[%s6492_s0 + $0x70] sm:$0xff]  ;;  %v270_v32 = vld [vmem:[%s6493_s1 + $0x20] sm:$0xff] }
   0x7   :  { %2047 = vmatprep.subr.bf16.mxu0 %v2071_v8  ;;  %2066 = vmatprep.subr.bf16.mxu1 %v2071_v8  ;;  %v41_v27 = vld [vmem:[%s6492_s0 + $0x78] sm:$0xff]  ;;  %v45_v28 = vpack.c.bf16 %v33_v25, %v32_v24  ;;  %v268_v30 = vld [vmem:[%s6493_s1 + $0x10] sm:$0xff]  ;;  %v2250_v33 = vld [vmem:[%s6493_s1] sm:$0xff] }
   0x8   :  { %2049 = vmatprep.mubr.msk.bf16.mxu0 %vm72_vm2, %v42_v10  ;;  %2057 = vmatprep.mubr.msk.bf16.mxu1 %vm72_vm2, %v46_v11  ;;  %v49_v29 = vpack.c.bf16 %v41_v27, %v40_v26  ;;  %v269_v31 = vld [vmem:[%s6493_s1 + $0x18] sm:$0xff]  ;;  %6619 = vst [vmem:[#allocation2_spill] sm:$0xff] %v2250_v33  ;;  %v2255_v34 = vld [vmem:[%s6493_s1 + $0x8] sm:$0xff]  ;;  %v272_v36 = vld [vmem:[%s6493_s1 + $0x30] sm:$0xff] }
   0x9   :  { %6620 = vst [vmem:[#allocation3_spill] sm:$0xff] %v2255_v34  ;;  %v271_v35 = vld [vmem:[%s6493_s1 + $0x28] sm:$0xff]  ;;  %v273_v37 = vld [vmem:[%s6493_s1 + $0x38] sm:$0xff]  ;;  %v274_v38 = vld [vmem:[%s6493_s1 + $0x40] sm:$0xff] }
   0xa   :  { %2048 = vmatpush3.bf16.msra.mxu0 %v2071_v8  ;;  %2068 = vmatpush3.bf16.msra.mxu1 %v2071_v8  ;;  %v275_v39 = vld [vmem:[%s6493_s1 + $0x48] sm:$0xff]  ;;  %v276_v40 = vld [vmem:[%s6493_s1 + $0x50] sm:$0xff]  ;;  %v277_v41 = vld [vmem:[%s6493_s1 + $0x58] sm:$0xff] }
   0xb   :  { %v278_v42 = vld [vmem:[%s6493_s1 + $0x60] sm:$0xff]  ;;  %v279_v44 = vld [vmem:[%s6493_s1 + $0x68] sm:$0xff]  ;;  %v280_v45 = vld [vmem:[%s6493_s1 + $0x70] sm:$0xff] }
   0xc   :  { %v2284_v43 = vld [vmem:[%s6494_s4] ss:$0 sm:$0xff]  ;;  %v281_v46 = vld [vmem:[%s6493_s1 + $0x78] sm:$0xff]  ;;  %v283_v48 = vld [vmem:[%s6493_s1 + $0x88] sm:$0xff] }
   0xd   :  { %2050 = vmatmul.mubr.msk.bf16.vlgmr.msra.gmra.mxu0 %vm72_vm2, %v43_v20  ;;  %2058 = vmatmul.mubr.msk.bf16.vlgmr.msra.gmra.mxu1 %vm72_vm2, %v47_v21  ;;  %v282_v47 = vld [vmem:[%s6493_s1 + $0x80] sm:$0xff]  ;;  %v284_v49 = vld [vmem:[%s6493_s1 + $0x90] sm:$0xff]  ;;  %v285_v50 = vld [vmem:[%s6493_s1 + $0x98] sm:$0xff]  ;;  %v2312_v52 = vmul.f32 %v2284_v43, %v2250_v33  ;;  %v2328_v57 = vmul.f32 %v2284_v43, %v2255_v34  ;;  %v2331_v58 = vmul.f32 %v2284_v43, %v268_v30 }
   0xe   :  { %2053 = vmatprep.mubr.msk.bf16.mxu0 %vm72_vm2, %v44_v22  ;;  %2061 = vmatprep.mubr.msk.bf16.mxu1 %vm72_vm2, %v48_v23  ;;  %v286_v51 = vld [vmem:[%s6493_s1 + $0xa0] sm:$0xff]  ;;  %v287_v53 = vld [vmem:[%s6493_s1 + $0xa8] sm:$0xff]  ;;  %v288_v54 = vld [vmem:[%s6493_s1 + $0xb0] sm:$0xff]  ;;  %v2334_v59 = vmul.f32 %v2284_v43, %v269_v31  ;;  %v2337_v60 = vmul.f32 %v2284_v43, %v270_v32  ;;  %v2352_v1 = vmul.f32 %v2284_v43, %v271_v35 }
   0xf   :  { %v289_v55 = vld [vmem:[%s6493_s1 + $0xb8] sm:$0xff]  ;;  %v290_v56 = vld [vmem:[%s6493_s1 + $0xc0] sm:$0xff]  ;;  %v291_v61 = vld [vmem:[%s6493_s1 + $0xc8] sm:$0xff]  ;;  %v2355_v2 = vmul.f32 %v2284_v43, %v272_v36  ;;  %v2358_v3 = vmul.f32 %v2284_v43, %v273_v37  ;;  %v2361_v4 = vmul.f32 %v2284_v43, %v274_v38  ;;  %v2376_v9 = vmul.f32 %v2284_v43, %v275_v39 }
  0x10   :  { %v292_v62 = vld [vmem:[%s6493_s1 + $0xd0] sm:$0xff]  ;;  %v293_v63 = vld [vmem:[%s6493_s1 + $0xd8] sm:$0xff]  ;;  %v294_v0 = vld [vmem:[%s6493_s1 + $0xe0] sm:$0xff]  ;;  %v2379_v10 = vmul.f32 %v2284_v43, %v276_v40  ;;  %v2382_v11 = vmul.f32 %v2284_v43, %v277_v41  ;;  %v2385_v12 = vmul.f32 %v2284_v43, %v278_v42  ;;  %v2400_v17 = vmul.f32 %v2284_v43, %v279_v44 }
  0x11   :  { %v295_v5 = vld [vmem:[%s6493_s1 + $0xe8] sm:$0xff]  ;;  %v296_v6 = vld [vmem:[%s6493_s1 + $0xf0] sm:$0xff]  ;;  %v297_v7 = vld [vmem:[%s6493_s1 + $0xf8] sm:$0xff]  ;;  %v2403_v18 = vmul.f32 %v2284_v43, %v280_v45  ;;  %v2406_v19 = vmul.f32 %v2284_v43, %v281_v46  ;;  %v2409_v20 = vmul.f32 %v2284_v43, %v282_v47  ;;  %v2421_v24 = vmul.f32 %v2284_v43, %v283_v48 }
  0x12   :  { %v298_v8 = vld [vmem:[%s6493_s1 + $0x100] sm:$0xff]  ;;  %v299_v13 = vld [vmem:[%s6493_s1 + $0x108] sm:$0xff]  ;;  %v300_v14 = vld [vmem:[%s6493_s1 + $0x110] sm:$0xff]  ;;  %v2424_v25 = vmul.f32 %v2284_v43, %v284_v49  ;;  %v2427_v26 = vmul.f32 %v2284_v43, %v285_v50  ;;  %v2430_v27 = vmul.f32 %v2284_v43, %v286_v51  ;;  %v2442_v31 = vmul.f32 %v2284_v43, %v287_v53 }
  0x13   :  { %v301_v15 = vld [vmem:[%s6493_s1 + $0x118] sm:$0xff]  ;;  %v302_v16 = vld [vmem:[%s6493_s1 + $0x120] sm:$0xff]  ;;  %v303_v21 = vld [vmem:[%s6493_s1 + $0x128] sm:$0xff]  ;;  %v2445_v32 = vmul.f32 %v2284_v43, %v288_v54  ;;  %v2448_v35 = vmul.f32 %v2284_v43, %v289_v55  ;;  %v2451_v36 = vmul.f32 %v2284_v43, %v290_v56  ;;  %v2463_v40 = vmul.f32 %v2284_v43, %v291_v61 }
  0x14   :  { %v304_v22 = vld [vmem:[%s6493_s1 + $0x130] sm:$0xff]  ;;  %v305_v23 = vld [vmem:[%s6493_s1 + $0x138] sm:$0xff]  ;;  %v310_v38 = vld [vmem:[%s6493_s1 + $0x160] sm:$0xff]  ;;  %v2466_v41 = vmul.f32 %v2284_v43, %v292_v62  ;;  %v2469_v42 = vmul.f32 %v2284_v43, %v293_v63  ;;  %v2472_v44 = vmul.f32 %v2284_v43, %v294_v0  ;;  %v2484_v48 = vmul.f32 %v2284_v43, %v295_v5 }
  0x15   :  { %2054 = vmatmul.mubr.msk.bf16.gmra.mxu0 %vm72_vm2, %v45_v28  ;;  %2062 = vmatmul.mubr.msk.bf16.gmra.mxu1 %vm72_vm2, %v49_v29  ;;  %v306_v28 = vld [vmem:[%s6493_s1 + $0x140] sm:$0xff]  ;;  %v307_v29 = vld [vmem:[%s6493_s1 + $0x148] sm:$0xff]  ;;  %v308_v30 = vld [vmem:[%s6493_s1 + $0x150] sm:$0xff]  ;;  %v2487_v49 = vmul.f32 %v2284_v43, %v296_v6  ;;  %v2490_v50 = vmul.f32 %v2284_v43, %v297_v7  ;;  %v2493_v51 = vmul.f32 %v2284_v43, %v298_v8 }
  0x16   :  { %v309_v37 = vld [vmem:[%s6493_s1 + $0x158] sm:$0xff]  ;;  %v311_v39 = vld [vmem:[%s6493_s1 + $0x168] sm:$0xff]  ;;  %v312_v45 = vld [vmem:[%s6493_s1 + $0x170] sm:$0xff]  ;;  %v2505_v56 = vmul.f32 %v2284_v43, %v299_v13  ;;  %v2508_v61 = vmul.f32 %v2284_v43, %v300_v14  ;;  %v2511_v62 = vmul.f32 %v2284_v43, %v301_v15  ;;  %v2514_v63 = vmul.f32 %v2284_v43, %v302_v16 }
  0x17   :  { %v313_v46 = vld [vmem:[%s6493_s1 + $0x178] sm:$0xff]  ;;  %v314_v47 = vld [vmem:[%s6493_s1 + $0x180] sm:$0xff]  ;;  %v315_v53 = vld [vmem:[%s6493_s1 + $0x188] sm:$0xff]  ;;  %v2526_v7 = vmul.f32 %v2284_v43, %v303_v21  ;;  %v2529_v8 = vmul.f32 %v2284_v43, %v304_v22  ;;  %v2532_v13 = vmul.f32 %v2284_v43, %v305_v23  ;;  %v2535_v14 = vmul.f32 %v2284_v43, %v306_v28 }
  0x18   :  { %v316_v54 = vld [vmem:[%s6493_s1 + $0x190] sm:$0xff]  ;;  %v317_v55 = vld [vmem:[%s6493_s1 + $0x198] sm:$0xff]  ;;  %v318_v0 = vld [vmem:[%s6493_s1 + $0x1a0] sm:$0xff]  ;;  %v2547_v22 = vmul.f32 %v2284_v43, %v307_v29  ;;  %v2550_v23 = vmul.f32 %v2284_v43, %v308_v30  ;;  %v2553_v28 = vmul.f32 %v2284_v43, %v309_v37  ;;  %v2556_v34 = vmul.f32 %v2284_v43, %v310_v38 }
  0x19   :  { %v319_v5 = vld [vmem:[%s6493_s1 + $0x1a8] sm:$0xff]  ;;  %v320_v6 = vld [vmem:[%s6493_s1 + $0x1b0] sm:$0xff]  ;;  %6621 = vst [vmem:[#allocation4_spill] sm:$0xff] %v2535_v14  ;;  %v321_v15 = vld [vmem:[%s6493_s1 + $0x1b8] sm:$0xff]  ;;  %v2568_v30 = vmul.f32 %v2284_v43, %v311_v39  ;;  %v2571_v37 = vmul.f32 %v2284_v43, %v312_v45  ;;  %v2574_v38 = vmul.f32 %v2284_v43, %v313_v46  ;;  %v2589_v45 = vmul.f32 %v2284_v43, %v315_v53 }
  0x1a   :  { %v322_v16 = vld [vmem:[%s6493_s1 + $0x1c0] sm:$0xff]  ;;  %v323_v21 = vld [vmem:[%s6493_s1 + $0x1c8] sm:$0xff]  ;;  %6622 = vst [vmem:[#allocation5_spill] sm:$0xff] %v2550_v23  ;;  %6623 = vst [vmem:[#allocation6_spill] sm:$0xff] %v2553_v28  ;;  %v2592_v46 = vmul.f32 %v2284_v43, %v316_v54  ;;  %v2609_v53 = vmul.f32 %v2284_v43, %v320_v6  ;;  %v2612_v54 = vmul.f32 %v2284_v43, %v321_v15 }
  0x1b   :  { %6624 = vst [vmem:[#allocation7_spill] sm:$0xff] %v2556_v34  ;;  %v324_v33 = vld [vmem:[%s6493_s1 + $0x1d0] sm:$0xff]  ;;  %v325_v14 = vld [vmem:[%s6493_s1 + $0x1d8] sm:$0xff]  ;;  %v326_v29 = vld [vmem:[%s6493_s1 + $0x1e0] sm:$0xff]  ;;  %v2577_v34 = vmul.f32 %v2284_v43, %v314_v47  ;;  %v2595_v47 = vmul.f32 %v2284_v43, %v317_v55  ;;  %v2615_v55 = vmul.f32 %v2284_v43, %v322_v16 }
  0x1c   :  { %6625 = vst [vmem:[#allocation8_spill] sm:$0xff] %v2571_v37  ;;  %6626 = vst [vmem:[#allocation9_spill] sm:$0xff] %v2574_v38  ;;  %v327_v28 = vld [vmem:[%s6493_s1 + $0x1e8] sm:$0xff]  ;;  %v328_v23 = vld [vmem:[%s6493_s1 + $0x1f0] sm:$0xff]  ;;  %v2606_v37 = vmul.f32 %v2284_v43, %v319_v5  ;;  %v2627_v5 = vmul.f32 %v2284_v43, %v326_v29 }
  0x1d   :  { %6627 = vst [vmem:[#allocation10_spill] sm:$0xff] %v2577_v34  ;;  %v329_v39 = vld [vmem:[%s6493_s1 + $0x1f8] sm:$0xff]  ;;  %6628 = vst [vmem:[#allocation11_spill] sm:$0xff] %v2595_v47  ;;  %v2598_v34 = vmul.f32 %v2284_v43, %v318_v0  ;;  %v2603_v38 = vld [vmem:[%s6495_s5] ss:$0 sm:$0xff]  ;;  %v2618_v0 = vmul.f32 %v2284_v43, %v323_v21  ;;  %v2624_v47 = vmul.f32 %v2284_v43, %v325_v14 }
  0x1e   :  { %v2630_v6 = vmul.f32 %v2284_v43, %v327_v28  ;;  %v2633_v15 = vmul.f32 %v2284_v43, %v328_v23  ;;  %v2636_v16 = vmul.f32 %v2284_v43, %v329_v39  ;;  %v2640_v21 = vadd.f32 %v2603_v38, %v2312_v52 }
  0x1f   :  { %6629 = vst [vmem:[#allocation12_spill] sm:$0xff] %v2598_v34  ;;  %v2621_v34 = vmul.f32 %v2284_v43, %v324_v33  ;;  %v2644_v33 = vadd.f32 %v2603_v38, %v2328_v57  ;;  %v2648_v14 = vadd.f32 %v2603_v38, %v2331_v58  ;;  %v2652_v28 = vadd.f32 %v2603_v38, %v2334_v59 }
  0x20   :  { %v2656_v43 = vadd.f32 %v2603_v38, %v2337_v60  ;;  %v2660_v52 = vadd.f32 %v2603_v38, %v2352_v1  ;;  %v2664_v57 = vadd.f32 %v2603_v38, %v2355_v2  ;;  %v2668_v58 = vadd.f32 %v2603_v38, %v2358_v3  ;;  %v6631_v23 = vld [vmem:[#allocation4_spill] sm:$0xff] }
  0x21   :  { %v2672_v59 = vadd.f32 %v2603_v38, %v2361_v4  ;;  %v2676_v60 = vadd.f32 %v2603_v38, %v2376_v9  ;;  %v2680_v1 = vadd.f32 %v2603_v38, %v2379_v10  ;;  %v2684_v2 = vadd.f32 %v2603_v38, %v2382_v11  ;;  %v6634_v29 = vld [vmem:[#allocation5_spill] sm:$0xff]  ;;  %v6636_v39 = vld [vmem:[#allocation6_spill] sm:$0xff] }
  0x22   :  { %v2688_v3 = vadd.f32 %v2603_v38, %v2385_v12  ;;  %v2692_v4 = vadd.f32 %v2603_v38, %v2400_v17  ;;  %v2696_v9 = vadd.f32 %v2603_v38, %v2403_v18  ;;  %v2700_v10 = vadd.f32 %v2603_v38, %v2406_v19 }
  0x23   :  { %v2704_v11 = vadd.f32 %v2603_v38, %v2409_v20  ;;  %v2708_v12 = vadd.f32 %v2603_v38, %v2421_v24  ;;  %v2712_v17 = vadd.f32 %v2603_v38, %v2424_v25  ;;  %v2716_v18 = vadd.f32 %v2603_v38, %v2427_v26 }
  0x24   :  { %v2720_v19 = vadd.f32 %v2603_v38, %v2430_v27  ;;  %v2724_v20 = vadd.f32 %v2603_v38, %v2442_v31  ;;  %v2728_v24 = vadd.f32 %v2603_v38, %v2445_v32  ;;  %v2732_v25 = vadd.f32 %v2603_v38, %v2448_v35 }
  0x25   :  { %v2736_v26 = vadd.f32 %v2603_v38, %v2451_v36  ;;  %v2740_v27 = vadd.f32 %v2603_v38, %v2463_v40  ;;  %v2744_v31 = vadd.f32 %v2603_v38, %v2466_v41  ;;  %v2748_v32 = vadd.f32 %v2603_v38, %v2469_v42 }
  0x26   :  { %v2752_v35 = vadd.f32 %v2603_v38, %v2472_v44  ;;  %v2756_v36 = vadd.f32 %v2603_v38, %v2484_v48  ;;  %v2760_v40 = vadd.f32 %v2603_v38, %v2487_v49  ;;  %v2764_v41 = vadd.f32 %v2603_v38, %v2490_v50 }
  0x27   :  { %v2768_v42 = vadd.f32 %v2603_v38, %v2493_v51  ;;  %v2772_v44 = vadd.f32 %v2603_v38, %v2505_v56  ;;  %v2776_v48 = vadd.f32 %v2603_v38, %v2508_v61  ;;  %v2780_v49 = vadd.f32 %v2603_v38, %v2511_v62 }
  0x28   :  { %v2784_v50 = vadd.f32 %v2603_v38, %v2514_v63  ;;  %v2788_v51 = vadd.f32 %v2603_v38, %v2526_v7  ;;  %v2792_v56 = vadd.f32 %v2603_v38, %v2529_v8  ;;  %v2796_v61 = vadd.f32 %v2603_v38, %v2532_v13 }
  0x29   :  { %v2800_v62 = vadd.f32 %v2603_v38, %v6631_v23  ;;  %v2804_v63 = vadd.f32 %v2603_v38, %v2547_v22  ;;  %v2808_v7 = vadd.f32 %v2603_v38, %v6634_v29  ;;  %v2812_v8 = vadd.f32 %v2603_v38, %v6636_v39 }
  0x2a   :  { %6630 = vst [vmem:[#allocation13_spill] sm:$0xff] %v2792_v56  ;;  %v6637_v56 = vld [vmem:[#allocation7_spill] sm:$0xff]  ;;  %v2820_v23 = vadd.f32 %v2603_v38, %v2568_v30  ;;  %v2840_v30 = vadd.f32 %v2603_v38, %v2592_v46  ;;  %v2860_v46 = vadd.f32 %v2603_v38, %v2612_v54  ;;  %v2880_v54 = vadd.f32 %v2603_v38, %v2627_v5 }
  0x2b   :  { %6632 = vst [vmem:[#allocation4_spill] sm:$0xff] %v2800_v62  ;;  %6633 = vst [vmem:[#allocation14_spill] sm:$0xff] %v2804_v63  ;;  %v2816_v13 = vadd.f32 %v2603_v38, %v6637_v56  ;;  %v6639_v62 = vld [vmem:[#allocation8_spill] sm:$0xff]  ;;  %v6641_v63 = vld [vmem:[#allocation9_spill] sm:$0xff]  ;;  %v2836_v56 = vadd.f32 %v2603_v38, %v2589_v45  ;;  %v2856_v45 = vadd.f32 %v2603_v38, %v2609_v53  ;;  %vm468_vm3 = vcmp.ge.f32.partialorder %v2640_v21, 0.0 }
  0x2c   :  { %6635 = vst [vmem:[#allocation5_spill] sm:$0xff] %v2808_v7  ;;  %6638 = vst [vmem:[#allocation6_spill] sm:$0xff] %v2820_v23  ;;  %v2824_v22 = vadd.f32 %v2603_v38, %v6639_v62  ;;  %v2828_v29 = vadd.f32 %v2603_v38, %v6641_v63  ;;  %v6642_v7 = vld [vmem:[#allocation10_spill] sm:$0xff]  ;;  %v6645_v23 = vld [vmem:[#allocation11_spill] sm:$0xff]  ;;  %v2876_v53 = vadd.f32 %v2603_v38, %v2624_v47  ;;  %vm469_vm4 = vcmp.ge.f32.partialorder %v2644_v33, 0.0 }
  0x2d   :  { %v2832_v39 = vadd.f32 %v2603_v38, %v6642_v7  ;;  %6643 = vst [vmem:[#allocation8_spill] sm:$0xff] %v2836_v56  ;;  %6644 = vst [vmem:[#allocation9_spill] sm:$0xff] %v2840_v30  ;;  %v2844_v62 = vadd.f32 %v2603_v38, %v6645_v23  ;;  %v2852_v7 = vadd.f32 %v2603_v38, %v2606_v37  ;;  %vm470_vm5 = vcmp.ge.f32.partialorder %v2648_v14, 0.0 }
  0x2e   :  { %6640 = vst [vmem:[#allocation7_spill] sm:$0xff] %v2824_v22  ;;  %v6647_v22 = vld [vmem:[#allocation12_spill] sm:$0xff]  ;;  %6650 = vst [vmem:[#allocation15_spill] sm:$0xff] %v2856_v45  ;;  %v2864_v23 = vadd.f32 %v2603_v38, %v2615_v55  ;;  %v2872_v37 = vadd.f32 %v2603_v38, %v2621_v34  ;;  %v2884_v55 = vadd.f32 %v2603_v38, %v2630_v6  ;;  %vm471_vm6 = vcmp.ge.f32.partialorder %v2652_v28, 0.0 }
  0x2f   :  { %6646 = vst [vmem:[#allocation10_spill] sm:$0xff] %v2844_v62  ;;  %v2848_v63 = vadd.f32 %v2603_v38, %v6647_v22  ;;  %6649 = vst [vmem:[#allocation12_spill] sm:$0xff] %v2852_v7  ;;  %v2868_v22 = vadd.f32 %v2603_v38, %v2618_v0  ;;  %v2888_v0 = vadd.f32 %v2603_v38, %v2633_v15  ;;  %vm472_vm7 = vcmp.ge.f32.partialorder %v2656_v43, 0.0  ;;  %v6660_v15 = vld [vmem:[#allocation2_spill] sm:$0xff] }
  0x30   :  { %6651 = vst [vmem:[#allocation16_spill] sm:$0xff] %v2860_v46  ;;  %6652 = vst [vmem:[#allocation17_spill] sm:$0xff] %v2864_v23  ;;  %v2892_v34 = vadd.f32 %v2603_v38, %v2636_v16  ;;  %vm473_vm8 = vcmp.ge.f32.partialorder %v2660_v52, 0.0  ;;  %vm474_vm9 = vcmp.ge.f32.partialorder %v2664_v57, 0.0  ;;  %vm475_vm10 = vcmp.ge.f32.partialorder %v2668_v58, 0.0 }
  0x31   :  { %6648 = vst [vmem:[#allocation11_spill] sm:$0xff] %v2848_v63  ;;  %6653 = vst [vmem:[#allocation18_spill] sm:$0xff] %v2868_v22  ;;  %vm476_vm11 = vcmp.ge.f32.partialorder %v2672_v59, 0.0  ;;  %v1905_v38 = vld [vmem:[%s6494_s4 + $0x1] ss:$0 sm:$0xff]  ;;  %vm477_vm12 = vcmp.ge.f32.partialorder %v2676_v60, 0.0 }
  0x32   :  { %6654 = vst [vmem:[#allocation19_spill] sm:$0xff] %v2872_v37  ;;  %6655 = vst [vmem:[#allocation20_spill] sm:$0xff] %v2876_v53  ;;  %v532_v47 = vmul.f32 0.1, %v2640_v21  ;;  %v533_v5 = vmul.f32 0.1, %v2644_v33  ;;  %v2911_v16 = vmul.f32 %v1905_v38, %v6660_v15 }
  0x33   :  { %6656 = vst [vmem:[#allocation21_spill] sm:$0xff] %v2880_v54  ;;  %6657 = vst [vmem:[#allocation22_spill] sm:$0xff] %v2884_v55  ;;  %v534_v6 = vmul.f32 0.1, %v2648_v14  ;;  %vm478_vm13 = vcmp.ge.f32.partialorder %v2680_v1, 0.0  ;;  %v6662_v54 = vld [vmem:[#allocation3_spill] sm:$0xff] }
  0x34   :  { %6658 = vst [vmem:[#allocation23_spill] sm:$0xff] %v2888_v0  ;;  %6659 = vst [vmem:[#allocation24_spill] sm:$0xff] %v2892_v34  ;;  %v535_v34 = vmul.f32 0.1, %v2652_v28  ;;  %v536_v0 = vmul.f32 0.1, %v2656_v43  ;;  %v2918_v53 = vmul.f32 %v1905_v38, %v6662_v54 }
  0x35   :  { %6661 = vst [vmem:[#allocation2_spill] sm:$0xff] %v2911_v16  ;;  %v537_v55 = vmul.f32 0.1, %v2660_v52  ;;  %vm479_vm14 = vcmp.ge.f32.partialorder %v2684_v2, 0.0  ;;  %v538_v37 = vmul.f32 0.1, %v2664_v57  ;;  %v2927_v16 = vsel %vm468_vm3, %v2640_v21, %v532_v47 }
  0x36   :  { %6663 = vst [vmem:[#allocation3_spill] sm:$0xff] %v2918_v53  ;;  %v539_v22 = vmul.f32 0.1, %v2668_v58  ;;  %v540_v15 = vmul.f32 0.1, %v2672_v59  ;;  %6664 = vst [vmem:[#allocation25_spill] sm:$0xff] %v2927_v16  ;;  %v2938_v53 = vsel %vm469_vm4, %v2644_v33, %v533_v5  ;;  %v2953_v16 = vsel %vm470_vm5, %v2648_v14, %v534_v6 }
  0x37   :  { %vm480_vm15 = vcmp.ge.f32.partialorder %v2688_v3, 0.0  ;;  %v541_v23 = vmul.f32 0.1, %v2676_v60  ;;  %v542_v54 = vmul.f32 0.1, %v2680_v1  ;;  %6665 = vst [vmem:[#allocation26_spill] sm:$0xff] %v2938_v53  ;;  %v2968_v45 = vsel %vm471_vm6, %v2652_v28, %v535_v34 }
  0x38   :  { %v2933_v38 = vmul.f32 0.1, %v2684_v2  ;;  %vm481_vm0 = vcmp.ge.f32.partialorder %v2692_v4, 0.0  ;;  %v2942_v46 = vmul.f32 0.1, %v2688_v3  ;;  %6666 = vst [vmem:[#allocation27_spill] sm:$0xff] %v2953_v16 }
  0x39   :  { %v2945_v21 = vmul.f32 0.1, %v2692_v4  ;;  %v2948_v47 = vmul.f32 0.1, %v2696_v9  ;;  %vm482_vm1 = vcmp.ge.f32.partialorder %v2696_v9, 0.0  ;;  %6668 = vst [vmem:[#allocation29_spill] sm:$0xff] %v2968_v45 }
  0x3a   :  { %v2957_v33 = vmul.f32 0.1, %v2700_v10  ;;  %v2960_v5 = vmul.f32 0.1, %v2704_v11  ;;  %v2963_v53 = vmul.f32 0.1, %v2708_v12 }
  0x3b   :  { %vm483_vm2 = vcmp.ge.f32.partialorder %v2700_v10, 0.0  ;;  %v2972_v14 = vmul.f32 0.1, %v2712_v17  ;;  %v2975_v6 = vmul.f32 0.1, %v2716_v18  ;;  %vm484_vm3 = vcmp.ge.f32.partialorder %v2704_v11, 0.0 }
  0x3c   :  { %6667 = vst [vmem:[#allocation28_spill] sm:$0xff] %v2963_v53  ;;  %v2978_v16 = vmul.f32 0.1, %v2720_v19  ;;  %v2983_v53 = vsel %vm472_vm7, %v2656_v43, %v536_v0  ;;  %v2987_v28 = vmul.f32 0.1, %v2724_v20  ;;  %vm485_vm4 = vcmp.ge.f32.partialorder %v2708_v12, 0.0 }
  0x3d   :  { %6670 = vst [vmem:[#allocation31_spill] sm:$0xff] %v2983_v53  ;;  %v2990_v34 = vmul.f32 0.1, %v2728_v24  ;;  %v2993_v45 = vmul.f32 0.1, %v2732_v25  ;;  %vm486_vm5 = vcmp.ge.f32.partialorder %v2712_v17, 0.0 }
  0x3e   :  { %6669 = vst [vmem:[#allocation30_spill] sm:$0xff] %v2978_v16  ;;  %v2998_v16 = vsel %vm473_vm8, %v2660_v52, %v537_v55  ;;  %v3002_v43 = vmul.f32 0.1, %v2736_v26  ;;  %v3005_v0 = vmul.f32 0.1, %v2740_v27  ;;  %vm487_vm6 = vcmp.ge.f32.partialorder %v2716_v18, 0.0 }
  0x3f   :  { %6671 = vst [vmem:[#allocation32_spill] sm:$0xff] %v2993_v45  ;;  %6672 = vst [vmem:[#allocation33_spill] sm:$0xff] %v2998_v16  ;;  %v3008_v53 = vmul.f32 0.1, %v2744_v31  ;;  %v3013_v45 = vsel %vm474_vm9, %v2664_v57, %v538_v37  ;;  %v3017_v52 = vmul.f32 0.1, %v2748_v32 }
  0x40   :  { %6674 = vst [vmem:[#allocation35_spill] sm:$0xff] %v3013_v45  ;;  %v3020_v55 = vmul.f32 0.1, %v2752_v35  ;;  %v3023_v16 = vmul.f32 0.1, %v2756_v36  ;;  %vm490_vm9 = vcmp.ge.f32.partialorder %v2728_v24, 0.0 }
  0x41   :  { %6673 = vst [vmem:[#allocation34_spill] sm:$0xff] %v3008_v53  ;;  %v3028_v53 = vsel %vm475_vm10, %v2668_v58, %v539_v22  ;;  %v3034_v57 = vmul.f32 0.1, %v2760_v40  ;;  %v3037_v37 = vmul.f32 0.1, %v2764_v41  ;;  %v3045_v58 = vsel %vm476_vm11, %v2672_v59, %v540_v15 }
  0x42   :  { %6675 = vst [vmem:[#allocation36_spill] sm:$0xff] %v3028_v53  ;;  %v3040_v45 = vmul.f32 0.1, %v2768_v42  ;;  %6677 = vst [vmem:[#allocation38_spill] sm:$0xff] %v3045_v58  ;;  %v3052_v22 = vmul.f32 0.1, %v2772_v44  ;;  %v3063_v59 = vsel %vm477_vm12, %v2676_v60, %v541_v23  ;;  %v3081_v60 = vsel %vm478_vm13, %v2680_v1, %v542_v54 }
  0x43   :  { %v3055_v53 = vmul.f32 0.1, %v2776_v48  ;;  %6680 = vst [vmem:[#allocation41_spill] sm:$0xff] %v3063_v59  ;;  %vm494_vm11 = vcmp.ge.f32.partialorder %v2744_v31, 0.0  ;;  %v3070_v15 = vmul.f32 0.1, %v2784_v50  ;;  %v3100_v1 = vsel %vm479_vm14, %v2684_v2, %v2933_v38 }
  0x44   :  { %6676 = vst [vmem:[#allocation37_spill] sm:$0xff] %v3040_v45  ;;  %v3058_v45 = vmul.f32 0.1, %v2780_v49  ;;  %v3073_v58 = vmul.f32 0.1, %v2788_v51  ;;  %6685 = vst [vmem:[#allocation44_spill] sm:$0xff] %v3081_v60  ;;  %v3119_v2 = vsel %vm480_vm15, %v2688_v3, %v2942_v46  ;;  %v3138_v3 = vsel %vm481_vm0, %v2692_v4, %v2945_v21 }
  0x45   :  { %6678 = vst [vmem:[#allocation39_spill] sm:$0xff] %v3055_v53  ;;  %6681 = vst [vmem:[#allocation42_spill] sm:$0xff] %v3070_v15  ;;  %vm498_vm12 = vcmp.ge.f32.partialorder %v2760_v40, 0.0  ;;  %v3088_v23 = vmul.f32 0.1, %v2796_v61  ;;  %v6686_v59 = vld [vmem:[#allocation4_spill] sm:$0xff]  ;;  %v3157_v4 = vsel %vm482_vm1, %v2696_v9, %v2948_v47  ;;  %v3176_v9 = vsel %vm483_vm2, %v2700_v10, %v2957_v33 }
  0x46   :  { %6679 = vst [vmem:[#allocation40_spill] sm:$0xff] %v3058_v45  ;;  %6682 = vst [vmem:[#allocation43_spill] sm:$0xff] %v3073_v58  ;;  %v6683_v45 = vld [vmem:[#allocation13_spill] sm:$0xff]  ;;  %v3091_v58 = vmul.f32 0.1, %v6686_v59  ;;  %vm502_vm13 = vcmp.ge.f32.partialorder %v2776_v48, 0.0  ;;  %v3189_v10 = vsel %vm484_vm3, %v2704_v11, %v2960_v5 }
  0x47   :  { %v3076_v53 = vmul.f32 0.1, %v6683_v45  ;;  %6690 = vst [vmem:[#allocation45_spill] sm:$0xff] %v3100_v1  ;;  %v6691_v54 = vld [vmem:[#allocation5_spill] sm:$0xff]  ;;  %6695 = vst [vmem:[#allocation48_spill] sm:$0xff] %v3119_v2  ;;  %vm506_vm14 = vcmp.ge.f32.partialorder %v6683_v45, 0.0 }
  0x48   :  { %6687 = vst [vmem:[#allocation4_spill] sm:$0xff] %v3091_v58  ;;  %v3107_v60 = vmul.f32 0.1, %v6691_v54  ;;  %v3110_v58 = vmul.f32 0.1, %v2812_v8  ;;  %v6696_v38 = vld [vmem:[#allocation6_spill] sm:$0xff] }
  0x49   :  { %6684 = vst [vmem:[#allocation13_spill] sm:$0xff] %v3076_v53  ;;  %v6688_v53 = vld [vmem:[#allocation14_spill] sm:$0xff]  ;;  %v3126_v1 = vmul.f32 0.1, %v6696_v38  ;;  %vm510_vm15 = vcmp.ge.f32.partialorder %v6691_v54, 0.0  ;;  %6702 = vst [vmem:[#allocation51_spill] sm:$0xff] %v3157_v4 }
  0x4a   :  { %v3094_v15 = vmul.f32 0.1, %v6688_v53  ;;  %6692 = vst [vmem:[#allocation5_spill] sm:$0xff] %v3107_v60  ;;  %6693 = vst [vmem:[#allocation46_spill] sm:$0xff] %v3110_v58  ;;  %v6697_v58 = vld [vmem:[#allocation7_spill] sm:$0xff]  ;;  %vm518_vm1 = vcmp.ge.f32.partialorder %v2840_v30, 0.0 }
  0x4b   :  { %v3129_v60 = vmul.f32 0.1, %v6697_v58  ;;  %6699 = vst [vmem:[#allocation7_spill] sm:$0xff] %v3138_v3  ;;  %v3145_v46 = vmul.f32 0.1, %v2832_v39  ;;  %vm514_vm0 = vcmp.ge.f32.partialorder %v6697_v58, 0.0 }
  0x4c   :  { %6689 = vst [vmem:[#allocation14_spill] sm:$0xff] %v3094_v15  ;;  %v3113_v15 = vmul.f32 0.1, %v2816_v13  ;;  %v3148_v2 = vmul.f32 0.1, %v2836_v56  ;;  %6706 = vst [vmem:[#allocation55_spill] sm:$0xff] %v3176_v9 }
  0x4d   :  { %v3164_v21 = vmul.f32 0.1, %v2844_v62  ;;  %v3167_v3 = vmul.f32 0.1, %v2848_v63  ;;  %v6707_v47 = vld [vmem:[#allocation15_spill] sm:$0xff]  ;;  %v6709_v56 = vld [vmem:[#allocation17_spill] sm:$0xff] }
  0x4e   :  { %6694 = vst [vmem:[#allocation47_spill] sm:$0xff] %v3113_v15  ;;  %v3132_v15 = vmul.f32 0.1, %v2828_v29  ;;  %6700 = vst [vmem:[#allocation49_spill] sm:$0xff] %v3148_v2  ;;  %v586_v4 = vmul.f32 0.1, %v6707_v47 }
  0x4f   :  { %6703 = vst [vmem:[#allocation52_spill] sm:$0xff] %v3164_v21  ;;  %6704 = vst [vmem:[#allocation53_spill] sm:$0xff] %v3167_v3  ;;  %v6708_v3 = vld [vmem:[#allocation16_spill] sm:$0xff]  ;;  %vm522_vm2 = vcmp.ge.f32.partialorder %v6707_v47, 0.0  ;;  %v6711_v33 = vld [vmem:[#allocation18_spill] sm:$0xff]  ;;  %vm6721_vm10 = vcmp.ge.f32.partialorder %v2720_v19, 0.0 }
  0x50   :  { %6698 = vst [vmem:[#allocation6_spill] sm:$0xff] %v3132_v15  ;;  %v3151_v15 = vmul.f32 0.1, %v2840_v30  ;;  %v587_v21 = vmul.f32 0.1, %v6708_v3  ;;  %6710 = vst [vmem:[#allocation56_spill] sm:$0xff] %v3189_v10 }
  0x51   :  { %v589_v9 = vmul.f32 0.1, %v6711_v33  ;;  %v6713_v62 = vld [vmem:[#allocation20_spill] sm:$0xff]  ;;  %v6716_v5 = vld [vmem:[#allocation21_spill] sm:$0xff]  ;;  %v6717_v10 = vld [vmem:[#allocation22_spill] sm:$0xff] }
  0x52   :  { %6701 = vst [vmem:[#allocation50_spill] sm:$0xff] %v3151_v15  ;;  %v3170_v15 = vmul.f32 0.1, %v2852_v7  ;;  %v6712_v7 = vld [vmem:[#allocation19_spill] sm:$0xff]  ;;  %v591_v30 = vmul.f32 0.1, %v6713_v62 }
  0x53   :  { %v590_v63 = vmul.f32 0.1, %v6712_v7  ;;  %v6714_v2 = vld [vmem:[#allocation28_spill] sm:$0xff]  ;;  %vm526_vm3 = vcmp.ge.f32.partialorder %v6712_v7, 0.0  ;;  %vm528_vm7 = vcmp.ge.f32.partialorder %v6716_v5, 0.0  ;;  %v6718_v3 = vld [vmem:[#allocation23_spill] sm:$0xff] }
  0x54   :  { %6705 = vst [vmem:[#allocation54_spill] sm:$0xff] %v3170_v15  ;;  %v588_v15 = vmul.f32 0.1, %v6709_v56  ;;  %v3202_v11 = vsel %vm485_vm4, %v2708_v12, %v6714_v2  ;;  %v592_v33 = vmul.f32 0.1, %v6716_v5  ;;  %v3215_v12 = vsel %vm486_vm5, %v2712_v17, %v2972_v14  ;;  %v6719_v2 = vld [vmem:[#allocation24_spill] sm:$0xff] }
  0x55   :  { %6715 = vst [vmem:[#allocation19_spill] sm:$0xff] %v3202_v11  ;;  %v593_v56 = vmul.f32 0.1, %v6717_v10  ;;  %v594_v47 = vmul.f32 0.1, %v6718_v3  ;;  %vm530_vm4 = vcmp.ge.f32.partialorder %v6718_v3, 0.0  ;;  %v3224_v5 = vsel %vm487_vm6, %v2716_v18, %v2975_v6 }
  0x56   :  { %vm531_vm8 = vcmp.ge.f32.partialorder %v6719_v2, 0.0  ;;  %v595_v11 = vmul.f32 0.1, %v6719_v2  ;;  %v6720_v10 = vld [vmem:[#allocation30_spill] sm:$0xff]  ;;  %vm6722_vm5 = vcmp.ge.f32.partialorder %v2724_v20, 0.0  ;;  %v3242_v14 = vsel %vm490_vm9, %v2728_v24, %v2990_v34  ;;  %v6723_v18 = vld [vmem:[#allocation32_spill] sm:$0xff] }
  0x57   :  { %v3230_v62 = vsel %vm6721_vm10, %v2720_v19, %v6720_v10  ;;  %v3236_v17 = vsel %vm6722_vm5, %v2724_v20, %v2987_v28  ;;  %vm6724_vm6 = vcmp.ge.f32.partialorder %v2732_v25, 0.0  ;;  %vm6725_vm10 = vcmp.ge.f32.partialorder %v2736_v26, 0.0  ;;  %v6727_v24 = vld [vmem:[#allocation34_spill] sm:$0xff] }
  0x58   :  { %v3248_v6 = vsel %vm6724_vm6, %v2732_v25, %v6723_v18  ;;  %v3254_v19 = vsel %vm6725_vm10, %v2736_v26, %v3002_v43  ;;  %vm6726_vm5 = vcmp.ge.f32.partialorder %v2740_v27, 0.0  ;;  %v3266_v28 = vsel %vm494_vm11, %v2744_v31, %v6727_v24  ;;  %v6736_v43 = vld [vmem:[#allocation40_spill] sm:$0xff]  ;;  %v6749_v10 = vld [vmem:[#allocation46_spill] sm:$0xff]  ;;  %v6757_v24 = vld [vmem:[#allocation49_spill] sm:$0xff] }
  0x59   :  { %v3260_v20 = vsel %vm6726_vm5, %v2740_v27, %v3005_v0  ;;  %vm6728_vm9 = vcmp.ge.f32.partialorder %v2748_v32, 0.0  ;;  %vm6729_vm6 = vcmp.ge.f32.partialorder %v2752_v35, 0.0  ;;  %vm6730_vm10 = vcmp.ge.f32.partialorder %v2756_v36, 0.0  ;;  %v6738_v0 = vld [vmem:[#allocation42_spill] sm:$0xff] }
  0x5a   :  { %v3272_v25 = vsel %vm6728_vm9, %v2748_v32, %v3017_v52  ;;  %v3278_v26 = vsel %vm6729_vm6, %v2752_v35, %v3020_v55  ;;  %v3284_v27 = vsel %vm6730_vm10, %v2756_v36, %v3023_v16  ;;  %v3290_v31 = vsel %vm498_vm12, %v2760_v40, %v3034_v57  ;;  %v6732_v35 = vld [vmem:[#allocation37_spill] sm:$0xff]  ;;  %v6735_v16 = vld [vmem:[#allocation39_spill] sm:$0xff]  ;;  %v6744_v57 = vld [vmem:[#allocation4_spill] sm:$0xff] }
  0x5b   :  { %vm6731_vm11 = vcmp.ge.f32.partialorder %v2764_v41, 0.0  ;;  %vm6733_vm5 = vcmp.ge.f32.partialorder %v2768_v42, 0.0  ;;  %vm6734_vm9 = vcmp.ge.f32.partialorder %v2772_v44, 0.0  ;;  %v630_v40 = vsel %vm502_vm13, %v2776_v48, %v6735_v16  ;;  %v6740_v52 = vld [vmem:[#allocation43_spill] sm:$0xff]  ;;  %v6742_v55 = vld [vmem:[#allocation13_spill] sm:$0xff]  ;;  %v6754_v18 = vld [vmem:[#allocation6_spill] sm:$0xff] }
  0x5c   :  { %v3296_v32 = vsel %vm6731_vm11, %v2764_v41, %v3037_v37  ;;  %v628_v34 = vsel %vm6733_vm5, %v2768_v42, %v6732_v35  ;;  %v629_v36 = vsel %vm6734_vm9, %v2772_v44, %v3052_v22  ;;  %vm6737_vm12 = vcmp.ge.f32.partialorder %v2780_v49, 0.0  ;;  %v6746_v37 = vld [vmem:[#allocation14_spill] sm:$0xff]  ;;  %v6748_v22 = vld [vmem:[#allocation5_spill] sm:$0xff]  ;;  %v6758_v35 = vld [vmem:[#allocation8_spill] sm:$0xff] }
  0x5d   :  { %v631_v41 = vsel %vm6737_vm12, %v2780_v49, %v6736_v43  ;;  %vm6739_vm6 = vcmp.ge.f32.partialorder %v2784_v50, 0.0  ;;  %vm6741_vm10 = vcmp.ge.f32.partialorder %v2788_v51, 0.0  ;;  %v634_v48 = vsel %vm506_vm14, %v6683_v45, %v6742_v55  ;;  %v6761_v16 = vld [vmem:[#allocation9_spill] sm:$0xff]  ;;  %v6763_v43 = vld [vmem:[#allocation10_spill] sm:$0xff]  ;;  %v6769_v55 = vld [vmem:[#allocation12_spill] sm:$0xff] }
  0x5e   :  { %v632_v42 = vsel %vm6739_vm6, %v2784_v50, %v6738_v0  ;;  %v633_v44 = vsel %vm6741_vm10, %v2788_v51, %v6740_v52  ;;  %vm6743_vm13 = vcmp.ge.f32.partialorder %v2796_v61, 0.0  ;;  %vm6745_vm11 = vcmp.ge.f32.partialorder %v6686_v59, 0.0  ;;  %v6765_v0 = vld [vmem:[#allocation53_spill] sm:$0xff]  ;;  %v6766_v52 = vld [vmem:[#allocation11_spill] sm:$0xff] }
  0x5f   :  { %v635_v49 = vsel %vm6743_vm13, %v2796_v61, %v3088_v23  ;;  %v636_v50 = vsel %vm6745_vm11, %v6686_v59, %v6744_v57  ;;  %vm6747_vm5 = vcmp.ge.f32.partialorder %v6688_v53, 0.0  ;;  %v638_v45 = vsel %vm510_vm15, %v6691_v54, %v6748_v22  ;;  %v6751_v23 = vld [vmem:[#allocation47_spill] sm:$0xff] }
  0x60   :  { %v637_v51 = vsel %vm6747_vm5, %v6688_v53, %v6746_v37  ;;  %vm6750_vm14 = vcmp.ge.f32.partialorder %v2812_v8, 0.0  ;;  %vm6752_vm9 = vcmp.ge.f32.partialorder %v2816_v13, 0.0  ;;  %vm6753_vm12 = vcmp.ge.f32.partialorder %v6696_v38, 0.0  ;;  %v6771_v37 = vld [vmem:[#allocation15_spill] sm:$0xff] }
  0x61   :  { %v639_v61 = vsel %vm6750_vm14, %v2812_v8, %v6749_v10  ;;  %v640_v59 = vsel %vm6752_vm9, %v2816_v13, %v6751_v23  ;;  %v641_v53 = vsel %vm6753_vm12, %v6696_v38, %v3126_v1  ;;  %v642_v54 = vsel %vm514_vm0, %v6697_v58, %v3129_v60  ;;  %v6760_v38 = vld [vmem:[#allocation50_spill] sm:$0xff]  ;;  %v6762_v60 = vld [vmem:[#allocation52_spill] sm:$0xff] }
  0x62   :  { %vm6755_vm15 = vcmp.ge.f32.partialorder %v2828_v29, 0.0  ;;  %vm6756_vm6 = vcmp.ge.f32.partialorder %v2832_v39, 0.0  ;;  %vm6759_vm10 = vcmp.ge.f32.partialorder %v6758_v35, 0.0  ;;  %v646_v58 = vsel %vm518_vm1, %v6761_v16, %v6760_v38  ;;  %v6772_v10 = vld [vmem:[#allocation16_spill] sm:$0xff] }
  0x63   :  { %v643_v8 = vsel %vm6755_vm15, %v2828_v29, %v6754_v18  ;;  %v644_v13 = vsel %vm6756_vm6, %v2832_v39, %v3145_v46  ;;  %v645_v1 = vsel %vm6759_vm10, %v6758_v35, %v6757_v24  ;;  %vm6764_vm0 = vcmp.ge.f32.partialorder %v6763_v43, 0.0  ;;  %v6768_v46 = vld [vmem:[#allocation54_spill] sm:$0xff]  ;;  %v6774_v18 = vld [vmem:[#allocation17_spill] sm:$0xff] }
  0x64   :  { %v647_v29 = vsel %vm6764_vm0, %v6763_v43, %v6762_v60  ;;  %vm6767_vm13 = vcmp.ge.f32.partialorder %v6766_v52, 0.0  ;;  %vm6770_vm11 = vcmp.ge.f32.partialorder %v6769_v55, 0.0  ;;  %v650_v22 = vsel %vm522_vm2, %v6771_v37, %v586_v4  ;;  %v6776_v35 = vld [vmem:[#allocation18_spill] sm:$0xff]  ;;  %v6778_v60 = vld [vmem:[#allocation20_spill] sm:$0xff]  ;;  %v6780_v43 = vld [vmem:[#allocation21_spill] sm:$0xff] }
  0x65   :  { %v648_v39 = vsel %vm6767_vm13, %v6766_v52, %v6765_v0  ;;  %v649_v57 = vsel %vm6770_vm11, %v6769_v55, %v6768_v46  ;;  %vm6773_vm1 = vcmp.ge.f32.partialorder %v6772_v10, 0.0  ;;  %vm6775_vm5 = vcmp.ge.f32.partialorder %v6774_v18, 0.0  ;;  %v6787_v46 = vld [vmem:[#allocation26_spill] sm:$0xff] }
  0x66   :  { %v651_v23 = vsel %vm6773_vm1, %v6772_v10, %v587_v21  ;;  %v652_v24 = vsel %vm6775_vm5, %v6774_v18, %v588_v15  ;;  %vm6777_vm14 = vcmp.ge.f32.partialorder %v6776_v35, 0.0  ;;  %v3401_v16 = vsel %vm526_vm3, %v6712_v7, %v590_v63  ;;  %v6781_v15 = vld [vmem:[#allocation22_spill] sm:$0xff]  ;;  %v6784_v7 = vld [vmem:[#allocation27_spill] sm:$0xff] }
  0x67   :  { %v653_v38 = vsel %vm6777_vm14, %v6776_v35, %v589_v9  ;;  %vm6779_vm2 = vcmp.ge.f32.partialorder %v6778_v60, 0.0  ;;  %v3411_v21 = vsel %vm528_vm7, %v6780_v43, %v592_v33  ;;  %vm6782_vm9 = vcmp.ge.f32.partialorder %v6781_v15, 0.0  ;;  %v6785_v9 = vld [vmem:[#allocation25_spill] sm:$0xff]  ;;  %v6789_v10 = vld [vmem:[#allocation31_spill] sm:$0xff]  ;;  %v6791_v35 = vld [vmem:[#allocation38_spill] sm:$0xff] }
  0x68   :  { %v3406_v4 = vsel %vm6779_vm2, %v6778_v60, %v591_v30  ;;  %v3416_v0 = vsel %vm6782_vm9, %v6781_v15, %v593_v56  ;;  %v3421_v63 = vsel %vm530_vm4, %v6718_v3, %v594_v47  ;;  %v3426_v30 = vsel %vm531_vm8, %v6719_v2, %v595_v11  ;;  %v6786_v33 = vld [vmem:[#allocation29_spill] sm:$0xff]  ;;  %v6792_v60 = vld [vmem:[#allocation35_spill] sm:$0xff] }
  0x69   :  { %6783 = vst [vmem:[#allocation28_spill] sm:$0xff] %v3426_v30  ;;  %v3430_v52 = vmax.f32 %v6785_v9, %v6784_v7  ;;  %v3434_v55 = vmax.f32 %v6787_v46, %v6786_v33  ;;  %v3436_v56 = vmax.f32 %v628_v34, %v630_v40  ;;  %v3438_v37 = vmax.f32 %v629_v36, %v631_v41  ;;  %v6790_v47 = vld [vmem:[#allocation33_spill] sm:$0xff]  ;;  %v6794_v9 = vld [vmem:[#allocation36_spill] sm:$0xff] }
  0x6a   :  { %v664_v3 = vmax.f32 %v6784_v7, %v6789_v10  ;;  %v665_v18 = vmax.f32 %v6786_v33, %v6790_v47  ;;  %v666_v11 = vmax.f32 %v630_v40, %v632_v42  ;;  %v667_v2 = vmax.f32 %v631_v41, %v633_v44  ;;  %v6793_v15 = vld [vmem:[#allocation41_spill] sm:$0xff]  ;;  %v6795_v40 = vld [vmem:[#allocation44_spill] sm:$0xff] }
  0x6b   :  { %6788 = vst [vmem:[#allocation23_spill] sm:$0xff] %v3438_v37  ;;  %v672_v43 = vmax.f32 %v6792_v60, %v6791_v35  ;;  %v673_v30 = vmax.f32 %v6794_v9, %v6793_v15  ;;  %v674_v36 = vmax.f32 %v634_v48, %v636_v50  ;;  %v675_v37 = vmax.f32 %v635_v49, %v637_v51  ;;  %v6796_v42 = vld [vmem:[#allocation45_spill] sm:$0xff]  ;;  %v6798_v35 = vld [vmem:[#allocation7_spill] sm:$0xff] }
  0x6c   :  { %v3449_v46 = vmax.f32 %v664_v3, %v6792_v60  ;;  %v3452_v34 = vmax.f32 %v665_v18, %v6794_v9  ;;  %v3454_v7 = vmax.f32 %v666_v11, %v634_v48  ;;  %v3456_v10 = vmax.f32 %v667_v2, %v635_v49  ;;  %v6797_v3 = vld [vmem:[#allocation48_spill] sm:$0xff]  ;;  %v6800_v11 = vld [vmem:[#allocation51_spill] sm:$0xff] }
  0x6d   :  { %v3459_v41 = vmax.f32 %v672_v43, %v6795_v40  ;;  %v3462_v44 = vmax.f32 %v673_v30, %v6796_v42  ;;  %v3464_v33 = vmax.f32 %v674_v36, %v638_v45  ;;  %v3466_v47 = vmax.f32 %v675_v37, %v639_v61  ;;  %v6799_v49 = vld [vmem:[#allocation56_spill] sm:$0xff]  ;;  %v6801_v60 = vld [vmem:[#allocation19_spill] sm:$0xff] }
  0x6e   :  { %v680_v18 = vmax.f32 %v6795_v40, %v6797_v3  ;;  %v681_v50 = vmax.f32 %v6796_v42, %v6798_v35  ;;  %v682_v48 = vmax.f32 %v638_v45, %v640_v59  ;;  %v683_v51 = vmax.f32 %v639_v61, %v641_v53  ;;  %v6802_v43 = vld [vmem:[#allocation55_spill] sm:$0xff] }
  0x6f   :  { %v688_v2 = vmax.f32 %v6800_v11, %v6799_v49  ;;  %v689_v15 = vmax.f32 %v6802_v43, %v6801_v60  ;;  %v690_v9 = vmax.f32 %v642_v54, %v644_v13  ;;  %v691_v36 = vmax.f32 %v643_v8, %v645_v1 }
  0x70   :  { %v3477_v30 = vmax.f32 %v680_v18, %v6800_v11  ;;  %v3480_v37 = vmax.f32 %v681_v50, %v6802_v43  ;;  %v3482_v40 = vmax.f32 %v682_v48, %v642_v54  ;;  %v3484_v3 = vmax.f32 %v683_v51, %v643_v8 }
  0x71   :  { %v3487_v45 = vmax.f32 %v688_v2, %v3215_v12  ;;  %v3490_v61 = vmax.f32 %v689_v15, %v3224_v5  ;;  %v3492_v59 = vmax.f32 %v690_v9, %v646_v58  ;;  %v3494_v53 = vmax.f32 %v691_v36, %v647_v29 }
  0x72   :  { %v696_v42 = vmax.f32 %v3215_v12, %v3230_v62  ;;  %v697_v13 = vmax.f32 %v3224_v5, %v3236_v17  ;;  %v698_v54 = vmax.f32 %v646_v58, %v648_v39  ;;  %v699_v1 = vmax.f32 %v647_v29, %v649_v57 }
  0x73   :  { %v704_v8 = vmax.f32 %v3242_v14, %v3254_v19  ;;  %v705_v18 = vmax.f32 %v3248_v6, %v3260_v20  ;;  %vm6573_vm7 = vcmask 16384   ;;  %v706_v48 = vmax.f32 %v650_v22, %v652_v24 }
  0x74   :  { %v3505_v35 = vmax.f32 %v696_v42, %v3242_v14  ;;  %v3508_v50 = vmax.f32 %v697_v13, %v3248_v6  ;;  %v707_v62 = vmax.f32 %v651_v23, %v653_v38  ;;  %v3510_v12 = vmax.f32 %v698_v54, %v650_v22  ;;  %v3583_v54 = vld [vmem:[%s6497_s3] ss:$0 sm:$0xff] }
  0x75   :  { %v3512_v5 = vmax.f32 %v699_v1, %v651_v23  ;;  %v3515_v17 = vmax.f32 %v704_v8, %v3266_v28  ;;  %v3518_v19 = vmax.f32 %v705_v18, %v3272_v25  ;;  %v3521_v20 = vmax.f32 %v706_v48, %v3401_v16 }
  0x76   :  { %v3524_v14 = vmax.f32 %v707_v62, %v3406_v4  ;;  %v712_v6 = vmax.f32 %v3266_v28, %v3278_v26  ;;  %v713_v58 = vmax.f32 %v3272_v25, %v3284_v27  ;;  %v714_v29 = vmax.f32 %v3401_v16, %v3411_v21  ;;  %v6804_v27 = vld [vmem:[#allocation28_spill] sm:$0xff] }
  0x77   :  { %v715_v39 = vmax.f32 %v3406_v4, %v3416_v0  ;;  %v736_v57 = vrot.slane %v3430_v52, 1  ;;  %v737_v22 = vrot.slane %v3449_v46, 1  ;;  %v738_v28 = vrot.slane %v3459_v41, 1 }
  0x78   :  { %6803 = vst [vmem:[#allocation24_spill] sm:$0xff] %v3524_v14  ;;  %v3537_v23 = vmax.f32 %v712_v6, %v3290_v31  ;;  %v3540_v24 = vmax.f32 %v713_v58, %v3296_v32  ;;  %v739_v25 = vrot.slane %v3477_v30, 1  ;;  %v3545_v26 = vmax.f32 %v714_v29, %v3421_v63 }
  0x79   :  { %v3548_v38 = vmax.f32 %v715_v39, %v6804_v27  ;;  %v740_v16 = vrot.slane %v3487_v45, 1  ;;  %v741_v4 = vrot.slane %v3505_v35, 1  ;;  %v742_v31 = vrot.slane %v3515_v17, 1 }
  0x7a   :  { %v743_v21 = vrot.slane %v3537_v23, 1  ;;  %v744_v32 = vrot.slane %v3436_v56, 1  ;;  %v745_v0 = vrot.slane %v3454_v7, 1  ;;  %vm249_vm8 = vcmask 48128  }
  0x7b   :  { %6805 = vst [vmem:[#allocation30_spill] sm:$0xff] %v3548_v38  ;;  %v746_v51 = vrot.slane %v3464_v33, 1  ;;  %v747_v63 = vrot.slane %v3482_v40, 1  ;;  %v748_v49 = vrot.slane %v3492_v59, 1  ;;  %v749_v11 = vrot.slane %v3510_v12, 1 }
  0x7c   :  { %v750_v2 = vrot.slane %v3521_v20, 1  ;;  %v751_v60 = vrot.slane %v3545_v26, 1  ;;  %v3563_v43 = vmax.f32 %v3430_v52, %v736_v57  ;;  %v3566_v15 = vmax.f32 %v3449_v46, %v737_v22 }
  0x7d   :  { %v3569_v9 = vmax.f32 %v3459_v41, %v738_v28  ;;  %v3572_v36 = vmax.f32 %v3477_v30, %v739_v25  ;;  %v3575_v42 = vmax.f32 %v3487_v45, %v740_v16  ;;  %v3578_v13 = vmax.f32 %v3505_v35, %v741_v4 }
  0x7e   :  { %v3586_v1 = vmax.f32 %v3515_v17, %v742_v31  ;;  %v3589_v8 = vmax.f32 %v3537_v23, %v743_v21  ;;  %v3592_v18 = vmax.f32 %v3436_v56, %v744_v32  ;;  %v3595_v48 = vmax.f32 %v3454_v7, %v745_v0  ;;  %785 = vst.msk [vmem:[%s6496_s7] sm:$0x1] %vm6573_vm7, %v3563_v43 }
  0x7f   :  { %786 = vst.msk [vmem:[%s6496_s7 + $0x8] sm:$0x1] %vm6573_vm7, %v3566_v15  ;;  %v3608_v62 = vmax.f32 %v3464_v33, %v746_v51  ;;  %v3611_v6 = vmax.f32 %v3482_v40, %v747_v63  ;;  %v3614_v58 = vmax.f32 %v3492_v59, %v748_v49  ;;  %v3617_v29 = vmax.f32 %v3510_v12, %v749_v11 }
  0x80   :  { %787 = vst.msk [vmem:[%s6496_s7 + $0x10] sm:$0x1] %vm6573_vm7, %v3569_v9  ;;  %788 = vst.msk [vmem:[%s6496_s7 + $0x18] sm:$0x1] %vm6573_vm7, %v3572_v36  ;;  %v3640_v22 = vmax.f32 %v3521_v20, %v750_v2  ;;  %v3643_v28 = vmax.f32 %v3545_v26, %v751_v60  ;;  %vm6572_vm5 = vcmask 17409  }
  0x81   :  { %789 = vst.msk [vmem:[%s6496_s7 + $0x20] sm:$0x1] %vm6573_vm7, %v3575_v42  ;;  %790 = vst.msk [vmem:[%s6496_s7 + $0x28] sm:$0x1] %vm6573_vm7, %v3578_v13 }
  0x82   :  { %791 = vst.msk [vmem:[%s6496_s7 + $0x30] sm:$0x1] %vm6573_vm7, %v3586_v1  ;;  %792 = vst.msk [vmem:[%s6496_s7 + $0x38] sm:$0x1] %vm6573_vm7, %v3589_v8 }
  0x83   :  { %793 = vst.msk [vmem:[%s6496_s7 + $0x40] sm:$0x1] %vm6573_vm7, %v3592_v18  ;;  %794 = vst.msk [vmem:[%s6496_s7 + $0x48] sm:$0x1] %vm6573_vm7, %v3595_v48 }
  0x84   :  { %795 = vst.msk [vmem:[%s6496_s7 + $0x50] sm:$0x1] %vm6573_vm7, %v3608_v62  ;;  %796 = vst.msk [vmem:[%s6496_s7 + $0x58] sm:$0x1] %vm6573_vm7, %v3611_v6 }
  0x85   :  { %797 = vst.msk [vmem:[%s6496_s7 + $0x60] sm:$0x1] %vm6573_vm7, %v3614_v58  ;;  %798 = vst.msk [vmem:[%s6496_s7 + $0x68] sm:$0x1] %vm6573_vm7, %v3617_v29 }
  0x86   :  { %799 = vst.msk [vmem:[%s6496_s7 + $0x70] sm:$0x1] %vm6573_vm7, %v3640_v22  ;;  %800 = vst.msk [vmem:[%s6496_s7 + $0x78] sm:$0x1] %vm6573_vm7, %v3643_v28 }
  0xcd   :  { %v2051_v39 = vpop.f32.mrf.mxu0  ;;  %v2059_v57 = vpop.f32.mrf.mxu1 }
  0xce   :  { %v147_v16 = vadd.f32 %v2051_v39, %v3583_v54  ;;  %v179_v4 = vadd.f32 %v2059_v57, %v3583_v54 }
  0xcf   :  { %v138_v32 = vpop.f32.mrf.mxu0  ;;  %v170_v0 = vpop.f32.mrf.mxu1 }
  0xd0   :  { %vm203_vm3 = vcmp.ge.f32.partialorder %v147_v16, 0.0  ;;  %v219_v2 = vmul.f32 0.1, %v147_v16  ;;  %vm211_vm4 = vcmp.ge.f32.partialorder %v179_v4, 0.0  ;;  %v227_v60 = vmul.f32 0.1, %v179_v4 }
  0xd1   :  { %v139_v39 = vadd.f32 %v3583_v54, %v138_v32  ;;  %v171_v57 = vadd.f32 %v3583_v54, %v170_v0  ;;  %v2052_v21 = vpop.f32.mrf.mxu0  ;;  %v2060_v31 = vpop.f32.mrf.mxu1 }
  0xd2   :  { %v235_v25 = vsel %vm203_vm3, %v147_v16, %v219_v2  ;;  %v243_v63 = vsel %vm211_vm4, %v179_v4, %v227_v60  ;;  %v150_v49 = vadd.f32 %v2052_v21, %v3583_v54  ;;  %v182_v11 = vadd.f32 %v2060_v31, %v3583_v54 }
  0xd3   :  { %252 = vst.msk [vmem:[%s6498_s6 + $0x10] sm:$0xff] %vm249_vm8, %v235_v25  ;;  %260 = vst.msk [vmem:[%s6498_s6 + $0x50] sm:$0xff] %vm249_vm8, %v243_v63  ;;  %vm201_vm12 = vcmp.ge.f32.partialorder %v139_v39, 0.0  ;;  %v217_v32 = vmul.f32 0.1, %v139_v39  ;;  %vm209_vm15 = vcmp.ge.f32.partialorder %v171_v57, 0.0  ;;  %v141_v16 = vpop.f32.mrf.mxu0  ;;  %v173_v4 = vpop.f32.mrf.mxu1 }
  0xd4   :  { %v225_v0 = vmul.f32 0.1, %v171_v57  ;;  %vm204_vm6 = vcmp.ge.f32.partialorder %v150_v49, 0.0  ;;  %v220_v21 = vmul.f32 0.1, %v150_v49  ;;  %vm212_vm10 = vcmp.ge.f32.partialorder %v182_v11, 0.0 }
  0xd5   :  { %v228_v31 = vmul.f32 0.1, %v182_v11  ;;  %v233_v2 = vsel %vm201_vm12, %v139_v39, %v217_v32  ;;  %v142_v51 = vadd.f32 %v3583_v54, %v141_v16  ;;  %v174_v25 = vadd.f32 %v3583_v54, %v173_v4  ;;  %v2055_v27 = vpop.f32.mrf.mxu0  ;;  %v2063_v38 = vpop.f32.mrf.mxu1 }
  0xd6   :  { %v241_v60 = vsel %vm209_vm15, %v171_v57, %v225_v0  ;;  %250 = vst.msk [vmem:[%s6498_s6] sm:$0xff] %vm249_vm8, %v233_v2  ;;  %v236_v63 = vsel %vm204_vm6, %v150_v49, %v220_v21  ;;  %v163_v39 = vadd.f32 %v2055_v27, %v3583_v54  ;;  %v195_v57 = vadd.f32 %v2063_v38, %v3583_v54 }
  0xd7   :  { %258 = vst.msk [vmem:[%s6498_s6 + $0x40] sm:$0xff] %vm249_vm8, %v241_v60  ;;  %v244_v14 = vsel %vm212_vm10, %v182_v11, %v228_v31  ;;  %253 = vst.msk [vmem:[%s6498_s6 + $0x18] sm:$0xff] %vm249_vm8, %v236_v63  ;;  %vm202_vm0 = vcmp.ge.f32.partialorder %v142_v51, 0.0  ;;  %v218_v32 = vmul.f32 0.1, %v142_v51  ;;  %vm210_vm13 = vcmp.ge.f32.partialorder %v174_v25, 0.0  ;;  %v154_v49 = vpop.f32.mrf.mxu0  ;;  %v186_v11 = vpop.f32.mrf.mxu1 }
  0xd8   :  { %261 = vst.msk [vmem:[%s6498_s6 + $0x58] sm:$0xff] %vm249_vm8, %v244_v14  ;;  %v226_v0 = vmul.f32 0.1, %v174_v25  ;;  %vm207_vm11 = vcmp.ge.f32.partialorder %v163_v39, 0.0  ;;  %v223_v27 = vmul.f32 0.1, %v163_v39  ;;  %v155_v21 = vadd.f32 %v3583_v54, %v154_v49 }
  0xd9   :  { %vm215_vm1 = vcmp.ge.f32.partialorder %v195_v57, 0.0  ;;  %v231_v38 = vmul.f32 0.1, %v195_v57  ;;  %v234_v16 = vsel %vm202_vm0, %v142_v51, %v218_v32  ;;  %v187_v31 = vadd.f32 %v3583_v54, %v186_v11  ;;  %v2056_v2 = vpop.f32.mrf.mxu0  ;;  %v2064_v60 = vpop.f32.mrf.mxu1 }
  0xda   :  { %v242_v4 = vsel %vm210_vm13, %v174_v25, %v226_v0  ;;  %251 = vst.msk [vmem:[%s6498_s6 + $0x8] sm:$0xff] %vm249_vm8, %v234_v16  ;;  %v239_v14 = vsel %vm207_vm11, %v163_v39, %v223_v27  ;;  %v166_v51 = vadd.f32 %v2056_v2, %v3583_v54  ;;  %v198_v25 = vadd.f32 %v2064_v60, %v3583_v54 }
  0xdb   :  { %259 = vst.msk [vmem:[%s6498_s6 + $0x48] sm:$0xff] %vm249_vm8, %v242_v4  ;;  %v247_v63 = vsel %vm215_vm1, %v195_v57, %v231_v38  ;;  %256 = vst.msk [vmem:[%s6498_s6 + $0x30] sm:$0xff] %vm249_vm8, %v239_v14  ;;  %vm205_vm14 = vcmp.ge.f32.partialorder %v155_v21, 0.0  ;;  %v221_v32 = vmul.f32 0.1, %v155_v21  ;;  %vm213_vm2 = vcmp.ge.f32.partialorder %v187_v31, 0.0  ;;  %v157_v39 = vpop.f32.mrf.mxu0  ;;  %v189_v57 = vpop.f32.mrf.mxu1 }
  0xdc   :  { %264 = vst.msk [vmem:[%s6498_s6 + $0x70] sm:$0xff] %vm249_vm8, %v247_v63  ;;  %v229_v0 = vmul.f32 0.1, %v187_v31  ;;  %vm208_vm9 = vcmp.ge.f32.partialorder %v166_v51, 0.0  ;;  %v224_v49 = vmul.f32 0.1, %v166_v51  ;;  %v158_v16 = vadd.f32 %v3583_v54, %v157_v39 }
  0xdd   :  { %vm216_vm3 = vcmp.ge.f32.partialorder %v198_v25, 0.0  ;;  %v232_v11 = vmul.f32 0.1, %v198_v25  ;;  %v237_v27 = vsel %vm205_vm14, %v155_v21, %v221_v32  ;;  %v190_v4 = vadd.f32 %v3583_v54, %v189_v57 }
  0xde   :  { %v245_v38 = vsel %vm213_vm2, %v187_v31, %v229_v0  ;;  %254 = vst.msk [vmem:[%s6498_s6 + $0x20] sm:$0xff] %vm249_vm8, %v237_v27  ;;  %v240_v2 = vsel %vm208_vm9, %v166_v51, %v224_v49  ;;  %v811_v14 = vrot.slane %v3464_v33, 2  ;;  %v812_v21 = vrot.slane %v3482_v40, 2 }
  0xdf   :  { %262 = vst.msk [vmem:[%s6498_s6 + $0x60] sm:$0xff] %vm249_vm8, %v245_v38  ;;  %v248_v60 = vsel %vm216_vm3, %v198_v25, %v232_v11  ;;  %257 = vst.msk [vmem:[%s6498_s6 + $0x38] sm:$0xff] %vm249_vm8, %v240_v2  ;;  %vm206_vm4 = vcmp.ge.f32.partialorder %v158_v16, 0.0  ;;  %v222_v54 = vmul.f32 0.1, %v158_v16  ;;  %vm214_vm12 = vcmp.ge.f32.partialorder %v190_v4, 0.0 }
  0xe0   :  { %265 = vst.msk [vmem:[%s6498_s6 + $0x78] sm:$0xff] %vm249_vm8, %v248_v60  ;;  %v230_v31 = vmul.f32 0.1, %v190_v4  ;;  %v813_v63 = vrot.slane %v3492_v59, 2  ;;  %v814_v51 = vrot.slane %v3510_v12, 2  ;;  %v815_v25 = vrot.slane %v3521_v20, 2 }
  0xe1   :  { %v816_v32 = vrot.slane %v3545_v26, 2  ;;  %v238_v0 = vsel %vm206_vm4, %v158_v16, %v222_v54  ;;  %v6806_v57 = vrot.slane %v3430_v52, 2  ;;  %v6807_v11 = vrot.slane %v3449_v46, 2 }
  0xe2   :  { %v246_v39 = vsel %vm214_vm12, %v190_v4, %v230_v31  ;;  %255 = vst.msk [vmem:[%s6498_s6 + $0x28] sm:$0xff] %vm249_vm8, %v238_v0  ;;  %v6808_v38 = vrot.slane %v3459_v41, 2  ;;  %v6811_v60 = vrot.slane %v3505_v35, 2  ;;  %v6812_v31 = vrot.slane %v3515_v17, 2 }
  0xe3   :  { %v833_v49 = vmax.f32 %v3563_v43, %v6806_v57  ;;  %v834_v27 = vmax.f32 %v3566_v15, %v6807_v11  ;;  %263 = vst.msk [vmem:[%s6498_s6 + $0x68] sm:$0xff] %vm249_vm8, %v246_v39  ;;  %v6809_v43 = vrot.slane %v3477_v30, 2  ;;  %v6810_v15 = vrot.slane %v3487_v45, 2 }
  0xe4   :  { %v835_v16 = vmax.f32 %v3569_v9, %v6808_v38  ;;  %v838_v54 = vmax.f32 %v3578_v13, %v6811_v60  ;;  %v839_v0 = vmax.f32 %v3586_v1, %v6812_v31  ;;  %v6813_v39 = vrot.slane %v3537_v23, 2 }
  0xe5   :  { %v836_v4 = vmax.f32 %v3572_v36, %v6809_v43  ;;  %v837_v2 = vmax.f32 %v3575_v42, %v6810_v15  ;;  %v6814_v57 = vrot.slane %v3436_v56, 2  ;;  %v6815_v11 = vrot.slane %v3454_v7, 2  ;;  %850 = vst.msk [vmem:[%s6496_s7] sm:$0x2] %vm6572_vm5, %v833_v49  ;;  %851 = vst.msk [vmem:[%s6496_s7 + $0x8] sm:$0x2] %vm6572_vm5, %v834_v27 }
  0xe6   :  { %v840_v9 = vmax.f32 %v3589_v8, %v6813_v39  ;;  %v843_v13 = vmax.f32 %v3608_v62, %v811_v14  ;;  %v844_v1 = vmax.f32 %v3611_v6, %v812_v21  ;;  %v845_v8 = vmax.f32 %v3614_v58, %v813_v63  ;;  %852 = vst.msk [vmem:[%s6496_s7 + $0x10] sm:$0x2] %vm6572_vm5, %v835_v16  ;;  %v6817_v43 = vld [vmem:[#allocation24_spill] sm:$0xff]  ;;  %v6818_v15 = vld [vmem:[#allocation30_spill] sm:$0xff] }
  0xe7   :  { %v841_v36 = vmax.f32 %v3592_v18, %v6814_v57  ;;  %v842_v42 = vmax.f32 %v3595_v48, %v6815_v11  ;;  %v846_v18 = vmax.f32 %v3617_v29, %v814_v51  ;;  %853 = vst.msk [vmem:[%s6496_s7 + $0x18] sm:$0x2] %vm6572_vm5, %v836_v4  ;;  %854 = vst.msk [vmem:[%s6496_s7 + $0x20] sm:$0x2] %vm6572_vm5, %v837_v2  ;;  %vm6566_vm8 = vcmask 19459   ;;  %v6816_v51 = vld [vmem:[#allocation23_spill] sm:$0xff] }
  0xe8   :  { %855 = vst.msk [vmem:[%s6496_s7 + $0x28] sm:$0x2] %vm6572_vm5, %v838_v54  ;;  %v847_v48 = vmax.f32 %v3640_v22, %v815_v25  ;;  %v848_v62 = vmax.f32 %v3643_v28, %v816_v32  ;;  %856 = vst.msk [vmem:[%s6496_s7 + $0x30] sm:$0x2] %vm6572_vm5, %v839_v0  ;;  %vm6561_vm15 = vcmask 21509   ;;  %v916_v6 = vrot.slane %v3434_v55, 1 }
  0xe9   :  { %857 = vst.msk [vmem:[%s6496_s7 + $0x38] sm:$0x2] %vm6572_vm5, %v840_v9  ;;  %858 = vst.msk [vmem:[%s6496_s7 + $0x40] sm:$0x2] %vm6572_vm5, %v841_v36  ;;  %v917_v58 = vrot.slane %v3452_v34, 1  ;;  %v918_v29 = vrot.slane %v3462_v44, 1 }
  0xea   :  { %859 = vst.msk [vmem:[%s6496_s7 + $0x48] sm:$0x2] %vm6572_vm5, %v842_v42  ;;  %860 = vst.msk [vmem:[%s6496_s7 + $0x50] sm:$0x2] %vm6572_vm5, %v843_v13  ;;  %v919_v22 = vrot.slane %v3480_v37, 1  ;;  %v920_v28 = vrot.slane %v3490_v61, 1  ;;  %v948_v60 = vmax.f32 %v3430_v52, %v916_v6 }
  0xeb   :  { %861 = vst.msk [vmem:[%s6496_s7 + $0x58] sm:$0x2] %vm6572_vm5, %v844_v1  ;;  %862 = vst.msk [vmem:[%s6496_s7 + $0x60] sm:$0x2] %vm6572_vm5, %v845_v8  ;;  %v921_v14 = vrot.slane %v3508_v50, 1  ;;  %v922_v21 = vrot.slane %v3518_v19, 1  ;;  %v950_v31 = vmax.f32 %v3459_v41, %v918_v29 }
  0xec   :  { %863 = vst.msk [vmem:[%s6496_s7 + $0x68] sm:$0x2] %vm6572_vm5, %v846_v18  ;;  %864 = vst.msk [vmem:[%s6496_s7 + $0x70] sm:$0x2] %vm6572_vm5, %v847_v48  ;;  %v923_v63 = vrot.slane %v3540_v24, 1  ;;  %v924_v25 = vrot.slane %v6816_v51, 1  ;;  %v952_v39 = vmax.f32 %v3487_v45, %v920_v28 }
  0xed   :  { %867 = vst.msk [vmem:[%s6496_s7 - $0x1] sm:$0x8] %vm6566_vm8, %v833_v49  ;;  %868 = vst.msk [vmem:[%s6496_s7 + $0x7] sm:$0x8] %vm6566_vm8, %v834_v27  ;;  %v6551_v32 = vrot.slane %v3456_v10, 1  ;;  %v6548_v38 = vrot.slane %v3494_v53, 1  ;;  %v953_v52 = vmax.f32 %v3505_v35, %v921_v14 }
  0xee   :  { %869 = vst.msk [vmem:[%s6496_s7 + $0xf] sm:$0x8] %vm6566_vm8, %v835_v16  ;;  %870 = vst.msk [vmem:[%s6496_s7 + $0x17] sm:$0x8] %vm6566_vm8, %v836_v4  ;;  %v955_v41 = vmax.f32 %v3537_v23, %v923_v63  ;;  %v966_v57 = vrot.slane %v3462_v44, 2  ;;  %v970_v11 = vrot.slane %v3518_v19, 2 }
  0xef   :  { %871 = vst.msk [vmem:[%s6496_s7 + $0x1f] sm:$0x8] %vm6566_vm8, %v837_v2  ;;  %872 = vst.msk [vmem:[%s6496_s7 + $0x27] sm:$0x8] %vm6566_vm8, %v838_v54  ;;  %v957_v45 = vmax.f32 %v3454_v7, %v6551_v32  ;;  %v960_v23 = vmax.f32 %v3492_v59, %v6548_v38  ;;  %v967_v59 = vrot.slane %v3480_v37, 2  ;;  %vm6558_vm6 = vcmask 23559  }
  0xf0   :  { %873 = vst.msk [vmem:[%s6496_s7 + $0x2f] sm:$0x8] %vm6566_vm8, %v839_v0  ;;  %874 = vst.msk [vmem:[%s6496_s7 + $0x37] sm:$0x8] %vm6566_vm8, %v840_v9 }
  0xf1   :  { %875 = vst.msk [vmem:[%s6496_s7 + $0x3f] sm:$0x8] %vm6566_vm8, %v841_v36  ;;  %876 = vst.msk [vmem:[%s6496_s7 + $0x47] sm:$0x8] %vm6566_vm8, %v842_v42 }
  0xf2   :  { %877 = vst.msk [vmem:[%s6496_s7 + $0x4f] sm:$0x8] %vm6566_vm8, %v843_v13  ;;  %878 = vst.msk [vmem:[%s6496_s7 + $0x57] sm:$0x8] %vm6566_vm8, %v844_v1 }
  0xf3   :  { %879 = vst.msk [vmem:[%s6496_s7 + $0x5f] sm:$0x8] %vm6566_vm8, %v845_v8  ;;  %880 = vst.msk [vmem:[%s6496_s7 + $0x67] sm:$0x8] %vm6566_vm8, %v846_v18 }
  0xf4   :  { %884 = vst.msk [vmem:[%s6496_s7 - $0x2] sm:$0x20] %vm6561_vm15, %v833_v49  ;;  %885 = vst.msk [vmem:[%s6496_s7 + $0x6] sm:$0x20] %vm6561_vm15, %v834_v27  ;;  %v6550_v49 = vrot.slane %v3466_v47, 1  ;;  %v6549_v27 = vrot.slane %v3484_v3, 1 }
  0xf5   :  { %886 = vst.msk [vmem:[%s6496_s7 + $0xe] sm:$0x20] %vm6561_vm15, %v835_v16  ;;  %887 = vst.msk [vmem:[%s6496_s7 + $0x16] sm:$0x20] %vm6561_vm15, %v836_v4  ;;  %v6547_v16 = vrot.slane %v3512_v5, 1  ;;  %v6546_v4 = vrot.slane %v6817_v43, 1 }
  0xf6   :  { %888 = vst.msk [vmem:[%s6496_s7 + $0x1e] sm:$0x20] %vm6561_vm15, %v837_v2  ;;  %889 = vst.msk [vmem:[%s6496_s7 + $0x26] sm:$0x20] %vm6561_vm15, %v838_v54  ;;  %v6545_v2 = vrot.slane %v6818_v15, 1  ;;  %v949_v54 = vmax.f32 %v3449_v46, %v917_v58  ;;  %v954_v46 = vmax.f32 %v3515_v17, %v922_v21  ;;  %v958_v35 = vmax.f32 %v3464_v33, %v6550_v49 }
  0xf7   :  { %890 = vst.msk [vmem:[%s6496_s7 + $0x2e] sm:$0x20] %vm6561_vm15, %v839_v0  ;;  %891 = vst.msk [vmem:[%s6496_s7 + $0x36] sm:$0x20] %vm6561_vm15, %v840_v9  ;;  %v951_v0 = vmax.f32 %v3477_v30, %v919_v22  ;;  %v956_v30 = vmax.f32 %v3436_v56, %v924_v25  ;;  %v959_v17 = vmax.f32 %v3482_v40, %v6549_v27  ;;  %v964_v9 = vrot.slane %v3434_v55, 2 }
  0xf8   :  { %892 = vst.msk [vmem:[%s6496_s7 + $0x3e] sm:$0x20] %vm6561_vm15, %v841_v36  ;;  %893 = vst.msk [vmem:[%s6496_s7 + $0x46] sm:$0x20] %vm6561_vm15, %v842_v42  ;;  %v961_v56 = vmax.f32 %v3510_v12, %v6547_v16  ;;  %v962_v7 = vmax.f32 %v3521_v20, %v6546_v4  ;;  %v963_v33 = vmax.f32 %v3545_v26, %v6545_v2  ;;  %v965_v40 = vrot.slane %v3452_v34, 2 }
  0xf9   :  { %894 = vst.msk [vmem:[%s6496_s7 + $0x4e] sm:$0x20] %vm6561_vm15, %v843_v13  ;;  %895 = vst.msk [vmem:[%s6496_s7 + $0x56] sm:$0x20] %vm6561_vm15, %v844_v1  ;;  %v968_v36 = vrot.slane %v3490_v61, 2  ;;  %v969_v12 = vrot.slane %v3508_v50, 2  ;;  %v996_v2 = vmax.f32 %v948_v60, %v964_v9  ;;  %v998_v16 = vmax.f32 %v950_v31, %v966_v57 }
  0xfa   :  { %896 = vst.msk [vmem:[%s6496_s7 + $0x5e] sm:$0x20] %vm6561_vm15, %v845_v8  ;;  %897 = vst.msk [vmem:[%s6496_s7 + $0x66] sm:$0x20] %vm6561_vm15, %v846_v18  ;;  %v971_v20 = vrot.slane %v3540_v24, 2  ;;  %v972_v42 = vrot.slane %v6816_v51, 2  ;;  %v997_v4 = vmax.f32 %v949_v54, %v965_v40  ;;  %v999_v38 = vmax.f32 %v951_v0, %v967_v59 }
  0xfb   :  { %865 = vst.msk [vmem:[%s6496_s7 + $0x78] sm:$0x2] %vm6572_vm5, %v848_v62  ;;  %v973_v26 = vrot.slane %v3456_v10, 2  ;;  %v974_v13 = vrot.slane %v3466_v47, 2  ;;  %v975_v1 = vrot.slane %v3484_v3, 2  ;;  %v976_v8 = vrot.slane %v3494_v53, 2 }
  0xfc   :  { %881 = vst.msk [vmem:[%s6496_s7 + $0x6f] sm:$0x8] %vm6566_vm8, %v847_v48  ;;  %882 = vst.msk [vmem:[%s6496_s7 + $0x77] sm:$0x8] %vm6566_vm8, %v848_v62  ;;  %v977_v18 = vrot.slane %v3512_v5, 2  ;;  %v1000_v27 = vmax.f32 %v952_v39, %v968_v36  ;;  %v1001_v49 = vmax.f32 %v953_v52, %v969_v12  ;;  %v1002_v32 = vmax.f32 %v954_v46, %v970_v11 }
  0xfd   :  { %898 = vst.msk [vmem:[%s6496_s7 + $0x6e] sm:$0x20] %vm6561_vm15, %v847_v48  ;;  %899 = vst.msk [vmem:[%s6496_s7 + $0x76] sm:$0x20] %vm6561_vm15, %v848_v62  ;;  %v978_v48 = vrot.slane %v6817_v43, 2  ;;  %v979_v62 = vrot.slane %v6818_v15, 2  ;;  %v1003_v60 = vmax.f32 %v955_v41, %v971_v20  ;;  %v1004_v54 = vmax.f32 %v956_v30, %v972_v42 }
  0xfe   :  { %v1005_v31 = vmax.f32 %v957_v45, %v973_v26  ;;  %v1006_v0 = vmax.f32 %v958_v35, %v974_v13  ;;  %v1007_v39 = vmax.f32 %v959_v17, %v975_v1  ;;  %v1008_v52 = vmax.f32 %v960_v23, %v976_v8  ;;  %1013 = vst.msk [vmem:[%s6496_s7 - $0x3] sm:$0x80] %vm6558_vm6, %v996_v2 }
  0xff   :  { %v1009_v46 = vmax.f32 %v961_v56, %v977_v18  ;;  %v1010_v41 = vmax.f32 %v962_v7, %v978_v48  ;;  %v1011_v30 = vmax.f32 %v963_v33, %v979_v62  ;;  %v1029_v45 = vmax.f32 %v3434_v55, %v916_v6  ;;  %1014 = vst.msk [vmem:[%s6496_s7 + $0x5] sm:$0x80] %vm6558_vm6, %v997_v4 }
 0x100   :  { %v1030_v35 = vmax.f32 %v3452_v34, %v917_v58  ;;  %v1031_v17 = vmax.f32 %v3462_v44, %v918_v29  ;;  %1015 = vst.msk [vmem:[%s6496_s7 + $0xd] sm:$0x80] %vm6558_vm6, %v998_v16  ;;  %1016 = vst.msk [vmem:[%s6496_s7 + $0x15] sm:$0x80] %vm6558_vm6, %v999_v38  ;;  %v1032_v6 = vmax.f32 %v3480_v37, %v919_v22  ;;  %v6820_v38 = vrot.slane %v3466_v47, 1 }
 0x101   :  { %1017 = vst.msk [vmem:[%s6496_s7 + $0x1d] sm:$0x80] %vm6558_vm6, %v1000_v27  ;;  %1018 = vst.msk [vmem:[%s6496_s7 + $0x25] sm:$0x80] %vm6558_vm6, %v1001_v49  ;;  %v1033_v58 = vmax.f32 %v3490_v61, %v920_v28  ;;  %v1034_v29 = vmax.f32 %v3508_v50, %v921_v14  ;;  %v1036_v49 = vmax.f32 %v3540_v24, %v923_v63  ;;  %v6819_v27 = vrot.slane %v3456_v10, 1  ;;  %v2074_v24 = vld [vmem:[%s6493_s1 + $0x18] sm:$0xff] }
 0x102   :  { %1019 = vst.msk [vmem:[%s6496_s7 + $0x2d] sm:$0x80] %vm6558_vm6, %v1002_v32  ;;  %1020 = vst.msk [vmem:[%s6496_s7 + $0x35] sm:$0x80] %vm6558_vm6, %v1003_v60  ;;  %v1035_v32 = vmax.f32 %v3518_v19, %v922_v21  ;;  %v1037_v22 = vmax.f32 %v6816_v51, %v924_v25  ;;  %v1039_v14 = vmax.f32 %v3466_v47, %v6820_v38  ;;  %v6821_v16 = vrot.slane %v3484_v3, 1 }
 0x103   :  { %1021 = vst.msk [vmem:[%s6496_s7 + $0x3d] sm:$0x80] %vm6558_vm6, %v1004_v54  ;;  %1022 = vst.msk [vmem:[%s6496_s7 + $0x45] sm:$0x80] %vm6558_vm6, %v1005_v31  ;;  %v1038_v28 = vmax.f32 %v3456_v10, %v6819_v27  ;;  %v6822_v4 = vrot.slane %v3494_v53, 1  ;;  %v6823_v2 = vrot.slane %v3512_v5, 1  ;;  %v1045_v60 = vmax.f32 %v1029_v45, %v964_v9 }
 0x104   :  { %1023 = vst.msk [vmem:[%s6496_s7 + $0x4d] sm:$0x80] %vm6558_vm6, %v1006_v0  ;;  %1024 = vst.msk [vmem:[%s6496_s7 + $0x55] sm:$0x80] %vm6558_vm6, %v1007_v39  ;;  %v1040_v21 = vmax.f32 %v3484_v3, %v6821_v16  ;;  %v6824_v23 = vrot.slane %v6817_v43, 1  ;;  %v6825_v7 = vrot.slane %v6818_v15, 1  ;;  %v1046_v54 = vmax.f32 %v1030_v35, %v965_v40 }
 0x105   :  { %1025 = vst.msk [vmem:[%s6496_s7 + $0x5d] sm:$0x80] %vm6558_vm6, %v1008_v52  ;;  %1026 = vst.msk [vmem:[%s6496_s7 + $0x65] sm:$0x80] %vm6558_vm6, %v1009_v46  ;;  %v1041_v63 = vmax.f32 %v3494_v53, %v6822_v4  ;;  %v1042_v25 = vmax.f32 %v3512_v5, %v6823_v2  ;;  %v1047_v31 = vmax.f32 %v1031_v17, %v966_v57  ;;  %v2072_v53 = vld [vmem:[%s6493_s1 + $0x10] sm:$0xff]  ;;  %v2076_v9 = vld [vmem:[%s6493_s1 + $0x28] sm:$0xff] }
 0x106   :  { %1027 = vst.msk [vmem:[%s6496_s7 + $0x6d] sm:$0x80] %vm6558_vm6, %v1010_v41  ;;  %1028 = vst.msk [vmem:[%s6496_s7 + $0x75] sm:$0x80] %vm6558_vm6, %v1011_v30  ;;  %v1043_v56 = vmax.f32 %v6817_v43, %v6824_v23  ;;  %v1044_v33 = vmax.f32 %v6818_v15, %v6825_v7  ;;  %v1048_v0 = vmax.f32 %v1032_v6, %v967_v59  ;;  %v4413_v5 = vld [vmem:[%s6494_s4 + $0x1] ss:$0 sm:$0xff] }
 0x107   :  { %v1049_v39 = vmax.f32 %v1033_v58, %v968_v36  ;;  %v1050_v52 = vmax.f32 %v1034_v29, %v969_v12  ;;  %v1051_v46 = vmax.f32 %v1035_v32, %v970_v11  ;;  %v1052_v55 = vmax.f32 %v1036_v49, %v971_v20  ;;  %1061 = vst.msk [vmem:[%s6496_s7 + $0x4] sm:$0x2] %vm6572_vm5, %v1045_v60  ;;  %v2075_v43 = vld [vmem:[%s6493_s1 + $0x20] sm:$0xff]  ;;  %v2077_v57 = vld [vmem:[%s6493_s1 + $0x30] sm:$0xff]  ;;  %v2078_v36 = vld [vmem:[%s6493_s1 + $0x38] sm:$0xff] }
 0x108   :  { %v1053_v34 = vmax.f32 %v1037_v22, %v972_v42  ;;  %v1054_v44 = vmax.f32 %v1038_v28, %v973_v26  ;;  %v1055_v37 = vmax.f32 %v1039_v14, %v974_v13  ;;  %1062 = vst.msk [vmem:[%s6496_s7 + $0xc] sm:$0x2] %vm6572_vm5, %v1046_v54  ;;  %1063 = vst.msk [vmem:[%s6496_s7 + $0x14] sm:$0x2] %vm6572_vm5, %v1047_v31  ;;  %v2079_v11 = vld [vmem:[%s6493_s1 + $0x40] sm:$0xff]  ;;  %v2080_v42 = vld [vmem:[%s6493_s1 + $0x48] sm:$0xff] }
 0x109   :  { %1077 = vst.msk [vmem:[%s6496_s7 + $0x3] sm:$0x8] %vm6566_vm8, %v1045_v60  ;;  %1078 = vst.msk [vmem:[%s6496_s7 + $0xb] sm:$0x8] %vm6566_vm8, %v1046_v54  ;;  %v1056_v10 = vmax.f32 %v1040_v21, %v975_v1  ;;  %v1057_v47 = vmax.f32 %v1041_v63, %v976_v8  ;;  %v1058_v61 = vmax.f32 %v1042_v25, %v977_v18  ;;  %v2081_v13 = vld [vmem:[%s6493_s1 + $0x50] sm:$0xff]  ;;  %v2082_v8 = vld [vmem:[%s6493_s1 + $0x58] sm:$0xff] }
 0x10a   :  { %1079 = vst.msk [vmem:[%s6496_s7 + $0x13] sm:$0x8] %vm6566_vm8, %v1047_v31  ;;  %v1059_v50 = vmax.f32 %v1043_v56, %v978_v48  ;;  %1080 = vst.msk [vmem:[%s6496_s7 + $0x1b] sm:$0x8] %vm6566_vm8, %v1048_v0  ;;  %v1060_v3 = vmax.f32 %v1044_v33, %v979_v62  ;;  %v4416_v19 = vmul.f32 %v4413_v5, %v2072_v53  ;;  %v2083_v48 = vld [vmem:[%s6493_s1 + $0x60] sm:$0xff]  ;;  %v2084_v41 = vld [vmem:[%s6493_s1 + $0x68] sm:$0xff] }
 0x10b   :  { %1093 = vst.msk [vmem:[%s6496_s7 + $0x2] sm:$0x20] %vm6561_vm15, %v1045_v60  ;;  %1094 = vst.msk [vmem:[%s6496_s7 + $0xa] sm:$0x20] %vm6561_vm15, %v1046_v54  ;;  %v4422_v51 = vmul.f32 %v2074_v24, %v4413_v5  ;;  %v4428_v15 = vmul.f32 %v2075_v43, %v4413_v5  ;;  %v4482_v40 = vmul.f32 %v2076_v9, %v4413_v5  ;;  %v2085_v45 = vld [vmem:[%s6493_s1 + $0x70] sm:$0xff]  ;;  %v2086_v17 = vld [vmem:[%s6493_s1 + $0x78] sm:$0xff] }
 0x10c   :  { %1095 = vst.msk [vmem:[%s6496_s7 + $0x12] sm:$0x20] %vm6561_vm15, %v1047_v31  ;;  %1096 = vst.msk [vmem:[%s6496_s7 + $0x1a] sm:$0x20] %vm6561_vm15, %v1048_v0  ;;  %v4488_v59 = vmul.f32 %v2077_v57, %v4413_v5  ;;  %v4494_v12 = vmul.f32 %v2078_v36, %v4413_v5  ;;  %v4500_v20 = vmul.f32 %v2079_v11, %v4413_v5  ;;  %v2087_v58 = vld [vmem:[%s6493_s1 + $0x80] sm:$0xff]  ;;  %v2088_v32 = vld [vmem:[%s6493_s1 + $0x88] sm:$0xff] }
 0x10d   :  { %1064 = vst.msk [vmem:[%s6496_s7 + $0x1c] sm:$0x2] %vm6572_vm5, %v1048_v0  ;;  %1065 = vst.msk [vmem:[%s6496_s7 + $0x24] sm:$0x2] %vm6572_vm5, %v1049_v39  ;;  %v4518_v26 = vmul.f32 %v2080_v42, %v4413_v5  ;;  %v4524_v1 = vmul.f32 %v2081_v13, %v4413_v5  ;;  %v4530_v18 = vmul.f32 %v2082_v8, %v4413_v5  ;;  %v2089_v22 = vld [vmem:[%s6493_s1 + $0x90] sm:$0xff]  ;;  %v2090_v28 = vld [vmem:[%s6493_s1 + $0x98] sm:$0xff] }
 0x10e   :  { %1066 = vst.msk [vmem:[%s6496_s7 + $0x2c] sm:$0x2] %vm6572_vm5, %v1050_v52  ;;  %1067 = vst.msk [vmem:[%s6496_s7 + $0x34] sm:$0x2] %vm6572_vm5, %v1051_v46  ;;  %v4536_v62 = vmul.f32 %v2083_v48, %v4413_v5  ;;  %v4542_v30 = vmul.f32 %v2084_v41, %v4413_v5  ;;  %v4548_v35 = vmul.f32 %v2085_v45, %v4413_v5  ;;  %v2091_v14 = vld [vmem:[%s6493_s1 + $0xa0] sm:$0xff]  ;;  %v2092_v21 = vld [vmem:[%s6493_s1 + $0xa8] sm:$0xff] }
 0x10f   :  { %1081 = vst.msk [vmem:[%s6496_s7 + $0x23] sm:$0x8] %vm6566_vm8, %v1049_v39  ;;  %1082 = vst.msk [vmem:[%s6496_s7 + $0x2b] sm:$0x8] %vm6566_vm8, %v1050_v52  ;;  %v4554_v6 = vmul.f32 %v2086_v17, %v4413_v5  ;;  %v4560_v29 = vmul.f32 %v2087_v58, %v4413_v5  ;;  %v4566_v49 = vmul.f32 %v2088_v32, %v4413_v5  ;;  %v2093_v63 = vld [vmem:[%s6493_s1 + $0xb0] sm:$0xff]  ;;  %v2094_v25 = vld [vmem:[%s6493_s1 + $0xb8] sm:$0xff] }
 0x110   :  { %1083 = vst.msk [vmem:[%s6496_s7 + $0x33] sm:$0x8] %vm6566_vm8, %v1051_v46  ;;  %1084 = vst.msk [vmem:[%s6496_s7 + $0x3b] sm:$0x8] %vm6566_vm8, %v1052_v55  ;;  %v4572_v27 = vmul.f32 %v2089_v22, %v4413_v5  ;;  %v4578_v38 = vmul.f32 %v2090_v28, %v4413_v5  ;;  %v4584_v16 = vmul.f32 %v2091_v14, %v4413_v5  ;;  %v2095_v56 = vld [vmem:[%s6493_s1 + $0xc0] sm:$0xff]  ;;  %v2096_v33 = vld [vmem:[%s6493_s1 + $0xc8] sm:$0xff] }
 0x111   :  { %1097 = vst.msk [vmem:[%s6496_s7 + $0x22] sm:$0x20] %vm6561_vm15, %v1049_v39  ;;  %1098 = vst.msk [vmem:[%s6496_s7 + $0x2a] sm:$0x20] %vm6561_vm15, %v1050_v52  ;;  %v4590_v4 = vmul.f32 %v2092_v21, %v4413_v5  ;;  %v4596_v2 = vmul.f32 %v2093_v63, %v4413_v5  ;;  %v4602_v23 = vmul.f32 %v2094_v25, %v4413_v5  ;;  %v2097_v54 = vld [vmem:[%s6493_s1 + $0xd0] sm:$0xff]  ;;  %v2098_v0 = vld [vmem:[%s6493_s1 + $0xd8] sm:$0xff] }
 0x112   :  { %1099 = vst.msk [vmem:[%s6496_s7 + $0x32] sm:$0x20] %vm6561_vm15, %v1051_v46  ;;  %1100 = vst.msk [vmem:[%s6496_s7 + $0x3a] sm:$0x20] %vm6561_vm15, %v1052_v55  ;;  %v4608_v7 = vmul.f32 %v2095_v56, %v4413_v5  ;;  %v4614_v60 = vmul.f32 %v2096_v33, %v4413_v5  ;;  %v4620_v31 = vmul.f32 %v2097_v54, %v4413_v5  ;;  %v2099_v52 = vld [vmem:[%s6493_s1 + $0xe0] sm:$0xff]  ;;  %v2105_v24 = vld [vmem:[%s6493_s1 + $0x110] sm:$0xff] }
 0x113   :  { %1068 = vst.msk [vmem:[%s6496_s7 + $0x3c] sm:$0x2] %vm6572_vm5, %v1052_v55  ;;  %1069 = vst.msk [vmem:[%s6496_s7 + $0x44] sm:$0x2] %vm6572_vm5, %v1053_v34  ;;  %v4626_v39 = vmul.f32 %v2098_v0, %v4413_v5  ;;  %v4632_v46 = vmul.f32 %v2099_v52, %v4413_v5  ;;  %v2100_v55 = vld [vmem:[%s6493_s1 + $0xe8] sm:$0xff]  ;;  %v4668_v43 = vmul.f32 %v2105_v24, %v4413_v5  ;;  %v2106_v9 = vld [vmem:[%s6493_s1 + $0x118] sm:$0xff] }
 0x114   :  { %1070 = vst.msk [vmem:[%s6496_s7 + $0x4c] sm:$0x2] %vm6572_vm5, %v1054_v44  ;;  %1071 = vst.msk [vmem:[%s6496_s7 + $0x54] sm:$0x2] %vm6572_vm5, %v1055_v37  ;;  %v4674_v57 = vmul.f32 %v2106_v9, %v4413_v5  ;;  %v2107_v36 = vld [vmem:[%s6493_s1 + $0x120] sm:$0xff]  ;;  %v2108_v42 = vld [vmem:[%s6493_s1 + $0x128] sm:$0xff] }
 0x115   :  { %1085 = vst.msk [vmem:[%s6496_s7 + $0x43] sm:$0x8] %vm6566_vm8, %v1053_v34  ;;  %1086 = vst.msk [vmem:[%s6496_s7 + $0x4b] sm:$0x8] %vm6566_vm8, %v1054_v44  ;;  %v4680_v11 = vmul.f32 %v2107_v36, %v4413_v5  ;;  %v4686_v13 = vmul.f32 %v2108_v42, %v4413_v5  ;;  %v2109_v8 = vld [vmem:[%s6493_s1 + $0x130] sm:$0xff]  ;;  %v2110_v41 = vld [vmem:[%s6493_s1 + $0x138] sm:$0xff] }
 0x116   :  { %1087 = vst.msk [vmem:[%s6496_s7 + $0x53] sm:$0x8] %vm6566_vm8, %v1055_v37  ;;  %1088 = vst.msk [vmem:[%s6496_s7 + $0x5b] sm:$0x8] %vm6566_vm8, %v1056_v10  ;;  %v4692_v48 = vmul.f32 %v2109_v8, %v4413_v5  ;;  %v4698_v45 = vmul.f32 %v2110_v41, %v4413_v5  ;;  %v2111_v17 = vld [vmem:[%s6493_s1 + $0x140] sm:$0xff]  ;;  %v2112_v32 = vld [vmem:[%s6493_s1 + $0x148] sm:$0xff] }
 0x117   :  { %1101 = vst.msk [vmem:[%s6496_s7 + $0x42] sm:$0x20] %vm6561_vm15, %v1053_v34  ;;  %1102 = vst.msk [vmem:[%s6496_s7 + $0x4a] sm:$0x20] %vm6561_vm15, %v1054_v44  ;;  %v4638_v34 = vmul.f32 %v2100_v55, %v4413_v5  ;;  %v2101_v44 = vld [vmem:[%s6493_s1 + $0xf0] sm:$0xff]  ;;  %v4704_v58 = vmul.f32 %v2111_v17, %v4413_v5  ;;  %v4710_v22 = vmul.f32 %v2112_v32, %v4413_v5  ;;  %v2114_v21 = vld [vmem:[%s6493_s1 + $0x158] sm:$0xff] }
 0x118   :  { %1103 = vst.msk [vmem:[%s6496_s7 + $0x52] sm:$0x20] %vm6561_vm15, %v1055_v37  ;;  %1104 = vst.msk [vmem:[%s6496_s7 + $0x5a] sm:$0x20] %vm6561_vm15, %v1056_v10  ;;  %v4644_v37 = vmul.f32 %v2101_v44, %v4413_v5  ;;  %v2113_v28 = vld [vmem:[%s6493_s1 + $0x150] sm:$0xff]  ;;  %v4722_v63 = vmul.f32 %v2114_v21, %v4413_v5  ;;  %v2115_v25 = vld [vmem:[%s6493_s1 + $0x160] sm:$0xff] }
 0x119   :  { %1072 = vst.msk [vmem:[%s6496_s7 + $0x5c] sm:$0x2] %vm6572_vm5, %v1056_v10  ;;  %1073 = vst.msk [vmem:[%s6496_s7 + $0x64] sm:$0x2] %vm6572_vm5, %v1057_v47  ;;  %v2102_v10 = vld [vmem:[%s6493_s1 + $0xf8] sm:$0xff]  ;;  %v4716_v14 = vmul.f32 %v2113_v28, %v4413_v5  ;;  %v4728_v56 = vmul.f32 %v2115_v25, %v4413_v5  ;;  %v2116_v33 = vld [vmem:[%s6493_s1 + $0x168] sm:$0xff] }
 0x11a   :  { %1074 = vst.msk [vmem:[%s6496_s7 + $0x6c] sm:$0x2] %vm6572_vm5, %v1058_v61  ;;  %1075 = vst.msk [vmem:[%s6496_s7 + $0x74] sm:$0x2] %vm6572_vm5, %v1059_v50  ;;  %v4734_v54 = vmul.f32 %v2116_v33, %v4413_v5  ;;  %v2117_v0 = vld [vmem:[%s6493_s1 + $0x170] sm:$0xff]  ;;  %v2118_v55 = vld [vmem:[%s6493_s1 + $0x178] sm:$0xff] }
 0x11b   :  { %1089 = vst.msk [vmem:[%s6496_s7 + $0x63] sm:$0x8] %vm6566_vm8, %v1057_v47  ;;  %1090 = vst.msk [vmem:[%s6496_s7 + $0x6b] sm:$0x8] %vm6566_vm8, %v1058_v61  ;;  %v4740_v52 = vmul.f32 %v2117_v0, %v4413_v5  ;;  %v4746_v44 = vmul.f32 %v2118_v55, %v4413_v5  ;;  %v2121_v9 = vld [vmem:[%s6493_s1 + $0x190] sm:$0xff]  ;;  %v2122_v42 = vld [vmem:[%s6493_s1 + $0x198] sm:$0xff] }
 0x11c   :  { %1091 = vst.msk [vmem:[%s6496_s7 + $0x73] sm:$0x8] %vm6566_vm8, %v1059_v50  ;;  %1092 = vst.msk [vmem:[%s6496_s7 + $0x7b] sm:$0x8] %vm6566_vm8, %v1060_v3  ;;  %v4764_v36 = vmul.f32 %v2121_v9, %v4413_v5  ;;  %v4770_v8 = vmul.f32 %v2122_v42, %v4413_v5  ;;  %v2123_v41 = vld [vmem:[%s6493_s1 + $0x1a0] sm:$0xff]  ;;  %v2124_v28 = vld [vmem:[%s6493_s1 + $0x1a8] sm:$0xff] }
 0x11d   :  { %1105 = vst.msk [vmem:[%s6496_s7 + $0x62] sm:$0x20] %vm6561_vm15, %v1057_v47  ;;  %1106 = vst.msk [vmem:[%s6496_s7 + $0x6a] sm:$0x20] %vm6561_vm15, %v1058_v61  ;;  %v4650_v47 = vmul.f32 %v2102_v10, %v4413_v5  ;;  %v2103_v61 = vld [vmem:[%s6493_s1 + $0x100] sm:$0xff]  ;;  %v4776_v17 = vmul.f32 %v2123_v41, %v4413_v5  ;;  %v4787_v21 = vmul.f32 %v2124_v28, %v4413_v5  ;;  %v2125_v25 = vld [vmem:[%s6493_s1 + $0x1b0] sm:$0xff] }
 0x11e   :  { %1107 = vst.msk [vmem:[%s6496_s7 + $0x72] sm:$0x20] %vm6561_vm15, %v1059_v50  ;;  %1108 = vst.msk [vmem:[%s6496_s7 + $0x7a] sm:$0x20] %vm6561_vm15, %v1060_v3  ;;  %v4656_v50 = vmul.f32 %v2103_v61, %v4413_v5  ;;  %v2119_v10 = vld [vmem:[%s6493_s1 + $0x180] sm:$0xff]  ;;  %v4793_v33 = vmul.f32 %v2125_v25, %v4413_v5  ;;  %v2126_v0 = vld [vmem:[%s6493_s1 + $0x1b8] sm:$0xff] }
 0x11f   :  { %1076 = vst.msk [vmem:[%s6496_s7 + $0x7c] sm:$0x2] %vm6572_vm5, %v1060_v3  ;;  %v2104_v3 = vld [vmem:[%s6493_s1 + $0x108] sm:$0xff]  ;;  %v4752_v61 = vmul.f32 %v2119_v10, %v4413_v5  ;;  %v4781_v32 = vld [vmem:[%s6495_s5 + $0x1] ss:$0 sm:$0xff]  ;;  %v4799_v55 = vmul.f32 %v2126_v0, %v4413_v5  ;;  %v2129_v41 = vld [vmem:[%s6493_s1 + $0x1d0] sm:$0xff] }
 0x120   :  { %v4662_v53 = vmul.f32 %v2104_v3, %v4413_v5  ;;  %v2120_v3 = vld [vmem:[%s6493_s1 + $0x188] sm:$0xff]  ;;  %v2127_v10 = vld [vmem:[%s6493_s1 + $0x1c0] sm:$0xff]  ;;  %v4817_v28 = vmul.f32 %v2129_v41, %v4413_v5  ;;  %v2130_v25 = vld [vmem:[%s6493_s1 + $0x1d8] sm:$0xff] }
 0x121   :  { %v4758_v24 = vmul.f32 %v2120_v3, %v4413_v5  ;;  %6826 = vst [vmem:[#allocation32_spill] sm:$0xff] %v4799_v55  ;;  %v4805_v3 = vmul.f32 %v2127_v10, %v4413_v5  ;;  %v2128_v9 = vld [vmem:[%s6493_s1 + $0x1c8] sm:$0xff]  ;;  %v4823_v0 = vmul.f32 %v2130_v25, %v4413_v5  ;;  %v2131_v10 = vld [vmem:[%s6493_s1 + $0x1e0] sm:$0xff]  ;;  %v4859_v55 = vadd.f32 %v4781_v32, %v4416_v19 }
 0x122   :  { %v4811_v42 = vmul.f32 %v2128_v9, %v4413_v5  ;;  %6829 = vst [vmem:[#allocation39_spill] sm:$0xff] %v4817_v28  ;;  %v4829_v9 = vmul.f32 %v2131_v10, %v4413_v5  ;;  %v2133_v28 = vld [vmem:[%s6493_s1 + $0x1f0] sm:$0xff]  ;;  %v4879_v19 = vadd.f32 %v4781_v32, %v4494_v12  ;;  %v4899_v12 = vadd.f32 %v4781_v32, %v4536_v62 }
 0x123   :  { %6827 = vst [vmem:[#allocation34_spill] sm:$0xff] %v4805_v3  ;;  %6830 = vst [vmem:[#allocation40_spill] sm:$0xff] %v4823_v0  ;;  %v4841_v25 = vmul.f32 %v2133_v28, %v4413_v5  ;;  %v2134_v0 = vld [vmem:[%s6493_s1 + $0x1f8] sm:$0xff]  ;;  %v4863_v28 = vadd.f32 %v4781_v32, %v4422_v51  ;;  %v4883_v51 = vadd.f32 %v4781_v32, %v4500_v20  ;;  %vm1249_vm13 = vcmp.ge.f32.partialorder %v4859_v55, 0.0 }
 0x124   :  { %6828 = vst [vmem:[#allocation37_spill] sm:$0xff] %v4811_v42  ;;  %6831 = vst [vmem:[#allocation42_spill] sm:$0xff] %v4829_v9  ;;  %v2132_v42 = vld [vmem:[%s6493_s1 + $0x1e8] sm:$0xff]  ;;  %v4847_v10 = vmul.f32 %v2134_v0, %v4413_v5  ;;  %v6833_v9 = vld [vmem:[#allocation2_spill] sm:$0xff]  ;;  %v4871_v0 = vadd.f32 %v4781_v32, %v4482_v40  ;;  %v4891_v40 = vadd.f32 %v4781_v32, %v4524_v1  ;;  %vm1254_vm9 = vcmp.ge.f32.partialorder %v4879_v19, 0.0 }
 0x125   :  { %v4835_v41 = vmul.f32 %v2132_v42, %v4413_v5  ;;  %v4851_v3 = vadd.f32 %v4781_v32, %v6833_v9  ;;  %v6834_v42 = vld [vmem:[#allocation3_spill] sm:$0xff]  ;;  %v4867_v5 = vadd.f32 %v4781_v32, %v4428_v15  ;;  %v4875_v9 = vadd.f32 %v4781_v32, %v4488_v59 }
 0x126   :  { %v4887_v15 = vadd.f32 %v4781_v32, %v4518_v26  ;;  %v4895_v59 = vadd.f32 %v4781_v32, %v4530_v18  ;;  %v4903_v20 = vadd.f32 %v4781_v32, %v4542_v30  ;;  %v4907_v26 = vadd.f32 %v4781_v32, %v4548_v35 }
 0x127   :  { %6832 = vst [vmem:[#allocation43_spill] sm:$0xff] %v4835_v41  ;;  %v4855_v41 = vadd.f32 %v4781_v32, %v6834_v42  ;;  %v4911_v1 = vadd.f32 %v4781_v32, %v4554_v6  ;;  %v4915_v18 = vadd.f32 %v4781_v32, %v4560_v29  ;;  %v4919_v62 = vadd.f32 %v4781_v32, %v4566_v49 }
 0x128   :  { %v4923_v30 = vadd.f32 %v4781_v32, %v4572_v27  ;;  %v4927_v35 = vadd.f32 %v4781_v32, %v4578_v38  ;;  %v4931_v6 = vadd.f32 %v4781_v32, %v4584_v16  ;;  %v4935_v29 = vadd.f32 %v4781_v32, %v4590_v4  ;;  %v6844_v42 = vld [vmem:[#allocation32_spill] sm:$0xff] }
 0x129   :  { %v4939_v49 = vadd.f32 %v4781_v32, %v4596_v2  ;;  %v4943_v27 = vadd.f32 %v4781_v32, %v4602_v23  ;;  %v4947_v38 = vadd.f32 %v4781_v32, %v4608_v7  ;;  %v4951_v16 = vadd.f32 %v4781_v32, %v4614_v60 }
 0x12a   :  { %v4955_v4 = vadd.f32 %v4781_v32, %v4620_v31  ;;  %v4959_v2 = vadd.f32 %v4781_v32, %v4626_v39  ;;  %v4963_v23 = vadd.f32 %v4781_v32, %v4632_v46  ;;  %v4967_v7 = vadd.f32 %v4781_v32, %v4638_v34 }
 0x12b   :  { %v4971_v60 = vadd.f32 %v4781_v32, %v4644_v37  ;;  %v4975_v31 = vadd.f32 %v4781_v32, %v4650_v47  ;;  %v4979_v39 = vadd.f32 %v4781_v32, %v4656_v50  ;;  %v4983_v46 = vadd.f32 %v4781_v32, %v4662_v53 }
 0x12c   :  { %v4987_v34 = vadd.f32 %v4781_v32, %v4668_v43  ;;  %v4991_v37 = vadd.f32 %v4781_v32, %v4674_v57  ;;  %v4995_v47 = vadd.f32 %v4781_v32, %v4680_v11  ;;  %v4999_v50 = vadd.f32 %v4781_v32, %v4686_v13 }
 0x12d   :  { %v5003_v53 = vadd.f32 %v4781_v32, %v4692_v48  ;;  %v5007_v43 = vadd.f32 %v4781_v32, %v4698_v45  ;;  %v5011_v57 = vadd.f32 %v4781_v32, %v4704_v58  ;;  %v5015_v11 = vadd.f32 %v4781_v32, %v4710_v22 }
 0x12e   :  { %v5019_v13 = vadd.f32 %v4781_v32, %v4716_v14  ;;  %v5023_v48 = vadd.f32 %v4781_v32, %v4722_v63  ;;  %v5027_v45 = vadd.f32 %v4781_v32, %v4728_v56  ;;  %v5031_v58 = vadd.f32 %v4781_v32, %v4734_v54 }
 0x12f   :  { %v5035_v22 = vadd.f32 %v4781_v32, %v4740_v52  ;;  %v5039_v14 = vadd.f32 %v4781_v32, %v4746_v44  ;;  %v5043_v63 = vadd.f32 %v4781_v32, %v4752_v61  ;;  %v5047_v56 = vadd.f32 %v4781_v32, %v4758_v24 }
 0x130   :  { %v5051_v54 = vadd.f32 %v4781_v32, %v4764_v36  ;;  %v5055_v52 = vadd.f32 %v4781_v32, %v4770_v8  ;;  %v5059_v44 = vadd.f32 %v4781_v32, %v4776_v17  ;;  %v5063_v61 = vadd.f32 %v4781_v32, %v4787_v21 }
 0x131   :  { %6835 = vst [vmem:[#allocation13_spill] sm:$0xff] %v5035_v22  ;;  %6836 = vst [vmem:[#allocation4_spill] sm:$0xff] %v5039_v14  ;;  %v5067_v24 = vadd.f32 %v4781_v32, %v4793_v33  ;;  %v5071_v36 = vadd.f32 %v4781_v32, %v6844_v42  ;;  %vm1247_vm10 = vcmp.ge.f32.partialorder %v4851_v3, 0.0  ;;  %vm1248_vm0 = vcmp.ge.f32.partialorder %v4855_v41, 0.0 }
 0x132   :  { %6837 = vst [vmem:[#allocation14_spill] sm:$0xff] %v5043_v63  ;;  %6838 = vst [vmem:[#allocation5_spill] sm:$0xff] %v5047_v56  ;;  %vm1250_vm11 = vcmp.ge.f32.partialorder %v4863_v28, 0.0  ;;  %vm1251_vm1 = vcmp.ge.f32.partialorder %v4867_v5, 0.0  ;;  %vm1252_vm14 = vcmp.ge.f32.partialorder %v4871_v0, 0.0  ;;  %vm1253_vm2 = vcmp.ge.f32.partialorder %v4875_v9, 0.0 }
 0x133   :  { %6839 = vst [vmem:[#allocation46_spill] sm:$0xff] %v5051_v54  ;;  %6840 = vst [vmem:[#allocation47_spill] sm:$0xff] %v5055_v52  ;;  %v6846_v54 = vld [vmem:[#allocation34_spill] sm:$0xff]  ;;  %v6848_v52 = vld [vmem:[#allocation37_spill] sm:$0xff]  ;;  %vm1255_vm3 = vcmp.ge.f32.partialorder %v4883_v51, 0.0  ;;  %vm1256_vm4 = vcmp.ge.f32.partialorder %v4887_v15, 0.0 }
 0x134   :  { %6841 = vst [vmem:[#allocation6_spill] sm:$0xff] %v5059_v44  ;;  %6842 = vst [vmem:[#allocation49_spill] sm:$0xff] %v5063_v61  ;;  %v5075_v8 = vadd.f32 %v4781_v32, %v6846_v54  ;;  %v5079_v17 = vadd.f32 %v4781_v32, %v6848_v52  ;;  %v6850_v44 = vld [vmem:[#allocation39_spill] sm:$0xff]  ;;  %v6852_v61 = vld [vmem:[#allocation40_spill] sm:$0xff]  ;;  %v5099_v52 = vadd.f32 %v4781_v32, %v4841_v25  ;;  %vm1257_vm12 = vcmp.ge.f32.partialorder %v4891_v40, 0.0 }
 0x135   :  { %6843 = vst [vmem:[#allocation8_spill] sm:$0xff] %v5067_v24  ;;  %6845 = vst [vmem:[#allocation50_spill] sm:$0xff] %v5071_v36  ;;  %v5083_v21 = vadd.f32 %v4781_v32, %v6850_v44  ;;  %v5087_v33 = vadd.f32 %v4781_v32, %v6852_v61  ;;  %v6854_v24 = vld [vmem:[#allocation42_spill] sm:$0xff]  ;;  %v6856_v36 = vld [vmem:[#allocation43_spill] sm:$0xff]  ;;  %v5103_v44 = vadd.f32 %v4781_v32, %v4847_v10  ;;  %v1312_v25 = vmul.f32 0.1, %v4855_v41 }
 0x136   :  { %6847 = vst [vmem:[#allocation9_spill] sm:$0xff] %v5075_v8  ;;  %6849 = vst [vmem:[#allocation52_spill] sm:$0xff] %v5079_v17  ;;  %v5091_v42 = vadd.f32 %v4781_v32, %v6854_v24  ;;  %v5095_v54 = vadd.f32 %v4781_v32, %v6856_v36  ;;  %v1311_v32 = vmul.f32 0.1, %v4851_v3  ;;  %v1313_v10 = vmul.f32 0.1, %v4859_v55 }
 0x137   :  { %6851 = vst [vmem:[#allocation10_spill] sm:$0xff] %v5083_v21  ;;  %6853 = vst [vmem:[#allocation53_spill] sm:$0xff] %v5087_v33  ;;  %v1314_v61 = vmul.f32 0.1, %v4863_v28  ;;  %vm1258_vm6 = vcmp.ge.f32.partialorder %v4895_v59, 0.0  ;;  %vm1259_vm15 = vcmp.ge.f32.partialorder %v4899_v12, 0.0  ;;  %v5136_v21 = vsel %vm1248_vm0, %v4855_v41, %v1312_v25 }
 0x138   :  { %6855 = vst [vmem:[#allocation11_spill] sm:$0xff] %v5091_v42  ;;  %6857 = vst [vmem:[#allocation54_spill] sm:$0xff] %v5095_v54  ;;  %v1315_v24 = vmul.f32 0.1, %v4867_v5  ;;  %v1316_v36 = vmul.f32 0.1, %v4871_v0 }
 0x139   :  { %6858 = vst [vmem:[#allocation12_spill] sm:$0xff] %v5099_v52  ;;  %6859 = vst [vmem:[#allocation15_spill] sm:$0xff] %v5103_v44  ;;  %v1317_v44 = vmul.f32 0.1, %v4875_v9  ;;  %v5127_v52 = vsel %vm1247_vm10, %v4851_v3, %v1311_v32  ;;  %v1318_v54 = vmul.f32 0.1, %v4879_v19 }
 0x13a   :  { %6860 = vst [vmem:[#allocation16_spill] sm:$0xff] %v5127_v52  ;;  %v1319_v42 = vmul.f32 0.1, %v4883_v51  ;;  %v1320_v33 = vmul.f32 0.1, %v4887_v15  ;;  %6861 = vst [vmem:[#allocation17_spill] sm:$0xff] %v5136_v21  ;;  %v5147_v52 = vsel %vm1249_vm13, %v4859_v55, %v1313_v10  ;;  %v5162_v21 = vsel %vm1250_vm11, %v4863_v28, %v1314_v61 }
 0x13b   :  { %vm1260_vm8 = vcmp.ge.f32.partialorder %v4903_v20, 0.0  ;;  %v1321_v17 = vmul.f32 0.1, %v4891_v40  ;;  %v1322_v3 = vmul.f32 0.1, %v4895_v59  ;;  %6862 = vst [vmem:[#allocation18_spill] sm:$0xff] %v5147_v52 }
 0x13c   :  { %v5142_v32 = vmul.f32 0.1, %v4899_v12  ;;  %vm1261_vm10 = vcmp.ge.f32.partialorder %v4907_v26, 0.0  ;;  %v5151_v8 = vmul.f32 0.1, %v4903_v20  ;;  %6864 = vst [vmem:[#allocation21_spill] sm:$0xff] %v5162_v21 }
 0x13d   :  { %v5154_v41 = vmul.f32 0.1, %v4907_v26  ;;  %v5157_v25 = vmul.f32 0.1, %v4911_v1  ;;  %vm1262_vm0 = vcmp.ge.f32.partialorder %v4911_v1, 0.0  ;;  %vm1263_vm13 = vcmp.ge.f32.partialorder %v4915_v18, 0.0 }
 0x13e   :  { %v5166_v55 = vmul.f32 0.1, %v4915_v18  ;;  %v5169_v10 = vmul.f32 0.1, %v4919_v62  ;;  %v5172_v52 = vmul.f32 0.1, %v4923_v30 }
 0x13f   :  { %6863 = vst [vmem:[#allocation20_spill] sm:$0xff] %v5157_v25  ;;  %v5177_v25 = vsel %vm1251_vm1, %v4867_v5, %v1315_v24  ;;  %v5181_v28 = vmul.f32 0.1, %v4927_v35  ;;  %v5184_v61 = vmul.f32 0.1, %v4931_v6  ;;  %vm1264_vm11 = vcmp.ge.f32.partialorder %v4919_v62, 0.0 }
 0x140   :  { %6865 = vst [vmem:[#allocation22_spill] sm:$0xff] %v5172_v52  ;;  %6866 = vst [vmem:[#allocation27_spill] sm:$0xff] %v5177_v25  ;;  %v5187_v21 = vmul.f32 0.1, %v4935_v29  ;;  %v5192_v52 = vsel %vm1252_vm14, %v4871_v0, %v1316_v36  ;;  %v5196_v5 = vmul.f32 0.1, %v4939_v49 }
 0x141   :  { %6868 = vst [vmem:[#allocation29_spill] sm:$0xff] %v5192_v52  ;;  %v5199_v24 = vmul.f32 0.1, %v4943_v27  ;;  %v5202_v25 = vmul.f32 0.1, %v4947_v38  ;;  %vm1265_vm1 = vcmp.ge.f32.partialorder %v4923_v30, 0.0 }
 0x142   :  { %6867 = vst [vmem:[#allocation25_spill] sm:$0xff] %v5187_v21  ;;  %v5207_v21 = vsel %vm1253_vm2, %v4875_v9, %v1317_v44  ;;  %v5211_v0 = vmul.f32 0.1, %v4951_v16  ;;  %v5214_v36 = vmul.f32 0.1, %v4955_v4  ;;  %vm1266_vm14 = vcmp.ge.f32.partialorder %v4927_v35, 0.0 }
 0x143   :  { %6869 = vst [vmem:[#allocation26_spill] sm:$0xff] %v5202_v25  ;;  %6870 = vst [vmem:[#allocation31_spill] sm:$0xff] %v5207_v21  ;;  %v5217_v52 = vmul.f32 0.1, %v4959_v2  ;;  %v5222_v25 = vsel %vm1254_vm9, %v4879_v19, %v1318_v54  ;;  %v5226_v9 = vmul.f32 0.1, %v4963_v23 }
 0x144   :  { %6872 = vst [vmem:[#allocation38_spill] sm:$0xff] %v5222_v25  ;;  %v5229_v44 = vmul.f32 0.1, %v4967_v7  ;;  %v5232_v21 = vmul.f32 0.1, %v4971_v60  ;;  %vm1267_vm2 = vcmp.ge.f32.partialorder %v4931_v6, 0.0 }
 0x145   :  { %6871 = vst [vmem:[#allocation33_spill] sm:$0xff] %v5217_v52  ;;  %v5237_v52 = vsel %vm1255_vm3, %v4883_v51, %v1319_v42  ;;  %v5244_v19 = vmul.f32 0.1, %v4975_v31  ;;  %v5247_v54 = vmul.f32 0.1, %v4979_v39  ;;  %v5255_v51 = vsel %vm1256_vm4, %v4887_v15, %v1320_v33 }
 0x146   :  { %6873 = vst [vmem:[#allocation35_spill] sm:$0xff] %v5237_v52  ;;  %v5250_v25 = vmul.f32 0.1, %v4983_v46  ;;  %6875 = vst [vmem:[#allocation36_spill] sm:$0xff] %v5255_v51  ;;  %vm1271_vm3 = vcmp.ge.f32.partialorder %v4947_v38, 0.0  ;;  %v5273_v15 = vsel %vm1257_vm12, %v4891_v40, %v1321_v17  ;;  %vm1275_vm4 = vcmp.ge.f32.partialorder %v4963_v23, 0.0 }
 0x147   :  { %v5262_v42 = vmul.f32 0.1, %v4987_v34  ;;  %v5265_v52 = vmul.f32 0.1, %v4991_v37  ;;  %6877 = vst [vmem:[#allocation45_spill] sm:$0xff] %v5273_v15  ;;  %v5291_v40 = vsel %vm1258_vm6, %v4895_v59, %v1322_v3  ;;  %vm1279_vm12 = vcmp.ge.f32.partialorder %v4979_v39, 0.0 }
 0x148   :  { %6874 = vst [vmem:[#allocation41_spill] sm:$0xff] %v5250_v25  ;;  %v5268_v25 = vmul.f32 0.1, %v4995_v47  ;;  %v5280_v33 = vmul.f32 0.1, %v4999_v50  ;;  %6879 = vst [vmem:[#allocation7_spill] sm:$0xff] %v5291_v40  ;;  %v5310_v59 = vsel %vm1259_vm15, %v4899_v12, %v5142_v32  ;;  %v5329_v12 = vsel %vm1260_vm8, %v4903_v20, %v5151_v8 }
 0x149   :  { %v5283_v51 = vmul.f32 0.1, %v5003_v53  ;;  %v5298_v17 = vmul.f32 0.1, %v5011_v57  ;;  %v5301_v15 = vmul.f32 0.1, %v5015_v11  ;;  %v5348_v20 = vsel %vm1261_vm10, %v4907_v26, %v5154_v41 }
 0x14a   :  { %6876 = vst [vmem:[#allocation44_spill] sm:$0xff] %v5268_v25  ;;  %v5286_v25 = vmul.f32 0.1, %v5007_v43  ;;  %6881 = vst [vmem:[#allocation51_spill] sm:$0xff] %v5310_v59  ;;  %vm1283_vm6 = vcmp.ge.f32.partialorder %v4995_v47, 0.0  ;;  %vm1287_vm15 = vcmp.ge.f32.partialorder %v5011_v57, 0.0 }
 0x14b   :  { %v5317_v3 = vmul.f32 0.1, %v5023_v48  ;;  %v5320_v40 = vmul.f32 0.1, %v5027_v45  ;;  %6884 = vst [vmem:[#allocation28_spill] sm:$0xff] %v5329_v12  ;;  %6888 = vst [vmem:[#allocation2_spill] sm:$0xff] %v5348_v20 }
 0x14c   :  { %6878 = vst [vmem:[#allocation48_spill] sm:$0xff] %v5286_v25  ;;  %v5304_v25 = vmul.f32 0.1, %v5019_v13  ;;  %v5336_v32 = vmul.f32 0.1, %v5035_v22  ;;  %vm1291_vm8 = vcmp.ge.f32.partialorder %v5027_v45, 0.0 }
 0x14d   :  { %6882 = vst [vmem:[#allocation19_spill] sm:$0xff] %v5320_v40  ;;  %v5339_v59 = vmul.f32 0.1, %v5039_v14  ;;  %v5355_v8 = vmul.f32 0.1, %v5047_v56  ;;  %v6890_v12 = vld [vmem:[#allocation46_spill] sm:$0xff] }
 0x14e   :  { %6880 = vst [vmem:[#allocation56_spill] sm:$0xff] %v5304_v25  ;;  %v5323_v25 = vmul.f32 0.1, %v5031_v58  ;;  %6885 = vst [vmem:[#allocation23_spill] sm:$0xff] %v5336_v32  ;;  %v6894_v40 = vld [vmem:[#allocation20_spill] sm:$0xff]  ;;  %vm1295_vm10 = vcmp.ge.f32.partialorder %v5043_v63, 0.0 }
 0x14f   :  { %6886 = vst [vmem:[#allocation24_spill] sm:$0xff] %v5339_v59  ;;  %6889 = vst [vmem:[#allocation3_spill] sm:$0xff] %v5355_v8  ;;  %v5358_v59 = vmul.f32 0.1, %v6890_v12  ;;  %v5367_v26 = vsel %vm1262_vm0, %v4911_v1, %v6894_v40  ;;  %v6896_v41 = vld [vmem:[#allocation6_spill] sm:$0xff]  ;;  %v6898_v14 = vld [vmem:[#allocation8_spill] sm:$0xff]  ;;  %v5380_v1 = vsel %vm1263_vm13, %v4915_v18, %v5166_v55  ;;  %v5393_v18 = vsel %vm1264_vm11, %v4919_v62, %v5169_v10 }
 0x150   :  { %6883 = vst [vmem:[#allocation55_spill] sm:$0xff] %v5323_v25  ;;  %v5342_v25 = vmul.f32 0.1, %v5043_v63  ;;  %6895 = vst [vmem:[#allocation37_spill] sm:$0xff] %v5367_v26  ;;  %v1363_v20 = vmul.f32 0.1, %v6896_v41 }
 0x151   :  { %6891 = vst [vmem:[#allocation32_spill] sm:$0xff] %v5358_v59  ;;  %v6897_v59 = vld [vmem:[#allocation49_spill] sm:$0xff]  ;;  %6899 = vst [vmem:[#allocation39_spill] sm:$0xff] %v5380_v1  ;;  %vm1299_vm0 = vcmp.ge.f32.partialorder %v6896_v41, 0.0  ;;  %v6900_v40 = vld [vmem:[#allocation50_spill] sm:$0xff]  ;;  %vm6914_vm9 = vcmp.ge.f32.partialorder %v4939_v49, 0.0 }
 0x152   :  { %6887 = vst [vmem:[#allocation30_spill] sm:$0xff] %v5342_v25  ;;  %v6892_v25 = vld [vmem:[#allocation47_spill] sm:$0xff]  ;;  %v1364_v8 = vmul.f32 0.1, %v6897_v59  ;;  %v1366_v26 = vmul.f32 0.1, %v6900_v40 }
 0x153   :  { %v5361_v32 = vmul.f32 0.1, %v6892_v25  ;;  %v6901_v25 = vld [vmem:[#allocation9_spill] sm:$0xff]  ;;  %v6902_v56 = vld [vmem:[#allocation52_spill] sm:$0xff]  ;;  %6903 = vst [vmem:[#allocation40_spill] sm:$0xff] %v5393_v18  ;;  %v6904_v55 = vld [vmem:[#allocation10_spill] sm:$0xff] }
 0x154   :  { %v1367_v12 = vmul.f32 0.1, %v6901_v25  ;;  %v1368_v63 = vmul.f32 0.1, %v6902_v56  ;;  %vm1303_vm13 = vcmp.ge.f32.partialorder %v6901_v25, 0.0  ;;  %v6905_v1 = vld [vmem:[#allocation53_spill] sm:$0xff] }
 0x155   :  { %6893 = vst [vmem:[#allocation34_spill] sm:$0xff] %v5361_v32  ;;  %v1365_v32 = vmul.f32 0.1, %v6898_v14  ;;  %v1369_v40 = vmul.f32 0.1, %v6904_v55  ;;  %v6906_v59 = vld [vmem:[#allocation11_spill] sm:$0xff] }
 0x156   :  { %v1370_v14 = vmul.f32 0.1, %v6905_v1  ;;  %v1371_v41 = vmul.f32 0.1, %v6906_v59  ;;  %v6907_v22 = vld [vmem:[#allocation22_spill] sm:$0xff]  ;;  %vm1307_vm11 = vcmp.ge.f32.partialorder %v6906_v59, 0.0 }
 0x157   :  { %v5406_v62 = vsel %vm1265_vm1, %v4923_v30, %v6907_v22  ;;  %v6909_v10 = vld [vmem:[#allocation54_spill] sm:$0xff]  ;;  %v6910_v18 = vld [vmem:[#allocation12_spill] sm:$0xff]  ;;  %v6911_v56 = vld [vmem:[#allocation15_spill] sm:$0xff]  ;;  %v5419_v30 = vsel %vm1266_vm14, %v4927_v35, %v5181_v28  ;;  %v5425_v22 = vsel %vm1267_vm2, %v4931_v6, %v5184_v61  ;;  %vm6913_vm1 = vcmp.ge.f32.partialorder %v4935_v29, 0.0 }
 0x158   :  { %6908 = vst [vmem:[#allocation42_spill] sm:$0xff] %v5406_v62  ;;  %vm1308_vm5 = vcmp.ge.f32.partialorder %v6909_v10, 0.0  ;;  %vm1309_vm7 = vcmp.ge.f32.partialorder %v6910_v18, 0.0  ;;  %v1372_v55 = vmul.f32 0.1, %v6909_v10  ;;  %v6912_v62 = vld [vmem:[#allocation25_spill] sm:$0xff] }
 0x159   :  { %v1373_v1 = vmul.f32 0.1, %v6910_v18  ;;  %v1374_v25 = vmul.f32 0.1, %v6911_v56  ;;  %v5431_v10 = vsel %vm6913_vm1, %v4935_v29, %v6912_v62  ;;  %v5437_v56 = vsel %vm6914_vm9, %v4939_v49, %v5196_v5  ;;  %v6916_v6 = vld [vmem:[#allocation26_spill] sm:$0xff]  ;;  %v6924_v5 = vld [vmem:[#allocation41_spill] sm:$0xff] }
 0x15a   :  { %vm6915_vm14 = vcmp.ge.f32.partialorder %v4943_v27, 0.0  ;;  %v5449_v28 = vsel %vm1271_vm3, %v4947_v38, %v6916_v6  ;;  %vm6917_vm2 = vcmp.ge.f32.partialorder %v4951_v16, 0.0  ;;  %vm6918_vm9 = vcmp.ge.f32.partialorder %v4955_v4, 0.0 }
 0x15b   :  { %v5443_v35 = vsel %vm6915_vm14, %v4943_v27, %v5199_v24  ;;  %v5455_v29 = vsel %vm6917_vm2, %v4951_v16, %v5211_v0  ;;  %v5461_v49 = vsel %vm6918_vm9, %v4955_v4, %v5214_v36  ;;  %v6919_v27 = vld [vmem:[#allocation33_spill] sm:$0xff]  ;;  %vm6920_vm1 = vcmp.ge.f32.partialorder %v4959_v2, 0.0  ;;  %v6931_v24 = vld [vmem:[#allocation48_spill] sm:$0xff]  ;;  %v6937_v0 = vld [vmem:[#allocation19_spill] sm:$0xff] }
 0x15c   :  { %v5467_v61 = vsel %vm6920_vm1, %v4959_v2, %v6919_v27  ;;  %v5473_v38 = vsel %vm1275_vm4, %v4963_v23, %v5226_v9  ;;  %vm6921_vm3 = vcmp.ge.f32.partialorder %v4967_v7, 0.0  ;;  %vm6922_vm14 = vcmp.ge.f32.partialorder %v4971_v60, 0.0  ;;  %v6938_v36 = vld [vmem:[#allocation55_spill] sm:$0xff]  ;;  %v6954_v6 = vld [vmem:[#allocation34_spill] sm:$0xff] }
 0x15d   :  { %v5479_v16 = vsel %vm6921_vm3, %v4967_v7, %v5229_v44  ;;  %v5485_v4 = vsel %vm6922_vm14, %v4971_v60, %v5232_v21  ;;  %vm6923_vm2 = vcmp.ge.f32.partialorder %v4975_v31, 0.0  ;;  %v1407_v23 = vsel %vm1279_vm12, %v4979_v39, %v5247_v54  ;;  %v6928_v21 = vld [vmem:[#allocation44_spill] sm:$0xff]  ;;  %v6940_v9 = vld [vmem:[#allocation23_spill] sm:$0xff]  ;;  %v6941_v44 = vld [vmem:[#allocation13_spill] sm:$0xff] }
 0x15e   :  { %v5491_v2 = vsel %vm6923_vm2, %v4975_v31, %v5244_v19  ;;  %vm6925_vm4 = vcmp.ge.f32.partialorder %v4983_v46, 0.0  ;;  %vm6926_vm9 = vcmp.ge.f32.partialorder %v4987_v34, 0.0  ;;  %vm6927_vm1 = vcmp.ge.f32.partialorder %v4991_v37, 0.0  ;;  %v6943_v19 = vld [vmem:[#allocation24_spill] sm:$0xff]  ;;  %v6955_v27 = vld [vmem:[#allocation47_spill] sm:$0xff] }
 0x15f   :  { %v1408_v7 = vsel %vm6925_vm4, %v4983_v46, %v6924_v5  ;;  %v1409_v60 = vsel %vm6926_vm9, %v4987_v34, %v5262_v42  ;;  %v1410_v31 = vsel %vm6927_vm1, %v4991_v37, %v5265_v52  ;;  %v1411_v39 = vsel %vm1283_vm6, %v4995_v47, %v6928_v21  ;;  %v6934_v52 = vld [vmem:[#allocation56_spill] sm:$0xff]  ;;  %v6947_v42 = vld [vmem:[#allocation14_spill] sm:$0xff] }
 0x160   :  { %vm6929_vm12 = vcmp.ge.f32.partialorder %v4999_v50, 0.0  ;;  %vm6930_vm3 = vcmp.ge.f32.partialorder %v5003_v53, 0.0  ;;  %vm6932_vm14 = vcmp.ge.f32.partialorder %v5007_v43, 0.0  ;;  %v1415_v47 = vsel %vm1287_vm15, %v5011_v57, %v5298_v17  ;;  %v6944_v54 = vld [vmem:[#allocation4_spill] sm:$0xff]  ;;  %v6957_v21 = vld [vmem:[#allocation6_spill] sm:$0xff] }
 0x161   :  { %v1412_v46 = vsel %vm6929_vm12, %v4999_v50, %v5280_v33  ;;  %v1413_v34 = vsel %vm6930_vm3, %v5003_v53, %v5283_v51  ;;  %v1414_v37 = vsel %vm6932_vm14, %v5007_v43, %v6931_v24  ;;  %vm6933_vm6 = vcmp.ge.f32.partialorder %v5015_v11, 0.0  ;;  %v6946_v51 = vld [vmem:[#allocation30_spill] sm:$0xff]  ;;  %v6949_v33 = vld [vmem:[#allocation5_spill] sm:$0xff]  ;;  %v6951_v17 = vld [vmem:[#allocation32_spill] sm:$0xff] }
 0x162   :  { %v1416_v50 = vsel %vm6933_vm6, %v5015_v11, %v5301_v15  ;;  %vm6935_vm2 = vcmp.ge.f32.partialorder %v5019_v13, 0.0  ;;  %vm6936_vm4 = vcmp.ge.f32.partialorder %v5023_v48, 0.0  ;;  %v1419_v57 = vsel %vm1291_vm8, %v5027_v45, %v6937_v0  ;;  %v6948_v15 = vld [vmem:[#allocation3_spill] sm:$0xff] }
 0x163   :  { %v1417_v53 = vsel %vm6935_vm2, %v5019_v13, %v6934_v52  ;;  %v1418_v43 = vsel %vm6936_vm4, %v5023_v48, %v5317_v3  ;;  %vm6939_vm15 = vcmp.ge.f32.partialorder %v5031_v58, 0.0  ;;  %vm6942_vm9 = vcmp.ge.f32.partialorder %v6941_v44, 0.0  ;;  %v6952_v3 = vld [vmem:[#allocation46_spill] sm:$0xff]  ;;  %v6958_v52 = vld [vmem:[#allocation49_spill] sm:$0xff] }
 0x164   :  { %v1420_v11 = vsel %vm6939_vm15, %v5031_v58, %v6938_v36  ;;  %v1421_v13 = vsel %vm6942_vm9, %v6941_v44, %v6940_v9  ;;  %vm6945_vm1 = vcmp.ge.f32.partialorder %v6944_v54, 0.0  ;;  %v1423_v45 = vsel %vm1295_vm10, %v6947_v42, %v6946_v51  ;;  %v6960_v36 = vld [vmem:[#allocation8_spill] sm:$0xff]  ;;  %v6962_v44 = vld [vmem:[#allocation50_spill] sm:$0xff] }
 0x165   :  { %v1422_v48 = vsel %vm6945_vm1, %v6944_v54, %v6943_v19  ;;  %vm6950_vm8 = vcmp.ge.f32.partialorder %v6949_v33, 0.0  ;;  %vm6953_vm12 = vcmp.ge.f32.partialorder %v6952_v3, 0.0  ;;  %vm6956_vm3 = vcmp.ge.f32.partialorder %v6955_v27, 0.0  ;;  %v6964_v54 = vld [vmem:[#allocation9_spill] sm:$0xff]  ;;  %v6965_v42 = vld [vmem:[#allocation52_spill] sm:$0xff] }
 0x166   :  { %v1424_v58 = vsel %vm6950_vm8, %v6949_v33, %v6948_v15  ;;  %v1425_v62 = vsel %vm6953_vm12, %v6952_v3, %v6951_v17  ;;  %v1426_v5 = vsel %vm6956_vm3, %v6955_v27, %v6954_v6  ;;  %v1427_v24 = vsel %vm1299_vm0, %v6957_v21, %v1363_v20  ;;  %v6967_v15 = vld [vmem:[#allocation10_spill] sm:$0xff]  ;;  %v6969_v33 = vld [vmem:[#allocation53_spill] sm:$0xff]  ;;  %v6975_v6 = vld [vmem:[#allocation16_spill] sm:$0xff] }
 0x167   :  { %vm6959_vm10 = vcmp.ge.f32.partialorder %v6958_v52, 0.0  ;;  %vm6961_vm14 = vcmp.ge.f32.partialorder %v6960_v36, 0.0  ;;  %vm6963_vm6 = vcmp.ge.f32.partialorder %v6962_v44, 0.0  ;;  %v1431_v51 = vsel %vm1303_vm13, %v6964_v54, %v1367_v12  ;;  %v6971_v12 = vld [vmem:[#allocation54_spill] sm:$0xff] }
 0x168   :  { %v1428_v0 = vsel %vm6959_vm10, %v6958_v52, %v1364_v8  ;;  %v1429_v9 = vsel %vm6961_vm14, %v6960_v36, %v1365_v32  ;;  %v1430_v19 = vsel %vm6963_vm6, %v6962_v44, %v1366_v26  ;;  %vm6966_vm2 = vcmp.ge.f32.partialorder %v6965_v42, 0.0  ;;  %v6974_v3 = vld [vmem:[#allocation18_spill] sm:$0xff]  ;;  %v6980_v36 = vld [vmem:[#allocation27_spill] sm:$0xff] }
 0x169   :  { %v1432_v20 = vsel %vm6966_vm2, %v6965_v42, %v1368_v63  ;;  %vm6968_vm0 = vcmp.ge.f32.partialorder %v6967_v15, 0.0  ;;  %vm6970_vm4 = vcmp.ge.f32.partialorder %v6969_v33, 0.0  ;;  %v5604_v26 = vsel %vm1307_vm11, %v6906_v59, %v1371_v41  ;;  %v6976_v59 = vld [vmem:[#allocation21_spill] sm:$0xff]  ;;  %v6982_v42 = vld [vmem:[#allocation35_spill] sm:$0xff] }
 0x16a   :  { %v5594_v8 = vsel %vm6968_vm0, %v6967_v15, %v1369_v40  ;;  %v5599_v32 = vsel %vm6970_vm4, %v6969_v33, %v1370_v14  ;;  %v5609_v17 = vsel %vm1308_vm5, %v6971_v12, %v1372_v55  ;;  %v5614_v63 = vsel %vm1309_vm7, %v6910_v18, %v1373_v1  ;;  %v6972_v40 = vld [vmem:[#allocation15_spill] sm:$0xff]  ;;  %v6977_v41 = vld [vmem:[#allocation17_spill] sm:$0xff]  ;;  %v6984_v12 = vld [vmem:[#allocation36_spill] sm:$0xff] }
 0x16b   :  { %vm6973_vm13 = vcmp.ge.f32.partialorder %v6972_v40, 0.0  ;;  %v5623_v27 = vmax.f32 %v6975_v6, %v6974_v3  ;;  %v5627_v21 = vmax.f32 %v6977_v41, %v6976_v59  ;;  %v5629_v55 = vmax.f32 %v1407_v23, %v1409_v60  ;;  %v6981_v18 = vld [vmem:[#allocation29_spill] sm:$0xff]  ;;  %v6983_v15 = vld [vmem:[#allocation31_spill] sm:$0xff] }
 0x16c   :  { %v5619_v14 = vsel %vm6973_vm13, %v6972_v40, %v1374_v25  ;;  %v5631_v52 = vmax.f32 %v1408_v7, %v1410_v31  ;;  %v1443_v1 = vmax.f32 %v6974_v3, %v6980_v36  ;;  %v1444_v44 = vmax.f32 %v6976_v59, %v6981_v18  ;;  %v6985_v40 = vld [vmem:[#allocation38_spill] sm:$0xff]  ;;  %v6993_v18 = vld [vmem:[#allocation28_spill] sm:$0xff] }
 0x16d   :  { %6978 = vst [vmem:[#allocation43_spill] sm:$0xff] %v5627_v21  ;;  %6979 = vst [vmem:[#allocation20_spill] sm:$0xff] %v5629_v55  ;;  %v1445_v25 = vmax.f32 %v1409_v60, %v1411_v39  ;;  %v1446_v54 = vmax.f32 %v1410_v31, %v1412_v46  ;;  %v1451_v33 = vmax.f32 %v6983_v15, %v6982_v42  ;;  %v6988_v60 = vld [vmem:[#allocation45_spill] sm:$0xff]  ;;  %v6990_v39 = vld [vmem:[#allocation7_spill] sm:$0xff]  ;;  %vm7005_vm7 = vcmask 16384  }
 0x16e   :  { %v1452_v6 = vmax.f32 %v6985_v40, %v6984_v12  ;;  %v1453_v41 = vmax.f32 %v1413_v34, %v1415_v47  ;;  %v1454_v21 = vmax.f32 %v1414_v37, %v1416_v50  ;;  %v5642_v23 = vmax.f32 %v1443_v1, %v6983_v15  ;;  %v6992_v50 = vld [vmem:[#allocation51_spill] sm:$0xff]  ;;  %v6996_v15 = vld [vmem:[#allocation40_spill] sm:$0xff]  ;;  %vm7006_vm5 = vmmov %vm7005_vm7 }
 0x16f   :  { %v5645_v7 = vmax.f32 %v1444_v44, %v6985_v40  ;;  %v5647_v3 = vmax.f32 %v1445_v25, %v1413_v34  ;;  %v5649_v36 = vmax.f32 %v1446_v54, %v1414_v37  ;;  %v5652_v31 = vmax.f32 %v1451_v33, %v6988_v60  ;;  %v6994_v37 = vld [vmem:[#allocation39_spill] sm:$0xff]  ;;  %v6995_v54 = vld [vmem:[#allocation2_spill] sm:$0xff]  ;;  %v6997_v33 = vld [vmem:[#allocation37_spill] sm:$0xff] }
 0x170   :  { %6986 = vst [vmem:[#allocation11_spill] sm:$0xff] %v5642_v23  ;;  %v5655_v46 = vmax.f32 %v1452_v6, %v6990_v39  ;;  %v5657_v59 = vmax.f32 %v1453_v41, %v1417_v53  ;;  %v5659_v47 = vmax.f32 %v1454_v21, %v1418_v43  ;;  %v1459_v1 = vmax.f32 %v6988_v60, %v6992_v50  ;;  %vm7007_vm11 = vmmov %vm7006_vm5 }
 0x171   :  { %6987 = vst [vmem:[#allocation22_spill] sm:$0xff] %v5647_v3  ;;  %6989 = vst [vmem:[#allocation12_spill] sm:$0xff] %v5652_v31  ;;  %v1460_v44 = vmax.f32 %v6990_v39, %v6993_v18  ;;  %v1461_v34 = vmax.f32 %v1417_v53, %v1419_v57  ;;  %v1462_v25 = vmax.f32 %v1418_v43, %v1420_v11  ;;  %v7000_v53 = vld [vmem:[#allocation42_spill] sm:$0xff] }
 0x172   :  { %6991 = vst [vmem:[#allocation25_spill] sm:$0xff] %v5657_v59  ;;  %v1467_v42 = vmax.f32 %v6995_v54, %v6994_v37  ;;  %v1468_v12 = vmax.f32 %v6997_v33, %v6996_v15  ;;  %v1469_v40 = vmax.f32 %v1421_v13, %v1423_v45  ;;  %v1470_v6 = vmax.f32 %v1422_v48, %v1424_v58  ;;  %vm7008_vm15 = vmmov %vm7006_vm5 }
 0x173   :  { %v5670_v41 = vmax.f32 %v1459_v1, %v6995_v54  ;;  %v5673_v21 = vmax.f32 %v1460_v44, %v6997_v33  ;;  %v5675_v60 = vmax.f32 %v1461_v34, %v1421_v13  ;;  %v5677_v50 = vmax.f32 %v1462_v25, %v1422_v48  ;;  %vm7009_vm9 = vmmov %vm7006_vm5 }
 0x174   :  { %v5680_v43 = vmax.f32 %v1467_v42, %v7000_v53  ;;  %v5683_v57 = vmax.f32 %v1468_v12, %v5419_v30  ;;  %v5685_v11 = vmax.f32 %v1469_v40, %v1425_v62  ;;  %v5687_v45 = vmax.f32 %v1470_v6, %v1426_v5  ;;  %vm7010_vm1 = vmmov %vm7006_vm5 }
 0x175   :  { %6998 = vst [vmem:[#allocation26_spill] sm:$0xff] %v5670_v41  ;;  %6999 = vst [vmem:[#allocation33_spill] sm:$0xff] %v5675_v60  ;;  %v1475_v58 = vmax.f32 %v7000_v53, %v5425_v22  ;;  %v1476_v39 = vmax.f32 %v5419_v30, %v5431_v10  ;;  %v1477_v13 = vmax.f32 %v1425_v62, %v1427_v24  ;;  %v1515_v24 = vrot.slane %v5623_v27, 1 }
 0x176   :  { %7001 = vst [vmem:[#allocation41_spill] sm:$0xff] %v5680_v43  ;;  %v1478_v1 = vmax.f32 %v1426_v5, %v1428_v0  ;;  %v1483_v48 = vmax.f32 %v5437_v56, %v5449_v28  ;;  %v1484_v18 = vmax.f32 %v5443_v35, %v5455_v29  ;;  %v1485_v44 = vmax.f32 %v1429_v9, %v1431_v51  ;;  %vm7011_vm8 = vmmov %vm7010_vm1 }
 0x177   :  { %v1486_v34 = vmax.f32 %v1430_v19, %v1432_v20  ;;  %v5698_v25 = vmax.f32 %v1475_v58, %v5437_v56  ;;  %v5701_v37 = vmax.f32 %v1476_v39, %v5443_v35  ;;  %v5703_v22 = vmax.f32 %v1477_v13, %v1429_v9  ;;  %vm7012_vm12 = vmmov %vm7010_vm1 }
 0x178   :  { %v5705_v54 = vmax.f32 %v1478_v1, %v1430_v19  ;;  %v5708_v10 = vmax.f32 %v1483_v48, %v5461_v49  ;;  %v5711_v30 = vmax.f32 %v1484_v18, %v5467_v61  ;;  %v5714_v28 = vmax.f32 %v1485_v44, %v5594_v8  ;;  %vm7013_vm3 = vmmov %vm7010_vm1 }
 0x179   :  { %7002 = vst [vmem:[#allocation44_spill] sm:$0xff] %v5698_v25  ;;  %v5717_v29 = vmax.f32 %v1486_v34, %v5599_v32  ;;  %v1491_v56 = vmax.f32 %v5461_v49, %v5473_v38  ;;  %v1492_v35 = vmax.f32 %v5467_v61, %v5479_v16  ;;  %v1493_v62 = vmax.f32 %v5594_v8, %v5604_v26  ;;  %vm7014_vm10 = vmmov %vm7010_vm1 }
 0x17a   :  { %7003 = vst [vmem:[#allocation48_spill] sm:$0xff] %v5708_v10  ;;  %v1494_v5 = vmax.f32 %v5599_v32, %v5609_v17  ;;  %v1516_v0 = vrot.slane %v5642_v23, 1  ;;  %v1517_v9 = vrot.slane %v5652_v31, 1  ;;  %v1518_v19 = vrot.slane %v5670_v41, 1  ;;  %vm7015_vm14 = vmmov %vm7010_vm1 }
 0x17b   :  { %v5732_v51 = vmax.f32 %v1491_v56, %v5485_v4  ;;  %v5735_v49 = vmax.f32 %v1492_v35, %v5491_v2  ;;  %v5738_v61 = vmax.f32 %v1493_v62, %v5614_v63  ;;  %v1519_v16 = vrot.slane %v5680_v43, 1  ;;  %vm7016_vm6 = vmmov %vm7010_vm1 }
 0x17c   :  { %v5741_v38 = vmax.f32 %v1494_v5, %v5619_v14  ;;  %v1520_v20 = vrot.slane %v5698_v25, 1  ;;  %v1521_v8 = vrot.slane %v5708_v10, 1  ;;  %v1523_v32 = vrot.slane %v5629_v55, 1  ;;  %vm7017_vm2 = vmmov %vm7010_vm1 }
 0x17d   :  { %7004 = vst [vmem:[#allocation56_spill] sm:$0xff] %v5732_v51  ;;  %v1522_v4 = vrot.slane %v5732_v51, 1  ;;  %v1524_v26 = vrot.slane %v5647_v3, 1  ;;  %v1525_v2 = vrot.slane %v5657_v59, 1  ;;  %v1526_v17 = vrot.slane %v5675_v60, 1  ;;  %vm7018_vm0 = vmmov %vm7010_vm1 }
 0x17e   :  { %v1527_v63 = vrot.slane %v5685_v11, 1  ;;  %v1528_v14 = vrot.slane %v5703_v22, 1  ;;  %v1529_v42 = vrot.slane %v5714_v28, 1  ;;  %v1530_v15 = vrot.slane %v5738_v61, 1  ;;  %vm7019_vm4 = vmmov %vm7018_vm0 }
 0x17f   :  { %v1547_v33 = vmax.f32 %v5623_v27, %v1515_v24  ;;  %v1548_v12 = vmax.f32 %v5642_v23, %v1516_v0  ;;  %v1549_v40 = vmax.f32 %v5652_v31, %v1517_v9  ;;  %v1550_v6 = vmax.f32 %v5670_v41, %v1518_v19  ;;  %vm7020_vm13 = vmmov %vm7018_vm0 }
 0x180   :  { %v1551_v53 = vmax.f32 %v5680_v43, %v1519_v16  ;;  %v1552_v58 = vmax.f32 %v5698_v25, %v1520_v20  ;;  %v1553_v39 = vmax.f32 %v5708_v10, %v1521_v8  ;;  %v1554_v13 = vmax.f32 %v5732_v51, %v1522_v4 }
 0x181   :  { %v1555_v1 = vmax.f32 %v5629_v55, %v1523_v32  ;;  %v1556_v48 = vmax.f32 %v5647_v3, %v1524_v26  ;;  %v1557_v18 = vmax.f32 %v5657_v59, %v1525_v2  ;;  %v1558_v44 = vmax.f32 %v5675_v60, %v1526_v17  ;;  %1907 = vst.msk [vmem:[%s6496_s7 + $0x80] sm:$0x1] %vm7005_vm7, %v1547_v33 }
 0x182   :  { %1908 = vst.msk [vmem:[%s6496_s7 + $0x88] sm:$0x1] %vm7006_vm5, %v1548_v12  ;;  %v1559_v34 = vmax.f32 %v5685_v11, %v1527_v63  ;;  %v1560_v56 = vmax.f32 %v5703_v22, %v1528_v14  ;;  %v1561_v35 = vmax.f32 %v5714_v28, %v1529_v42  ;;  %v1562_v62 = vmax.f32 %v5738_v61, %v1530_v15 }
 0x183   :  { %1909 = vst.msk [vmem:[%s6496_s7 + $0x90] sm:$0x1] %vm7007_vm11, %v1549_v40  ;;  %v1580_v5 = vrot.slane %v5623_v27, 2  ;;  %v1581_v24 = vrot.slane %v5642_v23, 2  ;;  %v1582_v0 = vrot.slane %v5652_v31, 2  ;;  %v1583_v9 = vrot.slane %v5670_v41, 2 }
 0x184   :  { %1910 = vst.msk [vmem:[%s6496_s7 + $0x98] sm:$0x1] %vm7008_vm15, %v1550_v6  ;;  %v1584_v19 = vrot.slane %v5680_v43, 2  ;;  %v1585_v16 = vrot.slane %v5698_v25, 2  ;;  %v1586_v20 = vrot.slane %v5708_v10, 2  ;;  %v1587_v8 = vrot.slane %v5732_v51, 2 }
 0x185   :  { %1911 = vst.msk [vmem:[%s6496_s7 + $0xa0] sm:$0x1] %vm7009_vm9, %v1551_v53  ;;  %v1588_v32 = vrot.slane %v5629_v55, 2  ;;  %v1589_v4 = vrot.slane %v5647_v3, 2  ;;  %v1590_v26 = vrot.slane %v5657_v59, 2  ;;  %v1591_v2 = vrot.slane %v5675_v60, 2 }
 0x186   :  { %1912 = vst.msk [vmem:[%s6496_s7 + $0xa8] sm:$0x1] %vm7010_vm1, %v1552_v58  ;;  %v1592_v17 = vrot.slane %v5685_v11, 2  ;;  %v1593_v63 = vrot.slane %v5703_v22, 2  ;;  %v1594_v14 = vrot.slane %v5714_v28, 2  ;;  %v1595_v42 = vrot.slane %v5738_v61, 2 }
 0x187   :  { %1913 = vst.msk [vmem:[%s6496_s7 + $0xb0] sm:$0x1] %vm7011_vm8, %v1553_v39  ;;  %v1612_v15 = vmax.f32 %v1547_v33, %v1580_v5  ;;  %v1613_v10 = vmax.f32 %v1548_v12, %v1581_v24  ;;  %v1614_v25 = vmax.f32 %v1549_v40, %v1582_v0  ;;  %v1615_v51 = vmax.f32 %v1550_v6, %v1583_v9  ;;  %v7073_v24 = vld [vmem:[#allocation41_spill] sm:$0xff]  ;;  %v7074_v9 = vld [vmem:[#allocation44_spill] sm:$0xff] }
 0x188   :  { %1914 = vst.msk [vmem:[%s6496_s7 + $0xb8] sm:$0x1] %vm7012_vm12, %v1554_v13  ;;  %v1616_v43 = vmax.f32 %v1551_v53, %v1584_v19  ;;  %v1617_v55 = vmax.f32 %v1552_v58, %v1585_v16  ;;  %v1618_v41 = vmax.f32 %v1553_v39, %v1586_v20  ;;  %v1619_v3 = vmax.f32 %v1554_v13, %v1587_v8  ;;  %v7075_v19 = vld [vmem:[#allocation48_spill] sm:$0xff] }
 0x189   :  { %1915 = vst.msk [vmem:[%s6496_s7 + $0xc0] sm:$0x1] %vm7013_vm3, %v1555_v1  ;;  %v1620_v31 = vmax.f32 %v1555_v1, %v1588_v32  ;;  %v1621_v59 = vmax.f32 %v1556_v48, %v1589_v4  ;;  %v1622_v23 = vmax.f32 %v1557_v18, %v1590_v26  ;;  %v1623_v60 = vmax.f32 %v1558_v44, %v1591_v2  ;;  %v7076_v20 = vld [vmem:[#allocation56_spill] sm:$0xff]  ;;  %v7078_v26 = vld [vmem:[#allocation22_spill] sm:$0xff] }
 0x18a   :  { %1916 = vst.msk [vmem:[%s6496_s7 + $0xc8] sm:$0x1] %vm7014_vm10, %v1556_v48  ;;  %vm7021_vm7 = vcmask 17409   ;;  %vm7025_vm9 = vcmask 19459   ;;  %vm7029_vm3 = vcmask 21509   ;;  %v1624_v33 = vmax.f32 %v1559_v34, %v1592_v17  ;;  %v7077_v32 = vld [vmem:[#allocation20_spill] sm:$0xff] }
 0x18b   :  { %1917 = vst.msk [vmem:[%s6496_s7 + $0xd0] sm:$0x1] %vm7015_vm14, %v1557_v18  ;;  %vm7022_vm5 = vmmov %vm7021_vm7  ;;  %v1625_v12 = vmax.f32 %v1560_v56, %v1593_v63  ;;  %v1626_v40 = vmax.f32 %v1561_v35, %v1594_v14  ;;  %v1627_v6 = vmax.f32 %v1562_v62, %v1595_v42  ;;  %v6617_v53 = vrot.slane %v5659_v47, 1  ;;  %v7079_v17 = vld [vmem:[#allocation25_spill] sm:$0xff] }
 0x18c   :  { %1918 = vst.msk [vmem:[%s6496_s7 + $0xd8] sm:$0x1] %vm7016_vm6, %v1558_v44  ;;  %vm7023_vm11 = vmmov %vm7022_vm5  ;;  %v6616_v58 = vrot.slane %v5677_v50, 1  ;;  %v6615_v39 = vrot.slane %v5687_v45, 1  ;;  %v6614_v13 = vrot.slane %v5705_v54, 1  ;;  %v6613_v1 = vrot.slane %v5717_v29, 1 }
 0x18d   :  { %1919 = vst.msk [vmem:[%s6496_s7 + $0xe0] sm:$0x1] %vm7017_vm2, %v1559_v34  ;;  %vm7024_vm15 = vmmov %vm7022_vm5  ;;  %v6612_v48 = vrot.slane %v5741_v38, 1  ;;  %v7070_v44 = vld [vmem:[#allocation11_spill] sm:$0xff]  ;;  %v1734_v63 = vmax.f32 %v7079_v17, %v6617_v53  ;;  %v7080_v14 = vld [vmem:[#allocation33_spill] sm:$0xff]  ;;  %v1754_v17 = vrot.slane %v5717_v29, 2 }
 0x18e   :  { %1920 = vst.msk [vmem:[%s6496_s7 + $0xe8] sm:$0x1] %vm7018_vm0, %v1560_v56  ;;  %vm7026_vm1 = vmmov %vm7025_vm9  ;;  %v7071_v56 = vld [vmem:[#allocation12_spill] sm:$0xff]  ;;  %v1735_v42 = vmax.f32 %v7080_v14, %v6616_v58  ;;  %v1755_v14 = vrot.slane %v5741_v38, 2 }
 0x18f   :  { %1921 = vst.msk [vmem:[%s6496_s7 + $0xf0] sm:$0x1] %vm7019_vm4, %v1561_v35  ;;  %vm7027_vm8 = vmmov %vm7026_vm1 }
 0x190   :  { %1922 = vst.msk [vmem:[%s6496_s7 + $0xf8] sm:$0x1] %vm7020_vm13, %v1562_v62  ;;  %vm7028_vm12 = vmmov %vm7026_vm1  ;;  %v7072_v62 = vld [vmem:[#allocation26_spill] sm:$0xff] }
 0x191   :  { %1923 = vst.msk [vmem:[%s6496_s7 + $0x80] sm:$0x2] %vm7021_vm7, %v1612_v15  ;;  %vm7030_vm10 = vmmov %vm7029_vm3 }
 0x192   :  { %1924 = vst.msk [vmem:[%s6496_s7 + $0x88] sm:$0x2] %vm7022_vm5, %v1613_v10  ;;  %vm7031_vm14 = vmmov %vm7029_vm3 }
 0x193   :  { %1925 = vst.msk [vmem:[%s6496_s7 + $0x90] sm:$0x2] %vm7023_vm11, %v1614_v25  ;;  %vm7032_vm6 = vmmov %vm7029_vm3 }
 0x194   :  { %1926 = vst.msk [vmem:[%s6496_s7 + $0x98] sm:$0x2] %vm7024_vm15, %v1615_v51  ;;  %vm7033_vm2 = vmmov %vm7022_vm5 }
 0x195   :  { %1939 = vst.msk [vmem:[%s6496_s7 + $0x7f] sm:$0x8] %vm7025_vm9, %v1612_v15  ;;  %vm7034_vm0 = vmmov %vm7033_vm2 }
 0x196   :  { %1940 = vst.msk [vmem:[%s6496_s7 + $0x87] sm:$0x8] %vm7026_vm1, %v1613_v10  ;;  %vm7035_vm4 = vmmov %vm7034_vm0 }
 0x197   :  { %1941 = vst.msk [vmem:[%s6496_s7 + $0x8f] sm:$0x8] %vm7027_vm8, %v1614_v25  ;;  %vm7036_vm13 = vmmov %vm7034_vm0 }
 0x198   :  { %1942 = vst.msk [vmem:[%s6496_s7 + $0x97] sm:$0x8] %vm7028_vm12, %v1615_v51  ;;  %vm7037_vm7 = vmmov %vm7026_vm1 }
 0x199   :  { %1955 = vst.msk [vmem:[%s6496_s7 + $0x7e] sm:$0x20] %vm7029_vm3, %v1612_v15  ;;  %vm7038_vm5 = vmmov %vm7026_vm1  ;;  %v1736_v15 = vmax.f32 %v5685_v11, %v6615_v39  ;;  %v1743_v11 = vrot.slane %v5673_v21, 2 }
 0x19a   :  { %1956 = vst.msk [vmem:[%s6496_s7 + $0x86] sm:$0x20] %vm7030_vm10, %v1613_v10  ;;  %vm7039_vm11 = vmmov %vm7026_vm1  ;;  %v1700_v10 = vrot.slane %v5631_v52, 1 }
 0x19b   :  { %1957 = vst.msk [vmem:[%s6496_s7 + $0x8e] sm:$0x20] %vm7031_vm14, %v1614_v25  ;;  %vm7040_vm15 = vmmov %vm7026_vm1  ;;  %v1699_v25 = vrot.slane %v5735_v49, 1 }
 0x19c   :  { %1958 = vst.msk [vmem:[%s6496_s7 + $0x96] sm:$0x20] %vm7032_vm6, %v1615_v51  ;;  %vm7041_vm9 = vmmov %vm7029_vm3  ;;  %v6618_v51 = vrot.slane %v5649_v36, 1  ;;  %v1732_v4 = vmax.f32 %v7077_v32, %v1700_v10  ;;  %v1752_v32 = vrot.slane %v5687_v45, 2 }
 0x19d   :  { %1927 = vst.msk [vmem:[%s6496_s7 + $0xa0] sm:$0x2] %vm7033_vm2, %v1616_v43  ;;  %vm7042_vm1 = vmmov %vm7029_vm3  ;;  %v1731_v8 = vmax.f32 %v7076_v20, %v1699_v25  ;;  %v1751_v20 = vrot.slane %v5677_v50, 2 }
 0x19e   :  { %1928 = vst.msk [vmem:[%s6496_s7 + $0xa8] sm:$0x2] %vm7034_vm0, %v1617_v55  ;;  %vm7043_vm8 = vmmov %vm7042_vm1  ;;  %v1733_v2 = vmax.f32 %v7078_v26, %v6618_v51  ;;  %v1753_v26 = vrot.slane %v5705_v54, 2 }
 0x19f   :  { %1929 = vst.msk [vmem:[%s6496_s7 + $0xb0] sm:$0x2] %vm7035_vm4, %v1618_v41  ;;  %vm7044_vm12 = vmmov %vm7042_vm1 }
 0x1a0   :  { %1930 = vst.msk [vmem:[%s6496_s7 + $0xb8] sm:$0x2] %vm7036_vm13, %v1619_v3  ;;  %vm7045_vm3 = vmmov %vm7034_vm0 }
 0x1a1   :  { %1943 = vst.msk [vmem:[%s6496_s7 + $0x9f] sm:$0x8] %vm7037_vm7, %v1616_v43  ;;  %vm7046_vm10 = vmmov %vm7034_vm0 }
 0x1a2   :  { %1944 = vst.msk [vmem:[%s6496_s7 + $0xa7] sm:$0x8] %vm7038_vm5, %v1617_v55  ;;  %vm7047_vm14 = vmmov %vm7034_vm0 }
 0x1a3   :  { %1945 = vst.msk [vmem:[%s6496_s7 + $0xaf] sm:$0x8] %vm7039_vm11, %v1618_v41  ;;  %vm7048_vm6 = vmmov %vm7034_vm0 }
 0x1a4   :  { %1946 = vst.msk [vmem:[%s6496_s7 + $0xb7] sm:$0x8] %vm7040_vm15, %v1619_v3  ;;  %vm7049_vm2 = vmmov %vm7038_vm5 }
 0x1a5   :  { %1959 = vst.msk [vmem:[%s6496_s7 + $0x9e] sm:$0x20] %vm7041_vm9, %v1616_v43  ;;  %vm7050_vm0 = vmmov %vm7049_vm2  ;;  %v1695_v43 = vrot.slane %v5673_v21, 1 }
 0x1a6   :  { %1960 = vst.msk [vmem:[%s6496_s7 + $0xa6] sm:$0x20] %vm7042_vm1, %v1617_v55  ;;  %vm7051_vm4 = vmmov %vm7050_vm0  ;;  %v7057_v55 = vld [vmem:[#allocation43_spill] sm:$0xff] }
 0x1a7   :  { %1961 = vst.msk [vmem:[%s6496_s7 + $0xae] sm:$0x20] %vm7043_vm8, %v1618_v41  ;;  %vm7052_vm13 = vmmov %vm7050_vm0  ;;  %v1693_v41 = vrot.slane %v5645_v7, 1  ;;  %v1727_v5 = vmax.f32 %v7072_v62, %v1695_v43  ;;  %v1744_v62 = vrot.slane %v5683_v57, 2 }
 0x1a8   :  { %1962 = vst.msk [vmem:[%s6496_s7 + $0xb6] sm:$0x20] %vm7044_vm12, %v1619_v3  ;;  %vm7053_vm7 = vmmov %vm7042_vm1  ;;  %v1692_v3 = vrot.slane %v7057_v55, 1 }
 0x1a9   :  { %1931 = vst.msk [vmem:[%s6496_s7 + $0xc0] sm:$0x2] %vm7045_vm3, %v1620_v31  ;;  %vm7054_vm5 = vmmov %vm7042_vm1  ;;  %v1725_v34 = vmax.f32 %v7070_v44, %v1693_v41  ;;  %v1741_v44 = vrot.slane %v5645_v7, 2  ;;  %v1775_v39 = vmax.f32 %v1727_v5, %v1743_v11 }
 0x1aa   :  { %1932 = vst.msk [vmem:[%s6496_s7 + $0xc8] sm:$0x2] %vm7046_vm10, %v1621_v59  ;;  %vm7055_vm11 = vmmov %vm7042_vm1  ;;  %v1724_v18 = vmax.f32 %v5623_v27, %v1692_v3 }
 0x1ab   :  { %1933 = vst.msk [vmem:[%s6496_s7 + $0xd0] sm:$0x2] %vm7047_vm14, %v1622_v23  ;;  %vm7056_vm15 = vmmov %vm7042_vm1 }
 0x1ac   :  { %1934 = vst.msk [vmem:[%s6496_s7 + $0xd8] sm:$0x2] %vm7048_vm6, %v1623_v60  ;;  %vm7058_vm9 = vmmov %vm7045_vm3 }
 0x1ad   :  { %1947 = vst.msk [vmem:[%s6496_s7 + $0xbf] sm:$0x8] %vm7049_vm2, %v1620_v31  ;;  %vm7059_vm1 = vmmov %vm7045_vm3 }
 0x1ae   :  { %1948 = vst.msk [vmem:[%s6496_s7 + $0xc7] sm:$0x8] %vm7050_vm0, %v1621_v59  ;;  %vm7060_vm8 = vmmov %vm7059_vm1 }
 0x1af   :  { %1949 = vst.msk [vmem:[%s6496_s7 + $0xcf] sm:$0x8] %vm7051_vm4, %v1622_v23  ;;  %vm7061_vm12 = vmmov %vm7059_vm1 }
 0x1b0   :  { %1950 = vst.msk [vmem:[%s6496_s7 + $0xd7] sm:$0x8] %vm7052_vm13, %v1623_v60  ;;  %vm7062_vm3 = vmmov %vm7050_vm0 }
 0x1b1   :  { %1963 = vst.msk [vmem:[%s6496_s7 + $0xbe] sm:$0x20] %vm7053_vm7, %v1620_v31  ;;  %v1694_v31 = vrot.slane %v5655_v46, 1  ;;  %vm7063_vm10 = vmmov %vm7050_vm0  ;;  %vm7081_vm7 = vcmask 23559  }
 0x1b2   :  { %1964 = vst.msk [vmem:[%s6496_s7 + $0xc6] sm:$0x20] %vm7054_vm5, %v1621_v59  ;;  %vm7064_vm14 = vmmov %vm7050_vm0  ;;  %v1697_v59 = vrot.slane %v5701_v37, 1 }
 0x1b3   :  { %1965 = vst.msk [vmem:[%s6496_s7 + $0xce] sm:$0x20] %vm7055_vm11, %v1622_v23  ;;  %vm7065_vm6 = vmmov %vm7050_vm0  ;;  %v1696_v23 = vrot.slane %v5683_v57, 1  ;;  %v1726_v35 = vmax.f32 %v7071_v56, %v1694_v31  ;;  %v1742_v56 = vrot.slane %v5655_v46, 2 }
 0x1b4   :  { %1966 = vst.msk [vmem:[%s6496_s7 + $0xd6] sm:$0x20] %vm7056_vm15, %v1623_v60  ;;  %vm7066_vm2 = vmmov %vm7054_vm5  ;;  %v1698_v60 = vrot.slane %v5711_v30, 1  ;;  %v1729_v27 = vmax.f32 %v7074_v9, %v1697_v59  ;;  %v1748_v9 = vrot.slane %v5631_v52, 2 }
 0x1b5   :  { %1935 = vst.msk [vmem:[%s6496_s7 + $0xe0] sm:$0x2] %vm7058_vm9, %v1624_v33  ;;  %vm7067_vm0 = vmmov %vm7066_vm2  ;;  %v1728_v0 = vmax.f32 %v7073_v24, %v1696_v23  ;;  %v1746_v24 = vrot.slane %v5711_v30, 2 }
 0x1b6   :  { %1936 = vst.msk [vmem:[%s6496_s7 + $0xe8] sm:$0x2] %vm7059_vm1, %v1625_v12  ;;  %vm7068_vm4 = vmmov %vm7067_vm0  ;;  %v1730_v16 = vmax.f32 %v7075_v19, %v1698_v60  ;;  %v1750_v19 = vrot.slane %v5659_v47, 2 }
 0x1b7   :  { %1937 = vst.msk [vmem:[%s6496_s7 + $0xf0] sm:$0x2] %vm7060_vm8, %v1626_v40  ;;  %vm7069_vm13 = vmmov %vm7067_vm0  ;;  %v1776_v58 = vmax.f32 %v1728_v0, %v1744_v62  ;;  %v1783_v0 = vmax.f32 %v1735_v42, %v1751_v20  ;;  %v7101_v42 = vrot.slane %v5705_v54, 1 }
 0x1b8   :  { %1938 = vst.msk [vmem:[%s6496_s7 + $0xf8] sm:$0x2] %vm7061_vm12, %v1627_v6  ;;  %v1778_v51 = vmax.f32 %v1730_v16, %v1746_v24  ;;  %v1782_v5 = vmax.f32 %v1734_v63, %v1750_v19  ;;  %vm7082_vm5 = vmmov %vm7081_vm7  ;;  %v7100_v63 = vrot.slane %v5687_v45, 1 }
 0x1b9   :  { %1951 = vst.msk [vmem:[%s6496_s7 + $0xdf] sm:$0x8] %vm7062_vm3, %v1624_v33  ;;  %vm7083_vm11 = vmmov %vm7082_vm5 }
 0x1ba   :  { %1952 = vst.msk [vmem:[%s6496_s7 + $0xe7] sm:$0x8] %vm7063_vm10, %v1625_v12  ;;  %vm7084_vm15 = vmmov %vm7082_vm5 }
 0x1bb   :  { %1953 = vst.msk [vmem:[%s6496_s7 + $0xef] sm:$0x8] %vm7064_vm14, %v1626_v40  ;;  %vm7085_vm9 = vmmov %vm7082_vm5 }
 0x1bc   :  { %1954 = vst.msk [vmem:[%s6496_s7 + $0xf7] sm:$0x8] %vm7065_vm6, %v1627_v6  ;;  %vm7086_vm1 = vmmov %vm7082_vm5 }
 0x1bd   :  { %1967 = vst.msk [vmem:[%s6496_s7 + $0xde] sm:$0x20] %vm7066_vm2, %v1624_v33  ;;  %v1737_v33 = vmax.f32 %v5703_v22, %v6614_v13  ;;  %v1745_v22 = vrot.slane %v5701_v37, 2  ;;  %v1774_v13 = vmax.f32 %v1726_v35, %v1742_v56  ;;  %vm7087_vm8 = vmmov %vm7086_vm1 }
 0x1be   :  { %1968 = vst.msk [vmem:[%s6496_s7 + $0xe6] sm:$0x20] %vm7067_vm0, %v1625_v12  ;;  %v1738_v12 = vmax.f32 %v5714_v28, %v6613_v1  ;;  %v1747_v28 = vrot.slane %v5735_v49, 2  ;;  %v1773_v1 = vmax.f32 %v1725_v34, %v1741_v44  ;;  %v1780_v34 = vmax.f32 %v1732_v4, %v1748_v9  ;;  %vm7088_vm12 = vmmov %vm7086_vm1 }
 0x1bf   :  { %1969 = vst.msk [vmem:[%s6496_s7 + $0xee] sm:$0x20] %vm7068_vm4, %v1626_v40  ;;  %v1739_v40 = vmax.f32 %v5738_v61, %v6612_v48  ;;  %v1749_v61 = vrot.slane %v5649_v36, 2  ;;  %v1777_v53 = vmax.f32 %v1729_v27, %v1745_v22  ;;  %v1784_v27 = vmax.f32 %v1736_v15, %v1752_v32  ;;  %vm7089_vm3 = vmmov %vm7086_vm1 }
 0x1c0   :  { %1970 = vst.msk [vmem:[%s6496_s7 + $0xf6] sm:$0x20] %vm7069_vm13, %v1627_v6  ;;  %v1740_v6 = vrot.slane %v7057_v55, 2  ;;  %v1786_v16 = vmax.f32 %v1738_v12, %v1754_v17  ;;  %vm7090_vm10 = vmmov %vm7086_vm1  ;;  %v7098_v4 = vrot.slane %v5659_v47, 1  ;;  %v7102_v15 = vrot.slane %v5717_v29, 1 }
 0x1c1   :  { %v1781_v35 = vmax.f32 %v1733_v2, %v1749_v61  ;;  %1972 = vst.msk [vmem:[%s6496_s7 + $0x85] sm:$0x80] %vm7082_vm5, %v1773_v1  ;;  %v1787_v1 = vmax.f32 %v1739_v40, %v1755_v14  ;;  %vm7091_vm14 = vmmov %vm7086_vm1  ;;  %v7099_v2 = vrot.slane %v5677_v50, 1  ;;  %v7103_v12 = vrot.slane %v5741_v38, 1 }
 0x1c2   :  { %v1772_v48 = vmax.f32 %v1724_v18, %v1740_v6  ;;  %v1779_v18 = vmax.f32 %v1731_v8, %v1747_v28  ;;  %1973 = vst.msk [vmem:[%s6496_s7 + $0x8d] sm:$0x80] %vm7083_vm11, %v1774_v13  ;;  %vm7092_vm6 = vmmov %vm7086_vm1  ;;  %v1812_v13 = vmax.f32 %v5631_v52, %v1700_v10  ;;  %v7097_v8 = vrot.slane %v5649_v36, 1 }
 0x1c3   :  { %1974 = vst.msk [vmem:[%s6496_s7 + $0x95] sm:$0x80] %vm7084_vm15, %v1775_v39  ;;  %v1807_v39 = vmax.f32 %v5673_v21, %v1695_v43  ;;  %vm7093_vm2 = vmmov %vm7086_vm1  ;;  %v1811_v43 = vmax.f32 %v5735_v49, %v1699_v25  ;;  %v1816_v25 = vmax.f32 %v5687_v45, %v7100_v63  ;;  %v1817_v10 = vmax.f32 %v5705_v54, %v7101_v42 }
 0x1c4   :  { %1971 = vst.msk [vmem:[%s6496_s7 + $0x7d] sm:$0x80] %vm7081_vm7, %v1772_v48  ;;  %v1785_v48 = vmax.f32 %v1737_v33, %v1753_v26  ;;  %vm7094_vm0 = vmmov %vm7086_vm1  ;;  %v1818_v33 = vmax.f32 %v5717_v29, %v7102_v15  ;;  %v1819_v40 = vmax.f32 %v5741_v38, %v7103_v12  ;;  %vm7104_vm7 = vcmask 17409  }
 0x1c5   :  { %1975 = vst.msk [vmem:[%s6496_s7 + $0x9d] sm:$0x80] %vm7085_vm9, %v1776_v58  ;;  %v1806_v58 = vmax.f32 %v5655_v46, %v1694_v31  ;;  %vm7095_vm4 = vmmov %vm7094_vm0  ;;  %v1810_v31 = vmax.f32 %v5711_v30, %v1698_v60  ;;  %v1815_v60 = vmax.f32 %v5677_v50, %v7099_v2  ;;  %vm7108_vm9 = vcmask 19459  }
 0x1c6   :  { %1976 = vst.msk [vmem:[%s6496_s7 + $0xa5] sm:$0x80] %vm7086_vm1, %v1777_v53  ;;  %v1805_v53 = vmax.f32 %v5645_v7, %v1693_v41  ;;  %vm7096_vm13 = vmmov %vm7094_vm0  ;;  %v1809_v41 = vmax.f32 %v5701_v37, %v1697_v59  ;;  %v1814_v59 = vmax.f32 %v5659_v47, %v7098_v4  ;;  %v1828_v7 = vmax.f32 %v1812_v13, %v1748_v9 }
 0x1c7   :  { %1977 = vst.msk [vmem:[%s6496_s7 + $0xad] sm:$0x80] %vm7087_vm8, %v1778_v51  ;;  %v1804_v51 = vmax.f32 %v7057_v55, %v1692_v3  ;;  %v1808_v3 = vmax.f32 %v5683_v57, %v1696_v23  ;;  %v1813_v23 = vmax.f32 %v5649_v36, %v7097_v8  ;;  %v1827_v55 = vmax.f32 %v1811_v43, %v1747_v28  ;;  %vm7105_vm5 = vmmov %vm7104_vm7 }
 0x1c8   :  { %1978 = vst.msk [vmem:[%s6496_s7 + $0xb5] sm:$0x80] %vm7088_vm12, %v1779_v18  ;;  %v1830_v21 = vmax.f32 %v1814_v59, %v1750_v19  ;;  %v1831_v57 = vmax.f32 %v1815_v60, %v1751_v20  ;;  %vm7106_vm11 = vmmov %vm7105_vm5  ;;  %v1832_v52 = vmax.f32 %v1816_v25, %v1752_v32  ;;  %v1833_v36 = vmax.f32 %v1817_v10, %v1753_v26 }
 0x1c9   :  { %1979 = vst.msk [vmem:[%s6496_s7 + $0xbd] sm:$0x80] %vm7089_vm3, %v1780_v34  ;;  %v1820_v18 = vmax.f32 %v1804_v51, %v1740_v6  ;;  %v1821_v34 = vmax.f32 %v1805_v53, %v1741_v44  ;;  %v1829_v46 = vmax.f32 %v1813_v23, %v1749_v61  ;;  %vm7107_vm15 = vmmov %vm7105_vm5  ;;  %vm7112_vm3 = vcmask 21509  }
 0x1ca   :  { %1980 = vst.msk [vmem:[%s6496_s7 + $0xc5] sm:$0x80] %vm7090_vm10, %v1781_v35  ;;  %v1822_v35 = vmax.f32 %v1806_v58, %v1742_v56  ;;  %vm7109_vm1 = vmmov %vm7108_vm9  ;;  %v1834_v47 = vmax.f32 %v1818_v33, %v1754_v17  ;;  %v1835_v50 = vmax.f32 %v1819_v40, %v1755_v14 }
 0x1cb   :  { %1981 = vst.msk [vmem:[%s6496_s7 + $0xcd] sm:$0x80] %vm7091_vm14, %v1782_v5  ;;  %v1823_v5 = vmax.f32 %v1807_v39, %v1743_v11  ;;  %vm7110_vm8 = vmmov %vm7109_vm1 }
 0x1cc   :  { %1982 = vst.msk [vmem:[%s6496_s7 + $0xd5] sm:$0x80] %vm7092_vm6, %v1783_v0  ;;  %v1824_v0 = vmax.f32 %v1808_v3, %v1744_v62  ;;  %vm7111_vm12 = vmmov %vm7109_vm1 }
 0x1cd   :  { %1983 = vst.msk [vmem:[%s6496_s7 + $0xdd] sm:$0x80] %vm7093_vm2, %v1784_v27  ;;  %v1825_v27 = vmax.f32 %v1809_v41, %v1745_v22  ;;  %vm7113_vm10 = vmmov %vm7112_vm3 }
 0x1ce   :  { %1984 = vst.msk [vmem:[%s6496_s7 + $0xe5] sm:$0x80] %vm7094_vm0, %v1785_v48  ;;  %v1826_v48 = vmax.f32 %v1810_v31, %v1746_v24  ;;  %vm7114_vm14 = vmmov %vm7112_vm3 }
 0x1cf   :  { %1985 = vst.msk [vmem:[%s6496_s7 + $0xed] sm:$0x80] %vm7095_vm4, %v1786_v16  ;;  %vm7115_vm6 = vmmov %vm7112_vm3 }
 0x1d0   :  { %1986 = vst.msk [vmem:[%s6496_s7 + $0xf5] sm:$0x80] %vm7096_vm13, %v1787_v1  ;;  %vm7116_vm2 = vmmov %vm7105_vm5 }
 0x1d1   :  { %1987 = vst.msk [vmem:[%s6496_s7 + $0x84] sm:$0x2] %vm7104_vm7, %v1820_v18  ;;  %vm7117_vm0 = vmmov %vm7116_vm2 }
 0x1d2   :  { %1988 = vst.msk [vmem:[%s6496_s7 + $0x8c] sm:$0x2] %vm7105_vm5, %v1821_v34  ;;  %vm7118_vm4 = vmmov %vm7117_vm0 }
 0x1d3   :  { %1989 = vst.msk [vmem:[%s6496_s7 + $0x94] sm:$0x2] %vm7106_vm11, %v1822_v35  ;;  %vm7119_vm13 = vmmov %vm7117_vm0 }
 0x1d4   :  { %1990 = vst.msk [vmem:[%s6496_s7 + $0x9c] sm:$0x2] %vm7107_vm15, %v1823_v5  ;;  %vm7120_vm7 = vmmov %vm7109_vm1 }
 0x1d5   :  { %2003 = vst.msk [vmem:[%s6496_s7 + $0x83] sm:$0x8] %vm7108_vm9, %v1820_v18  ;;  %vm7121_vm5 = vmmov %vm7109_vm1 }
 0x1d6   :  { %2004 = vst.msk [vmem:[%s6496_s7 + $0x8b] sm:$0x8] %vm7109_vm1, %v1821_v34  ;;  %vm7122_vm11 = vmmov %vm7109_vm1 }
 0x1d7   :  { %2005 = vst.msk [vmem:[%s6496_s7 + $0x93] sm:$0x8] %vm7110_vm8, %v1822_v35  ;;  %vm7123_vm15 = vmmov %vm7109_vm1 }
 0x1d8   :  { %2006 = vst.msk [vmem:[%s6496_s7 + $0x9b] sm:$0x8] %vm7111_vm12, %v1823_v5  ;;  %vm7124_vm9 = vmmov %vm7112_vm3 }
 0x1d9   :  { %2019 = vst.msk [vmem:[%s6496_s7 + $0x82] sm:$0x20] %vm7112_vm3, %v1820_v18  ;;  %vm7125_vm1 = vmmov %vm7112_vm3 }
 0x1da   :  { %2020 = vst.msk [vmem:[%s6496_s7 + $0x8a] sm:$0x20] %vm7113_vm10, %v1821_v34  ;;  %vm7126_vm8 = vmmov %vm7125_vm1 }
 0x1db   :  { %2021 = vst.msk [vmem:[%s6496_s7 + $0x92] sm:$0x20] %vm7114_vm14, %v1822_v35  ;;  %vm7127_vm12 = vmmov %vm7125_vm1 }
 0x1dc   :  { %2022 = vst.msk [vmem:[%s6496_s7 + $0x9a] sm:$0x20] %vm7115_vm6, %v1823_v5  ;;  %vm7128_vm3 = vmmov %vm7117_vm0 }
 0x1dd   :  { %1991 = vst.msk [vmem:[%s6496_s7 + $0xa4] sm:$0x2] %vm7116_vm2, %v1824_v0  ;;  %vm7129_vm10 = vmmov %vm7117_vm0 }
 0x1de   :  { %1992 = vst.msk [vmem:[%s6496_s7 + $0xac] sm:$0x2] %vm7117_vm0, %v1825_v27  ;;  %vm7130_vm14 = vmmov %vm7117_vm0 }
 0x1df   :  { %1993 = vst.msk [vmem:[%s6496_s7 + $0xb4] sm:$0x2] %vm7118_vm4, %v1826_v48  ;;  %vm7131_vm6 = vmmov %vm7117_vm0 }
 0x1e0   :  { %1994 = vst.msk [vmem:[%s6496_s7 + $0xbc] sm:$0x2] %vm7119_vm13, %v1827_v55  ;;  %vm7132_vm2 = vmmov %vm7121_vm5 }
 0x1e1   :  { %2007 = vst.msk [vmem:[%s6496_s7 + $0xa3] sm:$0x8] %vm7120_vm7, %v1824_v0  ;;  %vm7133_vm0 = vmmov %vm7132_vm2 }
 0x1e2   :  { %2008 = vst.msk [vmem:[%s6496_s7 + $0xab] sm:$0x8] %vm7121_vm5, %v1825_v27  ;;  %vm7134_vm4 = vmmov %vm7133_vm0 }
 0x1e3   :  { %2009 = vst.msk [vmem:[%s6496_s7 + $0xb3] sm:$0x8] %vm7122_vm11, %v1826_v48  ;;  %vm7135_vm13 = vmmov %vm7133_vm0 }
 0x1e4   :  { %2010 = vst.msk [vmem:[%s6496_s7 + $0xbb] sm:$0x8] %vm7123_vm15, %v1827_v55  ;;  %vm7136_vm7 = vmmov %vm7125_vm1 }
 0x1e5   :  { %2023 = vst.msk [vmem:[%s6496_s7 + $0xa2] sm:$0x20] %vm7124_vm9, %v1824_v0  ;;  %vm7137_vm5 = vmmov %vm7125_vm1 }
 0x1e6   :  { %2024 = vst.msk [vmem:[%s6496_s7 + $0xaa] sm:$0x20] %vm7125_vm1, %v1825_v27  ;;  %vm7138_vm11 = vmmov %vm7125_vm1 }
 0x1e7   :  { %2025 = vst.msk [vmem:[%s6496_s7 + $0xb2] sm:$0x20] %vm7126_vm8, %v1826_v48  ;;  %vm7139_vm15 = vmmov %vm7125_vm1 }
 0x1e8   :  { %2026 = vst.msk [vmem:[%s6496_s7 + $0xba] sm:$0x20] %vm7127_vm12, %v1827_v55  ;;  %vm7140_vm9 = vmmov %vm7128_vm3 }
 0x1e9   :  { %1995 = vst.msk [vmem:[%s6496_s7 + $0xc4] sm:$0x2] %vm7128_vm3, %v1828_v7  ;;  %vm7141_vm1 = vmmov %vm7128_vm3 }
 0x1ea   :  { %1996 = vst.msk [vmem:[%s6496_s7 + $0xcc] sm:$0x2] %vm7129_vm10, %v1829_v46  ;;  %vm7142_vm8 = vmmov %vm7141_vm1 }
 0x1eb   :  { %1997 = vst.msk [vmem:[%s6496_s7 + $0xd4] sm:$0x2] %vm7130_vm14, %v1830_v21  ;;  %vm7143_vm12 = vmmov %vm7141_vm1 }
 0x1ec   :  { %1998 = vst.msk [vmem:[%s6496_s7 + $0xdc] sm:$0x2] %vm7131_vm6, %v1831_v57  ;;  %vm7144_vm3 = vmmov %vm7133_vm0 }
 0x1ed   :  { %2011 = vst.msk [vmem:[%s6496_s7 + $0xc3] sm:$0x8] %vm7132_vm2, %v1828_v7  ;;  %vm7145_vm10 = vmmov %vm7133_vm0 }
 0x1ee   :  { %2012 = vst.msk [vmem:[%s6496_s7 + $0xcb] sm:$0x8] %vm7133_vm0, %v1829_v46  ;;  %vm7146_vm14 = vmmov %vm7133_vm0 }
 0x1ef   :  { %2013 = vst.msk [vmem:[%s6496_s7 + $0xd3] sm:$0x8] %vm7134_vm4, %v1830_v21  ;;  %vm7147_vm6 = vmmov %vm7133_vm0 }
 0x1f0   :  { %2014 = vst.msk [vmem:[%s6496_s7 + $0xdb] sm:$0x8] %vm7135_vm13, %v1831_v57  ;;  %vm7148_vm2 = vmmov %vm7137_vm5 }
 0x1f1   :  { %2027 = vst.msk [vmem:[%s6496_s7 + $0xc2] sm:$0x20] %vm7136_vm7, %v1828_v7  ;;  %vm7149_vm0 = vmmov %vm7148_vm2 }
 0x1f2   :  { %2028 = vst.msk [vmem:[%s6496_s7 + $0xca] sm:$0x20] %vm7137_vm5, %v1829_v46  ;;  %vm7150_vm4 = vmmov %vm7149_vm0 }
 0x1f3   :  { %2029 = vst.msk [vmem:[%s6496_s7 + $0xd2] sm:$0x20] %vm7138_vm11, %v1830_v21  ;;  %vm7151_vm13 = vmmov %vm7149_vm0 }
 0x1f4   :  { %2030 = vst.msk [vmem:[%s6496_s7 + $0xda] sm:$0x20] %vm7139_vm15, %v1831_v57 }
 0x1f5   :  { %1999 = vst.msk [vmem:[%s6496_s7 + $0xe4] sm:$0x2] %vm7140_vm9, %v1832_v52 }
 0x1f6   :  { %2000 = vst.msk [vmem:[%s6496_s7 + $0xec] sm:$0x2] %vm7141_vm1, %v1833_v36 }
 0x1f7   :  { %2001 = vst.msk [vmem:[%s6496_s7 + $0xf4] sm:$0x2] %vm7142_vm8, %v1834_v47 }
 0x1f8   :  { %2002 = vst.msk [vmem:[%s6496_s7 + $0xfc] sm:$0x2] %vm7143_vm12, %v1835_v50 }
 0x1f9   :  { %2015 = vst.msk [vmem:[%s6496_s7 + $0xe3] sm:$0x8] %vm7144_vm3, %v1832_v52 }
 0x1fa   :  { %2016 = vst.msk [vmem:[%s6496_s7 + $0xeb] sm:$0x8] %vm7145_vm10, %v1833_v36 }
 0x1fb   :  { %2017 = vst.msk [vmem:[%s6496_s7 + $0xf3] sm:$0x8] %vm7146_vm14, %v1834_v47 }
 0x1fc   :  { %2018 = vst.msk [vmem:[%s6496_s7 + $0xfb] sm:$0x8] %vm7147_vm6, %v1835_v50 }
 0x1fd   :  { %2031 = vst.msk [vmem:[%s6496_s7 + $0xe2] sm:$0x20] %vm7148_vm2, %v1832_v52 }
 0x1fe   :  { %2032 = vst.msk [vmem:[%s6496_s7 + $0xea] sm:$0x20] %vm7149_vm0, %v1833_v36 }
 0x1ff   :  { %2033 = vst.msk [vmem:[%s6496_s7 + $0xf2] sm:$0x20] %vm7150_vm4, %v1834_v47 }
 0x200   :  { %2034 = vst.msk [vmem:[%s6496_s7 + $0xfa] sm:$0x20] %vm7151_vm13, %v1835_v50 }

// kernel: binocular_net_forward.6
= control target key start
LH: loop header
LB: loop body
LE: loop exit
PB: predicated region body
PF: predicated region fallthrough
CT: control target
= control target key end

     0   :  { %v640_v0 = vmov 0   ;;  %vm257_vm0 = vcmask 392192   ;;  %vm426_vm9 = vcmask 385024   ;;  %vm443_vm10 = vcmask 386049   ;;  %s915_s2 = inlined_call_operand.vmem [shape: bf16[432,96], index: 2, kind: input, shape index: {}]   ;;  %s916_s0 = inlined_call_operand.vmem [shape: f32[8,432], index: 0, kind: input, shape index: {}]   ;;  %s917_s1 = inlined_call_operand.vmem [shape: f32[2,4,4,48], index: 1, kind: input, shape index: {}]   ;;  %s918_s4 = inlined_call_operand.vmem [shape: f32[2,48], index: 4, kind: input, shape index: {}]   ;;  %s919_s5 = inlined_call_operand.vmem [shape: f32[2,48], index: 5, kind: input, shape index: {}]   ;;  %s920_s7 = inlined_call_operand.vmem [shape: f32[2,2,2,2,48], index: 7, kind: output, shape index: {1}]   ;;  %s921_s3 = inlined_call_operand.vmem [shape: f32[1,96], index: 3, kind: input, shape index: {}]   ;;  %s922_s6 = inlined_call_operand.vmem [shape: f32[8,96], index: 6, kind: output, shape index: {0}]  }
   0x1   :  { %301 = vmatprep.subr.bf16.mxu1 %v640_v0  ;;  %v613_v1 = vld [vmem:[%s915_s2 + $0x78] sm:$0xff]   ;;  %v616_v4 = vld [vmem:[%s915_s2 + $0x70] sm:$0xff]   ;;  %v619_v7 = vld [vmem:[%s915_s2 + $0x68] sm:$0xff]  }
   0x2   :  { %v614_v2 = vld [vmem:[%s915_s2 + $0xb8] sm:$0xff]   ;;  %590 = vmatprep.subr.bf16.mxu0 %v613_v1  ;;  %v617_v5 = vld [vmem:[%s915_s2 + $0xb0] sm:$0xff]   ;;  %v620_v8 = vld [vmem:[%s915_s2 + $0xa8] sm:$0xff]  }
   0x3   :  { %v615_v3 = vld [vmem:[%s915_s2 + $0x38] sm:$0xff]   ;;  %302 = vmatpush1.bf16.msra.mxu1 %v614_v2  ;;  %v618_v6 = vld [vmem:[%s915_s2 + $0x30] sm:$0xff]   ;;  %v621_v9 = vld [vmem:[%s915_s2 + $0x28] sm:$0xff]  }
   0x4   :  { %591 = vmatpush3.bf16.msra.mxu0 %v615_v3  ;;  %303 = vmatprep.subr.bf16.mxu1 %v640_v0  ;;  %v622_v10 = vld [vmem:[%s915_s2 + $0x60] sm:$0xff]   ;;  %v625_v13 = vld [vmem:[%s915_s2 + $0x58] sm:$0xff]   ;;  %v628_v16 = vld [vmem:[%s915_s2 + $0x50] sm:$0xff]  }
   0x5   :  { %592 = vmatprep.subr.bf16.mxu0 %v616_v4  ;;  %v623_v11 = vld [vmem:[%s915_s2 + $0xa0] sm:$0xff]   ;;  %v626_v14 = vld [vmem:[%s915_s2 + $0x98] sm:$0xff]   ;;  %v629_v17 = vld [vmem:[%s915_s2 + $0x90] sm:$0xff]  }
   0x6   :  { %v624_v12 = vld [vmem:[%s915_s2 + $0x20] sm:$0xff]   ;;  %v627_v15 = vld [vmem:[%s915_s2 + $0x18] sm:$0xff]   ;;  %v630_v18 = vld [vmem:[%s915_s2 + $0x10] sm:$0xff]  }
   0x7   :  { %304 = vmatpush1.bf16.msra.mxu1 %v617_v5  ;;  %v631_v19 = vld [vmem:[%s915_s2 + $0x48] sm:$0xff]   ;;  %v634_v23 = vld [vmem:[%s915_s2 + $0x40] sm:$0xff]   ;;  %v29_v26 = vld [vmem:[%s916_s0 + $0x18] sm:$0xff] }
   0x8   :  { %593 = vmatpush3.bf16.msra.mxu0 %v618_v6  ;;  %305 = vmatprep.subr.bf16.mxu1 %v640_v0  ;;  %v632_v20 = vld [vmem:[%s915_s2 + $0x88] sm:$0xff]   ;;  %v635_v25 = vld [vmem:[%s915_s2 + $0x80] sm:$0xff]   ;;  %v33_v29 = vpack.c.bf16 %v29_v26, %v29_v26  ;;  %v637_v31 = vld [vmem:[%s915_s2 + $0xd0] sm:$0xff]  }
   0x9   :  { %594 = vmatprep.subr.bf16.mxu0 %v619_v7  ;;  %v633_v21 = vld [vmem:[%s915_s2 + $0x8] sm:$0xff]   ;;  %v636_v27 = vld [vmem:[%s915_s2] sm:$0xff]   ;;  %v28_v34 = vld [vmem:[%s916_s0 + $0x10] sm:$0xff] }
   0xa   :  { %v27_v22 = vld [vmem:[%s916_s0 + $0x8] sm:$0xff]  ;;  %v26_v28 = vld [vmem:[%s916_s0] sm:$0xff]  ;;  %577 = vmatprep.mubr.msk.bf16.mxu1 %vm257_vm0, %v33_v29  ;;  %v32_v35 = vpack.c.bf16 %v28_v34, %v28_v34  ;;  %v794_v38 = vld [vmem:[%s917_s1 + $0x14] sm:$0xf] }
   0xb   :  { %306 = vmatpush1.bf16.msra.mxu1 %v620_v8  ;;  %v31_v24 = vpack.c.bf16 %v27_v22, %v27_v22  ;;  %v30_v30 = vpack.c.bf16 %v26_v28, %v26_v28  ;;  %v638_v32 = vld [vmem:[%s915_s2 + $0xc8] sm:$0xff]   ;;  %v639_v33 = vld [vmem:[%s915_s2 + $0xc0] sm:$0xff]   ;;  %v799_v39 = vld [vmem:[%s917_s1 + $0x18] sm:$0xf] }
   0xc   :  { %595 = vmatpush3.bf16.msra.mxu0 %v621_v9  ;;  %307 = vmatprep.subr.bf16.mxu1 %v640_v0  ;;  %v347_v36 = vld [vmem:[%s917_s1 + $0x4] sm:$0xf]  ;;  %v348_v37 = vld [vmem:[%s917_s1 + $0x8] sm:$0xf]  ;;  %v578_v40 = vld [vmem:[%s918_s4] ss:$0 sm:$0xff] }
   0xd   :  { %596 = vmatprep.subr.bf16.mxu0 %v622_v10  ;;  %293 = vmatprep.mubr.bf16.mxu0 %v31_v24  ;;  %v346_v41 = vld [vmem:[%s917_s1] sm:$0xf]  ;;  %v349_v42 = vld [vmem:[%s917_s1 + $0xc] sm:$0xf]  ;;  %v350_v43 = vld [vmem:[%s917_s1 + $0x10] sm:$0xf]  ;;  %v361_v44 = vmul.f32 %v578_v40, %v347_v36  ;;  %v362_v45 = vmul.f32 %v578_v40, %v348_v37  ;;  %v365_v46 = vmul.f32 %v578_v40, %v794_v38 }
   0xe   :  { %v366_v47 = vmul.f32 %v578_v40, %v799_v39  ;;  %v818_v48 = vld [vmem:[%s917_s1 + $0x1c] sm:$0xf]  ;;  %v579_v49 = vld [vmem:[%s919_s5] ss:$0 sm:$0xff]  ;;  %v360_v50 = vmul.f32 %v578_v40, %v346_v41  ;;  %v363_v51 = vmul.f32 %v578_v40, %v349_v42  ;;  %v364_v52 = vmul.f32 %v578_v40, %v350_v43  ;;  %v580_v61 = vld [vmem:[%s918_s4 + $0x1] ss:$0 sm:$0xff] }
   0xf   :  { %308 = vmatpush1.bf16.msra.mxu1 %v623_v11  ;;  %v367_v53 = vmul.f32 %v578_v40, %v818_v48  ;;  %v373_v54 = vadd.f32 %v579_v49, %v361_v44  ;;  %v374_v55 = vadd.f32 %v579_v49, %v362_v45  ;;  %v377_v56 = vadd.f32 %v579_v49, %v365_v46 }
  0x10   :  { %597 = vmatpush3.bf16.msra.mxu0 %v624_v12  ;;  %309 = vmatprep.subr.bf16.mxu1 %v640_v0  ;;  %v372_v57 = vadd.f32 %v579_v49, %v360_v50  ;;  %v375_v58 = vadd.f32 %v579_v49, %v363_v51  ;;  %v376_v59 = vadd.f32 %v579_v49, %v364_v52 }
  0x11   :  { %598 = vmatprep.subr.bf16.mxu0 %v625_v13  ;;  %v378_v60 = vadd.f32 %v579_v49, %v366_v47  ;;  %v379_v62 = vadd.f32 %v579_v49, %v367_v53  ;;  %vm381_vm1 = vcmp.ge.f32.partialorder %v373_v54, 0.0  ;;  %vm382_vm2 = vcmp.ge.f32.partialorder %v374_v55, 0.0 }
  0x12   :  { %v454_v63 = vmul.f32 %v580_v61, %v346_v41  ;;  %vm385_vm3 = vcmp.ge.f32.partialorder %v377_v56, 0.0  ;;  %v389_v1 = vmul.f32 0.1, %v373_v54  ;;  %vm380_vm5 = vcmp.ge.f32.partialorder %v372_v57, 0.0 }
  0x13   :  { %310 = vmatpush1.bf16.msra.mxu1 %v626_v14  ;;  %vm386_vm4 = vcmp.ge.f32.partialorder %v378_v60, 0.0  ;;  %vm383_vm6 = vcmp.ge.f32.partialorder %v375_v58, 0.0  ;;  %vm384_vm7 = vcmp.ge.f32.partialorder %v376_v59, 0.0  ;;  %vm387_vm8 = vcmp.ge.f32.partialorder %v379_v62, 0.0 }
  0x14   :  { %599 = vmatpush3.bf16.msra.mxu0 %v627_v15  ;;  %311 = vmatprep.subr.bf16.mxu1 %v640_v0  ;;  %v390_v2 = vmul.f32 0.1, %v374_v55  ;;  %v391_v3 = vmul.f32 0.1, %v375_v58  ;;  %v392_v4 = vmul.f32 0.1, %v376_v59  ;;  %v397_v9 = vsel %vm381_vm1, %v373_v54, %v389_v1 }
  0x15   :  { %600 = vmatprep.subr.bf16.mxu0 %v628_v16  ;;  %v393_v6 = vmul.f32 0.1, %v377_v56  ;;  %v394_v7 = vmul.f32 0.1, %v378_v60  ;;  %v395_v8 = vmul.f32 0.1, %v379_v62  ;;  %v456_v24 = vmul.f32 %v580_v61, %v348_v37 }
  0x16   :  { %v398_v10 = vsel %vm382_vm2, %v374_v55, %v390_v2  ;;  %v399_v11 = vsel %vm383_vm6, %v375_v58, %v391_v3  ;;  %v400_v12 = vsel %vm384_vm7, %v376_v59, %v392_v4  ;;  %v460_v40 = vmul.f32 %v580_v61, %v799_v39 }
  0x17   :  { %312 = vmatpush1.bf16.msra.mxu1 %v629_v17  ;;  %v401_v14 = vsel %vm385_vm3, %v377_v56, %v393_v6  ;;  %v402_v15 = vsel %vm386_vm4, %v378_v60, %v394_v7  ;;  %v403_v16 = vsel %vm387_vm8, %v379_v62, %v395_v8  ;;  %v406_v17 = vmax.f32 %v397_v9, %v398_v10 }
  0x18   :  { %601 = vmatpush3.bf16.msra.mxu0 %v630_v18  ;;  %313 = vmatprep.subr.bf16.mxu1 %v640_v0  ;;  %v405_v18 = vmax.f32 %v400_v12, %v401_v14  ;;  %v461_v44 = vmul.f32 %v580_v61, %v818_v48  ;;  %vm344_vm4 = vcmask 785408  }
  0x19   :  { %602 = vmatprep.subr.bf16.mxu0 %v631_v19  ;;  %v407_v19 = vmax.f32 %v401_v14, %v402_v15  ;;  %v408_v22 = vmax.f32 %v406_v17, %v399_v11 }
  0x1a   :  { %v433_v29 = vrot.slane %v405_v18, 2 }
  0x1b   :  { %314 = vmatpush1.bf16.msra.mxu1 %v632_v20  ;;  %v409_v26 = vmax.f32 %v407_v19, %v403_v16 }
  0x1c   :  { %603 = vmatpush3.bf16.msra.mxu0 %v633_v21  ;;  %315 = vmatprep.subr.bf16.mxu1 %v640_v0  ;;  %v455_v21 = vmul.f32 %v580_v61, %v347_v36  ;;  %v581_v36 = vld [vmem:[%s919_s5 + $0x1] ss:$0 sm:$0xff] }
  0x1d   :  { %604 = vmatprep.subr.bf16.mxu0 %v634_v23  ;;  %v417_v34 = vrot.slane %v409_v26, 1  ;;  %v434_v41 = vrot.slane %v409_v26, 2  ;;  %v466_v45 = vadd.f32 %v581_v36, %v454_v63  ;;  %v468_v47 = vadd.f32 %v581_v36, %v456_v24 }
  0x1e   :  { %v467_v46 = vadd.f32 %v581_v36, %v455_v21  ;;  %v472_v52 = vadd.f32 %v581_v36, %v460_v40  ;;  %v473_v53 = vadd.f32 %v581_v36, %v461_v44 }
  0x1f   :  { %316 = vmatpush1.bf16.msra.mxu1 %v635_v25  ;;  %v457_v25 = vmul.f32 %v580_v61, %v349_v42  ;;  %vm474_vm11 = vcmp.ge.f32.partialorder %v466_v45, 0.0  ;;  %vm476_vm13 = vcmp.ge.f32.partialorder %v468_v47, 0.0  ;;  %v482_v54 = vmul.f32 0.1, %v466_v45 }
  0x20   :  { %605 = vmatpush3.bf16.msra.mxu0 %v636_v27  ;;  %327 = vmatprep.subr.bf16.mxu1 %v640_v0  ;;  %v416_v27 = vrot.slane %v405_v18, 1  ;;  %vm475_vm12 = vcmp.ge.f32.partialorder %v467_v46, 0.0  ;;  %vm480_vm1 = vcmp.ge.f32.partialorder %v472_v52, 0.0  ;;  %vm481_vm2 = vcmp.ge.f32.partialorder %v473_v53, 0.0 }
  0x21   :  { %v469_v49 = vadd.f32 %v581_v36, %v457_v25  ;;  %v483_v55 = vmul.f32 0.1, %v467_v46  ;;  %v484_v56 = vmul.f32 0.1, %v468_v47  ;;  %v488_v60 = vmul.f32 0.1, %v472_v52 }
  0x22   :  { %v490_v62 = vsel %vm474_vm11, %v466_v45, %v482_v54 }
  0x23   :  { %294 = vmatmul.mubr.bf16.vlgmr.msra.gmra.mxu0 %v30_v30  ;;  %328 = vmatpush2.bf16.msra.mxu1 %v637_v31  ;;  %v415_v30 = vrot.slane %v408_v22, 1  ;;  %v432_v31 = vrot.slane %v408_v22, 2  ;;  %vm477_vm14 = vcmp.ge.f32.partialorder %v469_v49, 0.0  ;;  %v491_v63 = vsel %vm475_vm12, %v467_v46, %v483_v55 }
  0x24   :  { %329 = vmatprep.subr.bf16.mxu1 %v640_v0  ;;  %v496_v4 = vsel %vm480_vm1, %v472_v52, %v488_v60  ;;  %v498_v6 = vmax.f32 %v490_v62, %v491_v63 }
  0x25   :  { %v423_v37 = vmax.f32 %v408_v22, %v415_v30 }
  0x26   :  { %v508_v10 = vrot.slane %v498_v6, 1  ;;  %v525_v11 = vrot.slane %v498_v6, 2 }
  0x27   :  { %330 = vmatpush2.bf16.msra.mxu1 %v638_v32  ;;  %v458_v32 = vmul.f32 %v580_v61, %v350_v43  ;;  %v425_v43 = vmax.f32 %v409_v26, %v417_v34  ;;  %428 = vst.msk [vmem:[%s920_s7 + $0x2] sm:$0x1] %vm426_vm9, %v423_v37  ;;  %v440_v39 = vmax.f32 %v423_v37, %v432_v31 }
  0x28   :  { %331 = vmatprep.subr.bf16.mxu1 %v640_v0  ;;  %v388_v0 = vmul.f32 0.1, %v372_v57  ;;  %v516_v16 = vmax.f32 %v498_v6, %v508_v10 }
  0x29   :  { %430 = vst.msk [vmem:[%s920_s7 + $0x6] sm:$0x1] %vm426_vm9, %v425_v43  ;;  %v442_v48 = vmax.f32 %v425_v43, %v434_v41  ;;  %v470_v50 = vadd.f32 %v581_v36, %v458_v32 }
  0x2a   :  { %v396_v5 = vsel %vm380_vm5, %v372_v57, %v388_v0  ;;  %445 = vst.msk [vmem:[%s920_s7 + $0x2] sm:$0x2] %vm443_vm10, %v440_v39  ;;  %v485_v57 = vmul.f32 0.1, %v469_v49  ;;  %v492_v0 = vsel %vm476_vm13, %v468_v47, %v484_v56  ;;  %v533_v22 = vmax.f32 %v516_v16, %v525_v11 }
  0x2b   :  { %332 = vmatpush2.bf16.msra.mxu1 %v639_v33  ;;  %v404_v13 = vmax.f32 %v396_v5, %v397_v9  ;;  %v459_v33 = vmul.f32 %v580_v61, %v794_v38  ;;  %447 = vst.msk [vmem:[%s920_s7 + $0x6] sm:$0x2] %vm443_vm10, %v442_v48  ;;  %vm478_vm15 = vcmp.ge.f32.partialorder %v470_v50, 0.0  ;;  %v486_v58 = vmul.f32 0.1, %v470_v50 }
  0x2c   :  { %v489_v61 = vmul.f32 0.1, %v473_v53  ;;  %v493_v1 = vsel %vm477_vm14, %v469_v49, %v485_v57  ;;  %v500_v8 = vmax.f32 %v491_v63, %v492_v0  ;;  %582 = vst.msk [vmem:[%s920_s7 + $0x8] sm:$0x1] %vm426_vm9, %v516_v16 }
  0x2d   :  { %v414_v20 = vrot.slane %v404_v13, 1  ;;  %v431_v23 = vrot.slane %v404_v13, 2  ;;  %v471_v51 = vadd.f32 %v581_v36, %v459_v33  ;;  %v494_v2 = vsel %vm478_vm15, %v470_v50, %v486_v58  ;;  %586 = vst.msk [vmem:[%s920_s7 + $0x8] sm:$0x2] %vm443_vm10, %v533_v22  ;;  %v549_v33 = vld [vmem:[%s921_s3] ss:$0 sm:$0xff] }
  0x2e   :  { %334 = vmatmul.mubr.bf16.vlgmr.msra.gmra.mxu1 %v32_v35  ;;  %v424_v35 = vmax.f32 %v405_v18, %v416_v27  ;;  %v497_v5 = vsel %vm481_vm2, %v473_v53, %v489_v61  ;;  %v502_v12 = vmax.f32 %v500_v8, %v493_v1 }
  0x2f   :  { %v422_v28 = vmax.f32 %v404_v13, %v414_v20  ;;  %vm479_vm0 = vcmp.ge.f32.partialorder %v471_v51, 0.0  ;;  %v487_v59 = vmul.f32 0.1, %v471_v51 }
  0x30   :  { %429 = vst.msk [vmem:[%s920_s7 + $0x4] sm:$0x1] %vm426_vm9, %v424_v35  ;;  %v441_v38 = vmax.f32 %v424_v35, %v433_v29  ;;  %v509_v17 = vrot.slane %v502_v12, 1  ;;  %v526_v20 = vrot.slane %v502_v12, 2 }
  0x31   :  { %427 = vst.msk [vmem:[%s920_s7] sm:$0x1] %vm426_vm9, %v422_v28  ;;  %v439_v42 = vmax.f32 %v422_v28, %v431_v23  ;;  %v495_v3 = vsel %vm479_vm0, %v471_v51, %v487_v59 }
  0x32   :  { %446 = vst.msk [vmem:[%s920_s7 + $0x4] sm:$0x2] %vm443_vm10, %v441_v38  ;;  %v499_v7 = vmax.f32 %v494_v2, %v495_v3  ;;  %v501_v9 = vmax.f32 %v495_v3, %v496_v4  ;;  %v517_v23 = vmax.f32 %v502_v12, %v509_v17 }
  0x33   :  { %444 = vst.msk [vmem:[%s920_s7] sm:$0x2] %vm443_vm10, %v439_v42 }
  0x34   :  { %v503_v13 = vmax.f32 %v501_v9, %v497_v5  ;;  %v510_v14 = vrot.slane %v499_v7, 1  ;;  %v527_v15 = vrot.slane %v499_v7, 2  ;;  %583 = vst.msk [vmem:[%s920_s7 + $0xa] sm:$0x1] %vm426_vm9, %v517_v23  ;;  %v534_v26 = vmax.f32 %v517_v23, %v526_v20 }
  0x36   :  { %v511_v18 = vrot.slane %v503_v13, 1  ;;  %v518_v19 = vmax.f32 %v499_v7, %v510_v14  ;;  %v528_v21 = vrot.slane %v503_v13, 2  ;;  %587 = vst.msk [vmem:[%s920_s7 + $0xa] sm:$0x2] %vm443_vm10, %v534_v26 }
  0x38   :  { %v519_v24 = vmax.f32 %v503_v13, %v511_v18  ;;  %584 = vst.msk [vmem:[%s920_s7 + $0xc] sm:$0x1] %vm426_vm9, %v518_v19  ;;  %v535_v25 = vmax.f32 %v518_v19, %v527_v15 }
  0x3a   :  { %585 = vst.msk [vmem:[%s920_s7 + $0xe] sm:$0x1] %vm426_vm9, %v519_v24  ;;  %v536_v27 = vmax.f32 %v519_v24, %v528_v21 }
  0x3b   :  { %588 = vst.msk [vmem:[%s920_s7 + $0xc] sm:$0x2] %vm443_vm10, %v535_v25 }
  0x3c   :  { %589 = vst.msk [vmem:[%s920_s7 + $0xe] sm:$0x2] %vm443_vm10, %v536_v27 }
  0xe3   :  { %v606_v28 = vpop.f32.mrf.mxu0 }
  0xe5   :  { %v607_v29 = vpop.f32.mrf.mxu0 }
  0xe6   :  { %v608_v31 = vadd.f32 %v607_v29, %v606_v28 }
  0xe7   :  { %v609_v30 = vpop.f32.mrf.mxu0 }
  0xe8   :  { %v296_v34 = vadd.f32 %v608_v31, %v549_v33 }
  0xe9   :  { %v610_v32 = vpop.f32.mrf.mxu0 }
  0xee   :  { %v335_v35 = vpop.f32.mrf.mxu1 }
  0xef   :  { %v336_v36 = vadd.f32 %v335_v35, %v296_v34 }
  0xf0   :  { %v337_v40 = vpop.f32.mrf.mxu1 }
  0xf1   :  { %vm341_vm3 = vcmp.ge.f32.partialorder %v336_v36, 0.0  ;;  %v342_v37 = vmul.f32 0.1, %v336_v36 }
  0xf2   :  { %v338_v41 = vpop.f32.mrf.mxu1 }
  0xf3   :  { %v343_v42 = vsel %vm341_vm3, %v336_v36, %v342_v37 }
  0xf4   :  { %345 = vst.msk [vmem:[%s922_s6] sm:$0xff] %vm344_vm4, %v343_v42  ;;  %v339_v43 = vpop.f32.mrf.mxu1 }

// kernel: binocular_net_forward.7
= control target key start
LH: loop header
LB: loop body
LE: loop exit
PB: predicated region body
PF: predicated region fallthrough
CT: control target
= control target key end

     0   :  { %s14577_s0 = inlined_call_operand.vmem [shape: f32[2,768], index: 0, kind: input, shape index: {}]   ;;  %s14578_s1 = inlined_call_operand.vmem [shape: f32[8,192], index: 1, kind: input, shape index: {}]   ;;  %s14579_s2 = inlined_call_operand.vmem [shape: bf16[768,384], index: 2, kind: input, shape index: {}]   ;;  %s14580_s3 = inlined_call_operand.vmem [shape: f32[1,384], index: 3, kind: input, shape index: {}]   ;;  %s14581_s4 = inlined_call_operand.vmem [shape: f32[192,384], index: 4, kind: input, shape index: {}]   ;;  %s14582_s5 = inlined_call_operand.vmem [shape: f32[1,384], index: 5, kind: input, shape index: {}]   ;;  %s14583_s6 = inlined_call_operand.vmem [shape: bf16[768,768], index: 6, kind: input, shape index: {}]   ;;  %s14584_s7 = inlined_call_operand.vmem [shape: f32[1,768], index: 7, kind: input, shape index: {}]   ;;  %s14585_s8 = inlined_call_operand.vmem [shape: f32[1,768], index: 8, kind: input, shape index: {}]   ;;  %s14586_s9 = inlined_call_operand.vmem [shape: f32[1,768], index: 9, kind: input, shape index: {}]   ;;  %s14587_s10 = inlined_call_operand.vmem [shape: bf16[1536,640], index: 10, kind: input, shape index: {}]   ;;  %s14588_s11 = inlined_call_operand.vmem [shape: f32[1,640], index: 11, kind: input, shape index: {}]   ;;  %s14589_s12 = inlined_call_operand.vmem [shape: bf16[640,10], index: 12, kind: input, shape index: {}]   ;;  %s14590_s13 = inlined_call_operand.vmem [shape: f32[1,10], index: 13, kind: input, shape index: {}]   ;;  %s14591_s14 = inlined_call_operand.vmem [shape: f32[2,768], index: 14, kind: output, shape index: {0}]   ;;  %s14592_s15 = inlined_call_operand.vmem [shape: f32[2,1536], index: 15, kind: output, shape index: {1}]   ;;  %s14593_s16 = inlined_call_operand.hbm [shape: f32[2,10], index: 16, kind: output, shape index: {2}]  }
   0x1   :  { %14595 = sst [smem:[#allocation5_spill]] %s14577_s0 }
   0x2   :  { %v9647_v0 = vld [vmem:[%s14579_s2 + $0xac] ss:$12 sps:$4 sm:$0xff]   ;;  %v9651_v2 = vld [vmem:[%s14579_s2 + $0xa8] ss:$12 sps:$4 sm:$0xff]   ;;  %v9657_v6 = vld [vmem:[%s14579_s2 + $0x90] ss:$12 sps:$4 sm:$0xff]   ;;  %v60_v38 = vlaneseq }
   0x3   :  { %v9649_v1 = vld [vmem:[%s14579_s2 + $0x22c] ss:$12 sps:$4 sm:$0xff]   ;;  %1070 = vmatprep.subr.bf16.mxu0 %v9647_v0  ;;  %v9652_v3 = vld [vmem:[%s14579_s2 + $0x228] ss:$12 sps:$4 sm:$0xff]   ;;  %v9658_v7 = vld [vmem:[%s14579_s2 + $0x210] ss:$12 sps:$4 sm:$0xff]  }
   0x4   :  { %1111 = vmatprep.subr.bf16.mxu1 %v9649_v1  ;;  %v9653_v4 = vld [vmem:[%s14579_s2 + $0x94] ss:$12 sps:$4 sm:$0xff]   ;;  %1071 = vmatpush1.bf16.msra.mxu0 %v9651_v2  ;;  %v9659_v8 = vld [vmem:[%s14579_s2 + $0x7c] ss:$12 sps:$4 sm:$0xff]   ;;  %v9663_v10 = vld [vmem:[%s14579_s2 + $0x78] ss:$12 sps:$4 sm:$0xff]  }
   0x5   :  { %1112 = vmatpush1.bf16.msra.mxu1 %v9652_v3  ;;  %v9655_v5 = vld [vmem:[%s14579_s2 + $0x214] ss:$12 sps:$4 sm:$0xff]   ;;  %1072 = vmatprep.subr.bf16.mxu0 %v9653_v4  ;;  %v9661_v9 = vld [vmem:[%s14579_s2 + $0x1fc] ss:$12 sps:$4 sm:$0xff]   ;;  %v9664_v11 = vld [vmem:[%s14579_s2 + $0x1f8] ss:$12 sps:$4 sm:$0xff]  }
   0x6   :  { %1113 = vmatprep.subr.bf16.mxu1 %v9655_v5  ;;  %v9665_v12 = vld [vmem:[%s14579_s2 + $0x64] ss:$12 sps:$4 sm:$0xff]   ;;  %v9669_v14 = vld [vmem:[%s14579_s2 + $0x60] ss:$12 sps:$4 sm:$0xff]   ;;  %v9675_v18 = vld [vmem:[%s14579_s2 + $0x48] ss:$12 sps:$4 sm:$0xff]  }
   0x7   :  { %v9667_v13 = vld [vmem:[%s14579_s2 + $0x1e4] ss:$12 sps:$4 sm:$0xff]   ;;  %v9670_v15 = vld [vmem:[%s14579_s2 + $0x1e0] ss:$12 sps:$4 sm:$0xff]   ;;  %v9676_v19 = vld [vmem:[%s14579_s2 + $0x1c8] ss:$12 sps:$4 sm:$0xff]  }
   0x8   :  { %1073 = vmatpush1.bf16.msra.mxu0 %v9657_v6  ;;  %v9671_v16 = vld [vmem:[%s14579_s2 + $0x4c] ss:$12 sps:$4 sm:$0xff]   ;;  %v9677_v20 = vld [vmem:[%s14579_s2 + $0x34] ss:$12 sps:$4 sm:$0xff]   ;;  %v9681_v22 = vld [vmem:[%s14579_s2 + $0x30] ss:$12 sps:$4 sm:$0xff]  }
   0x9   :  { %1114 = vmatpush1.bf16.msra.mxu1 %v9658_v7  ;;  %1074 = vmatprep.subr.bf16.mxu0 %v9659_v8  ;;  %v9673_v17 = vld [vmem:[%s14579_s2 + $0x1cc] ss:$12 sps:$4 sm:$0xff]   ;;  %v9679_v21 = vld [vmem:[%s14579_s2 + $0x1b4] ss:$12 sps:$4 sm:$0xff]   ;;  %v9682_v23 = vld [vmem:[%s14579_s2 + $0x1b0] ss:$12 sps:$4 sm:$0xff]  }
   0xa   :  { %1115 = vmatprep.subr.bf16.mxu1 %v9661_v9  ;;  %v9683_v24 = vld [vmem:[%s14579_s2 + $0x1c] ss:$12 sps:$4 sm:$0xff]   ;;  %v9687_v26 = vld [vmem:[%s14579_s2 + $0x18] ss:$12 sps:$4 sm:$0xff]   ;;  %v9693_v30 = vld [vmem:[%s14579_s2] ss:$12 sps:$4 sm:$0xff]  }
   0xb   :  { %v9685_v25 = vld [vmem:[%s14579_s2 + $0x19c] ss:$12 sps:$4 sm:$0xff]   ;;  %v9688_v27 = vld [vmem:[%s14579_s2 + $0x198] ss:$12 sps:$4 sm:$0xff]   ;;  %v9694_v31 = vld [vmem:[%s14579_s2 + $0x180] ss:$12 sps:$4 sm:$0xff]  }
   0xc   :  { %1075 = vmatpush1.bf16.msra.mxu0 %v9663_v10  ;;  %v9689_v28 = vld [vmem:[%s14579_s2 + $0x4] ss:$12 sps:$4 sm:$0xff]   ;;  %v9695_v32 = vld [vmem:[%s14579_s2 + $0x16c] ss:$12 sps:$4 sm:$0xff]   ;;  %v9699_v34 = vld [vmem:[%s14579_s2 + $0x168] ss:$12 sps:$4 sm:$0xff]  }
   0xd   :  { %1116 = vmatpush1.bf16.msra.mxu1 %v9664_v11  ;;  %1076 = vmatprep.subr.bf16.mxu0 %v9665_v12  ;;  %v9691_v29 = vld [vmem:[%s14579_s2 + $0x184] ss:$12 sps:$4 sm:$0xff]   ;;  %v9697_v33 = vld [vmem:[%s14579_s2 + $0x2ec] ss:$12 sps:$4 sm:$0xff]   ;;  %v9700_v35 = vld [vmem:[%s14579_s2 + $0x2e8] ss:$12 sps:$4 sm:$0xff]  }
   0xe   :  { %1117 = vmatprep.subr.bf16.mxu1 %v9667_v13  ;;  %v11011_v36 = vmov 1983009808   ;;  %v9701_v39 = vld [vmem:[%s14579_s2 + $0x154] ss:$12 sps:$4 sm:$0xff]   ;;  %v9705_v41 = vld [vmem:[%s14579_s2 + $0x150] ss:$12 sps:$4 sm:$0xff]  }
   0xf   :  { %v58_v37 = vunpack.c.l.s4 %v11011_v36  ;;  %v9703_v40 = vld [vmem:[%s14579_s2 + $0x2d4] ss:$12 sps:$4 sm:$0xff]   ;;  %v11219_v43 = vshrl.u32 %v60_v38, 7  ;;  %v9706_v44 = vld [vmem:[%s14579_s2 + $0x2d0] ss:$12 sps:$4 sm:$0xff]   ;;  %s14596_s27 = sld [smem:[#allocation5_spill]] }
  0x10   :  { %1077 = vmatpush1.bf16.msra.mxu0 %v9669_v14  ;;  %v9707_v45 = vld [vmem:[%s14579_s2 + $0x13c] ss:$12 sps:$4 sm:$0xff]   ;;  %v9711_v47 = vld [vmem:[%s14579_s2 + $0x138] ss:$12 sps:$4 sm:$0xff]   ;;  %v9717_v52 = vld [vmem:[%s14579_s2 + $0x120] ss:$12 sps:$4 sm:$0xff]  }
  0x11   :  { %1118 = vmatpush1.bf16.msra.mxu1 %v9670_v15  ;;  %1078 = vmatprep.subr.bf16.mxu0 %v9671_v16  ;;  %v59_v42 = vunpack.c.0.s8 %v58_v37  ;;  %v9709_v46 = vld [vmem:[%s14579_s2 + $0x2bc] ss:$12 sps:$4 sm:$0xff]   ;;  %v9712_v48 = vld [vmem:[%s14579_s2 + $0x2b8] ss:$12 sps:$4 sm:$0xff]   ;;  %v9718_v54 = vld [vmem:[%s14579_s2 + $0x2a0] ss:$12 sps:$4 sm:$0xff]  }
  0x12   :  { %1119 = vmatprep.subr.bf16.mxu1 %v9673_v17  ;;  %v9713_v50 = vld [vmem:[%s14579_s2 + $0x124] ss:$12 sps:$4 sm:$0xff]   ;;  %v9719_v57 = vld [vmem:[%s14579_s2 + $0x10c] ss:$12 sps:$4 sm:$0xff]   ;;  %v9723_v61 = vld [vmem:[%s14579_s2 + $0x108] ss:$12 sps:$4 sm:$0xff]  }
  0x13   :  { %v11237_v49 = vsub.s32 %v59_v42, %v11219_v43  ;;  %v9715_v51 = vld [vmem:[%s14579_s2 + $0x2a4] ss:$12 sps:$4 sm:$0xff]   ;;  %v9721_v58 = vld [vmem:[%s14579_s2 + $0x28c] ss:$12 sps:$4 sm:$0xff]   ;;  %v9724_v62 = vld [vmem:[%s14579_s2 + $0x288] ss:$12 sps:$4 sm:$0xff]  }
  0x14   :  { %1079 = vmatpush1.bf16.msra.mxu0 %v9675_v18  ;;  %v9725_v1 = vld [vmem:[%s14579_s2 + $0xf4] ss:$12 sps:$4 sm:$0xff]   ;;  %v9729_v4 = vld [vmem:[%s14579_s2 + $0xf0] ss:$12 sps:$4 sm:$0xff]   ;;  %v9735_v8 = vld [vmem:[%s14579_s2 + $0xd8] ss:$12 sps:$4 sm:$0xff]  }
  0x15   :  { %1120 = vmatpush1.bf16.msra.mxu1 %v9676_v19  ;;  %1080 = vmatprep.subr.bf16.mxu0 %v9677_v20  ;;  %v52_v53 = vld [vmem:[%s14596_s27] sm:$0xff]  ;;  %v9730_v5 = vld [vmem:[%s14579_s2 + $0x270] ss:$12 sps:$4 sm:$0xff]   ;;  %v9746_v14 = vld [vmem:[%s14579_s2 + $0x3ac] ss:$12 sps:$4 sm:$0xff]   ;;  %vm1434_vm0 = vcmask 523264  }
  0x16   :  { %1121 = vmatprep.subr.bf16.mxu1 %v9679_v21  ;;  %v63_v55 = vrot.slane %v52_v53, %v11237_v49  ;;  %v56_v56 = vcombine.high %v52_v53, %v52_v53  ;;  %v9727_v2 = vld [vmem:[%s14579_s2 + $0x274] ss:$12 sps:$4 sm:$0xff]   ;;  %v9731_v6 = vld [vmem:[%s14579_s2 + $0xdc] ss:$12 sps:$4 sm:$0xff]   ;;  %v9736_v9 = vld [vmem:[%s14579_s2 + $0x258] ss:$12 sps:$4 sm:$0xff]  }
  0x17   :  { %v9733_v7 = vld [vmem:[%s14579_s2 + $0x25c] ss:$12 sps:$4 sm:$0xff]   ;;  %v9737_v10 = vld [vmem:[%s14579_s2 + $0xc4] ss:$12 sps:$4 sm:$0xff]   ;;  %v9741_v12 = vld [vmem:[%s14579_s2 + $0xc0] ss:$12 sps:$4 sm:$0xff]  }
  0x18   :  { %1081 = vmatpush1.bf16.msra.mxu0 %v9681_v22  ;;  %v71_v59 = vcombine.high %v63_v55, %v63_v55  ;;  %v70_v60 = vrot.slane %v56_v56, %v11237_v49  ;;  %v9739_v11 = vld [vmem:[%s14579_s2 + $0x244] ss:$12 sps:$4 sm:$0xff]   ;;  %v9742_v13 = vld [vmem:[%s14579_s2 + $0x240] ss:$12 sps:$4 sm:$0xff]   ;;  %v9744_v16 = vld [vmem:[%s14579_s2 + $0x3a8] ss:$12 sps:$4 sm:$0xff]   ;;  %v11316_v17 = vpack.c.bf16 %v63_v55, %v63_v55 }
  0x19   :  { %1122 = vmatpush1.bf16.msra.mxu1 %v9682_v23  ;;  %1082 = vmatprep.subr.bf16.mxu0 %v9683_v24  ;;  %v9747_v15 = vld [vmem:[%s14579_s2 + $0x170] ss:$12 sps:$4 sm:$0xff]   ;;  %v9751_v20 = vld [vmem:[%s14579_s2 + $0x394] ss:$12 sps:$4 sm:$0xff]   ;;  %v9752_v21 = vld [vmem:[%s14579_s2 + $0x158] ss:$12 sps:$4 sm:$0xff]  }
  0x1a   :  { %1123 = vmatprep.subr.bf16.mxu1 %v9685_v25  ;;  %v88_v63 = vpack.c.bf16 %v71_v59, %v71_v59  ;;  %v72_v0 = vcombine.high %v70_v60, %v70_v60  ;;  %v11318_v18 = vpack.c.bf16 %v70_v60, %v70_v60  ;;  %v9748_v19 = vld [vmem:[%s14579_s2 + $0xb0] ss:$12 sps:$4 sm:$0xff]   ;;  %v9753_v23 = vld [vmem:[%s14579_s2 + $0x98] ss:$12 sps:$4 sm:$0xff]   ;;  %v9757_v25 = vld [vmem:[%s14579_s2 + $0x140] ss:$12 sps:$4 sm:$0xff]  }
  0x1b   :  { %v9749_v22 = vld [vmem:[%s14579_s2 + $0x390] ss:$12 sps:$4 sm:$0xff]   ;;  %v9771_v36 = vld [vmem:[%s14579_s2 + $0x334] ss:$12 sps:$4 sm:$0xff]   ;;  %v9772_v37 = vld [vmem:[%s14579_s2 + $0xf8] ss:$12 sps:$4 sm:$0xff]  }
  0x1c   :  { %1083 = vmatpush1.bf16.msra.mxu0 %v9687_v26  ;;  %v11274_v3 = vpack.c.bf16 %v72_v0, %v72_v0  ;;  %1102 = vmatprep.mubr.bf16.mxu0 %v88_v63  ;;  %v9756_v24 = vld [vmem:[%s14579_s2 + $0x37c] ss:$12 sps:$4 sm:$0xff]   ;;  %v9754_v26 = vld [vmem:[%s14579_s2 + $0x378] ss:$12 sps:$4 sm:$0xff]   ;;  %v9777_v42 = vld [vmem:[%s14579_s2 + $0xe0] ss:$12 sps:$4 sm:$0xff]  }
  0x1d   :  { %1124 = vmatpush1.bf16.msra.mxu1 %v9688_v27  ;;  %1084 = vmatprep.subr.bf16.mxu0 %v9689_v28  ;;  %v9758_v27 = vld [vmem:[%s14579_s2 + $0x80] ss:$12 sps:$4 sm:$0xff]   ;;  %v9761_v28 = vld [vmem:[%s14579_s2 + $0x364] ss:$12 sps:$4 sm:$0xff]   ;;  %v9784_v53 = vld [vmem:[%s14579_s2 + $0x468] ss:$12 sps:$4 sm:$0xff]  }
  0x1e   :  { %1125 = vmatprep.subr.bf16.mxu1 %v9691_v29  ;;  %1143 = vmatprep.mubr.bf16.mxu1 %v11274_v3  ;;  %v9762_v29 = vld [vmem:[%s14579_s2 + $0x128] ss:$12 sps:$4 sm:$0xff]   ;;  %v9789_v59 = vld [vmem:[%s14579_s2 + $0x450] ss:$12 sps:$4 sm:$0xff]   ;;  %v9793_v60 = vld [vmem:[%s14579_s2 + $0x218] ss:$12 sps:$4 sm:$0xff]  }
  0x1f   :  { %v9791_v55 = vld [vmem:[%s14579_s2 + $0x454] ss:$12 sps:$4 sm:$0xff]   ;;  %v11427_v56 = vld.sshfl [vmem:[%s14596_s27 + $0x8] sm:$0x33 pattern:$0x76325410] }
  0x20   :  { %1085 = vmatpush1.bf16.msra.mxu0 %v9693_v30  ;;  %v9759_v30 = vld [vmem:[%s14579_s2 + $0x360] ss:$12 sps:$4 sm:$0xff]   ;;  %v9794_v0 = vld [vmem:[%s14579_s2 + $0x438] ss:$12 sps:$4 sm:$0xff]   ;;  %vm12084_vm7 = vcmp.lt.s32.totalorder %v60_v38, 384 }
  0x21   :  { %1126 = vmatpush1.bf16.msra.mxu1 %v9694_v31  ;;  %1086 = vmatprep.subr.bf16.mxu0 %v9695_v32  ;;  %v9763_v31 = vld [vmem:[%s14579_s2 + $0x68] ss:$12 sps:$4 sm:$0xff]   ;;  %v9766_v32 = vld [vmem:[%s14579_s2 + $0x34c] ss:$12 sps:$4 sm:$0xff]  }
  0x22   :  { %1127 = vmatprep.subr.bf16.mxu1 %v9697_v33  ;;  %v9767_v33 = vld [vmem:[%s14579_s2 + $0x110] ss:$12 sps:$4 sm:$0xff]  }
  0x24   :  { %1087 = vmatpush2.bf16.msra.mxu0 %v9699_v34  ;;  %v9764_v34 = vld [vmem:[%s14579_s2 + $0x348] ss:$12 sps:$4 sm:$0xff]  }
  0x25   :  { %1128 = vmatpush2.bf16.msra.mxu1 %v9700_v35  ;;  %1088 = vmatprep.subr.bf16.mxu0 %v9701_v39  ;;  %v9768_v35 = vld [vmem:[%s14579_s2 + $0x50] ss:$12 sps:$4 sm:$0xff]  }
  0x26   :  { %1129 = vmatprep.subr.bf16.mxu1 %v9703_v40  ;;  %v9769_v39 = vld [vmem:[%s14579_s2 + $0x330] ss:$12 sps:$4 sm:$0xff]   ;;  %v9773_v40 = vld [vmem:[%s14579_s2 + $0x38] ss:$12 sps:$4 sm:$0xff]  }
  0x28   :  { %1089 = vmatpush2.bf16.msra.mxu0 %v9705_v41  ;;  %v9776_v41 = vld [vmem:[%s14579_s2 + $0x31c] ss:$12 sps:$4 sm:$0xff]  }
  0x29   :  { %1130 = vmatpush2.bf16.msra.mxu1 %v9706_v44  ;;  %1090 = vmatprep.subr.bf16.mxu0 %v9707_v45  ;;  %v9774_v44 = vld [vmem:[%s14579_s2 + $0x318] ss:$12 sps:$4 sm:$0xff]   ;;  %v9778_v45 = vld [vmem:[%s14579_s2 + $0x20] ss:$12 sps:$4 sm:$0xff]  }
  0x2a   :  { %1131 = vmatprep.subr.bf16.mxu1 %v9709_v46  ;;  %v9781_v46 = vld [vmem:[%s14579_s2 + $0x304] ss:$12 sps:$4 sm:$0xff]  }
  0x2c   :  { %1091 = vmatpush2.bf16.msra.mxu0 %v9711_v47  ;;  %v9782_v47 = vld [vmem:[%s14579_s2 + $0xc8] ss:$12 sps:$4 sm:$0xff]  }
  0x2d   :  { %1132 = vmatpush2.bf16.msra.mxu1 %v9712_v48  ;;  %1092 = vmatprep.subr.bf16.mxu0 %v9713_v50  ;;  %v9779_v48 = vld [vmem:[%s14579_s2 + $0x300] ss:$12 sps:$4 sm:$0xff]   ;;  %v9783_v50 = vld [vmem:[%s14579_s2 + $0x8] ss:$12 sps:$4 sm:$0xff]  }
  0x2e   :  { %1133 = vmatprep.subr.bf16.mxu1 %v9715_v51  ;;  %v9786_v51 = vld [vmem:[%s14579_s2 + $0x46c] ss:$12 sps:$4 sm:$0xff]  }
  0x30   :  { %1093 = vmatpush2.bf16.msra.mxu0 %v9717_v52  ;;  %v9787_v52 = vld [vmem:[%s14579_s2 + $0x2f0] ss:$12 sps:$4 sm:$0xff]  }
  0x31   :  { %1134 = vmatpush2.bf16.msra.mxu1 %v9718_v54  ;;  %1094 = vmatprep.subr.bf16.mxu0 %v9719_v57  ;;  %v9788_v54 = vld [vmem:[%s14579_s2 + $0x230] ss:$12 sps:$4 sm:$0xff]   ;;  %v9792_v57 = vld [vmem:[%s14579_s2 + $0x2d8] ss:$12 sps:$4 sm:$0xff]  }
  0x32   :  { %1135 = vmatprep.subr.bf16.mxu1 %v9721_v58  ;;  %v80_v58 = vcombine.high %v11427_v56, %v11427_v56 }
  0x34   :  { %1095 = vmatpush2.bf16.msra.mxu0 %v9723_v61  ;;  %v11441_v61 = vpack.c.bf16 %v80_v58, %v80_v58  ;;  %v9835_v58 = vld [vmem:[%s14579_s2 + $0x338] ss:$12 sps:$4 sm:$0xff]  }
  0x35   :  { %1136 = vmatpush2.bf16.msra.mxu1 %v9724_v62  ;;  %1096 = vmatprep.subr.bf16.mxu0 %v9725_v1  ;;  %v9796_v62 = vld [vmem:[%s14579_s2 + $0x43c] ss:$12 sps:$4 sm:$0xff]   ;;  %v9798_v1 = vld [vmem:[%s14579_s2 + $0x200] ss:$12 sps:$4 sm:$0xff]  }
  0x36   :  { %1137 = vmatprep.subr.bf16.mxu1 %v9727_v2  ;;  %v9801_v2 = vld [vmem:[%s14579_s2 + $0x424] ss:$12 sps:$4 sm:$0xff]  }
  0x38   :  { %1097 = vmatpush2.bf16.msra.mxu0 %v9729_v4  ;;  %v9802_v4 = vld [vmem:[%s14579_s2 + $0x2a8] ss:$12 sps:$4 sm:$0xff]  }
  0x39   :  { %1138 = vmatpush2.bf16.msra.mxu1 %v9730_v5  ;;  %1098 = vmatprep.subr.bf16.mxu0 %v9731_v6  ;;  %v9803_v5 = vld [vmem:[%s14579_s2 + $0x1e8] ss:$12 sps:$4 sm:$0xff]   ;;  %v9806_v6 = vld [vmem:[%s14579_s2 + $0x40c] ss:$12 sps:$4 sm:$0xff]  }
  0x3a   :  { %1139 = vmatprep.subr.bf16.mxu1 %v9733_v7  ;;  %v9807_v7 = vld [vmem:[%s14579_s2 + $0x290] ss:$12 sps:$4 sm:$0xff]  }
  0x3c   :  { %1099 = vmatpush2.bf16.msra.mxu0 %v9735_v8  ;;  %v9804_v8 = vld [vmem:[%s14579_s2 + $0x408] ss:$12 sps:$4 sm:$0xff]  }
  0x3d   :  { %1140 = vmatpush2.bf16.msra.mxu1 %v9736_v9  ;;  %1100 = vmatprep.subr.bf16.mxu0 %v9737_v10  ;;  %v9808_v9 = vld [vmem:[%s14579_s2 + $0x1d0] ss:$12 sps:$4 sm:$0xff]   ;;  %v9811_v10 = vld [vmem:[%s14579_s2 + $0x3f4] ss:$12 sps:$4 sm:$0xff]  }
  0x3e   :  { %1141 = vmatprep.subr.bf16.mxu1 %v9739_v11  ;;  %v9812_v11 = vld [vmem:[%s14579_s2 + $0x278] ss:$12 sps:$4 sm:$0xff]  }
  0x40   :  { %1101 = vmatpush2.bf16.msra.mxu0 %v9741_v12  ;;  %v9809_v12 = vld [vmem:[%s14579_s2 + $0x3f0] ss:$12 sps:$4 sm:$0xff]  }
  0x41   :  { %1142 = vmatpush2.bf16.msra.mxu1 %v9742_v13  ;;  %1152 = vmatprep.subr.bf16.mxu0 %v9746_v14  ;;  %v9813_v13 = vld [vmem:[%s14579_s2 + $0x1b8] ss:$12 sps:$4 sm:$0xff]   ;;  %v9816_v14 = vld [vmem:[%s14579_s2 + $0x3dc] ss:$12 sps:$4 sm:$0xff]  }
  0x42   :  { %9371 = vmatprep.subr.bf16.mxu1 %v9747_v15  ;;  %v9817_v15 = vld [vmem:[%s14579_s2 + $0x260] ss:$12 sps:$4 sm:$0xff]  }
  0x43   :  { %1103 = vmatmul.mubr.bf16.vlgmr.msra.gmra.mxu0 %v11316_v17 }
  0x44   :  { %1144 = vmatmul.mubr.bf16.vlgmr.msra.gmra.mxu1 %v11318_v18  ;;  %1153 = vmatpush1.bf16.msra.mxu0 %v9744_v16  ;;  %v9814_v16 = vld [vmem:[%s14579_s2 + $0x3d8] ss:$12 sps:$4 sm:$0xff]  }
  0x45   :  { %9372 = vmatpush3.bf16.msra.mxu1 %v9748_v19  ;;  %1154 = vmatprep.subr.bf16.mxu0 %v9751_v20  ;;  %v9821_v19 = vld [vmem:[%s14579_s2 + $0x3c4] ss:$12 sps:$4 sm:$0xff]   ;;  %v9822_v20 = vld [vmem:[%s14579_s2 + $0x248] ss:$12 sps:$4 sm:$0xff]  }
  0x46   :  { %9373 = vmatprep.subr.bf16.mxu1 %v9752_v21  ;;  %1225 = vmatprep.mubr.bf16.mxu1 %v88_v63  ;;  %v9797_v63 = vld [vmem:[%s14579_s2 + $0x2c0] ss:$12 sps:$4 sm:$0xff]  }
  0x47   :  { %1184 = vmatprep.mubr.bf16.mxu0 %v11441_v61  ;;  %v9819_v21 = vld [vmem:[%s14579_s2 + $0x3c0] ss:$12 sps:$4 sm:$0xff]  }
  0x48   :  { %1155 = vmatpush1.bf16.msra.mxu0 %v9749_v22  ;;  %v9823_v22 = vld [vmem:[%s14579_s2 + $0x188] ss:$12 sps:$4 sm:$0xff]  }
  0x49   :  { %9374 = vmatpush3.bf16.msra.mxu1 %v9753_v23  ;;  %1156 = vmatprep.subr.bf16.mxu0 %v9756_v24  ;;  %v9824_v23 = vld [vmem:[%s14579_s2 + $0x470] ss:$12 sps:$4 sm:$0xff]  }
  0x4a   :  { %9375 = vmatprep.subr.bf16.mxu1 %v9757_v25  ;;  %v1391_v24 = vld [vmem:[%s14581_s4 + $0x170] sm:$0xff]  ;;  %v11525_v25 = vpack.c.bf16 %v11427_v56, %v11427_v56  ;;  %v1364_v56 = vld [vmem:[%s14581_s4 + $0x98] sm:$0xff] }
  0x4c   :  { %1157 = vmatpush1.bf16.msra.mxu0 %v9754_v26  ;;  %v9825_v26 = vld [vmem:[%s14579_s2 + $0x3b0] ss:$12 sps:$4 sm:$0xff]  }
  0x4d   :  { %9376 = vmatpush3.bf16.msra.mxu1 %v9758_v27  ;;  %1158 = vmatprep.subr.bf16.mxu0 %v9761_v28  ;;  %v9826_v27 = vld [vmem:[%s14579_s2 + $0x458] ss:$12 sps:$4 sm:$0xff]   ;;  %v1390_v28 = vld [vmem:[%s14581_s4 + $0x168] sm:$0xff] }
  0x4e   :  { %9377 = vmatprep.subr.bf16.mxu1 %v9762_v29  ;;  %v1388_v29 = vld [vmem:[%s14581_s4 + $0x158] sm:$0xff] }
  0x50   :  { %1159 = vmatpush1.bf16.msra.mxu0 %v9759_v30  ;;  %v1387_v30 = vld [vmem:[%s14581_s4 + $0x150] sm:$0xff] }
  0x51   :  { %9378 = vmatpush3.bf16.msra.mxu1 %v9763_v31  ;;  %1160 = vmatprep.subr.bf16.mxu0 %v9766_v32  ;;  %v9827_v31 = vld [vmem:[%s14579_s2 + $0x398] ss:$12 sps:$4 sm:$0xff]  }
  0x52   :  { %9379 = vmatprep.subr.bf16.mxu1 %v9767_v33  ;;  %v1385_v32 = vld [vmem:[%s14581_s4 + $0x140] sm:$0xff] }
  0x53   :  { %v9828_v33 = vld [vmem:[%s14579_s2 + $0x440] ss:$12 sps:$4 sm:$0xff]  }
  0x54   :  { %1161 = vmatpush1.bf16.msra.mxu0 %v9764_v34  ;;  %v1382_v34 = vld [vmem:[%s14581_s4 + $0x128] sm:$0xff] }
  0x55   :  { %9380 = vmatpush3.bf16.msra.mxu1 %v9768_v35  ;;  %1162 = vmatprep.subr.bf16.mxu0 %v9771_v36  ;;  %v1381_v35 = vld [vmem:[%s14581_s4 + $0x120] sm:$0xff]  ;;  %v11566_v36 = vld [vmem:[%s14578_s1 + $0x8] sm:$0xff] }
  0x56   :  { %9381 = vmatprep.subr.bf16.mxu1 %v9772_v37  ;;  %v9829_v37 = vld [vmem:[%s14579_s2 + $0x380] ss:$12 sps:$4 sm:$0xff]  }
  0x58   :  { %1163 = vmatpush1.bf16.msra.mxu0 %v9769_v39  ;;  %v9830_v39 = vld [vmem:[%s14579_s2 + $0x428] ss:$12 sps:$4 sm:$0xff]  }
  0x59   :  { %9382 = vmatpush3.bf16.msra.mxu1 %v9773_v40  ;;  %1164 = vmatprep.subr.bf16.mxu0 %v9776_v41  ;;  %v1379_v40 = vld [vmem:[%s14581_s4 + $0x110] sm:$0xff]  ;;  %v1378_v41 = vld [vmem:[%s14581_s4 + $0x108] sm:$0xff] }
  0x5a   :  { %9383 = vmatprep.subr.bf16.mxu1 %v9777_v42  ;;  %v1376_v42 = vld [vmem:[%s14581_s4 + $0xf8] sm:$0xff] }
  0x5c   :  { %1165 = vmatpush1.bf16.msra.mxu0 %v9774_v44  ;;  %v1375_v44 = vld [vmem:[%s14581_s4 + $0xf0] sm:$0xff] }
  0x5d   :  { %9384 = vmatpush3.bf16.msra.mxu1 %v9778_v45  ;;  %1166 = vmatprep.subr.bf16.mxu0 %v9781_v46  ;;  %v9831_v45 = vld [vmem:[%s14579_s2 + $0x368] ss:$12 sps:$4 sm:$0xff]   ;;  %v1373_v46 = vld [vmem:[%s14581_s4 + $0xe0] sm:$0xff] }
  0x5e   :  { %9385 = vmatprep.subr.bf16.mxu1 %v9782_v47  ;;  %v9832_v47 = vld [vmem:[%s14579_s2 + $0x410] ss:$12 sps:$4 sm:$0xff]  }
  0x60   :  { %1167 = vmatpush1.bf16.msra.mxu0 %v9779_v48  ;;  %v1372_v48 = vld [vmem:[%s14581_s4 + $0xd8] sm:$0xff] }
  0x61   :  { %9386 = vmatpush3.bf16.msra.mxu1 %v9783_v50  ;;  %1168 = vmatprep.subr.bf16.mxu0 %v9786_v51  ;;  %v1370_v50 = vld [vmem:[%s14581_s4 + $0xc8] sm:$0xff]  ;;  %v1369_v51 = vld [vmem:[%s14581_s4 + $0xc0] sm:$0xff] }
  0x62   :  { %9393 = vmatprep.subr.bf16.mxu1 %v9787_v52  ;;  %v9833_v52 = vld [vmem:[%s14579_s2 + $0x350] ss:$12 sps:$4 sm:$0xff]  }
  0x64   :  { %1226 = vmatmul.mubr.bf16.vlgmr.msra.gmra.mxu1 %v11316_v17  ;;  %1169 = vmatpush2.bf16.msra.mxu0 %v9784_v53  ;;  %v9818_v17 = vld [vmem:[%s14579_s2 + $0x1a0] ss:$12 sps:$4 sm:$0xff]   ;;  %v1367_v53 = vld [vmem:[%s14581_s4 + $0xb0] sm:$0xff] }
  0x65   :  { %9394 = vmatpush3.bf16.msra.mxu1 %v9788_v54  ;;  %1170 = vmatprep.subr.bf16.mxu0 %v9791_v55  ;;  %v9834_v54 = vld [vmem:[%s14579_s2 + $0x3f8] ss:$12 sps:$4 sm:$0xff]   ;;  %v1366_v55 = vld [vmem:[%s14581_s4 + $0xa8] sm:$0xff] }
  0x66   :  { %9395 = vmatprep.subr.bf16.mxu1 %v9792_v57  ;;  %1265 = vmatprep.mubr.bf16.mxu1 %v11274_v3  ;;  %v9799_v3 = vld [vmem:[%s14579_s2 + $0x420] ss:$12 sps:$4 sm:$0xff]   ;;  %v1363_v57 = vld [vmem:[%s14581_s4 + $0x90] sm:$0xff] }
  0x68   :  { %1171 = vmatpush2.bf16.msra.mxu0 %v9789_v59  ;;  %v1361_v59 = vld [vmem:[%s14581_s4 + $0x80] sm:$0xff] }
  0x69   :  { %9396 = vmatpush3.bf16.msra.mxu1 %v9793_v60  ;;  %1172 = vmatprep.subr.bf16.mxu0 %v9796_v62  ;;  %v9836_v60 = vld [vmem:[%s14579_s2 + $0x3e0] ss:$12 sps:$4 sm:$0xff]  }
  0x6a   :  { %9397 = vmatprep.subr.bf16.mxu1 %v9797_v63  ;;  %v1358_v62 = vld [vmem:[%s14581_s4 + $0x68] sm:$0xff]  ;;  %v1357_v63 = vld [vmem:[%s14581_s4 + $0x60] sm:$0xff] }
  0x6c   :  { %1173 = vmatpush2.bf16.msra.mxu0 %v9794_v0  ;;  %v9837_v0 = vld [vmem:[%s14579_s2 + $0x320] ss:$12 sps:$4 sm:$0xff]  }
  0x6d   :  { %9398 = vmatpush3.bf16.msra.mxu1 %v9798_v1  ;;  %1174 = vmatprep.subr.bf16.mxu0 %v9801_v2  ;;  %v1355_v1 = vld [vmem:[%s14581_s4 + $0x50] sm:$0xff] }
  0x6e   :  { %9399 = vmatprep.subr.bf16.mxu1 %v9802_v4  ;;  %v9838_v2 = vld [vmem:[%s14579_s2 + $0x3c8] ss:$12 sps:$4 sm:$0xff]  }
  0x6f   :  { %v1354_v4 = vld [vmem:[%s14581_s4 + $0x48] sm:$0xff] }
  0x70   :  { %1175 = vmatpush2.bf16.msra.mxu0 %v9799_v3  ;;  %v1352_v3 = vld [vmem:[%s14581_s4 + $0x38] sm:$0xff] }
  0x71   :  { %9400 = vmatpush3.bf16.msra.mxu1 %v9803_v5  ;;  %1176 = vmatprep.subr.bf16.mxu0 %v9806_v6  ;;  %v1351_v5 = vld [vmem:[%s14581_s4 + $0x30] sm:$0xff] }
  0x72   :  { %9401 = vmatprep.subr.bf16.mxu1 %v9807_v7  ;;  %v9839_v6 = vld [vmem:[%s14579_s2 + $0x308] ss:$12 sps:$4 sm:$0xff]   ;;  %v1349_v7 = vld [vmem:[%s14581_s4 + $0x20] sm:$0xff] }
  0x74   :  { %1177 = vmatpush2.bf16.msra.mxu0 %v9804_v8  ;;  %v1348_v8 = vld [vmem:[%s14581_s4 + $0x18] sm:$0xff] }
  0x75   :  { %9402 = vmatpush3.bf16.msra.mxu1 %v9808_v9  ;;  %1178 = vmatprep.subr.bf16.mxu0 %v9811_v10  ;;  %v1346_v9 = vld [vmem:[%s14581_s4 + $0x8] sm:$0xff]  ;;  %v1345_v10 = vld [vmem:[%s14581_s4] sm:$0xff] }
  0x76   :  { %9403 = vmatprep.subr.bf16.mxu1 %v9812_v11  ;;  %v1415_v11 = vld [vmem:[%s14581_s4 + $0x230] sm:$0xff] }
  0x78   :  { %1179 = vmatpush2.bf16.msra.mxu0 %v9809_v12  ;;  %v1392_v12 = vld [vmem:[%s14581_s4 + $0x178] sm:$0xff] }
  0x79   :  { %9404 = vmatpush3.bf16.msra.mxu1 %v9813_v13  ;;  %1180 = vmatprep.subr.bf16.mxu0 %v9816_v14  ;;  %v1414_v13 = vld [vmem:[%s14581_s4 + $0x228] sm:$0xff]  ;;  %v1412_v14 = vld [vmem:[%s14581_s4 + $0x218] sm:$0xff] }
  0x7a   :  { %9405 = vmatprep.subr.bf16.mxu1 %v9817_v15  ;;  %v11012_v15 = vmov 0.0  }
  0x7c   :  { %1181 = vmatpush2.bf16.msra.mxu0 %v9814_v16  ;;  %v1389_v16 = vld [vmem:[%s14581_s4 + $0x160] sm:$0xff] }
  0x7d   :  { %9406 = vmatpush3.bf16.msra.mxu1 %v9818_v17  ;;  %1182 = vmatprep.subr.bf16.mxu0 %v9821_v19  ;;  %v1411_v17 = vld [vmem:[%s14581_s4 + $0x210] sm:$0xff]  ;;  %v1409_v19 = vld [vmem:[%s14581_s4 + $0x200] sm:$0xff] }
  0x7e   :  { %9407 = vmatprep.subr.bf16.mxu1 %v9822_v20  ;;  %v1386_v20 = vld [vmem:[%s14581_s4 + $0x148] sm:$0xff] }
  0x80   :  { %1183 = vmatpush2.bf16.msra.mxu0 %v9819_v21  ;;  %v1408_v21 = vld [vmem:[%s14581_s4 + $0x1f8] sm:$0xff] }
  0x81   :  { %9408 = vmatpush3.bf16.msra.mxu1 %v9823_v22  ;;  %9415 = vmatprep.subr.bf16.mxu0 %v9824_v23  ;;  %v1406_v22 = vld [vmem:[%s14581_s4 + $0x1e8] sm:$0xff]  ;;  %v1383_v23 = vld [vmem:[%s14581_s4 + $0x130] sm:$0xff] }
  0x82   :  { %1438 = vmatprep.subr.mxu1 %v1391_v24  ;;  %v1405_v24 = vld [vmem:[%s14581_s4 + $0x1e0] sm:$0xff] }
  0x83   :  { %1185 = vmatmul.mubr.bf16.vlgmr.msra.gmra.mxu0 %v11525_v25 }
  0x84   :  { %1266 = vmatmul.mubr.bf16.vlgmr.msra.gmra.mxu1 %v11318_v18  ;;  %9416 = vmatpush3.bf16.msra.mxu0 %v9825_v26  ;;  %v1384_v18 = vld [vmem:[%s14581_s4 + $0x138] sm:$0xff] }
  0x85   :  { %1439 = vmatpush1.msra.mxu1 %v1390_v28  ;;  %9417 = vmatprep.subr.bf16.mxu0 %v9826_v27  ;;  %v1380_v26 = vld [vmem:[%s14581_s4 + $0x118] sm:$0xff]  ;;  %v1402_v27 = vld [vmem:[%s14581_s4 + $0x1c8] sm:$0xff] }
  0x86   :  { %1440 = vmatprep.subr.mxu1 %v1388_v29  ;;  %1305 = vmatprep.mubr.bf16.mxu0 %v11441_v61  ;;  %v1360_v61 = vld [vmem:[%s14581_s4 + $0x78] sm:$0xff]  ;;  %v1377_v29 = vld [vmem:[%s14581_s4 + $0x100] sm:$0xff] }
  0x87   :  { %1441 = vmatpush1.msra.mxu1 %v1387_v30  ;;  %8557 = vmatprep.mubr.msk.f32.mxu1 %vm1434_vm0, %v11566_v36  ;;  %v1400_v28 = vld [vmem:[%s14581_s4 + $0x1b8] sm:$0xff]  ;;  %v1399_v30 = vld [vmem:[%s14581_s4 + $0x1b0] sm:$0xff] }
  0x88   :  { %1442 = vmatprep.subr.mxu1 %v1385_v32  ;;  %9418 = vmatpush3.bf16.msra.mxu0 %v9827_v31  ;;  %v1397_v31 = vld [vmem:[%s14581_s4 + $0x1a0] sm:$0xff]  ;;  %v1374_v32 = vld [vmem:[%s14581_s4 + $0xe8] sm:$0xff] }
  0x89   :  { %1443 = vmatpush1.msra.mxu1 %v1384_v18  ;;  %9419 = vmatprep.subr.bf16.mxu0 %v9828_v33  ;;  %v1396_v33 = vld [vmem:[%s14581_s4 + $0x198] sm:$0xff]  ;;  %v1394_v18 = vld [vmem:[%s14581_s4 + $0x188] sm:$0xff] }
  0x8a   :  { %1444 = vmatprep.subr.mxu1 %v1382_v34  ;;  %v1371_v34 = vld [vmem:[%s14581_s4 + $0xd0] sm:$0xff] }
  0x8b   :  { %1445 = vmatpush1.msra.mxu1 %v1381_v35  ;;  %v1393_v35 = vld [vmem:[%s14581_s4 + $0x180] sm:$0xff] }
  0x8c   :  { %1446 = vmatprep.subr.mxu1 %v1379_v40  ;;  %9420 = vmatpush3.bf16.msra.mxu0 %v9829_v37  ;;  %v1343_v37 = vld [vmem:[%s14578_s1] sm:$0xff] }
  0x8d   :  { %1447 = vmatpush1.msra.mxu1 %v1378_v41  ;;  %9421 = vmatprep.subr.bf16.mxu0 %v9830_v39  ;;  %v1368_v39 = vld [vmem:[%s14581_s4 + $0xb8] sm:$0xff]  ;;  %v1365_v40 = vld [vmem:[%s14581_s4 + $0xa0] sm:$0xff]  ;;  %v1362_v41 = vld [vmem:[%s14581_s4 + $0x88] sm:$0xff] }
  0x8e   :  { %1448 = vmatprep.subr.mxu1 %v1376_v42  ;;  %v1359_v42 = vld [vmem:[%s14581_s4 + $0x70] sm:$0xff] }
  0x8f   :  { %1449 = vmatpush1.msra.mxu1 %v1375_v44  ;;  %v1356_v44 = vld [vmem:[%s14581_s4 + $0x58] sm:$0xff] }
  0x90   :  { %1450 = vmatprep.subr.mxu1 %v1373_v46  ;;  %9422 = vmatpush3.bf16.msra.mxu0 %v9831_v45  ;;  %v1350_v45 = vld [vmem:[%s14581_s4 + $0x28] sm:$0xff]  ;;  %v1347_v46 = vld [vmem:[%s14581_s4 + $0x10] sm:$0xff] }
  0x91   :  { %1451 = vmatpush1.msra.mxu1 %v1372_v48  ;;  %9423 = vmatprep.subr.bf16.mxu0 %v9832_v47  ;;  %v1416_v47 = vld [vmem:[%s14581_s4 + $0x238] sm:$0xff]  ;;  %v1413_v48 = vld [vmem:[%s14581_s4 + $0x220] sm:$0xff] }
  0x92   :  { %1452 = vmatprep.subr.mxu1 %v1370_v50  ;;  %v1410_v50 = vld [vmem:[%s14581_s4 + $0x208] sm:$0xff] }
  0x93   :  { %1453 = vmatpush1.msra.mxu1 %v1369_v51  ;;  %v1407_v51 = vld [vmem:[%s14581_s4 + $0x1f0] sm:$0xff] }
  0x94   :  { %1454 = vmatprep.subr.mxu1 %v1367_v53  ;;  %9424 = vmatpush3.bf16.msra.mxu0 %v9833_v52  ;;  %v1404_v52 = vld [vmem:[%s14581_s4 + $0x1d8] sm:$0xff]  ;;  %v1401_v53 = vld [vmem:[%s14581_s4 + $0x1c0] sm:$0xff] }
  0x95   :  { %1455 = vmatpush1.msra.mxu1 %v1366_v55  ;;  %9425 = vmatprep.subr.bf16.mxu0 %v9834_v54  ;;  %v1398_v54 = vld [vmem:[%s14581_s4 + $0x1a8] sm:$0xff]  ;;  %v1395_v55 = vld [vmem:[%s14581_s4 + $0x190] sm:$0xff] }
  0x96   :  { %1456 = vmatprep.subr.mxu1 %v1364_v56  ;;  %v9840_v56 = vld [vmem:[%s14583_s6 + $0x150] ss:$24 sps:$4 sm:$0xff]  }
  0x97   :  { %1457 = vmatpush1.msra.mxu1 %v1363_v57  ;;  %v9842_v57 = vld [vmem:[%s14583_s6 + $0x154] ss:$24 sps:$4 sm:$0xff]  }
  0x98   :  { %1458 = vmatprep.subr.mxu1 %v1361_v59  ;;  %9426 = vmatpush3.bf16.msra.mxu0 %v9835_v58  ;;  %v9843_v58 = vld [vmem:[%s14583_s6 + $0x450] ss:$24 sps:$4 sm:$0xff]   ;;  %v9845_v59 = vld [vmem:[%s14583_s6 + $0x454] ss:$24 sps:$4 sm:$0xff]  }
  0x99   :  { %1459 = vmatpush1.msra.mxu1 %v1360_v61  ;;  %9427 = vmatprep.subr.bf16.mxu0 %v9836_v60  ;;  %v9848_v60 = vld [vmem:[%s14583_s6 + $0x124] ss:$24 sps:$4 sm:$0xff]  }
  0x9a   :  { %1460 = vmatprep.subr.mxu1 %v1358_v62  ;;  %v9851_v61 = vld [vmem:[%s14583_s6 + $0x424] ss:$24 sps:$4 sm:$0xff]   ;;  %v9846_v62 = vld [vmem:[%s14583_s6 + $0x120] ss:$24 sps:$4 sm:$0xff]  }
  0x9b   :  { %1461 = vmatpush1.msra.mxu1 %v1357_v63  ;;  %v9849_v63 = vld [vmem:[%s14583_s6 + $0x420] ss:$24 sps:$4 sm:$0xff]  }
  0x9c   :  { %1462 = vmatprep.subr.mxu1 %v1355_v1  ;;  %9428 = vmatpush3.bf16.msra.mxu0 %v9837_v0  ;;  %v9854_v0 = vld [vmem:[%s14583_s6 + $0xf4] ss:$24 sps:$4 sm:$0xff]   ;;  %v9852_v1 = vld [vmem:[%s14583_s6 + $0xf0] ss:$24 sps:$4 sm:$0xff]  }
  0x9d   :  { %1463 = vmatpush1.msra.mxu1 %v1354_v4  ;;  %9429 = vmatprep.subr.bf16.mxu0 %v9838_v2  ;;  %v9857_v2 = vld [vmem:[%s14583_s6 + $0x3f4] ss:$24 sps:$4 sm:$0xff]   ;;  %v9855_v4 = vld [vmem:[%s14583_s6 + $0x3f0] ss:$24 sps:$4 sm:$0xff]  }
  0x9e   :  { %1464 = vmatprep.subr.mxu1 %v1352_v3  ;;  %v9860_v3 = vld [vmem:[%s14583_s6 + $0xc4] ss:$24 sps:$4 sm:$0xff]  }
  0x9f   :  { %1465 = vmatpush1.msra.mxu1 %v1351_v5  ;;  %v9863_v5 = vld [vmem:[%s14583_s6 + $0x3c4] ss:$24 sps:$4 sm:$0xff]  }
  0xa0   :  { %1466 = vmatprep.subr.mxu1 %v1349_v7  ;;  %9430 = vmatpush3.bf16.msra.mxu0 %v9839_v6  ;;  %v9858_v6 = vld [vmem:[%s14583_s6 + $0xc0] ss:$24 sps:$4 sm:$0xff]  }
  0xa1   :  { %1467 = vmatpush1.msra.mxu1 %v1348_v8  ;;  %1509 = vmatprep.subr.mxu0 %v11012_v15  ;;  %v11873_v7 = vld [vmem:[%s14580_s3] sm:$0x7] }
  0xa2   :  { %1468 = vmatprep.subr.mxu1 %v1346_v9  ;;  %v9861_v8 = vld [vmem:[%s14583_s6 + $0x3c0] ss:$24 sps:$4 sm:$0xff]   ;;  %v9866_v9 = vld [vmem:[%s14583_s6 + $0x94] ss:$24 sps:$4 sm:$0xff]  }
  0xa3   :  { %1469 = vmatpush1.msra.mxu1 %v1345_v10  ;;  %1306 = vmatmul.mubr.bf16.vlgmr.msra.gmra.mxu0 %v11525_v25  ;;  %v1403_v25 = vld [vmem:[%s14581_s4 + $0x1d0] sm:$0xff]  ;;  %v11882_v10 = vsub.s32 0, %v11219_v43 }
  0xa4   :  { %1486 = vmatprep.subr.mxu1 %v1415_v11  ;;  %1510 = vmatpush1.msra.mxu0 %v1392_v12  ;;  %v11885_v11 = vsub.s32 1, %v11219_v43  ;;  %v9864_v12 = vld [vmem:[%s14583_s6 + $0x90] ss:$24 sps:$4 sm:$0xff]  }
  0xa5   :  { %1487 = vmatpush2.msra.mxu1 %v1414_v13  ;;  %1511 = vmatprep.subr.mxu0 %v11012_v15  ;;  %v9867_v13 = vld [vmem:[%s14583_s6 + $0x390] ss:$24 sps:$4 sm:$0xff]  }
  0xa6   :  { %1488 = vmatprep.subr.mxu1 %v1412_v14  ;;  %1512 = vmatpush1.msra.mxu0 %v1389_v16  ;;  %v9869_v14 = vld [vmem:[%s14583_s6 + $0x394] ss:$24 sps:$4 sm:$0xff]   ;;  %v290_v16 = vrot.slane %v11873_v7, %v11882_v10 }
  0xa7   :  { %1489 = vmatpush2.msra.mxu1 %v1411_v17  ;;  %1513 = vmatprep.subr.mxu0 %v11012_v15  ;;  %v294_v17 = vrot.slane %v11873_v7, %v11885_v11 }
  0xa8   :  { %1490 = vmatprep.subr.mxu1 %v1409_v19  ;;  %1514 = vmatpush1.msra.mxu0 %v1386_v20 }
  0xa9   :  { %1491 = vmatpush2.msra.mxu1 %v1408_v21  ;;  %1515 = vmatprep.subr.mxu0 %v11012_v15 }
  0xaa   :  { %1492 = vmatprep.subr.mxu1 %v1406_v22  ;;  %1516 = vmatpush1.msra.mxu0 %v1383_v23 }
  0xab   :  { %1493 = vmatpush2.msra.mxu1 %v1405_v24  ;;  %1517 = vmatprep.subr.mxu0 %v11012_v15  ;;  %v9870_v24 = vld [vmem:[%s14583_s6 + $0x60] ss:$24 sps:$4 sm:$0xff]  }
  0xac   :  { %1494 = vmatprep.subr.mxu1 %v1403_v25  ;;  %1518 = vmatpush1.msra.mxu0 %v1380_v26  ;;  %v9872_v25 = vld [vmem:[%s14583_s6 + $0x64] ss:$24 sps:$4 sm:$0xff]   ;;  %v9873_v26 = vld [vmem:[%s14583_s6 + $0x360] ss:$24 sps:$4 sm:$0xff]  }
  0xad   :  { %1495 = vmatpush2.msra.mxu1 %v1402_v27  ;;  %1519 = vmatprep.subr.mxu0 %v11012_v15 }
  0xae   :  { %1496 = vmatprep.subr.mxu1 %v1400_v28  ;;  %1520 = vmatpush1.msra.mxu0 %v1377_v29  ;;  %v9875_v29 = vld [vmem:[%s14583_s6 + $0x364] ss:$24 sps:$4 sm:$0xff]  }
  0xaf   :  { %1497 = vmatpush2.msra.mxu1 %v1399_v30  ;;  %1521 = vmatprep.subr.mxu0 %v11012_v15  ;;  %v9876_v30 = vld [vmem:[%s14583_s6 + $0x30] ss:$24 sps:$4 sm:$0xff]  }
  0xb0   :  { %1498 = vmatprep.subr.mxu1 %v1397_v31  ;;  %1522 = vmatpush1.msra.mxu0 %v1374_v32  ;;  %v9878_v31 = vld [vmem:[%s14583_s6 + $0x34] ss:$24 sps:$4 sm:$0xff]  }
  0xb1   :  { %1499 = vmatpush2.msra.mxu1 %v1396_v33  ;;  %1523 = vmatprep.subr.mxu0 %v11012_v15 }
  0xb2   :  { %1500 = vmatprep.subr.mxu1 %v1394_v18  ;;  %1524 = vmatpush1.msra.mxu0 %v1371_v34  ;;  %v9879_v18 = vld [vmem:[%s14583_s6 + $0x330] ss:$24 sps:$4 sm:$0xff]   ;;  %v9881_v34 = vld [vmem:[%s14583_s6 + $0x334] ss:$24 sps:$4 sm:$0xff]  }
  0xb3   :  { %1501 = vmatpush2.msra.mxu1 %v1393_v35  ;;  %1525 = vmatprep.subr.mxu0 %v11012_v15 }
  0xb4   :  { %1503 = vmatmul.mubr.f32.vlgmr.msra.gmra.mxu1 %v1343_v37  ;;  %1526 = vmatpush1.msra.mxu0 %v1368_v39 }
  0xb5   :  { %8558 = vmatprep.mubr.msk.f32.mxu0 %vm1434_vm0, %v11566_v36  ;;  %1527 = vmatprep.subr.mxu0 %v11012_v15  ;;  %v1353_v36 = vld [vmem:[%s14581_s4 + $0x40] sm:$0xff] }
  0xb6   :  { %1528 = vmatpush1.msra.mxu0 %v1365_v40  ;;  %3479 = vmatprep.subr.bf16.mxu1 %v9842_v57  ;;  %v9884_v40 = vld [vmem:[%s14583_s6 + $0x4] ss:$24 sps:$4 sm:$0xff]  }
  0xb7   :  { %1529 = vmatprep.subr.mxu0 %v11012_v15  ;;  %3480 = vmatpush1.bf16.msra.mxu1 %v9840_v56  ;;  %v9903_v56 = vld [vmem:[%s14583_s6 + $0x570] ss:$24 sps:$4 sm:$0xff]   ;;  %v9908_v57 = vld [vmem:[%s14583_s6 + $0x244] ss:$24 sps:$4 sm:$0xff]  }
  0xb8   :  { %1530 = vmatpush1.msra.mxu0 %v1362_v41  ;;  %3481 = vmatprep.subr.bf16.mxu1 %v9848_v60  ;;  %v9882_v41 = vld [vmem:[%s14583_s6] ss:$24 sps:$4 sm:$0xff]   ;;  %v9911_v60 = vld [vmem:[%s14583_s6 + $0x544] ss:$24 sps:$4 sm:$0xff]  }
  0xb9   :  { %1531 = vmatprep.subr.mxu0 %v11012_v15 }
  0xba   :  { %1532 = vmatpush1.msra.mxu0 %v1359_v42  ;;  %v9887_v42 = vld [vmem:[%s14583_s6 + $0x304] ss:$24 sps:$4 sm:$0xff]  }
  0xbb   :  { %1533 = vmatprep.subr.mxu0 %v11012_v15  ;;  %3482 = vmatpush1.bf16.msra.mxu1 %v9846_v62 }
  0xbc   :  { %1534 = vmatpush1.msra.mxu0 %v1356_v44  ;;  %3483 = vmatprep.subr.bf16.mxu1 %v9854_v0  ;;  %v9885_v44 = vld [vmem:[%s14583_s6 + $0x300] ss:$24 sps:$4 sm:$0xff]   ;;  %v9912_v0 = vld [vmem:[%s14583_s6 + $0x210] ss:$24 sps:$4 sm:$0xff]  }
  0xbd   :  { %1535 = vmatprep.subr.mxu0 %v11012_v15 }
  0xbe   :  { %1536 = vmatpush1.msra.mxu0 %v1353_v36  ;;  %v9890_v36 = vld [vmem:[%s14583_s6 + $0x2d4] ss:$24 sps:$4 sm:$0xff]  }
  0xbf   :  { %1537 = vmatprep.subr.mxu0 %v11012_v15  ;;  %3484 = vmatpush1.bf16.msra.mxu1 %v9852_v1 }
  0xc0   :  { %1538 = vmatpush1.msra.mxu0 %v1350_v45  ;;  %3485 = vmatprep.subr.bf16.mxu1 %v9860_v3  ;;  %v9888_v45 = vld [vmem:[%s14583_s6 + $0x2d0] ss:$24 sps:$4 sm:$0xff]  }
  0xc1   :  { %1539 = vmatprep.subr.mxu0 %v11012_v15 }
  0xc2   :  { %1540 = vmatpush1.msra.mxu0 %v1347_v46  ;;  %v9893_v46 = vld [vmem:[%s14583_s6 + $0x5d4] ss:$24 sps:$4 sm:$0xff]  }
  0xc3   :  { %1557 = vmatprep.subr.mxu0 %v11012_v15  ;;  %3486 = vmatpush1.bf16.msra.mxu1 %v9858_v6  ;;  %v9920_v6 = vld [vmem:[%s14583_s6 + $0x1e4] ss:$24 sps:$4 sm:$0xff]  }
  0xc4   :  { %1558 = vmatpush2.msra.mxu0 %v1416_v47  ;;  %3487 = vmatprep.subr.bf16.mxu1 %v9866_v9  ;;  %v9891_v47 = vld [vmem:[%s14583_s6 + $0x5d0] ss:$24 sps:$4 sm:$0xff]   ;;  %v9923_v9 = vld [vmem:[%s14583_s6 + $0x4e4] ss:$24 sps:$4 sm:$0xff]  }
  0xc5   :  { %1559 = vmatprep.subr.mxu0 %v11012_v15 }
  0xc6   :  { %1560 = vmatpush2.msra.mxu0 %v1413_v48  ;;  %v9896_v48 = vld [vmem:[%s14583_s6 + $0x2a4] ss:$24 sps:$4 sm:$0xff]  }
  0xc7   :  { %1561 = vmatprep.subr.mxu0 %v11012_v15  ;;  %3488 = vmatpush1.bf16.msra.mxu1 %v9864_v12  ;;  %v9926_v12 = vld [vmem:[%s14583_s6 + $0x1b4] ss:$24 sps:$4 sm:$0xff]  }
  0xc8   :  { %1562 = vmatpush2.msra.mxu0 %v1410_v50  ;;  %3489 = vmatprep.subr.bf16.mxu1 %v9872_v25  ;;  %v9894_v50 = vld [vmem:[%s14583_s6 + $0x2a0] ss:$24 sps:$4 sm:$0xff]  }
  0xc9   :  { %1563 = vmatprep.subr.mxu0 %v11012_v15 }
  0xca   :  { %1564 = vmatpush2.msra.mxu0 %v1407_v51  ;;  %v9899_v51 = vld [vmem:[%s14583_s6 + $0x5a4] ss:$24 sps:$4 sm:$0xff]  }
  0xcb   :  { %1565 = vmatprep.subr.mxu0 %v11012_v15  ;;  %3490 = vmatpush1.bf16.msra.mxu1 %v9870_v24 }
  0xcc   :  { %1566 = vmatpush2.msra.mxu0 %v1404_v52  ;;  %3491 = vmatprep.subr.bf16.mxu1 %v9878_v31  ;;  %v9897_v52 = vld [vmem:[%s14583_s6 + $0x5a0] ss:$24 sps:$4 sm:$0xff]  }
  0xcd   :  { %1567 = vmatprep.subr.mxu0 %v11012_v15 }
  0xce   :  { %1568 = vmatpush2.msra.mxu0 %v1401_v53  ;;  %v9902_v53 = vld [vmem:[%s14583_s6 + $0x274] ss:$24 sps:$4 sm:$0xff]  }
  0xcf   :  { %1569 = vmatprep.subr.mxu0 %v11012_v15  ;;  %3492 = vmatpush1.bf16.msra.mxu1 %v9876_v30 }
  0xd0   :  { %1570 = vmatpush2.msra.mxu0 %v1398_v54  ;;  %3493 = vmatprep.subr.bf16.mxu1 %v9884_v40  ;;  %v9900_v54 = vld [vmem:[%s14583_s6 + $0x270] ss:$24 sps:$4 sm:$0xff]  }
  0xd1   :  { %1571 = vmatprep.subr.mxu0 %v11012_v15 }
  0xd2   :  { %1572 = vmatpush2.msra.mxu0 %v1395_v55  ;;  %v9905_v55 = vld [vmem:[%s14583_s6 + $0x574] ss:$24 sps:$4 sm:$0xff]  }
  0xd3   :  { %1574 = vmatmul.mubr.f32.vlgmr.msra.gmra.mxu0 %v1343_v37  ;;  %3520 = vmatprep.subr.bf16.mxu0 %v9845_v59 }
  0xd4   :  { %3521 = vmatpush1.bf16.msra.mxu0 %v9843_v58  ;;  %3494 = vmatpush1.bf16.msra.mxu1 %v9882_v41  ;;  %v9906_v58 = vld [vmem:[%s14583_s6 + $0x240] ss:$24 sps:$4 sm:$0xff]  }
  0xd5   :  { %3522 = vmatprep.subr.bf16.mxu0 %v9851_v61  ;;  %3495 = vmatprep.subr.bf16.mxu1 %v9890_v36  ;;  %v9909_v61 = vld [vmem:[%s14583_s6 + $0x540] ss:$24 sps:$4 sm:$0xff]  }
  0xd8   :  { %3523 = vmatpush1.bf16.msra.mxu0 %v9849_v63  ;;  %3496 = vmatpush2.bf16.msra.mxu1 %v9888_v45  ;;  %v9914_v63 = vld [vmem:[%s14583_s6 + $0x214] ss:$24 sps:$4 sm:$0xff]  }
  0xd9   :  { %3524 = vmatprep.subr.bf16.mxu0 %v9857_v2  ;;  %3497 = vmatprep.subr.bf16.mxu1 %v9896_v48  ;;  %v9917_v2 = vld [vmem:[%s14583_s6 + $0x514] ss:$24 sps:$4 sm:$0xff]  }
  0xdc   :  { %3525 = vmatpush1.bf16.msra.mxu0 %v9855_v4  ;;  %3498 = vmatpush2.bf16.msra.mxu1 %v9894_v50  ;;  %v9915_v4 = vld [vmem:[%s14583_s6 + $0x510] ss:$24 sps:$4 sm:$0xff]  }
  0xdd   :  { %3526 = vmatprep.subr.bf16.mxu0 %v9863_v5  ;;  %3499 = vmatprep.subr.bf16.mxu1 %v9902_v53  ;;  %v9918_v5 = vld [vmem:[%s14583_s6 + $0x1e0] ss:$24 sps:$4 sm:$0xff]  }
  0xe0   :  { %3527 = vmatpush1.bf16.msra.mxu0 %v9861_v8  ;;  %3500 = vmatpush2.bf16.msra.mxu1 %v9900_v54  ;;  %v9921_v8 = vld [vmem:[%s14583_s6 + $0x4e0] ss:$24 sps:$4 sm:$0xff]  }
  0xe1   :  { %3528 = vmatprep.subr.bf16.mxu0 %v9869_v14  ;;  %3501 = vmatprep.subr.bf16.mxu1 %v9908_v57  ;;  %v9924_v14 = vld [vmem:[%s14583_s6 + $0x1b0] ss:$24 sps:$4 sm:$0xff]  }
  0xe4   :  { %3529 = vmatpush1.bf16.msra.mxu0 %v9867_v13  ;;  %3502 = vmatpush2.bf16.msra.mxu1 %v9906_v58  ;;  %v9929_v13 = vld [vmem:[%s14583_s6 + $0x4b4] ss:$24 sps:$4 sm:$0xff]  }
  0xe5   :  { %3530 = vmatprep.subr.bf16.mxu0 %v9875_v29  ;;  %3503 = vmatprep.subr.bf16.mxu1 %v9914_v63 }
  0xe8   :  { %3531 = vmatpush1.bf16.msra.mxu0 %v9873_v26  ;;  %3504 = vmatpush2.bf16.msra.mxu1 %v9912_v0 }
  0xe9   :  { %3532 = vmatprep.subr.bf16.mxu0 %v9881_v34  ;;  %3505 = vmatprep.subr.bf16.mxu1 %v9920_v6 }
  0xec   :  { %3533 = vmatpush1.bf16.msra.mxu0 %v9879_v18  ;;  %3506 = vmatpush2.bf16.msra.mxu1 %v9918_v5 }
  0xed   :  { %3534 = vmatprep.subr.bf16.mxu0 %v9887_v42  ;;  %3507 = vmatprep.subr.bf16.mxu1 %v9926_v12  ;;  %v12047_v42 = vsub.s32 2, %v11219_v43 }
  0xf0   :  { %3535 = vmatpush1.bf16.msra.mxu0 %v9885_v44  ;;  %3508 = vmatpush2.bf16.msra.mxu1 %v9924_v14 }
  0xf1   :  { %3536 = vmatprep.subr.bf16.mxu0 %v9893_v46 }
  0xf4   :  { %3537 = vmatpush2.bf16.msra.mxu0 %v9891_v47 }
  0xf5   :  { %3538 = vmatprep.subr.bf16.mxu0 %v9899_v51 }
  0xf8   :  { %3539 = vmatpush2.bf16.msra.mxu0 %v9897_v52 }
  0xf9   :  { %3540 = vmatprep.subr.bf16.mxu0 %v9905_v55 }
  0xfc   :  { %3541 = vmatpush2.bf16.msra.mxu0 %v9903_v56 }
  0xfd   :  { %3542 = vmatprep.subr.bf16.mxu0 %v9911_v60 }
 0x100   :  { %3543 = vmatpush2.bf16.msra.mxu0 %v9909_v61 }
 0x101   :  { %3544 = vmatprep.subr.bf16.mxu0 %v9917_v2 }
 0x103   :  { %v1104_v19 = vpop.f32.mrf.mxu0 }
 0x104   :  { %v1145_v20 = vpop.f32.mrf.mxu1  ;;  %v1105_v21 = vadd.f32 %v1104_v19, %v290_v16  ;;  %3545 = vmatpush2.bf16.msra.mxu0 %v9915_v4  ;;  %v9927_v16 = vld [vmem:[%s14583_s6 + $0x4b0] ss:$24 sps:$4 sm:$0xff]   ;;  %v9935_v19 = vld [vmem:[%s14583_s6 + $0x484] ss:$24 sps:$4 sm:$0xff]  }
 0x105   :  { %v1106_v22 = vpop.f32.mrf.mxu0  ;;  %3546 = vmatprep.subr.bf16.mxu0 %v9923_v9 }
 0x106   :  { %v1147_v23 = vpop.f32.mrf.mxu1  ;;  %v1107_v27 = vadd.f32 %v1106_v22, %v294_v17  ;;  %v11909_v28 = vadd.f32 %v1145_v20, %v1105_v21  ;;  %v9932_v17 = vld [vmem:[%s14583_s6 + $0x184] ss:$24 sps:$4 sm:$0xff]   ;;  %v9930_v20 = vld [vmem:[%s14583_s6 + $0x180] ss:$24 sps:$4 sm:$0xff]   ;;  %v9938_v22 = vld [vmem:[%s14583_s6 + $0x754] ss:$24 sps:$4 sm:$0xff]  }
 0x107   :  { %v1108_v32 = vpop.f32.mrf.mxu0  ;;  %v9933_v21 = vld [vmem:[%s14583_s6 + $0x480] ss:$24 sps:$4 sm:$0xff]   ;;  %3509 = vmatprep.subr.bf16.mxu1 %v9932_v17 }
 0x108   :  { %v1149_v33 = vpop.f32.mrf.mxu1  ;;  %v11926_v35 = vadd.f32 %v1147_v23, %v1107_v27  ;;  %3547 = vmatpush2.bf16.msra.mxu0 %v9921_v8  ;;  %3510 = vmatpush2.bf16.msra.mxu1 %v9930_v20  ;;  %v9942_v23 = vld [vmem:[%s14583_s6 + $0x15c] ss:$24 sps:$4 sm:$0xff]  }
 0x109   :  { %v1109_v37 = vpop.f32.mrf.mxu0  ;;  %3548 = vmatprep.subr.bf16.mxu0 %v9929_v13  ;;  %3561 = vmatprep.subr.bf16.mxu1 %v9938_v22 }
 0x10a   :  { %v1150_v39 = vpop.f32.mrf.mxu1 }
 0x10c   :  { %3549 = vmatpush2.bf16.msra.mxu0 %v9927_v16  ;;  %v11013_v16 = vmov 1966171168  }
 0x10d   :  { %3550 = vmatprep.subr.bf16.mxu0 %v9935_v19  ;;  %v1623_v17 = vunpack.c.l.s4 %v11013_v16 }
 0x110   :  { %3551 = vmatpush2.bf16.msra.mxu0 %v9933_v21 }
 0x111   :  { %3602 = vmatprep.subr.bf16.mxu0 %v9942_v23 }
 0x124   :  { %v11982_v59 = vpop.f32.mrf.mxu1 }
 0x126   :  { %v9388_v62 = vpop.f32.mrf.mxu1 }
 0x127   :  { %v9389_v44 = vadd.f32 %v9388_v62, %v11982_v59 }
 0x128   :  { %v9390_v1 = vpop.f32.mrf.mxu1 }
 0x12a   :  { %v9391_v3 = vpop.f32.mrf.mxu1 }
 0x143   :  { %v1186_v24 = vpop.f32.mrf.mxu0 }
 0x144   :  { %v9409_v25 = vpop.f32.mrf.mxu1  ;;  %v1187_v26 = vadd.f32 %v1186_v24, %v11909_v28  ;;  %v298_v28 = vrot.slane %v11873_v7, %v12047_v42  ;;  %v1417_v7 = vld [vmem:[%s14582_s5] sm:$0x7] }
 0x145   :  { %v1188_v27 = vpop.f32.mrf.mxu0  ;;  %v1422_v59 = vrot.slane %v1417_v7, %v11882_v10  ;;  %v1426_v60 = vrot.slane %v1417_v7, %v11885_v11  ;;  %v1430_v6 = vrot.slane %v1417_v7, %v12047_v42 }
 0x146   :  { %v9410_v29 = vpop.f32.mrf.mxu1  ;;  %v1316_v30 = vmul.f32 0.1, %v1187_v26  ;;  %v1189_v31 = vadd.f32 %v1188_v27, %v11926_v35  ;;  %vm1313_vm1 = vcmp.ge.f32.partialorder %v1187_v26, 0.0  ;;  %v1228_v36 = vadd.f32 %v9389_v44, %v298_v28 }
 0x147   :  { %v1190_v32 = vpop.f32.mrf.mxu0  ;;  %v9411_v35 = vadd.f32 %v9410_v29, %v9409_v25 }
 0x148   :  { %v9412_v33 = vpop.f32.mrf.mxu1  ;;  %vm1314_vm2 = vcmp.ge.f32.partialorder %v1189_v31, 0.0  ;;  %v1317_v18 = vmul.f32 0.1, %v1189_v31  ;;  %v1319_v39 = vsel %vm1313_vm1, %v1187_v26, %v1316_v30  ;;  %v1624_v26 = vunpack.c.0.s8 %v1623_v17 }
 0x149   :  { %v1191_v34 = vpop.f32.mrf.mxu0  ;;  %v1268_v47 = vadd.f32 %v9411_v35, %v1228_v36 }
 0x14a   :  { %v9413_v37 = vpop.f32.mrf.mxu1  ;;  %v1320_v40 = vsel %vm1314_vm2, %v1189_v31, %v1317_v18  ;;  %v1627_v18 = vsub.s32 %v1624_v26, %v11219_v43 }
 0x14b   :  { %v1325_v41 = vcombine.low %v1319_v39, %v1320_v40  ;;  %v12065_v40 = vsub.s32 3, %v11219_v43 }
 0x14d   :  { %v1332_v55 = vrot.slane %v1325_v41, %v11237_v49  ;;  %v3901_v41 = vld [vmem:[%s14585_s8] sm:$0x3f] }
 0x14e   :  { %v3906_v36 = vrot.slane %v3901_v41, %v11882_v10  ;;  %v3910_v35 = vrot.slane %v3901_v41, %v11885_v11 }
 0x163   :  { %v9431_v45 = vpop.f32.mrf.mxu0 }
 0x165   :  { %v9432_v46 = vpop.f32.mrf.mxu0 }
 0x166   :  { %v9433_v48 = vadd.f32 %v9432_v46, %v9431_v45  ;;  %v3914_v45 = vrot.slane %v3901_v41, %v12047_v42 }
 0x167   :  { %v9434_v50 = vpop.f32.mrf.mxu0 }
 0x168   :  { %v1308_v51 = vadd.f32 %v9433_v48, %v1268_v47  ;;  %v3918_v50 = vrot.slane %v3901_v41, %v12065_v40 }
 0x169   :  { %v9435_v52 = vpop.f32.mrf.mxu0 }
 0x16a   :  { %vm1315_vm3 = vcmp.ge.f32.partialorder %v1308_v51, 0.0  ;;  %v1318_v53 = vmul.f32 0.1, %v1308_v51  ;;  %v12078_v52 = vsub.s32 4, %v11219_v43 }
 0x16c   :  { %v1321_v54 = vsel %vm1315_vm3, %v1308_v51, %v1318_v53  ;;  %v3956_v51 = vld [vmem:[%s14586_s9] sm:$0x3f]  ;;  %v12081_v53 = vsub.s32 5, %v11219_v43  ;;  %v3927_v43 = vcombine.low %v3906_v36, %v3910_v35 }
 0x16d   :  { %v1339_v56 = vrot.slane %v1321_v54, %v11237_v49  ;;  %v3961_v7 = vrot.slane %v3956_v51, %v11882_v10  ;;  %v9945_v36 = vld [vmem:[%s14583_s6 + $0x724] ss:$24 sps:$4 sm:$0xff]  }
 0x16e   :  { %v3926_v38 = vrot.slane %v3901_v41, %v12081_v53 }
 0x16f   :  { %v1340_v57 = vcombine.low %v1332_v55, %v1339_v56  ;;  %v9954_v56 = vld [vmem:[%s14583_s6 + $0xfc] ss:$24 sps:$4 sm:$0xff]  }
 0x171   :  { %1342 = vst [vmem:[%s14591_s14] sm:$0x3f] %v1340_v57 }
 0x174   :  { %v1504_v58 = vpop.f32.mrf.mxu1 }
 0x175   :  { %v1505_v62 = vadd.f32 %v1504_v58, %v1422_v59  ;;  %v3965_v58 = vrot.slane %v3956_v51, %v11885_v11  ;;  %v3969_v59 = vrot.slane %v3956_v51, %v12047_v42 }
 0x176   :  { %v1506_v61 = vpop.f32.mrf.mxu1 }
 0x177   :  { %v1507_v63 = vadd.f32 %v1506_v61, %v1426_v60  ;;  %v1582_v0 = vmul.f32 0.1, %v1505_v62  ;;  %vm1579_vm4 = vcmp.ge.f32.partialorder %v1505_v62, 0.0  ;;  %v3973_v60 = vrot.slane %v3956_v51, %v12065_v40 }
 0x179   :  { %v1583_v1 = vmul.f32 0.1, %v1507_v63  ;;  %vm1580_vm5 = vcmp.ge.f32.partialorder %v1507_v63, 0.0  ;;  %v1585_v2 = vsel %vm1579_vm4, %v1505_v62, %v1582_v0  ;;  %v3922_v0 = vrot.slane %v3901_v41, %v12078_v52  ;;  %v9940_v41 = vld [vmem:[%s14583_s6 + $0x158] ss:$24 sps:$4 sm:$0xff]  }
 0x17a   :  { %v1591_v3 = vrot.slane %v1585_v2, 1  ;;  %v1600_v9 = vrot.slane %v1585_v2, 2  ;;  %v1609_v21 = vrot.slane %v1585_v2, 3 }
 0x17b   :  { %v1586_v4 = vsel %vm1580_vm5, %v1507_v63, %v1583_v1  ;;  %v3928_v63 = vcombine.low %v3914_v45, %v3918_v50  ;;  %v9943_v50 = vld [vmem:[%s14583_s6 + $0x720] ss:$24 sps:$4 sm:$0xff]  }
 0x17c   :  { %v1592_v5 = vrot.slane %v1586_v4, 1  ;;  %v1597_v8 = vmax.f32 %v1585_v2, %v1591_v3  ;;  %v1601_v13 = vrot.slane %v1586_v4, 2  ;;  %v1610_v23 = vrot.slane %v1586_v4, 3 }
 0x17d   :  { %v3982_v2 = vcombine.low %v3961_v7, %v3965_v58  ;;  %v3977_v3 = vrot.slane %v3956_v51, %v12078_v52  ;;  %v9957_v7 = vld [vmem:[%s14583_s6 + $0x6c4] ss:$24 sps:$4 sm:$0xff]   ;;  %v9952_v58 = vld [vmem:[%s14583_s6 + $0xf8] ss:$24 sps:$4 sm:$0xff]  }
 0x17e   :  { %v1598_v12 = vmax.f32 %v1586_v4, %v1592_v5  ;;  %v1606_v20 = vmax.f32 %v1597_v8, %v1600_v9  ;;  %v3983_v4 = vcombine.low %v3969_v59, %v3973_v60  ;;  %v3981_v5 = vrot.slane %v3956_v51, %v12081_v53  ;;  %v9960_v59 = vld [vmem:[%s14583_s6 + $0xcc] ss:$24 sps:$4 sm:$0xff]   ;;  %v9955_v60 = vld [vmem:[%s14583_s6 + $0x6c0] ss:$24 sps:$4 sm:$0xff]  }
 0x17f   :  { %v3942_v8 = vrot.slane %v3928_v63, %v11237_v49  ;;  %v3944_v9 = vcombine.low %v3922_v0, %v3926_v38  ;;  %v9966_v63 = vld [vmem:[%s14583_s6 + $0x9c] ss:$24 sps:$4 sm:$0xff]   ;;  %v9964_v0 = vld [vmem:[%s14583_s6 + $0x98] ss:$24 sps:$4 sm:$0xff]  }
 0x180   :  { %v1607_v22 = vmax.f32 %v1598_v12, %v1601_v13  ;;  %v1615_v29 = vmax.f32 %v1606_v20, %v1609_v21  ;;  %v3990_v12 = vrot.slane %v3982_v2, %v11237_v49  ;;  %v3997_v13 = vrot.slane %v3983_v4, %v11237_v49  ;;  %v9969_v38 = vld [vmem:[%s14583_s6 + $0x664] ss:$24 sps:$4 sm:$0xff]   ;;  %v9970_v4 = vld [vmem:[%s14583_s6 + $0x68] ss:$24 sps:$4 sm:$0xff]  }
 0x181   :  { %v3951_v17 = vrot.slane %v3944_v9, %v11237_v49  ;;  %v9972_v2 = vld [vmem:[%s14583_s6 + $0x6c] ss:$24 sps:$4 sm:$0xff]  }
 0x182   :  { %v1616_v30 = vmax.f32 %v1607_v22, %v1610_v23  ;;  %v3998_v21 = vcombine.low %v3990_v12, %v3997_v13  ;;  %v9981_v9 = vld [vmem:[%s14583_s6 + $0x604] ss:$24 sps:$4 sm:$0xff]   ;;  %v9979_v12 = vld [vmem:[%s14583_s6 + $0x600] ss:$24 sps:$4 sm:$0xff]  }
 0x183   :  { %v9984_v13 = vld [vmem:[%s14583_s6 + $0xc] ss:$24 sps:$4 sm:$0xff]  }
 0x184   :  { %v1621_v34 = vcombine.low %v1615_v29, %v1616_v30  ;;  %v1651_v28 = vcombine.high %v1615_v29, %v1616_v30 }
 0x186   :  { %v1628_v46 = vrot.slane %v1621_v34, %v1627_v18  ;;  %v1659_v54 = vrot.slane %v1651_v28, %v1627_v18  ;;  %v9936_v34 = vld [vmem:[%s14583_s6 + $0x750] ss:$24 sps:$4 sm:$0xff]  }
 0x193   :  { %v1575_v14 = vpop.f32.mrf.mxu0 }
 0x194   :  { %v1576_v19 = vadd.f32 %v1575_v14, %v1430_v6  ;;  %v3935_v6 = vrot.slane %v3927_v43, %v11237_v49  ;;  %v3999_v14 = vcombine.low %v3977_v3, %v3981_v5  ;;  %v9961_v43 = vld [vmem:[%s14583_s6 + $0x690] ss:$24 sps:$4 sm:$0xff]   ;;  %v9975_v3 = vld [vmem:[%s14583_s6 + $0x634] ss:$24 sps:$4 sm:$0xff]  }
 0x195   :  { %v1577_v24 = vpop.f32.mrf.mxu0  ;;  %v9973_v5 = vld [vmem:[%s14583_s6 + $0x630] ss:$24 sps:$4 sm:$0xff]  }
 0x196   :  { %vm1581_vm6 = vcmp.ge.f32.partialorder %v1576_v19, 0.0  ;;  %v1584_v25 = vmul.f32 0.1, %v1576_v19  ;;  %v3943_v16 = vcombine.low %v3935_v6, %v3942_v8  ;;  %v4006_v22 = vrot.slane %v3999_v14, %v11237_v49  ;;  %v9978_v6 = vld [vmem:[%s14583_s6 + $0x3c] ss:$24 sps:$4 sm:$0xff]  }
 0x197   :  { %v9976_v8 = vld [vmem:[%s14583_s6 + $0x38] ss:$24 sps:$4 sm:$0xff]   ;;  %v9982_v14 = vld [vmem:[%s14583_s6 + $0x8] ss:$24 sps:$4 sm:$0xff]  }
 0x198   :  { %v1587_v27 = vsel %vm1581_vm6, %v1576_v19, %v1584_v25 }
 0x199   :  { %v1593_v31 = vrot.slane %v1587_v27, 1  ;;  %v1602_v33 = vrot.slane %v1587_v27, 2  ;;  %v1611_v39 = vrot.slane %v1587_v27, 3 }
 0x19b   :  { %v1599_v32 = vmax.f32 %v1587_v27, %v1593_v31 }
 0x19d   :  { %v1608_v37 = vmax.f32 %v1599_v32, %v1602_v33 }
 0x19f   :  { %v1617_v44 = vmax.f32 %v1608_v37, %v1611_v39 }
 0x1a1   :  { %v1635_v47 = vrot.slane %v1617_v44, %v1627_v18  ;;  %v1652_v48 = vcombine.high %v1617_v44, %v1617_v44 }
 0x1a3   :  { %v1636_v55 = vcombine.low %v1628_v46, %v1635_v47  ;;  %v1666_v57 = vrot.slane %v1652_v48, %v1627_v18  ;;  %v9948_v47 = vld [vmem:[%s14583_s6 + $0x12c] ss:$24 sps:$4 sm:$0xff]  }
 0x1a5   :  { %v1643_v61 = vrot.slane %v1636_v55, %v1627_v18  ;;  %v1667_v62 = vcombine.low %v1659_v54, %v1666_v57  ;;  %v9951_v54 = vld [vmem:[%s14583_s6 + $0x6f4] ss:$24 sps:$4 sm:$0xff]   ;;  %v9946_v55 = vld [vmem:[%s14583_s6 + $0x128] ss:$24 sps:$4 sm:$0xff]  }
 0x1a6   :  { %v9949_v57 = vld [vmem:[%s14583_s6 + $0x6f0] ss:$24 sps:$4 sm:$0xff]  }
 0x1a7   :  { %8559 = vst.msk [vmem:[%s14591_s14 + $0x6] ss:$2 sm:$0x7] %vm12084_vm7, %v1643_v61  ;;  %v1674_v1 = vrot.slane %v1667_v62, %v1627_v18  ;;  %v9958_v61 = vld [vmem:[%s14583_s6 + $0xc8] ss:$24 sps:$4 sm:$0xff]  }
 0x1a8   :  { %v9963_v62 = vld [vmem:[%s14583_s6 + $0x694] ss:$24 sps:$4 sm:$0xff]  }
 0x1a9   :  { %8560 = vst.msk [vmem:[%s14591_s14 + $0x7] ss:$2 sm:$0x7] %vm12084_vm7, %v1674_v1  ;;  %v9967_v1 = vld [vmem:[%s14583_s6 + $0x660] ss:$24 sps:$4 sm:$0xff]  }
 0x1b0   :  { %v1678_v19 = vld [vmem:[%s14591_s14] sm:$0xff]  ;;  %v1679_v20 = vld [vmem:[%s14591_s14 + $0x8] sm:$0xf] }
 0x1b1   :  { %v1689_v23 = vrot.slane %v1678_v19, %v11237_v49  ;;  %v1682_v24 = vcombine.high %v1678_v19, %v1678_v19  ;;  %v12120_v25 = vrot.slane %v1679_v20, %v11237_v49  ;;  %v3954_v26 = vmul.f32 %v3943_v16, %v1678_v19  ;;  %v9987_v16 = vld [vmem:[%s14583_s6 + $0x8d4] ss:$24 sps:$4 sm:$0xff]  }
 0x1b2   :  { %v3955_v27 = vmul.f32 %v3951_v17, %v1679_v20  ;;  %v9985_v17 = vld [vmem:[%s14583_s6 + $0x8d0] ss:$24 sps:$4 sm:$0xff]   ;;  %v9990_v19 = vld [vmem:[%s14583_s6 + $0x2dc] ss:$24 sps:$4 sm:$0xff]  }
 0x1b3   :  { %v1697_v29 = vcombine.high %v1689_v23, %v1689_v23  ;;  %v1696_v30 = vrot.slane %v1682_v24, %v11237_v49  ;;  %v1706_v31 = vcombine.high %v12120_v25, %v12120_v25  ;;  %v4009_v32 = vadd.f32 %v3998_v21, %v3954_v26  ;;  %v9988_v20 = vld [vmem:[%s14583_s6 + $0x2d8] ss:$24 sps:$4 sm:$0xff]   ;;  %v9993_v21 = vld [vmem:[%s14583_s6 + $0x8a4] ss:$24 sps:$4 sm:$0xff]   ;;  %v9994_v24 = vld [vmem:[%s14583_s6 + $0x2a8] ss:$24 sps:$4 sm:$0xff]  }
 0x1b4   :  { %v4010_v33 = vadd.f32 %v4006_v22, %v3955_v27  ;;  %v12130_v39 = vpack.c.bf16 %v1689_v23, %v1689_v23  ;;  %v9991_v22 = vld [vmem:[%s14583_s6 + $0x8a0] ss:$24 sps:$4 sm:$0xff]   ;;  %v9996_v23 = vld [vmem:[%s14583_s6 + $0x2ac] ss:$24 sps:$4 sm:$0xff]   ;;  %v9997_v27 = vld [vmem:[%s14583_s6 + $0x870] ss:$24 sps:$4 sm:$0xff]  }
 0x1b5   :  { %v12125_v18 = vpack.c.bf16 %v1697_v29, %v1697_v29  ;;  %v1698_v37 = vcombine.high %v1696_v30, %v1696_v30  ;;  %vm4011_vm8 = vcmp.ge.f32.partialorder %v4009_v32, 0.0  ;;  %v4013_v28 = vmul.f32 0.1, %v4009_v32  ;;  %v9999_v26 = vld [vmem:[%s14583_s6 + $0x874] ss:$24 sps:$4 sm:$0xff]  }
 0x1b6   :  { %vm4012_vm9 = vcmp.ge.f32.partialorder %v4010_v33, 0.0  ;;  %v4014_v35 = vmul.f32 0.1, %v4010_v33  ;;  %v12142_v45 = vpack.c.bf16 %v1706_v31, %v1706_v31  ;;  %v12144_v46 = vpack.c.bf16 %v1696_v30, %v1696_v30  ;;  %v10002_v29 = vld [vmem:[%s14583_s6 + $0x27c] ss:$24 sps:$4 sm:$0xff]  }
 0x1b7   :  { %3511 = vmatprep.mubr.bf16.mxu1 %v12125_v18  ;;  %v12136_v44 = vpack.c.bf16 %v1698_v37, %v1698_v37  ;;  %v4015_v48 = vsel %vm4011_vm8, %v4009_v32, %v4013_v28  ;;  %v10000_v30 = vld [vmem:[%s14583_s6 + $0x278] ss:$24 sps:$4 sm:$0xff]   ;;  %v10005_v31 = vld [vmem:[%s14583_s6 + $0x844] ss:$24 sps:$4 sm:$0xff]   ;;  %v10011_v37 = vld [vmem:[%s14583_s6 + $0x814] ss:$24 sps:$4 sm:$0xff]  }
 0x1b8   :  { %3512 = vmatmul.mubr.bf16.vlgmr.msra.gmra.mxu1 %v12130_v39  ;;  %4017 = vst [vmem:[%s14592_s15 + $0xc] sm:$0xff] %v4015_v48  ;;  %v4016_v51 = vsel %vm4012_vm9, %v4010_v33, %v4014_v35  ;;  %v10003_v32 = vld [vmem:[%s14583_s6 + $0x840] ss:$24 sps:$4 sm:$0xff]   ;;  %v10008_v33 = vld [vmem:[%s14583_s6 + $0x24c] ss:$24 sps:$4 sm:$0xff]  }
 0x1b9   :  { %3562 = vmatpush1.bf16.msra.mxu1 %v9936_v34  ;;  %3552 = vmatprep.mubr.bf16.mxu0 %v12136_v44  ;;  %4018 = vst [vmem:[%s14592_s15 + $0x14] sm:$0xf] %v4016_v51  ;;  %v10006_v34 = vld [vmem:[%s14583_s6 + $0x248] ss:$24 sps:$4 sm:$0xff]   ;;  %v10014_v28 = vld [vmem:[%s14583_s6 + $0x21c] ss:$24 sps:$4 sm:$0xff]  }
 0x1ba   :  { %3593 = vmatprep.mubr.bf16.mxu1 %v12142_v45  ;;  %3553 = vmatmul.mubr.bf16.vlgmr.msra.gmra.mxu0 %v12144_v46  ;;  %v10017_v35 = vld [vmem:[%s14583_s6 + $0x7e4] ss:$24 sps:$4 sm:$0xff]   ;;  %v10023_v51 = vld [vmem:[%s14583_s6 + $0x7b4] ss:$24 sps:$4 sm:$0xff]  }
 0x1bb   :  { %3603 = vmatpush1.bf16.msra.mxu0 %v9940_v41  ;;  %3563 = vmatprep.subr.bf16.mxu1 %v9945_v36  ;;  %v10009_v41 = vld [vmem:[%s14583_s6 + $0x810] ss:$24 sps:$4 sm:$0xff]   ;;  %v10020_v48 = vld [vmem:[%s14583_s6 + $0x1ec] ss:$24 sps:$4 sm:$0xff]  }
 0x1bc   :  { %3634 = vmatprep.mubr.bf16.mxu0 %v12125_v18  ;;  %3604 = vmatprep.subr.bf16.mxu0 %v9948_v47  ;;  %v10012_v36 = vld [vmem:[%s14583_s6 + $0x218] ss:$24 sps:$4 sm:$0xff]  }
 0x1bd   :  { %3564 = vmatpush1.bf16.msra.mxu1 %v9943_v50  ;;  %v10015_v47 = vld [vmem:[%s14583_s6 + $0x7e0] ss:$24 sps:$4 sm:$0xff]  }
 0x1be   :  { %3565 = vmatprep.subr.bf16.mxu1 %v9951_v54  ;;  %v10018_v50 = vld [vmem:[%s14583_s6 + $0x1e8] ss:$24 sps:$4 sm:$0xff]  }
 0x1bf   :  { %3605 = vmatpush1.bf16.msra.mxu0 %v9946_v55  ;;  %v10021_v54 = vld [vmem:[%s14583_s6 + $0x7b0] ss:$24 sps:$4 sm:$0xff]   ;;  %v10026_v55 = vld [vmem:[%s14583_s6 + $0x1bc] ss:$24 sps:$4 sm:$0xff]  }
 0x1c0   :  { %3606 = vmatprep.subr.bf16.mxu0 %v9954_v56  ;;  %v10024_v56 = vld [vmem:[%s14583_s6 + $0x1b8] ss:$24 sps:$4 sm:$0xff]  }
 0x1c1   :  { %3566 = vmatpush1.bf16.msra.mxu1 %v9949_v57  ;;  %v10029_v57 = vld [vmem:[%s14583_s6 + $0x784] ss:$24 sps:$4 sm:$0xff]  }
 0x1c2   :  { %3567 = vmatprep.subr.bf16.mxu1 %v9957_v7  ;;  %v10027_v7 = vld [vmem:[%s14583_s6 + $0x780] ss:$24 sps:$4 sm:$0xff]  }
 0x1c3   :  { %3607 = vmatpush1.bf16.msra.mxu0 %v9952_v58  ;;  %v10032_v58 = vld [vmem:[%s14583_s6 + $0x18c] ss:$24 sps:$4 sm:$0xff]  }
 0x1c4   :  { %3608 = vmatprep.subr.bf16.mxu0 %v9960_v59  ;;  %v10030_v59 = vld [vmem:[%s14583_s6 + $0x188] ss:$24 sps:$4 sm:$0xff]  }
 0x1c5   :  { %3568 = vmatpush1.bf16.msra.mxu1 %v9955_v60  ;;  %v10035_v60 = vld [vmem:[%s14583_s6 + $0x45c] ss:$24 sps:$4 sm:$0xff]  }
 0x1c6   :  { %3569 = vmatprep.subr.bf16.mxu1 %v9963_v62  ;;  %v10038_v62 = vld [vmem:[%s14583_s6 + $0x75c] ss:$24 sps:$4 sm:$0xff]  }
 0x1c7   :  { %3609 = vmatpush1.bf16.msra.mxu0 %v9958_v61  ;;  %v10033_v61 = vld [vmem:[%s14583_s6 + $0x458] ss:$24 sps:$4 sm:$0xff]  }
 0x1c8   :  { %3610 = vmatprep.subr.bf16.mxu0 %v9966_v63  ;;  %v12347_v63 = vpack.c.bf16 %v12120_v25, %v12120_v25  ;;  %v10042_v25 = vld [vmem:[%s14583_s6 + $0x728] ss:$24 sps:$4 sm:$0xff]  }
 0x1c9   :  { %3570 = vmatpush1.bf16.msra.mxu1 %v9961_v43  ;;  %v10036_v43 = vld [vmem:[%s14583_s6 + $0x758] ss:$24 sps:$4 sm:$0xff]  }
 0x1ca   :  { %3571 = vmatprep.subr.bf16.mxu1 %v9969_v38  ;;  %v10039_v38 = vld [vmem:[%s14583_s6 + $0x428] ss:$24 sps:$4 sm:$0xff]  }
 0x1cb   :  { %3611 = vmatpush1.bf16.msra.mxu0 %v9964_v0  ;;  %v10041_v0 = vld [vmem:[%s14583_s6 + $0x42c] ss:$24 sps:$4 sm:$0xff]  }
 0x1cc   :  { %3612 = vmatprep.subr.bf16.mxu0 %v9972_v2  ;;  %v10047_v2 = vld [vmem:[%s14583_s6 + $0x3fc] ss:$24 sps:$4 sm:$0xff]  }
 0x1cd   :  { %3572 = vmatpush1.bf16.msra.mxu1 %v9967_v1  ;;  %v10044_v1 = vld [vmem:[%s14583_s6 + $0x72c] ss:$24 sps:$4 sm:$0xff]  }
 0x1ce   :  { %3573 = vmatprep.subr.bf16.mxu1 %v9975_v3  ;;  %v10050_v3 = vld [vmem:[%s14583_s6 + $0x6fc] ss:$24 sps:$4 sm:$0xff]  }
 0x1cf   :  { %3613 = vmatpush1.bf16.msra.mxu0 %v9970_v4  ;;  %v10045_v4 = vld [vmem:[%s14583_s6 + $0x3f8] ss:$24 sps:$4 sm:$0xff]  }
 0x1d0   :  { %3614 = vmatprep.subr.bf16.mxu0 %v9978_v6  ;;  %v10053_v6 = vld [vmem:[%s14583_s6 + $0x3cc] ss:$24 sps:$4 sm:$0xff]  }
 0x1d1   :  { %3574 = vmatpush1.bf16.msra.mxu1 %v9973_v5  ;;  %v10048_v5 = vld [vmem:[%s14583_s6 + $0x6f8] ss:$24 sps:$4 sm:$0xff]  }
 0x1d2   :  { %3575 = vmatprep.subr.bf16.mxu1 %v9981_v9  ;;  %v10051_v9 = vld [vmem:[%s14583_s6 + $0x3c8] ss:$24 sps:$4 sm:$0xff]  }
 0x1d3   :  { %3615 = vmatpush1.bf16.msra.mxu0 %v9976_v8  ;;  %v10056_v8 = vld [vmem:[%s14583_s6 + $0x6cc] ss:$24 sps:$4 sm:$0xff]  }
 0x1d4   :  { %3616 = vmatprep.subr.bf16.mxu0 %v9984_v13  ;;  %v10059_v13 = vld [vmem:[%s14583_s6 + $0x39c] ss:$24 sps:$4 sm:$0xff]  }
 0x1d5   :  { %3576 = vmatpush1.bf16.msra.mxu1 %v9979_v12  ;;  %v10054_v12 = vld [vmem:[%s14583_s6 + $0x6c8] ss:$24 sps:$4 sm:$0xff]  }
 0x1d6   :  { %3577 = vmatprep.subr.bf16.mxu1 %v9987_v16  ;;  %v10057_v16 = vld [vmem:[%s14583_s6 + $0x398] ss:$24 sps:$4 sm:$0xff]  }
 0x1d7   :  { %3617 = vmatpush1.bf16.msra.mxu0 %v9982_v14  ;;  %v10062_v14 = vld [vmem:[%s14583_s6 + $0x69c] ss:$24 sps:$4 sm:$0xff]  }
 0x1d8   :  { %3618 = vmatprep.subr.bf16.mxu0 %v9990_v19  ;;  %v10065_v19 = vld [vmem:[%s14583_s6 + $0x36c] ss:$24 sps:$4 sm:$0xff]  }
 0x1d9   :  { %3578 = vmatpush2.bf16.msra.mxu1 %v9985_v17  ;;  %v10060_v17 = vld [vmem:[%s14583_s6 + $0x698] ss:$24 sps:$4 sm:$0xff]  }
 0x1da   :  { %3579 = vmatprep.subr.bf16.mxu1 %v9993_v21  ;;  %v10063_v21 = vld [vmem:[%s14583_s6 + $0x368] ss:$24 sps:$4 sm:$0xff]  }
 0x1db   :  { %3619 = vmatpush2.bf16.msra.mxu0 %v9988_v20  ;;  %v10068_v20 = vld [vmem:[%s14583_s6 + $0x66c] ss:$24 sps:$4 sm:$0xff]  }
 0x1dc   :  { %3620 = vmatprep.subr.bf16.mxu0 %v9996_v23  ;;  %v10071_v23 = vld [vmem:[%s14583_s6 + $0x33c] ss:$24 sps:$4 sm:$0xff]  }
 0x1dd   :  { %3580 = vmatpush2.bf16.msra.mxu1 %v9991_v22  ;;  %v10066_v22 = vld [vmem:[%s14583_s6 + $0x668] ss:$24 sps:$4 sm:$0xff]  }
 0x1de   :  { %3581 = vmatprep.subr.bf16.mxu1 %v9999_v26  ;;  %v10069_v26 = vld [vmem:[%s14583_s6 + $0x338] ss:$24 sps:$4 sm:$0xff]  }
 0x1df   :  { %3621 = vmatpush2.bf16.msra.mxu0 %v9994_v24  ;;  %v10074_v24 = vld [vmem:[%s14583_s6 + $0x63c] ss:$24 sps:$4 sm:$0xff]  }
 0x1e0   :  { %3622 = vmatprep.subr.bf16.mxu0 %v10002_v29  ;;  %v10077_v29 = vld [vmem:[%s14583_s6 + $0x30c] ss:$24 sps:$4 sm:$0xff]  }
 0x1e1   :  { %3582 = vmatpush2.bf16.msra.mxu1 %v9997_v27  ;;  %v10072_v27 = vld [vmem:[%s14583_s6 + $0x638] ss:$24 sps:$4 sm:$0xff]  }
 0x1e2   :  { %3583 = vmatprep.subr.bf16.mxu1 %v10005_v31  ;;  %v10075_v31 = vld [vmem:[%s14583_s6 + $0x308] ss:$24 sps:$4 sm:$0xff]  }
 0x1e3   :  { %3623 = vmatpush2.bf16.msra.mxu0 %v10000_v30  ;;  %v10080_v30 = vld [vmem:[%s14583_s6 + $0x60c] ss:$24 sps:$4 sm:$0xff]  }
 0x1e4   :  { %3624 = vmatprep.subr.bf16.mxu0 %v10008_v33  ;;  %v10083_v33 = vld [vmem:[%s14583_s6 + $0x5dc] ss:$24 sps:$4 sm:$0xff]  }
 0x1e5   :  { %3584 = vmatpush2.bf16.msra.mxu1 %v10003_v32  ;;  %v10078_v32 = vld [vmem:[%s14583_s6 + $0x608] ss:$24 sps:$4 sm:$0xff]  }
 0x1e6   :  { %3585 = vmatprep.subr.bf16.mxu1 %v10011_v37  ;;  %v10081_v37 = vld [vmem:[%s14583_s6 + $0x5d8] ss:$24 sps:$4 sm:$0xff]  }
 0x1e7   :  { %3625 = vmatpush2.bf16.msra.mxu0 %v10006_v34  ;;  %v10086_v34 = vld [vmem:[%s14583_s6 + $0x8dc] ss:$24 sps:$4 sm:$0xff]  }
 0x1e8   :  { %3626 = vmatprep.subr.bf16.mxu0 %v10014_v28  ;;  %v10089_v28 = vld [vmem:[%s14583_s6 + $0x5ac] ss:$24 sps:$4 sm:$0xff]  }
 0x1e9   :  { %3586 = vmatpush2.bf16.msra.mxu1 %v10009_v41  ;;  %v10084_v41 = vld [vmem:[%s14583_s6 + $0x8d8] ss:$24 sps:$4 sm:$0xff]  }
 0x1ea   :  { %3587 = vmatprep.subr.bf16.mxu1 %v10017_v35  ;;  %v10087_v35 = vld [vmem:[%s14583_s6 + $0x5a8] ss:$24 sps:$4 sm:$0xff]  }
 0x1eb   :  { %3627 = vmatpush2.bf16.msra.mxu0 %v10012_v36  ;;  %v10092_v36 = vld [vmem:[%s14583_s6 + $0x8ac] ss:$24 sps:$4 sm:$0xff]  }
 0x1ec   :  { %3628 = vmatprep.subr.bf16.mxu0 %v10020_v48  ;;  %v10095_v48 = vld [vmem:[%s14583_s6 + $0x57c] ss:$24 sps:$4 sm:$0xff]  }
 0x1ed   :  { %3588 = vmatpush2.bf16.msra.mxu1 %v10015_v47  ;;  %v10090_v47 = vld [vmem:[%s14583_s6 + $0x8a8] ss:$24 sps:$4 sm:$0xff]  }
 0x1ee   :  { %3589 = vmatprep.subr.bf16.mxu1 %v10023_v51  ;;  %v10093_v51 = vld [vmem:[%s14583_s6 + $0x578] ss:$24 sps:$4 sm:$0xff]  }
 0x1ef   :  { %3629 = vmatpush2.bf16.msra.mxu0 %v10018_v50  ;;  %v10098_v50 = vld [vmem:[%s14583_s6 + $0x87c] ss:$24 sps:$4 sm:$0xff]  }
 0x1f0   :  { %3630 = vmatprep.subr.bf16.mxu0 %v10026_v55  ;;  %v10101_v55 = vld [vmem:[%s14583_s6 + $0x54c] ss:$24 sps:$4 sm:$0xff]  }
 0x1f1   :  { %3590 = vmatpush2.bf16.msra.mxu1 %v10021_v54  ;;  %v10096_v54 = vld [vmem:[%s14583_s6 + $0x878] ss:$24 sps:$4 sm:$0xff]  }
 0x1f2   :  { %3591 = vmatprep.subr.bf16.mxu1 %v10029_v57  ;;  %v10099_v57 = vld [vmem:[%s14583_s6 + $0x548] ss:$24 sps:$4 sm:$0xff]  }
 0x1f3   :  { %3631 = vmatpush2.bf16.msra.mxu0 %v10024_v56  ;;  %v10104_v56 = vld [vmem:[%s14583_s6 + $0x84c] ss:$24 sps:$4 sm:$0xff]  }
 0x1f4   :  { %3632 = vmatprep.subr.bf16.mxu0 %v10032_v58  ;;  %v10107_v58 = vld [vmem:[%s14583_s6 + $0x51c] ss:$24 sps:$4 sm:$0xff]  }
 0x1f5   :  { %3592 = vmatpush2.bf16.msra.mxu1 %v10027_v7  ;;  %v10102_v7 = vld [vmem:[%s14583_s6 + $0x848] ss:$24 sps:$4 sm:$0xff]  }
 0x1f6   :  { %3643 = vmatprep.subr.bf16.mxu1 %v10035_v60  ;;  %v10105_v60 = vld [vmem:[%s14583_s6 + $0x518] ss:$24 sps:$4 sm:$0xff]  }
 0x1f7   :  { %3633 = vmatpush2.bf16.msra.mxu0 %v10030_v59  ;;  %v10110_v59 = vld [vmem:[%s14583_s6 + $0x81c] ss:$24 sps:$4 sm:$0xff]  }
 0x1f8   :  { %3594 = vmatmul.mubr.bf16.vlgmr.msra.gmra.mxu1 %v12347_v63  ;;  %3684 = vmatprep.subr.bf16.mxu0 %v10038_v62  ;;  %v10113_v62 = vld [vmem:[%s14583_s6 + $0x4ec] ss:$24 sps:$4 sm:$0xff]  }
 0x1f9   :  { %3644 = vmatpush1.bf16.msra.mxu1 %v10033_v61  ;;  %3675 = vmatprep.mubr.bf16.mxu1 %v12136_v44  ;;  %v10108_v61 = vld [vmem:[%s14583_s6 + $0x818] ss:$24 sps:$4 sm:$0xff]  }
 0x1fa   :  { %3635 = vmatmul.mubr.bf16.vlgmr.msra.gmra.mxu0 %v12130_v39  ;;  %3645 = vmatprep.subr.bf16.mxu1 %v10041_v0  ;;  %v10111_v0 = vld [vmem:[%s14583_s6 + $0x4e8] ss:$24 sps:$4 sm:$0xff]  }
 0x1fb   :  { %3685 = vmatpush1.bf16.msra.mxu0 %v10036_v43  ;;  %3716 = vmatprep.mubr.bf16.mxu0 %v12142_v45  ;;  %v10116_v43 = vld [vmem:[%s14583_s6 + $0x7ec] ss:$24 sps:$4 sm:$0xff]  }
 0x1fc   :  { %3686 = vmatprep.subr.bf16.mxu0 %v10044_v1 }
 0x1fd   :  { %3646 = vmatpush1.bf16.msra.mxu1 %v10039_v38  ;;  %v10119_v38 = vld [vmem:[%s14583_s6 + $0x4bc] ss:$24 sps:$4 sm:$0xff]  }
 0x1fe   :  { %3647 = vmatprep.subr.bf16.mxu1 %v10047_v2 }
 0x1ff   :  { %3687 = vmatpush1.bf16.msra.mxu0 %v10042_v25 }
 0x200   :  { %3688 = vmatprep.subr.bf16.mxu0 %v10050_v3 }
 0x201   :  { %3648 = vmatpush1.bf16.msra.mxu1 %v10045_v4 }
 0x202   :  { %3649 = vmatprep.subr.bf16.mxu1 %v10053_v6 }
 0x203   :  { %3689 = vmatpush1.bf16.msra.mxu0 %v10048_v5 }
 0x204   :  { %3690 = vmatprep.subr.bf16.mxu0 %v10056_v8 }
 0x205   :  { %3650 = vmatpush1.bf16.msra.mxu1 %v10051_v9 }
 0x206   :  { %3651 = vmatprep.subr.bf16.mxu1 %v10059_v13 }
 0x207   :  { %3691 = vmatpush1.bf16.msra.mxu0 %v10054_v12 }
 0x208   :  { %3692 = vmatprep.subr.bf16.mxu0 %v10062_v14 }
 0x209   :  { %3652 = vmatpush1.bf16.msra.mxu1 %v10057_v16 }
 0x20a   :  { %3653 = vmatprep.subr.bf16.mxu1 %v10065_v19 }
 0x20b   :  { %3693 = vmatpush1.bf16.msra.mxu0 %v10060_v17 }
 0x20c   :  { %3694 = vmatprep.subr.bf16.mxu0 %v10068_v20 }
 0x20d   :  { %3654 = vmatpush1.bf16.msra.mxu1 %v10063_v21 }
 0x20e   :  { %3655 = vmatprep.subr.bf16.mxu1 %v10071_v23 }
 0x20f   :  { %3695 = vmatpush1.bf16.msra.mxu0 %v10066_v22 }
 0x210   :  { %3696 = vmatprep.subr.bf16.mxu0 %v10074_v24 }
 0x211   :  { %3656 = vmatpush1.bf16.msra.mxu1 %v10069_v26 }
 0x212   :  { %3657 = vmatprep.subr.bf16.mxu1 %v10077_v29 }
 0x213   :  { %3697 = vmatpush1.bf16.msra.mxu0 %v10072_v27 }
 0x214   :  { %3698 = vmatprep.subr.bf16.mxu0 %v10080_v30 }
 0x215   :  { %3658 = vmatpush1.bf16.msra.mxu1 %v10075_v31 }
 0x216   :  { %3659 = vmatprep.subr.bf16.mxu1 %v10083_v33 }
 0x217   :  { %3699 = vmatpush1.bf16.msra.mxu0 %v10078_v32 }
 0x218   :  { %3700 = vmatprep.subr.bf16.mxu0 %v10086_v34 }
 0x219   :  { %3660 = vmatpush2.bf16.msra.mxu1 %v10081_v37 }
 0x21a   :  { %3661 = vmatprep.subr.bf16.mxu1 %v10089_v28 }
 0x21b   :  { %3701 = vmatpush2.bf16.msra.mxu0 %v10084_v41 }
 0x21c   :  { %3702 = vmatprep.subr.bf16.mxu0 %v10092_v36 }
 0x21d   :  { %3662 = vmatpush2.bf16.msra.mxu1 %v10087_v35 }
 0x21e   :  { %3663 = vmatprep.subr.bf16.mxu1 %v10095_v48 }
 0x21f   :  { %3703 = vmatpush2.bf16.msra.mxu0 %v10090_v47 }
 0x220   :  { %3704 = vmatprep.subr.bf16.mxu0 %v10098_v50 }
 0x221   :  { %3664 = vmatpush2.bf16.msra.mxu1 %v10093_v51 }
 0x222   :  { %3665 = vmatprep.subr.bf16.mxu1 %v10101_v55 }
 0x223   :  { %3705 = vmatpush2.bf16.msra.mxu0 %v10096_v54 }
 0x224   :  { %3706 = vmatprep.subr.bf16.mxu0 %v10104_v56 }
 0x225   :  { %3666 = vmatpush2.bf16.msra.mxu1 %v10099_v57 }
 0x226   :  { %3667 = vmatprep.subr.bf16.mxu1 %v10107_v58 }
 0x227   :  { %3707 = vmatpush2.bf16.msra.mxu0 %v10102_v7 }
 0x228   :  { %3708 = vmatprep.subr.bf16.mxu0 %v10110_v59 }
 0x229   :  { %3668 = vmatpush2.bf16.msra.mxu1 %v10105_v60 }
 0x22a   :  { %3669 = vmatprep.subr.bf16.mxu1 %v10113_v62 }
 0x22b   :  { %22 = vsyncpa [#allocation3], 0  ;;  %3709 = vmatpush2.bf16.msra.mxu0 %v10108_v61  ;;  %v10114_v1 = vld [vmem:[%s14583_s6 + $0x7e8] ss:$24 sps:$4 sm:$0xff]   ;;  %v10122_v25 = vld [vmem:[%s14583_s6 + $0x7bc] ss:$24 sps:$4 sm:$0xff]  }
 0x22c   :  { %3710 = vmatprep.subr.bf16.mxu0 %v10116_v43  ;;  %v10117_v2 = vld [vmem:[%s14583_s6 + $0x4b8] ss:$24 sps:$4 sm:$0xff]   ;;  %v10125_v4 = vld [vmem:[%s14583_s6 + $0x48c] ss:$24 sps:$4 sm:$0xff]   ;;  %v10123_v6 = vld [vmem:[%s14583_s6 + $0x488] ss:$24 sps:$4 sm:$0xff]  }
 0x22d   :  { %3670 = vmatpush2.bf16.msra.mxu1 %v10111_v0  ;;  %v10120_v3 = vld [vmem:[%s14583_s6 + $0x7b8] ss:$24 sps:$4 sm:$0xff]   ;;  %v10128_v5 = vld [vmem:[%s14583_s6 + $0x78c] ss:$24 sps:$4 sm:$0xff]   ;;  %v10126_v9 = vld [vmem:[%s14583_s6 + $0x788] ss:$24 sps:$4 sm:$0xff]  }
 0x22e   :  { %3671 = vmatprep.subr.bf16.mxu1 %v10119_v38  ;;  %v10131_v8 = vld [vmem:[%s14583_s6 + $0x164] ss:$24 sps:$4 sm:$0xff]   ;;  %v10129_v13 = vld [vmem:[%s14583_s6 + $0x160] ss:$24 sps:$4 sm:$0xff]   ;;  %v10137_v14 = vld [vmem:[%s14583_s6 + $0x134] ss:$24 sps:$4 sm:$0xff]  }
 0x22f   :  { %3711 = vmatpush2.bf16.msra.mxu0 %v10114_v1  ;;  %v10134_v12 = vld [vmem:[%s14583_s6 + $0x464] ss:$24 sps:$4 sm:$0xff]   ;;  %v10132_v16 = vld [vmem:[%s14583_s6 + $0x460] ss:$24 sps:$4 sm:$0xff]   ;;  %v10140_v17 = vld [vmem:[%s14583_s6 + $0x434] ss:$24 sps:$4 sm:$0xff]  }
 0x230   :  { %3712 = vmatprep.subr.bf16.mxu0 %v10122_v25  ;;  %v10135_v19 = vld [vmem:[%s14583_s6 + $0x130] ss:$24 sps:$4 sm:$0xff]   ;;  %v10143_v20 = vld [vmem:[%s14583_s6 + $0x104] ss:$24 sps:$4 sm:$0xff]   ;;  %v10141_v22 = vld [vmem:[%s14583_s6 + $0x100] ss:$24 sps:$4 sm:$0xff]  }
 0x231   :  { %3672 = vmatpush2.bf16.msra.mxu1 %v10117_v2  ;;  %v10138_v21 = vld [vmem:[%s14583_s6 + $0x430] ss:$24 sps:$4 sm:$0xff]   ;;  %v10149_v23 = vld [vmem:[%s14583_s6 + $0xd4] ss:$24 sps:$4 sm:$0xff]   ;;  %v10155_v27 = vld [vmem:[%s14583_s6 + $0xa4] ss:$24 sps:$4 sm:$0xff]  }
 0x232   :  { %3673 = vmatprep.subr.bf16.mxu1 %v10125_v4  ;;  %v10152_v24 = vld [vmem:[%s14583_s6 + $0x3d4] ss:$24 sps:$4 sm:$0xff]   ;;  %v10147_v26 = vld [vmem:[%s14583_s6 + $0xd0] ss:$24 sps:$4 sm:$0xff]   ;;  %v10158_v30 = vld [vmem:[%s14583_s6 + $0x3a4] ss:$24 sps:$4 sm:$0xff]  }
 0x233   :  { %3713 = vmatpush2.bf16.msra.mxu0 %v10120_v3  ;;  %v10150_v29 = vld [vmem:[%s14583_s6 + $0x3d0] ss:$24 sps:$4 sm:$0xff]   ;;  %v10153_v31 = vld [vmem:[%s14583_s6 + $0xa0] ss:$24 sps:$4 sm:$0xff]   ;;  %v10161_v32 = vld [vmem:[%s14583_s6 + $0x74] ss:$24 sps:$4 sm:$0xff]  }
 0x234   :  { %3714 = vmatprep.subr.bf16.mxu0 %v10128_v5  ;;  %v10156_v33 = vld [vmem:[%s14583_s6 + $0x3a0] ss:$24 sps:$4 sm:$0xff]   ;;  %v10164_v34 = vld [vmem:[%s14583_s6 + $0x374] ss:$24 sps:$4 sm:$0xff]   ;;  %v10159_v37 = vld [vmem:[%s14583_s6 + $0x70] ss:$24 sps:$4 sm:$0xff]  }
 0x235   :  { %3674 = vmatpush2.bf16.msra.mxu1 %v10123_v6  ;;  %v10167_v41 = vld [vmem:[%s14583_s6 + $0x44] ss:$24 sps:$4 sm:$0xff]   ;;  %v10162_v28 = vld [vmem:[%s14583_s6 + $0x370] ss:$24 sps:$4 sm:$0xff]   ;;  %v10165_v35 = vld [vmem:[%s14583_s6 + $0x40] ss:$24 sps:$4 sm:$0xff]  }
 0x236   :  { %3725 = vmatprep.subr.bf16.mxu1 %v10131_v8  ;;  %v10170_v36 = vld [vmem:[%s14583_s6 + $0x344] ss:$24 sps:$4 sm:$0xff]   ;;  %v10173_v47 = vld [vmem:[%s14583_s6 + $0x14] ss:$24 sps:$4 sm:$0xff]   ;;  %v10168_v48 = vld [vmem:[%s14583_s6 + $0x340] ss:$24 sps:$4 sm:$0xff]  }
 0x237   :  { %3715 = vmatpush2.bf16.msra.mxu0 %v10126_v9  ;;  %v10176_v50 = vld [vmem:[%s14583_s6 + $0x314] ss:$24 sps:$4 sm:$0xff]   ;;  %v10171_v51 = vld [vmem:[%s14583_s6 + $0x10] ss:$24 sps:$4 sm:$0xff]   ;;  %v10179_v54 = vld [vmem:[%s14583_s6 + $0x2e4] ss:$24 sps:$4 sm:$0xff]  }
 0x238   :  { %3676 = vmatmul.mubr.bf16.vlgmr.msra.gmra.mxu1 %v12144_v46  ;;  %3766 = vmatprep.subr.bf16.mxu0 %v10134_v12  ;;  %v10174_v55 = vld [vmem:[%s14583_s6 + $0x310] ss:$24 sps:$4 sm:$0xff]   ;;  %v10182_v56 = vld [vmem:[%s14583_s6 + $0x5e4] ss:$24 sps:$4 sm:$0xff]   ;;  %v10177_v57 = vld [vmem:[%s14583_s6 + $0x2e0] ss:$24 sps:$4 sm:$0xff]  }
 0x239   :  { %3726 = vmatpush1.bf16.msra.mxu1 %v10129_v13  ;;  %3757 = vmatprep.mubr.bf16.mxu1 %v12125_v18  ;;  %v10146_v18 = vld [vmem:[%s14583_s6 + $0x404] ss:$24 sps:$4 sm:$0xff]   ;;  %v10185_v7 = vld [vmem:[%s14583_s6 + $0x2b4] ss:$24 sps:$4 sm:$0xff]   ;;  %v10180_v58 = vld [vmem:[%s14583_s6 + $0x5e0] ss:$24 sps:$4 sm:$0xff]  }
 0x23a   :  { %3717 = vmatmul.mubr.bf16.vlgmr.msra.gmra.mxu0 %v12347_v63  ;;  %3727 = vmatprep.subr.bf16.mxu1 %v10137_v14  ;;  %v10188_v59 = vld [vmem:[%s14583_s6 + $0x5b4] ss:$24 sps:$4 sm:$0xff]   ;;  %v10183_v60 = vld [vmem:[%s14583_s6 + $0x2b0] ss:$24 sps:$4 sm:$0xff]   ;;  %v10191_v61 = vld [vmem:[%s14583_s6 + $0x284] ss:$24 sps:$4 sm:$0xff]  }
 0x23b   :  { %3767 = vmatpush1.bf16.msra.mxu0 %v10132_v16  ;;  %3798 = vmatprep.mubr.bf16.mxu0 %v12136_v44  ;;  %v10144_v44 = vld [vmem:[%s14583_s6 + $0x400] ss:$24 sps:$4 sm:$0xff]   ;;  %v10186_v62 = vld [vmem:[%s14583_s6 + $0x5b0] ss:$24 sps:$4 sm:$0xff]   ;;  %v10194_v43 = vld [vmem:[%s14583_s6 + $0x584] ss:$24 sps:$4 sm:$0xff]  }
 0x23c   :  { %3768 = vmatprep.subr.bf16.mxu0 %v10140_v17  ;;  %v10189_v0 = vld [vmem:[%s14583_s6 + $0x280] ss:$24 sps:$4 sm:$0xff]   ;;  %v10197_v38 = vld [vmem:[%s14583_s6 + $0x254] ss:$24 sps:$4 sm:$0xff]   ;;  %v10195_v2 = vld [vmem:[%s14583_s6 + $0x250] ss:$24 sps:$4 sm:$0xff]  }
 0x23d   :  { %3728 = vmatpush1.bf16.msra.mxu1 %v10135_v19  ;;  %v10192_v1 = vld [vmem:[%s14583_s6 + $0x580] ss:$24 sps:$4 sm:$0xff]   ;;  %v10200_v25 = vld [vmem:[%s14583_s6 + $0x554] ss:$24 sps:$4 sm:$0xff]   ;;  %v10203_v4 = vld [vmem:[%s14583_s6 + $0x224] ss:$24 sps:$4 sm:$0xff]  }
 0x23e   :  { %3729 = vmatprep.subr.bf16.mxu1 %v10143_v20  ;;  %v10198_v3 = vld [vmem:[%s14583_s6 + $0x550] ss:$24 sps:$4 sm:$0xff]   ;;  %v10206_v5 = vld [vmem:[%s14583_s6 + $0x524] ss:$24 sps:$4 sm:$0xff]   ;;  %v10201_v6 = vld [vmem:[%s14583_s6 + $0x220] ss:$24 sps:$4 sm:$0xff]  }
 0x23f   :  { %3769 = vmatpush1.bf16.msra.mxu0 %v10138_v21  ;;  %v10209_v8 = vld [vmem:[%s14583_s6 + $0x1f4] ss:$24 sps:$4 sm:$0xff]   ;;  %v10204_v9 = vld [vmem:[%s14583_s6 + $0x520] ss:$24 sps:$4 sm:$0xff]   ;;  %v10207_v13 = vld [vmem:[%s14583_s6 + $0x1f0] ss:$24 sps:$4 sm:$0xff]  }
 0x240   :  { %3770 = vmatprep.subr.bf16.mxu0 %v10146_v18  ;;  %v10212_v12 = vld [vmem:[%s14583_s6 + $0x4f4] ss:$24 sps:$4 sm:$0xff]   ;;  %v10215_v14 = vld [vmem:[%s14583_s6 + $0x1c4] ss:$24 sps:$4 sm:$0xff]   ;;  %v10210_v16 = vld [vmem:[%s14583_s6 + $0x4f0] ss:$24 sps:$4 sm:$0xff]  }
 0x241   :  { %3730 = vmatpush1.bf16.msra.mxu1 %v10141_v22  ;;  %v10218_v17 = vld [vmem:[%s14583_s6 + $0x4c4] ss:$24 sps:$4 sm:$0xff]   ;;  %v10213_v19 = vld [vmem:[%s14583_s6 + $0x1c0] ss:$24 sps:$4 sm:$0xff]   ;;  %v10221_v20 = vld [vmem:[%s14583_s6 + $0x194] ss:$24 sps:$4 sm:$0xff]  }
 0x242   :  { %3731 = vmatprep.subr.bf16.mxu1 %v10149_v23  ;;  %v10216_v21 = vld [vmem:[%s14583_s6 + $0x4c0] ss:$24 sps:$4 sm:$0xff]   ;;  %v10224_v18 = vld [vmem:[%s14583_s6 + $0x494] ss:$24 sps:$4 sm:$0xff]   ;;  %v10219_v22 = vld [vmem:[%s14583_s6 + $0x190] ss:$24 sps:$4 sm:$0xff]  }
 0x243   :  { %3771 = vmatpush1.bf16.msra.mxu0 %v10144_v44  ;;  %v10227_v23 = vld [vmem:[%s14583_s6 + $0x764] ss:$24 sps:$4 sm:$0xff]   ;;  %vm11014_vm0 = vmmov 0   ;;  %s11015_s3 = smov [#allocation2]   ;;  %vm8388_vm1 = vcmask 74752  }
 0x244   :  { %3772 = vmatprep.subr.bf16.mxu0 %v10152_v24  ;;  %v12732_v44 = vld [vmem:[%s14584_s7] sm:$0x3f]  ;;  %v10222_v24 = vld [vmem:[%s14583_s6 + $0x490] ss:$24 sps:$4 sm:$0xff]   ;;  %s8400_s26 = sshll.u32 %s11015_s3, 4  ;;  %s8401_s26 = int_to_ptr.vmem [resolvable:$true] %s8400_s26 }
 0x245   :  { %3732 = vmatpush1.bf16.msra.mxu1 %v10147_v26  ;;  %v10275_v26 = vld [vmem:[%s14587_s10 + $0x11c] ss:$20 sps:$4 sm:$0xff]   ;;  %p10994_p1 = scmp.lt.s32.totalorder %s8401_s26, %s8401_s26 }
 0x246   :  { %3733 = vmatprep.subr.bf16.mxu1 %v10155_v27  ;;  %v10225_v27 = vld [vmem:[%s14583_s6 + $0x760] ss:$24 sps:$4 sm:$0xff]  }
 0x247   :  { %3773 = vmatpush1.bf16.msra.mxu0 %v10150_v29  ;;  %v2012_v29 = vrot.slane %v12732_v44, %v11882_v10 }
 0x248   :  { %3774 = vmatprep.subr.bf16.mxu0 %v10158_v30  ;;  %v10230_v30 = vld [vmem:[%s14583_s6 + $0x734] ss:$24 sps:$4 sm:$0xff]  }
 0x249   :  { %3734 = vmatpush1.bf16.msra.mxu1 %v10153_v31  ;;  %v2016_v31 = vrot.slane %v12732_v44, %v11885_v11 }
 0x24a   :  { %3735 = vmatprep.subr.bf16.mxu1 %v10161_v32  ;;  %v10273_v32 = vld [vmem:[%s14587_s10 + $0x118] ss:$20 sps:$4 sm:$0xff]  }
 0x24b   :  { %3775 = vmatpush1.bf16.msra.mxu0 %v10156_v33 }
 0x24c   :  { %3776 = vmatprep.subr.bf16.mxu0 %v10164_v34  ;;  %v10281_v34 = vld [vmem:[%s14587_s10 + $0xf4] ss:$20 sps:$4 sm:$0xff]  }
 0x24d   :  { %3736 = vmatpush1.bf16.msra.mxu1 %v10159_v37 }
 0x24e   :  { %3737 = vmatprep.subr.bf16.mxu1 %v10167_v41  ;;  %v10228_v41 = vld [vmem:[%s14583_s6 + $0x730] ss:$24 sps:$4 sm:$0xff]  }
 0x24f   :  { %3777 = vmatpush1.bf16.msra.mxu0 %v10162_v28 }
 0x250   :  { %3778 = vmatprep.subr.bf16.mxu0 %v10170_v36 }
 0x251   :  { %3738 = vmatpush1.bf16.msra.mxu1 %v10165_v35 }
 0x252   :  { %3739 = vmatprep.subr.bf16.mxu1 %v10173_v47 }
 0x253   :  { %3779 = vmatpush1.bf16.msra.mxu0 %v10168_v48 }
 0x254   :  { %3780 = vmatprep.subr.bf16.mxu0 %v10176_v50 }
 0x255   :  { %3740 = vmatpush1.bf16.msra.mxu1 %v10171_v51 }
 0x256   :  { %3741 = vmatprep.subr.bf16.mxu1 %v10179_v54  ;;  %v10231_v54 = vld [vmem:[%s14583_s6 + $0x700] ss:$24 sps:$4 sm:$0xff]  }
 0x257   :  { %3781 = vmatpush1.bf16.msra.mxu0 %v10174_v55 }
 0x258   :  { %3782 = vmatprep.subr.bf16.mxu0 %v10182_v56 }
 0x259   :  { %3742 = vmatpush2.bf16.msra.mxu1 %v10177_v57  ;;  %v10236_v57 = vld [vmem:[%s14583_s6 + $0x6d4] ss:$24 sps:$4 sm:$0xff]  }
 0x25a   :  { %3743 = vmatprep.subr.bf16.mxu1 %v10185_v7  ;;  %v10285_v7 = vld [vmem:[%s14587_s10 + $0xc8] ss:$20 sps:$4 sm:$0xff]  }
 0x25b   :  { %3783 = vmatpush2.bf16.msra.mxu0 %v10180_v58 }
 0x25c   :  { %3784 = vmatprep.subr.bf16.mxu0 %v10188_v59  ;;  %v10293_v59 = vld [vmem:[%s14587_s10 + $0xa4] ss:$20 sps:$4 sm:$0xff]  }
 0x25d   :  { %3744 = vmatpush2.bf16.msra.mxu1 %v10183_v60  ;;  %v10234_v60 = vld [vmem:[%s14583_s6 + $0x6d0] ss:$24 sps:$4 sm:$0xff]  }
 0x25e   :  { %3745 = vmatprep.subr.bf16.mxu1 %v10191_v61  ;;  %v10239_v61 = vld [vmem:[%s14583_s6 + $0x6a4] ss:$24 sps:$4 sm:$0xff]  }
 0x25f   :  { %3785 = vmatpush2.bf16.msra.mxu0 %v10186_v62  ;;  %v10291_v62 = vld [vmem:[%s14587_s10 + $0xa0] ss:$20 sps:$4 sm:$0xff]  }
 0x260   :  { %3786 = vmatprep.subr.bf16.mxu0 %v10194_v43  ;;  %v10299_v43 = vld [vmem:[%s14587_s10 + $0x7c] ss:$20 sps:$4 sm:$0xff]  }
 0x261   :  { %3746 = vmatpush2.bf16.msra.mxu1 %v10189_v0  ;;  %v10237_v0 = vld [vmem:[%s14583_s6 + $0x6a0] ss:$24 sps:$4 sm:$0xff]  }
 0x262   :  { %3747 = vmatprep.subr.bf16.mxu1 %v10197_v38  ;;  %v10242_v38 = vld [vmem:[%s14583_s6 + $0x674] ss:$24 sps:$4 sm:$0xff]  }
 0x263   :  { %3787 = vmatpush2.bf16.msra.mxu0 %v10192_v1  ;;  %v10297_v1 = vld [vmem:[%s14587_s10 + $0x78] ss:$20 sps:$4 sm:$0xff]  }
 0x264   :  { %3788 = vmatprep.subr.bf16.mxu0 %v10200_v25  ;;  %v10305_v25 = vld [vmem:[%s14587_s10 + $0x54] ss:$20 sps:$4 sm:$0xff]  }
 0x265   :  { %3748 = vmatpush2.bf16.msra.mxu1 %v10195_v2  ;;  %v10240_v2 = vld [vmem:[%s14583_s6 + $0x670] ss:$24 sps:$4 sm:$0xff]  }
 0x266   :  { %3749 = vmatprep.subr.bf16.mxu1 %v10203_v4  ;;  %v10245_v4 = vld [vmem:[%s14583_s6 + $0x644] ss:$24 sps:$4 sm:$0xff]  }
 0x267   :  { %3789 = vmatpush2.bf16.msra.mxu0 %v10198_v3  ;;  %v10303_v3 = vld [vmem:[%s14587_s10 + $0x50] ss:$20 sps:$4 sm:$0xff]  }
 0x268   :  { %3790 = vmatprep.subr.bf16.mxu0 %v10206_v5  ;;  %v10311_v5 = vld [vmem:[%s14587_s10 + $0x2c] ss:$20 sps:$4 sm:$0xff]  }
 0x269   :  { %3750 = vmatpush2.bf16.msra.mxu1 %v10201_v6  ;;  %v10243_v6 = vld [vmem:[%s14583_s6 + $0x640] ss:$24 sps:$4 sm:$0xff]  }
 0x26a   :  { %3751 = vmatprep.subr.bf16.mxu1 %v10209_v8  ;;  %v10248_v8 = vld [vmem:[%s14583_s6 + $0x614] ss:$24 sps:$4 sm:$0xff]  }
 0x26b   :  { %3791 = vmatpush2.bf16.msra.mxu0 %v10204_v9  ;;  %v10309_v9 = vld [vmem:[%s14587_s10 + $0x28] ss:$20 sps:$4 sm:$0xff]  }
 0x26c   :  { %3792 = vmatprep.subr.bf16.mxu0 %v10212_v12  ;;  %v10317_v12 = vld [vmem:[%s14587_s10 + $0x4] ss:$20 sps:$4 sm:$0xff]  }
 0x26d   :  { %3752 = vmatpush2.bf16.msra.mxu1 %v10207_v13  ;;  %v10246_v13 = vld [vmem:[%s14583_s6 + $0x610] ss:$24 sps:$4 sm:$0xff]  }
 0x26e   :  { %3753 = vmatprep.subr.bf16.mxu1 %v10215_v14  ;;  %v10251_v14 = vld [vmem:[%s14583_s6 + $0x8e4] ss:$24 sps:$4 sm:$0xff]  }
 0x26f   :  { %3793 = vmatpush2.bf16.msra.mxu0 %v10210_v16  ;;  %v10315_v16 = vld [vmem:[%s14587_s10] ss:$20 sps:$4 sm:$0xff]  }
 0x270   :  { %3794 = vmatprep.subr.bf16.mxu0 %v10218_v17  ;;  %v10323_v17 = vld [vmem:[%s14587_s10 + $0x25c] ss:$20 sps:$4 sm:$0xff]  }
 0x271   :  { %3754 = vmatpush2.bf16.msra.mxu1 %v10213_v19  ;;  %v10249_v19 = vld [vmem:[%s14583_s6 + $0x8e0] ss:$24 sps:$4 sm:$0xff]  }
 0x272   :  { %3755 = vmatprep.subr.bf16.mxu1 %v10221_v20  ;;  %v10254_v20 = vld [vmem:[%s14583_s6 + $0x8b4] ss:$24 sps:$4 sm:$0xff]  }
 0x273   :  { %3795 = vmatpush2.bf16.msra.mxu0 %v10216_v21  ;;  %v10321_v21 = vld [vmem:[%s14587_s10 + $0x258] ss:$20 sps:$4 sm:$0xff]  }
 0x274   :  { %3796 = vmatprep.subr.bf16.mxu0 %v10224_v18  ;;  %v10329_v18 = vld [vmem:[%s14587_s10 + $0x234] ss:$20 sps:$4 sm:$0xff]  }
 0x275   :  { %3756 = vmatpush2.bf16.msra.mxu1 %v10219_v22  ;;  %v10252_v22 = vld [vmem:[%s14583_s6 + $0x8b0] ss:$24 sps:$4 sm:$0xff]  }
 0x276   :  { %3807 = vmatprep.subr.bf16.mxu1 %v10227_v23  ;;  %v10257_v23 = vld [vmem:[%s14583_s6 + $0x884] ss:$24 sps:$4 sm:$0xff]  }
 0x277   :  { %3797 = vmatpush2.bf16.msra.mxu0 %v10222_v24  ;;  %v10327_v24 = vld [vmem:[%s14587_s10 + $0x230] ss:$20 sps:$4 sm:$0xff]  }
 0x278   :  { %3758 = vmatmul.mubr.bf16.vlgmr.msra.gmra.mxu1 %v12130_v39  ;;  %v3513_v33 = vpop.f32.mrf.mxu1  ;;  %7199 = vmatprep.subr.bf16.mxu0 %v10275_v26  ;;  %v10233_v39 = vld [vmem:[%s14583_s6 + $0x704] ss:$24 sps:$4 sm:$0xff]   ;;  %v10335_v26 = vld [vmem:[%s14587_s10 + $0x20c] ss:$20 sps:$4 sm:$0xff]  }
 0x279   :  { %v3514_v37 = vadd.f32 %v3513_v33, %v2012_v29  ;;  %3808 = vmatpush1.bf16.msra.mxu1 %v10225_v27  ;;  %3839 = vmatprep.mubr.bf16.mxu1 %v12142_v45  ;;  %v10279_v45 = vld [vmem:[%s14587_s10 + $0xf0] ss:$20 sps:$4 sm:$0xff]   ;;  %v10255_v27 = vld [vmem:[%s14583_s6 + $0x880] ss:$24 sps:$4 sm:$0xff]   ;;  %v10260_v29 = vld [vmem:[%s14583_s6 + $0x854] ss:$24 sps:$4 sm:$0xff]  }
 0x27a   :  { %3799 = vmatmul.mubr.bf16.vlgmr.msra.gmra.mxu0 %v12144_v46  ;;  %v3515_v28 = vpop.f32.mrf.mxu1  ;;  %v3554_v36 = vpop.f32.mrf.mxu0  ;;  %3809 = vmatprep.subr.bf16.mxu1 %v10230_v30  ;;  %v10287_v46 = vld [vmem:[%s14587_s10 + $0xcc] ss:$20 sps:$4 sm:$0xff]   ;;  %v10333_v30 = vld [vmem:[%s14587_s10 + $0x208] ss:$20 sps:$4 sm:$0xff]  }
 0x27b   :  { %v3516_v35 = vadd.f32 %v3515_v28, %v2016_v31  ;;  %v12765_v47 = vadd.f32 %v3554_v36, %v3514_v37  ;;  %7200 = vmatpush1.bf16.msra.mxu0 %v10273_v32  ;;  %v10341_v31 = vld [vmem:[%s14587_s10 + $0x1e4] ss:$20 sps:$4 sm:$0xff]   ;;  %v10258_v32 = vld [vmem:[%s14583_s6 + $0x850] ss:$24 sps:$4 sm:$0xff]   ;;  %v10266_v28 = vld [vmem:[%s14583_s6 + $0x7f4] ss:$24 sps:$4 sm:$0xff]  }
 0x27c   :  { %v3517_v48 = vpop.f32.mrf.mxu1  ;;  %v3556_v50 = vpop.f32.mrf.mxu0  ;;  %7201 = vmatprep.subr.bf16.mxu0 %v10281_v34  ;;  %v10263_v33 = vld [vmem:[%s14583_s6 + $0x824] ss:$24 sps:$4 sm:$0xff]   ;;  %v10339_v34 = vld [vmem:[%s14587_s10 + $0x1e0] ss:$20 sps:$4 sm:$0xff]   ;;  %v10345_v36 = vld [vmem:[%s14587_s10 + $0x1b8] ss:$20 sps:$4 sm:$0xff]  }
 0x27d   :  { %v12773_v51 = vadd.f32 %v3556_v50, %v3516_v35  ;;  %3810 = vmatpush1.bf16.msra.mxu1 %v10228_v41  ;;  %v10347_v37 = vld [vmem:[%s14587_s10 + $0x1bc] ss:$20 sps:$4 sm:$0xff]   ;;  %v10261_v41 = vld [vmem:[%s14583_s6 + $0x820] ss:$24 sps:$4 sm:$0xff]  }
 0x27e   :  { %v3518_v55 = vpop.f32.mrf.mxu1  ;;  %v3558_v56 = vpop.f32.mrf.mxu0  ;;  %3811 = vmatprep.subr.bf16.mxu1 %v10233_v39  ;;  %v10353_v39 = vld [vmem:[%s14587_s10 + $0x194] ss:$20 sps:$4 sm:$0xff]   ;;  %v10351_v48 = vld [vmem:[%s14587_s10 + $0x190] ss:$20 sps:$4 sm:$0xff]   ;;  %v10359_v50 = vld [vmem:[%s14587_s10 + $0x16c] ss:$20 sps:$4 sm:$0xff]  }
 0x27f   :  { %7202 = vmatpush1.bf16.msra.mxu0 %v10279_v45  ;;  %v10264_v35 = vld [vmem:[%s14583_s6 + $0x7f0] ss:$24 sps:$4 sm:$0xff]   ;;  %v10269_v45 = vld [vmem:[%s14583_s6 + $0x7c4] ss:$24 sps:$4 sm:$0xff]  }
 0x280   :  { %v3559_v58 = vpop.f32.mrf.mxu0  ;;  %7203 = vmatprep.subr.bf16.mxu0 %v10287_v46  ;;  %v10267_v46 = vld [vmem:[%s14583_s6 + $0x7c0] ss:$24 sps:$4 sm:$0xff]   ;;  %v10357_v55 = vld [vmem:[%s14587_s10 + $0x168] ss:$20 sps:$4 sm:$0xff]  }
 0x281   :  { %3812 = vmatpush1.bf16.msra.mxu1 %v10231_v54  ;;  %v10272_v54 = vld [vmem:[%s14583_s6 + $0x794] ss:$24 sps:$4 sm:$0xff]   ;;  %v10365_v56 = vld [vmem:[%s14587_s10 + $0x144] ss:$20 sps:$4 sm:$0xff]  }
 0x282   :  { %3813 = vmatprep.subr.bf16.mxu1 %v10236_v57  ;;  %v10270_v57 = vld [vmem:[%s14583_s6 + $0x790] ss:$24 sps:$4 sm:$0xff]   ;;  %v10363_v58 = vld [vmem:[%s14587_s10 + $0x140] ss:$20 sps:$4 sm:$0xff]  }
 0x283   :  { %7204 = vmatpush1.bf16.msra.mxu0 %v10285_v7  ;;  %v10278_v7 = vld [vmem:[%s14587_s10 + $0x39c] ss:$20 sps:$4 sm:$0xff]  }
 0x284   :  { %7205 = vmatprep.subr.bf16.mxu0 %v10293_v59  ;;  %v10276_v59 = vld [vmem:[%s14587_s10 + $0x398] ss:$20 sps:$4 sm:$0xff]  }
 0x285   :  { %3814 = vmatpush1.bf16.msra.mxu1 %v10234_v60  ;;  %v10284_v60 = vld [vmem:[%s14587_s10 + $0x374] ss:$20 sps:$4 sm:$0xff]  }
 0x286   :  { %3815 = vmatprep.subr.bf16.mxu1 %v10239_v61 }
 0x287   :  { %7206 = vmatpush1.bf16.msra.mxu0 %v10291_v62 }
 0x288   :  { %7207 = vmatprep.subr.bf16.mxu0 %v10299_v43  ;;  %v10282_v43 = vld [vmem:[%s14587_s10 + $0x370] ss:$20 sps:$4 sm:$0xff]  }
 0x289   :  { %3816 = vmatpush1.bf16.msra.mxu1 %v10237_v0 }
 0x28a   :  { %3817 = vmatprep.subr.bf16.mxu1 %v10242_v38 }
 0x28b   :  { %7208 = vmatpush1.bf16.msra.mxu0 %v10297_v1  ;;  %v10290_v1 = vld [vmem:[%s14587_s10 + $0x34c] ss:$20 sps:$4 sm:$0xff]  }
 0x28c   :  { %7209 = vmatprep.subr.bf16.mxu0 %v10305_v25 }
 0x28d   :  { %3818 = vmatpush1.bf16.msra.mxu1 %v10240_v2 }
 0x28e   :  { %3819 = vmatprep.subr.bf16.mxu1 %v10245_v4 }
 0x28f   :  { %7210 = vmatpush1.bf16.msra.mxu0 %v10303_v3  ;;  %v10288_v3 = vld [vmem:[%s14587_s10 + $0x348] ss:$20 sps:$4 sm:$0xff]  }
 0x290   :  { %7211 = vmatprep.subr.bf16.mxu0 %v10311_v5 }
 0x291   :  { %3820 = vmatpush1.bf16.msra.mxu1 %v10243_v6 }
 0x292   :  { %3821 = vmatprep.subr.bf16.mxu1 %v10248_v8  ;;  %v10296_v8 = vld [vmem:[%s14587_s10 + $0x324] ss:$20 sps:$4 sm:$0xff]  }
 0x293   :  { %7212 = vmatpush1.bf16.msra.mxu0 %v10309_v9 }
 0x294   :  { %7213 = vmatprep.subr.bf16.mxu0 %v10317_v12 }
 0x295   :  { %3822 = vmatpush1.bf16.msra.mxu1 %v10246_v13 }
 0x296   :  { %3823 = vmatprep.subr.bf16.mxu1 %v10251_v14  ;;  %v10371_v14 = vld [vmem:[%s14587_s10 + $0x61c] ss:$20 sps:$4 sm:$0xff]  }
 0x297   :  { %7214 = vmatpush1.bf16.msra.mxu0 %v10315_v16  ;;  %v10294_v16 = vld [vmem:[%s14587_s10 + $0x320] ss:$20 sps:$4 sm:$0xff]  }
 0x298   :  { %7215 = vmatprep.subr.bf16.mxu0 %v10323_v17  ;;  %v10302_v17 = vld [vmem:[%s14587_s10 + $0x2fc] ss:$20 sps:$4 sm:$0xff]  }
 0x299   :  { %3824 = vmatpush2.bf16.msra.mxu1 %v10249_v19  ;;  %v10300_v19 = vld [vmem:[%s14587_s10 + $0x2f8] ss:$20 sps:$4 sm:$0xff]  }
 0x29a   :  { %3825 = vmatprep.subr.bf16.mxu1 %v10254_v20  ;;  %v10308_v20 = vld [vmem:[%s14587_s10 + $0x2d4] ss:$20 sps:$4 sm:$0xff]  }
 0x29b   :  { %7216 = vmatpush2.bf16.msra.mxu0 %v10321_v21  ;;  %v10306_v21 = vld [vmem:[%s14587_s10 + $0x2d0] ss:$20 sps:$4 sm:$0xff]  }
 0x29c   :  { %7217 = vmatprep.subr.bf16.mxu0 %v10329_v18  ;;  %v10314_v18 = vld [vmem:[%s14587_s10 + $0x2ac] ss:$20 sps:$4 sm:$0xff]  }
 0x29d   :  { %3826 = vmatpush2.bf16.msra.mxu1 %v10252_v22  ;;  %v10312_v22 = vld [vmem:[%s14587_s10 + $0x2a8] ss:$20 sps:$4 sm:$0xff]  }
 0x29e   :  { %3827 = vmatprep.subr.bf16.mxu1 %v10257_v23  ;;  %v10320_v23 = vld [vmem:[%s14587_s10 + $0x284] ss:$20 sps:$4 sm:$0xff]  }
 0x29f   :  { %7218 = vmatpush2.bf16.msra.mxu0 %v10327_v24  ;;  %v10318_v24 = vld [vmem:[%s14587_s10 + $0x280] ss:$20 sps:$4 sm:$0xff]  }
 0x2a0   :  { %7219 = vmatprep.subr.bf16.mxu0 %v10335_v26  ;;  %v10326_v26 = vld [vmem:[%s14587_s10 + $0x4dc] ss:$20 sps:$4 sm:$0xff]  }
 0x2a1   :  { %3828 = vmatpush2.bf16.msra.mxu1 %v10255_v27  ;;  %v10324_v27 = vld [vmem:[%s14587_s10 + $0x4d8] ss:$20 sps:$4 sm:$0xff]  }
 0x2a2   :  { %3829 = vmatprep.subr.bf16.mxu1 %v10260_v29  ;;  %v10332_v29 = vld [vmem:[%s14587_s10 + $0x4b4] ss:$20 sps:$4 sm:$0xff]  }
 0x2a3   :  { %7220 = vmatpush2.bf16.msra.mxu0 %v10333_v30  ;;  %v10330_v30 = vld [vmem:[%s14587_s10 + $0x4b0] ss:$20 sps:$4 sm:$0xff]  }
 0x2a4   :  { %7221 = vmatprep.subr.bf16.mxu0 %v10341_v31  ;;  %v10338_v31 = vld [vmem:[%s14587_s10 + $0x48c] ss:$20 sps:$4 sm:$0xff]  }
 0x2a5   :  { %3830 = vmatpush2.bf16.msra.mxu1 %v10258_v32  ;;  %v10336_v32 = vld [vmem:[%s14587_s10 + $0x488] ss:$20 sps:$4 sm:$0xff]  }
 0x2a6   :  { %3831 = vmatprep.subr.bf16.mxu1 %v10263_v33  ;;  %v10344_v33 = vld [vmem:[%s14587_s10 + $0x464] ss:$20 sps:$4 sm:$0xff]  }
 0x2a7   :  { %7222 = vmatpush2.bf16.msra.mxu0 %v10339_v34  ;;  %v10342_v34 = vld [vmem:[%s14587_s10 + $0x460] ss:$20 sps:$4 sm:$0xff]  }
 0x2a8   :  { %7223 = vmatprep.subr.bf16.mxu0 %v10347_v37  ;;  %v10350_v37 = vld [vmem:[%s14587_s10 + $0x43c] ss:$20 sps:$4 sm:$0xff]  }
 0x2a9   :  { %3832 = vmatpush2.bf16.msra.mxu1 %v10261_v41  ;;  %v10348_v41 = vld [vmem:[%s14587_s10 + $0x438] ss:$20 sps:$4 sm:$0xff]  }
 0x2aa   :  { %3833 = vmatprep.subr.bf16.mxu1 %v10266_v28  ;;  %v10356_v28 = vld [vmem:[%s14587_s10 + $0x414] ss:$20 sps:$4 sm:$0xff]  }
 0x2ab   :  { %7224 = vmatpush2.bf16.msra.mxu0 %v10345_v36  ;;  %v10354_v36 = vld [vmem:[%s14587_s10 + $0x410] ss:$20 sps:$4 sm:$0xff]  }
 0x2ac   :  { %7225 = vmatprep.subr.bf16.mxu0 %v10353_v39  ;;  %v10362_v39 = vld [vmem:[%s14587_s10 + $0x3ec] ss:$20 sps:$4 sm:$0xff]  }
 0x2ad   :  { %3834 = vmatpush2.bf16.msra.mxu1 %v10264_v35  ;;  %v10360_v35 = vld [vmem:[%s14587_s10 + $0x3e8] ss:$20 sps:$4 sm:$0xff]  }
 0x2ae   :  { %3835 = vmatprep.subr.bf16.mxu1 %v10269_v45  ;;  %v10368_v45 = vld [vmem:[%s14587_s10 + $0x3c4] ss:$20 sps:$4 sm:$0xff]  }
 0x2af   :  { %7226 = vmatpush2.bf16.msra.mxu0 %v10351_v48  ;;  %v10366_v48 = vld [vmem:[%s14587_s10 + $0x3c0] ss:$20 sps:$4 sm:$0xff]  }
 0x2b0   :  { %7227 = vmatprep.subr.bf16.mxu0 %v10359_v50  ;;  %v10374_v50 = vld [vmem:[%s14587_s10 + $0x89c] ss:$20 sps:$4 sm:$0xff]  }
 0x2b1   :  { %3836 = vmatpush2.bf16.msra.mxu1 %v10267_v46  ;;  %v2020_v46 = vrot.slane %v12732_v44, %v12047_v42 }
 0x2b2   :  { %3837 = vmatprep.subr.bf16.mxu1 %v10272_v54  ;;  %v2024_v54 = vrot.slane %v12732_v44, %v12065_v40 }
 0x2b3   :  { %7228 = vmatpush2.bf16.msra.mxu0 %v10357_v55 }
 0x2b4   :  { %7229 = vmatprep.subr.bf16.mxu0 %v10365_v56 }
 0x2b5   :  { %3838 = vmatpush2.bf16.msra.mxu1 %v10270_v57 }
 0x2b6   :  { %7240 = vmatprep.subr.bf16.mxu1 %v10278_v7 }
 0x2b7   :  { %7230 = vmatpush2.bf16.msra.mxu0 %v10363_v58 }
 0x2b8   :  { %v3595_v61 = vpop.f32.mrf.mxu1  ;;  %3840 = vmatmul.mubr.bf16.vlgmr.msra.gmra.mxu1 %v12347_v63  ;;  %7281 = vmatprep.subr.bf16.mxu0 %v10371_v14 }
 0x2b9   :  { %v3596_v62 = vadd.f32 %v3595_v61, %v12765_v47  ;;  %7241 = vmatpush1.bf16.msra.mxu1 %v10276_v59 }
 0x2ba   :  { %v3597_v0 = vpop.f32.mrf.mxu1  ;;  %v12951_v38 = vpop.f32.mrf.mxu0  ;;  %7242 = vmatprep.subr.bf16.mxu1 %v10284_v60 }
 0x2bb   :  { %v3854_v25 = vmul.f32 0.1, %v3596_v62  ;;  %v3598_v2 = vadd.f32 %v3597_v0, %v12773_v51  ;;  %vm3848_vm10 = vcmp.ge.f32.partialorder %v3596_v62, 0.0  ;;  %v3637_v55 = vadd.f32 %v12951_v38, %v2020_v46  ;;  %v10402_v46 = vld [vmem:[%s14587_s10 + $0x7d0] ss:$20 sps:$4 sm:$0xff]  }
 0x2bc   :  { %v3599_v63 = vpop.f32.mrf.mxu1  ;;  %v12957_v4 = vpop.f32.mrf.mxu0 }
 0x2bd   :  { %vm3849_vm11 = vcmp.ge.f32.partialorder %v3598_v2, 0.0  ;;  %v3855_v47 = vmul.f32 0.1, %v3598_v2  ;;  %7243 = vmatpush1.bf16.msra.mxu1 %v10282_v43  ;;  %v12965_v9 = vsel %vm3848_vm10, %v3596_v62, %v3854_v25  ;;  %v3639_v57 = vadd.f32 %v12957_v4, %v2024_v54  ;;  %v10410_v54 = vld [vmem:[%s14587_s10 + $0x7ac] ss:$20 sps:$4 sm:$0xff]  }
 0x2be   :  { %v3600_v5 = vpop.f32.mrf.mxu1  ;;  %v3640_v6 = vpop.f32.mrf.mxu0  ;;  %7244 = vmatprep.subr.bf16.mxu1 %v10290_v1 }
 0x2bf   :  { %v12967_v51 = vsel %vm3849_vm11, %v3598_v2, %v3855_v47 }
 0x2c0   :  { %v3872_v12 = vcombine.low %v12965_v9, %v12967_v51  ;;  %v3641_v13 = vpop.f32.mrf.mxu0  ;;  %v10369_v9 = vld [vmem:[%s14587_s10 + $0x618] ss:$20 sps:$4 sm:$0xff]  }
 0x2c1   :  { %7245 = vmatpush1.bf16.msra.mxu1 %v10288_v3 }
 0x2c2   :  { %7246 = vmatprep.subr.bf16.mxu1 %v10296_v8  ;;  %v3880_v4 = vrot.slane %v3872_v12, %v11237_v49  ;;  %v10377_v12 = vld [vmem:[%s14587_s10 + $0x5f4] ss:$20 sps:$4 sm:$0xff]  }
 0x2c5   :  { %7247 = vmatpush1.bf16.msra.mxu1 %v10294_v16 }
 0x2c6   :  { %7248 = vmatprep.subr.bf16.mxu1 %v10302_v17 }
 0x2c9   :  { %7249 = vmatpush1.bf16.msra.mxu1 %v10300_v19 }
 0x2ca   :  { %7250 = vmatprep.subr.bf16.mxu1 %v10308_v20 }
 0x2cd   :  { %7251 = vmatpush1.bf16.msra.mxu1 %v10306_v21 }
 0x2ce   :  { %7252 = vmatprep.subr.bf16.mxu1 %v10314_v18  ;;  %v10372_v18 = vld [vmem:[%s14587_s10 + $0x898] ss:$20 sps:$4 sm:$0xff]  }
 0x2d1   :  { %7253 = vmatpush1.bf16.msra.mxu1 %v10312_v22 }
 0x2d2   :  { %7254 = vmatprep.subr.bf16.mxu1 %v10320_v23  ;;  %v10380_v23 = vld [vmem:[%s14587_s10 + $0x874] ss:$20 sps:$4 sm:$0xff]  }
 0x2d5   :  { %7255 = vmatpush1.bf16.msra.mxu1 %v10318_v24  ;;  %v10375_v24 = vld [vmem:[%s14587_s10 + $0x5f0] ss:$20 sps:$4 sm:$0xff]  }
 0x2d6   :  { %7256 = vmatprep.subr.bf16.mxu1 %v10326_v26  ;;  %v10383_v26 = vld [vmem:[%s14587_s10 + $0x5cc] ss:$20 sps:$4 sm:$0xff]  }
 0x2d9   :  { %7257 = vmatpush2.bf16.msra.mxu1 %v10324_v27  ;;  %v10378_v27 = vld [vmem:[%s14587_s10 + $0x870] ss:$20 sps:$4 sm:$0xff]  }
 0x2da   :  { %7258 = vmatprep.subr.bf16.mxu1 %v10332_v29  ;;  %v10386_v29 = vld [vmem:[%s14587_s10 + $0x84c] ss:$20 sps:$4 sm:$0xff]  }
 0x2dd   :  { %7259 = vmatpush2.bf16.msra.mxu1 %v10330_v30  ;;  %v10381_v30 = vld [vmem:[%s14587_s10 + $0x5c8] ss:$20 sps:$4 sm:$0xff]  }
 0x2de   :  { %7260 = vmatprep.subr.bf16.mxu1 %v10338_v31  ;;  %v10389_v31 = vld [vmem:[%s14587_s10 + $0x5a4] ss:$20 sps:$4 sm:$0xff]  }
 0x2e1   :  { %7261 = vmatpush2.bf16.msra.mxu1 %v10336_v32  ;;  %v10384_v32 = vld [vmem:[%s14587_s10 + $0x848] ss:$20 sps:$4 sm:$0xff]  }
 0x2e2   :  { %7262 = vmatprep.subr.bf16.mxu1 %v10344_v33  ;;  %v10392_v33 = vld [vmem:[%s14587_s10 + $0x824] ss:$20 sps:$4 sm:$0xff]  }
 0x2e5   :  { %7263 = vmatpush2.bf16.msra.mxu1 %v10342_v34  ;;  %v10387_v34 = vld [vmem:[%s14587_s10 + $0x5a0] ss:$20 sps:$4 sm:$0xff]  }
 0x2e6   :  { %7264 = vmatprep.subr.bf16.mxu1 %v10350_v37  ;;  %v10395_v37 = vld [vmem:[%s14587_s10 + $0x57c] ss:$20 sps:$4 sm:$0xff]  }
 0x2e9   :  { %7265 = vmatpush2.bf16.msra.mxu1 %v10348_v41  ;;  %v10390_v41 = vld [vmem:[%s14587_s10 + $0x820] ss:$20 sps:$4 sm:$0xff]  }
 0x2ea   :  { %7266 = vmatprep.subr.bf16.mxu1 %v10356_v28  ;;  %v10398_v28 = vld [vmem:[%s14587_s10 + $0x7fc] ss:$20 sps:$4 sm:$0xff]  }
 0x2ed   :  { %7267 = vmatpush2.bf16.msra.mxu1 %v10354_v36  ;;  %v10393_v36 = vld [vmem:[%s14587_s10 + $0x578] ss:$20 sps:$4 sm:$0xff]  }
 0x2ee   :  { %7268 = vmatprep.subr.bf16.mxu1 %v10362_v39  ;;  %v10401_v39 = vld [vmem:[%s14587_s10 + $0x554] ss:$20 sps:$4 sm:$0xff]  }
 0x2f1   :  { %7269 = vmatpush2.bf16.msra.mxu1 %v10360_v35  ;;  %v10396_v35 = vld [vmem:[%s14587_s10 + $0x7f8] ss:$20 sps:$4 sm:$0xff]  }
 0x2f2   :  { %7270 = vmatprep.subr.bf16.mxu1 %v10368_v45  ;;  %v10404_v45 = vld [vmem:[%s14587_s10 + $0x7d4] ss:$20 sps:$4 sm:$0xff]  }
 0x2f5   :  { %7271 = vmatpush2.bf16.msra.mxu1 %v10366_v48  ;;  %v10399_v48 = vld [vmem:[%s14587_s10 + $0x550] ss:$20 sps:$4 sm:$0xff]  }
 0x2f6   :  { %7322 = vmatprep.subr.bf16.mxu1 %v10374_v50  ;;  %v10407_v50 = vld [vmem:[%s14587_s10 + $0x52c] ss:$20 sps:$4 sm:$0xff]  }
 0x2f8   :  { %v3677_v56 = vpop.f32.mrf.mxu1 }
 0x2f9   :  { %v3678_v7 = vadd.f32 %v3677_v56, %v3637_v55  ;;  %v10405_v55 = vld [vmem:[%s14587_s10 + $0x528] ss:$20 sps:$4 sm:$0xff]   ;;  %v10413_v56 = vld [vmem:[%s14587_s10 + $0x504] ss:$20 sps:$4 sm:$0xff]  }
 0x2fa   :  { %v3679_v58 = vpop.f32.mrf.mxu1  ;;  %v3718_v59 = vpop.f32.mrf.mxu0 }
 0x2fb   :  { %v3680_v60 = vadd.f32 %v3679_v58, %v3639_v57  ;;  %v3719_v61 = vadd.f32 %v3718_v59, %v3678_v7  ;;  %v10408_v57 = vld [vmem:[%s14587_s10 + $0x7a8] ss:$20 sps:$4 sm:$0xff]   ;;  %v10416_v7 = vld [vmem:[%s14587_s10 + $0x784] ss:$20 sps:$4 sm:$0xff]   ;;  %v10411_v58 = vld [vmem:[%s14587_s10 + $0x500] ss:$20 sps:$4 sm:$0xff]  }
 0x2fc   :  { %v3681_v62 = vpop.f32.mrf.mxu1  ;;  %v3720_v43 = vpop.f32.mrf.mxu0  ;;  %v10419_v59 = vld [vmem:[%s14587_s10 + $0x75c] ss:$20 sps:$4 sm:$0xff]  }
 0x2fd   :  { %v3856_v0 = vmul.f32 0.1, %v3719_v61  ;;  %v3721_v1 = vadd.f32 %v3720_v43, %v3680_v60  ;;  %vm3850_vm12 = vcmp.ge.f32.partialorder %v3719_v61, 0.0  ;;  %v10414_v60 = vld [vmem:[%s14587_s10 + $0x780] ss:$20 sps:$4 sm:$0xff]  }
 0x2fe   :  { %v3682_v25 = vpop.f32.mrf.mxu1  ;;  %v3722_v2 = vpop.f32.mrf.mxu0  ;;  %v10417_v62 = vld [vmem:[%s14587_s10 + $0x758] ss:$20 sps:$4 sm:$0xff]   ;;  %v10425_v43 = vld [vmem:[%s14587_s10 + $0x734] ss:$20 sps:$4 sm:$0xff]  }
 0x2ff   :  { %vm3851_vm13 = vcmp.ge.f32.partialorder %v3721_v1, 0.0  ;;  %v3857_v63 = vmul.f32 0.1, %v3721_v1  ;;  %v3862_v3 = vsel %vm3850_vm12, %v3719_v61, %v3856_v0  ;;  %v10422_v61 = vld [vmem:[%s14587_s10 + $0x9dc] ss:$20 sps:$4 sm:$0xff]  }
 0x300   :  { %v3723_v47 = vpop.f32.mrf.mxu0  ;;  %v10420_v0 = vld [vmem:[%s14587_s10 + $0x9d8] ss:$20 sps:$4 sm:$0xff]   ;;  %v10423_v25 = vld [vmem:[%s14587_s10 + $0x730] ss:$20 sps:$4 sm:$0xff]  }
 0x301   :  { %v3863_v38 = vsel %vm3851_vm13, %v3721_v1, %v3857_v63  ;;  %v10428_v1 = vld [vmem:[%s14587_s10 + $0x9b4] ss:$20 sps:$4 sm:$0xff]   ;;  %v10431_v2 = vld [vmem:[%s14587_s10 + $0x70c] ss:$20 sps:$4 sm:$0xff]   ;;  %v10426_v63 = vld [vmem:[%s14587_s10 + $0x9b0] ss:$20 sps:$4 sm:$0xff]  }
 0x302   :  { %v3873_v5 = vcombine.low %v3862_v3, %v3863_v38  ;;  %v10434_v47 = vld [vmem:[%s14587_s10 + $0x98c] ss:$20 sps:$4 sm:$0xff]   ;;  %v10429_v3 = vld [vmem:[%s14587_s10 + $0x708] ss:$20 sps:$4 sm:$0xff]   ;;  %v10437_v38 = vld [vmem:[%s14587_s10 + $0x6e4] ss:$20 sps:$4 sm:$0xff]  }
 0x304   :  { %v3887_v6 = vrot.slane %v3873_v5, %v11237_v49  ;;  %v10432_v5 = vld [vmem:[%s14587_s10 + $0x988] ss:$20 sps:$4 sm:$0xff]  }
 0x306   :  { %v3888_v8 = vcombine.low %v3880_v4, %v3887_v6  ;;  %v10988_v14 = vcombine.low %v3887_v6, %v3887_v6  ;;  %v10440_v4 = vld [vmem:[%s14587_s10 + $0x964] ss:$20 sps:$4 sm:$0xff]  }
 0x308   :  { %3899 = vst [vmem:[%s14592_s15] sm:$0xff] %v3888_v8  ;;  %v4032_v13 = vrot.slane %v3888_v8, %v11237_v49  ;;  %v4039_v17 = vrot.slane %v10988_v14, %v11237_v49  ;;  %v10435_v8 = vld [vmem:[%s14587_s10 + $0x6e0] ss:$20 sps:$4 sm:$0xff]  }
 0x30a   :  { %v4040_v16 = vcombine.high %v4032_v13, %v4032_v13  ;;  %v4041_v20 = vcombine.high %v4039_v17, %v4039_v17  ;;  %v13073_v51 = vpack.c.bf16 %v4032_v13, %v4032_v13  ;;  %v13085_v22 = vpack.c.bf16 %v4039_v17, %v4039_v17  ;;  %v10443_v13 = vld [vmem:[%s14587_s10 + $0x6bc] ss:$20 sps:$4 sm:$0xff]   ;;  %v10438_v17 = vld [vmem:[%s14587_s10 + $0x960] ss:$20 sps:$4 sm:$0xff]  }
 0x30c   :  { %v13068_v19 = vpack.c.bf16 %v4040_v16, %v4040_v16  ;;  %v13079_v21 = vpack.c.bf16 %v4041_v20, %v4041_v20  ;;  %v10446_v20 = vld [vmem:[%s14587_s10 + $0x93c] ss:$20 sps:$4 sm:$0xff]  }
 0x30e   :  { %7231 = vmatprep.mubr.bf16.mxu0 %v13068_v19  ;;  %7272 = vmatprep.mubr.bf16.mxu1 %v13079_v21 }
 0x30f   :  { %7232 = vmatmul.mubr.bf16.vlgmr.msra.gmra.mxu0 %v13073_v51  ;;  %7273 = vmatmul.mubr.bf16.vlgmr.msra.gmra.mxu1 %v13085_v22 }
 0x310   :  { %7282 = vmatpush1.bf16.msra.mxu0 %v10369_v9  ;;  %7323 = vmatpush1.bf16.msra.mxu1 %v10372_v18  ;;  %v10441_v18 = vld [vmem:[%s14587_s10 + $0x6b8] ss:$20 sps:$4 sm:$0xff]  }
 0x311   :  { %7283 = vmatprep.subr.bf16.mxu0 %v10377_v12  ;;  %7324 = vmatprep.subr.bf16.mxu1 %v10380_v23  ;;  %v10449_v23 = vld [vmem:[%s14587_s10 + $0x694] ss:$20 sps:$4 sm:$0xff]  }
 0x314   :  { %7284 = vmatpush1.bf16.msra.mxu0 %v10375_v24  ;;  %7325 = vmatpush1.bf16.msra.mxu1 %v10378_v27  ;;  %v10444_v27 = vld [vmem:[%s14587_s10 + $0x938] ss:$20 sps:$4 sm:$0xff]  }
 0x315   :  { %7285 = vmatprep.subr.bf16.mxu0 %v10383_v26  ;;  %7326 = vmatprep.subr.bf16.mxu1 %v10386_v29  ;;  %v10452_v29 = vld [vmem:[%s14587_s10 + $0x914] ss:$20 sps:$4 sm:$0xff]  }
 0x318   :  { %7286 = vmatpush1.bf16.msra.mxu0 %v10381_v30  ;;  %7327 = vmatpush1.bf16.msra.mxu1 %v10384_v32  ;;  %v10455_v32 = vld [vmem:[%s14587_s10 + $0x66c] ss:$20 sps:$4 sm:$0xff]  }
 0x319   :  { %7287 = vmatprep.subr.bf16.mxu0 %v10389_v31  ;;  %7328 = vmatprep.subr.bf16.mxu1 %v10392_v33  ;;  %v10447_v31 = vld [vmem:[%s14587_s10 + $0x690] ss:$20 sps:$4 sm:$0xff]  }
 0x31a   :  { %v10450_v33 = vld [vmem:[%s14587_s10 + $0x910] ss:$20 sps:$4 sm:$0xff]  }
 0x31c   :  { %7288 = vmatpush1.bf16.msra.mxu0 %v10387_v34  ;;  %7329 = vmatpush1.bf16.msra.mxu1 %v10390_v41  ;;  %v10458_v34 = vld [vmem:[%s14587_s10 + $0x8ec] ss:$20 sps:$4 sm:$0xff]   ;;  %v10461_v41 = vld [vmem:[%s14587_s10 + $0x644] ss:$20 sps:$4 sm:$0xff]  }
 0x31d   :  { %7289 = vmatprep.subr.bf16.mxu0 %v10395_v37  ;;  %7330 = vmatprep.subr.bf16.mxu1 %v10398_v28  ;;  %v10453_v37 = vld [vmem:[%s14587_s10 + $0x668] ss:$20 sps:$4 sm:$0xff]  }
 0x31e   :  { %v10456_v28 = vld [vmem:[%s14587_s10 + $0x8e8] ss:$20 sps:$4 sm:$0xff]  }
 0x320   :  { %7290 = vmatpush1.bf16.msra.mxu0 %v10393_v36  ;;  %7331 = vmatpush1.bf16.msra.mxu1 %v10396_v35  ;;  %v10464_v36 = vld [vmem:[%s14587_s10 + $0x8c4] ss:$20 sps:$4 sm:$0xff]   ;;  %v10467_v35 = vld [vmem:[%s14587_s10 + $0xb1c] ss:$20 sps:$4 sm:$0xff]  }
 0x321   :  { %7291 = vmatprep.subr.bf16.mxu0 %v10401_v39  ;;  %7332 = vmatprep.subr.bf16.mxu1 %v10404_v45  ;;  %v10459_v39 = vld [vmem:[%s14587_s10 + $0x640] ss:$20 sps:$4 sm:$0xff]  }
 0x322   :  { %v10462_v45 = vld [vmem:[%s14587_s10 + $0x8c0] ss:$20 sps:$4 sm:$0xff]  }
 0x324   :  { %7292 = vmatpush1.bf16.msra.mxu0 %v10399_v48  ;;  %7333 = vmatpush1.bf16.msra.mxu1 %v10402_v46  ;;  %v10471_v48 = vld [vmem:[%s14587_s10 + $0xd9c] ss:$20 sps:$4 sm:$0xff]   ;;  %v2032_v46 = vrot.slane %v12732_v44, %v12081_v53 }
 0x325   :  { %7293 = vmatprep.subr.bf16.mxu0 %v10407_v50  ;;  %7334 = vmatprep.subr.bf16.mxu1 %v10410_v54  ;;  %v2028_v50 = vrot.slane %v12732_v44, %v12078_v52  ;;  %v4021_v53 = vld [vmem:[%s14592_s15 + $0x10] sm:$0xff] }
 0x326   :  { %v4059_v44 = vcombine.high %v4021_v53, %v4021_v53 }
 0x328   :  { %7294 = vmatpush1.bf16.msra.mxu0 %v10405_v55  ;;  %7335 = vmatpush1.bf16.msra.mxu1 %v10408_v57 }
 0x329   :  { %7295 = vmatprep.subr.bf16.mxu0 %v10413_v56  ;;  %7336 = vmatprep.subr.bf16.mxu1 %v10416_v7 }
 0x32c   :  { %7296 = vmatpush1.bf16.msra.mxu0 %v10411_v58  ;;  %7337 = vmatpush1.bf16.msra.mxu1 %v10414_v60 }
 0x32d   :  { %7297 = vmatprep.subr.bf16.mxu0 %v10419_v59  ;;  %7338 = vmatprep.subr.bf16.mxu1 %v10422_v61 }
 0x330   :  { %7298 = vmatpush2.bf16.msra.mxu0 %v10417_v62  ;;  %7339 = vmatpush2.bf16.msra.mxu1 %v10420_v0 }
 0x331   :  { %7299 = vmatprep.subr.bf16.mxu0 %v10425_v43  ;;  %7340 = vmatprep.subr.bf16.mxu1 %v10428_v1 }
 0x334   :  { %7300 = vmatpush2.bf16.msra.mxu0 %v10423_v25  ;;  %7341 = vmatpush2.bf16.msra.mxu1 %v10426_v63 }
 0x335   :  { %7301 = vmatprep.subr.bf16.mxu0 %v10431_v2  ;;  %7342 = vmatprep.subr.bf16.mxu1 %v10434_v47  ;;  %v13286_v47 = vrot.slane %v4021_v53, %v11237_v49  ;;  %v10521_v53 = vld [vmem:[%s14587_s10 + $0xc30] ss:$20 sps:$4 sm:$0xff]  }
 0x338   :  { %v3759_v6 = vpop.f32.mrf.mxu1  ;;  %7302 = vmatpush2.bf16.msra.mxu0 %v10429_v3  ;;  %7343 = vmatpush2.bf16.msra.mxu1 %v10432_v5  ;;  %v13290_v5 = vrot.slane %v4059_v44, %v11237_v49  ;;  %v10529_v44 = vld [vmem:[%s14587_s10 + $0xc0c] ss:$20 sps:$4 sm:$0xff]  }
 0x339   :  { %7303 = vmatprep.subr.bf16.mxu0 %v10437_v38  ;;  %7344 = vmatprep.subr.bf16.mxu1 %v10440_v4  ;;  %v3760_v54 = vadd.f32 %v3759_v6, %v2028_v50  ;;  %v10502_v50 = vld [vmem:[%s14587_s10 + $0xcd4] ss:$20 sps:$4 sm:$0xff]  }
 0x33a   :  { %v3761_v14 = vpop.f32.mrf.mxu1  ;;  %v3800_v16 = vpop.f32.mrf.mxu0 }
 0x33b   :  { %v3762_v55 = vadd.f32 %v3761_v14, %v2032_v46  ;;  %v3801_v56 = vadd.f32 %v3800_v16, %v3760_v54  ;;  %v10465_v14 = vld [vmem:[%s14587_s10 + $0xb18] ss:$20 sps:$4 sm:$0xff]   ;;  %v10497_v46 = vld [vmem:[%s14587_s10 + $0xa50] ss:$20 sps:$4 sm:$0xff]  }
 0x33c   :  { %v3763_v9 = vpop.f32.mrf.mxu1  ;;  %v3802_v12 = vpop.f32.mrf.mxu0  ;;  %7304 = vmatpush2.bf16.msra.mxu0 %v10435_v8  ;;  %7345 = vmatpush2.bf16.msra.mxu1 %v10438_v17  ;;  %v4074_v8 = vcombine.high %v13286_v47, %v13286_v47  ;;  %v10505_v54 = vld [vmem:[%s14587_s10 + $0xa2c] ss:$20 sps:$4 sm:$0xff]  }
 0x33d   :  { %7305 = vmatprep.subr.bf16.mxu0 %v10443_v13  ;;  %7346 = vmatprep.subr.bf16.mxu1 %v10446_v20  ;;  %v3803_v7 = vadd.f32 %v3802_v12, %v3762_v55  ;;  %v4075_v20 = vcombine.high %v13290_v5, %v13290_v5  ;;  %v10474_v12 = vld [vmem:[%s14587_s10 + $0xaf4] ss:$20 sps:$4 sm:$0xff]   ;;  %v10500_v55 = vld [vmem:[%s14587_s10 + $0xcd0] ss:$20 sps:$4 sm:$0xff]  }
 0x33e   :  { %v3764_v24 = vpop.f32.mrf.mxu1  ;;  %v3804_v26 = vpop.f32.mrf.mxu0 }
 0x33f   :  { %v10478_v24 = vld [vmem:[%s14587_s10 + $0xd74] ss:$20 sps:$4 sm:$0xff]   ;;  %v10472_v26 = vld [vmem:[%s14587_s10 + $0xaf0] ss:$20 sps:$4 sm:$0xff]  }
 0x340   :  { %v3805_v30 = vpop.f32.mrf.mxu0  ;;  %7306 = vmatpush2.bf16.msra.mxu0 %v10441_v18  ;;  %7347 = vmatpush2.bf16.msra.mxu1 %v10444_v27  ;;  %v13314_v18 = vpack.c.bf16 %v4074_v8, %v4074_v8  ;;  %v13327_v27 = vpack.c.bf16 %v4075_v20, %v4075_v20  ;;  %v10538_v8 = vld [vmem:[%s14587_s10 + $0xe64] ss:$20 sps:$4 sm:$0xff]   ;;  %v10536_v20 = vld [vmem:[%s14587_s10 + $0xe60] ss:$20 sps:$4 sm:$0xff]  }
 0x341   :  { %7307 = vmatprep.subr.bf16.mxu0 %v10449_v23  ;;  %7348 = vmatprep.subr.bf16.mxu1 %v10452_v29  ;;  %v10481_v29 = vld [vmem:[%s14587_s10 + $0xacc] ss:$20 sps:$4 sm:$0xff]   ;;  %v10476_v30 = vld [vmem:[%s14587_s10 + $0xd70] ss:$20 sps:$4 sm:$0xff]  }
 0x344   :  { %7308 = vmatpush2.bf16.msra.mxu0 %v10447_v31  ;;  %7349 = vmatpush2.bf16.msra.mxu1 %v10450_v33  ;;  %v10484_v31 = vld [vmem:[%s14587_s10 + $0xd4c] ss:$20 sps:$4 sm:$0xff]   ;;  %v10487_v33 = vld [vmem:[%s14587_s10 + $0xaa4] ss:$20 sps:$4 sm:$0xff]  }
 0x345   :  { %7309 = vmatprep.subr.bf16.mxu0 %v10455_v32  ;;  %7350 = vmatprep.subr.bf16.mxu1 %v10458_v34  ;;  %v10479_v32 = vld [vmem:[%s14587_s10 + $0xac8] ss:$20 sps:$4 sm:$0xff]  }
 0x346   :  { %v10482_v34 = vld [vmem:[%s14587_s10 + $0xd48] ss:$20 sps:$4 sm:$0xff]  }
 0x348   :  { %7310 = vmatpush2.bf16.msra.mxu0 %v10453_v37  ;;  %7351 = vmatpush2.bf16.msra.mxu1 %v10456_v28  ;;  %v10490_v37 = vld [vmem:[%s14587_s10 + $0xd24] ss:$20 sps:$4 sm:$0xff]   ;;  %v10493_v28 = vld [vmem:[%s14587_s10 + $0xa7c] ss:$20 sps:$4 sm:$0xff]  }
 0x349   :  { %7311 = vmatprep.subr.bf16.mxu0 %v10461_v41  ;;  %7352 = vmatprep.subr.bf16.mxu1 %v10464_v36  ;;  %v10485_v41 = vld [vmem:[%s14587_s10 + $0xaa0] ss:$20 sps:$4 sm:$0xff]  }
 0x34a   :  { %v10488_v36 = vld [vmem:[%s14587_s10 + $0xd20] ss:$20 sps:$4 sm:$0xff]  }
 0x34c   :  { %7312 = vmatpush2.bf16.msra.mxu0 %v10459_v39  ;;  %7353 = vmatpush2.bf16.msra.mxu1 %v10462_v45  ;;  %v10496_v39 = vld [vmem:[%s14587_s10 + $0xcfc] ss:$20 sps:$4 sm:$0xff]   ;;  %v10499_v45 = vld [vmem:[%s14587_s10 + $0xa54] ss:$20 sps:$4 sm:$0xff]  }
 0x34d   :  { %7363 = vmatprep.subr.bf16.mxu0 %v10467_v35  ;;  %7404 = vmatprep.subr.bf16.mxu1 %v10471_v48  ;;  %v10491_v35 = vld [vmem:[%s14587_s10 + $0xa78] ss:$20 sps:$4 sm:$0xff]  }
 0x34e   :  { %v10494_v48 = vld [vmem:[%s14587_s10 + $0xcf8] ss:$20 sps:$4 sm:$0xff]  }
 0x378   :  { %v3841_v57 = vpop.f32.mrf.mxu1 }
 0x379   :  { %v3842_v58 = vadd.f32 %v3841_v57, %v3801_v56  ;;  %v10508_v56 = vld [vmem:[%s14587_s10 + $0xcac] ss:$20 sps:$4 sm:$0xff]   ;;  %v10503_v57 = vld [vmem:[%s14587_s10 + $0xa28] ss:$20 sps:$4 sm:$0xff]  }
 0x37a   :  { %v3843_v59 = vpop.f32.mrf.mxu1 }
 0x37b   :  { %v3858_v60 = vmul.f32 0.1, %v3842_v58  ;;  %v3844_v61 = vadd.f32 %v3843_v59, %v3803_v7  ;;  %vm3852_vm14 = vcmp.ge.f32.partialorder %v3842_v58, 0.0  ;;  %v10511_v7 = vld [vmem:[%s14587_s10 + $0xa04] ss:$20 sps:$4 sm:$0xff]  }
 0x37c   :  { %v3845_v62 = vpop.f32.mrf.mxu1  ;;  %v10514_v59 = vld [vmem:[%s14587_s10 + $0xc84] ss:$20 sps:$4 sm:$0xff]  }
 0x37d   :  { %vm3853_vm15 = vcmp.ge.f32.partialorder %v3844_v61, 0.0  ;;  %v3859_v43 = vmul.f32 0.1, %v3844_v61  ;;  %v3864_v1 = vsel %vm3852_vm14, %v3842_v58, %v3858_v60  ;;  %v10506_v58 = vld [vmem:[%s14587_s10 + $0xca8] ss:$20 sps:$4 sm:$0xff]  }
 0x37e   :  { %v3846_v0 = vpop.f32.mrf.mxu1  ;;  %v10509_v60 = vld [vmem:[%s14587_s10 + $0xa00] ss:$20 sps:$4 sm:$0xff]  }
 0x37f   :  { %v3865_v25 = vsel %vm3853_vm15, %v3844_v61, %v3859_v43  ;;  %v10517_v61 = vld [vmem:[%s14587_s10 + $0xc5c] ss:$20 sps:$4 sm:$0xff]   ;;  %v10512_v62 = vld [vmem:[%s14587_s10 + $0xc80] ss:$20 sps:$4 sm:$0xff]   ;;  %v10515_v0 = vld [vmem:[%s14587_s10 + $0xc58] ss:$20 sps:$4 sm:$0xff]  }
 0x380   :  { %v3889_v2 = vcombine.low %v3864_v1, %v3865_v25  ;;  %v10520_v43 = vld [vmem:[%s14587_s10 + $0xedc] ss:$20 sps:$4 sm:$0xff]   ;;  %v10523_v1 = vld [vmem:[%s14587_s10 + $0xc34] ss:$20 sps:$4 sm:$0xff]   ;;  %v10518_v25 = vld [vmem:[%s14587_s10 + $0xed8] ss:$20 sps:$4 sm:$0xff]  }
 0x382   :  { %8849 = vst.sshfl [vmem:[%s14592_s15 + $0x8] sm:$0x33 pattern:$0x76325410] %v3889_v2  ;;  %v10526_v2 = vld [vmem:[%s14587_s10 + $0xeb4] ss:$20 sps:$4 sm:$0xff]  }
 0x389   :  { %v4020_v63 = vld [vmem:[%s14592_s15 + $0x8] sm:$0xff] }
 0x38a   :  { %v4049_v3 = vrot.slane %v4020_v63, %v11237_v49  ;;  %v4042_v38 = vcombine.high %v4020_v63, %v4020_v63  ;;  %v10524_v63 = vld [vmem:[%s14587_s10 + $0xeb0] ss:$20 sps:$4 sm:$0xff]  }
 0x38c   :  { %v4057_v4 = vcombine.high %v4049_v3, %v4049_v3  ;;  %v4056_v6 = vrot.slane %v4042_v38, %v11237_v49  ;;  %v13300_v17 = vpack.c.bf16 %v4049_v3, %v4049_v3  ;;  %v10469_v49 = vld [vmem:[%s14587_s10 + $0xd98] ss:$20 sps:$4 sm:$0xff]   ;;  %v10527_v38 = vld [vmem:[%s14587_s10 + $0xc08] ss:$20 sps:$4 sm:$0xff]  }
 0x38d   :  { %v10532_v3 = vld [vmem:[%s14587_s10 + $0xe8c] ss:$20 sps:$4 sm:$0xff]  }
 0x38e   :  { %v13295_v13 = vpack.c.bf16 %v4057_v4, %v4057_v4  ;;  %v4058_v16 = vcombine.high %v4056_v6, %v4056_v6  ;;  %v13316_v23 = vpack.c.bf16 %v4056_v6, %v4056_v6  ;;  %v10535_v4 = vld [vmem:[%s14587_s10 + $0xbe4] ss:$20 sps:$4 sm:$0xff]   ;;  %v10530_v6 = vld [vmem:[%s14587_s10 + $0xe88] ss:$20 sps:$4 sm:$0xff]  }
 0x390   :  { %7313 = vmatprep.mubr.bf16.mxu0 %v13295_v13  ;;  %v13305_v9 = vpack.c.bf16 %v4058_v16, %v4058_v16  ;;  %v10541_v16 = vld [vmem:[%s14587_s10 + $0xbbc] ss:$20 sps:$4 sm:$0xff]  }
 0x391   :  { %7314 = vmatmul.mubr.bf16.vlgmr.msra.gmra.mxu0 %v13300_v17 }
 0x392   :  { %7364 = vmatpush1.bf16.msra.mxu0 %v10465_v14  ;;  %7354 = vmatprep.mubr.bf16.mxu1 %v13305_v9  ;;  %v10533_v14 = vld [vmem:[%s14587_s10 + $0xbe0] ss:$20 sps:$4 sm:$0xff]  }
 0x393   :  { %7395 = vmatprep.mubr.bf16.mxu0 %v13314_v18  ;;  %7355 = vmatmul.mubr.bf16.vlgmr.msra.gmra.mxu1 %v13316_v23 }
 0x394   :  { %7405 = vmatpush1.bf16.msra.mxu1 %v10469_v49  ;;  %7365 = vmatprep.subr.bf16.mxu0 %v10474_v12  ;;  %v10544_v49 = vld [vmem:[%s14587_s10 + $0xe3c] ss:$20 sps:$4 sm:$0xff]   ;;  %v10539_v12 = vld [vmem:[%s14587_s10 + $0xbb8] ss:$20 sps:$4 sm:$0xff]  }
 0x395   :  { %7436 = vmatprep.mubr.bf16.mxu1 %v13327_v27  ;;  %7406 = vmatprep.subr.bf16.mxu1 %v10478_v24  ;;  %v10547_v24 = vld [vmem:[%s14587_s10 + $0xb94] ss:$20 sps:$4 sm:$0xff]  }
 0x396   :  { %7366 = vmatpush1.bf16.msra.mxu0 %v10472_v26  ;;  %v10542_v26 = vld [vmem:[%s14587_s10 + $0xe38] ss:$20 sps:$4 sm:$0xff]  }
 0x397   :  { %7367 = vmatprep.subr.bf16.mxu0 %v10481_v29  ;;  %v10550_v29 = vld [vmem:[%s14587_s10 + $0xe14] ss:$20 sps:$4 sm:$0xff]  }
 0x398   :  { %7407 = vmatpush1.bf16.msra.mxu1 %v10476_v30  ;;  %v10545_v30 = vld [vmem:[%s14587_s10 + $0xb90] ss:$20 sps:$4 sm:$0xff]  }
 0x399   :  { %7408 = vmatprep.subr.bf16.mxu1 %v10484_v31  ;;  %v10553_v31 = vld [vmem:[%s14587_s10 + $0xb6c] ss:$20 sps:$4 sm:$0xff]  }
 0x39a   :  { %7368 = vmatpush1.bf16.msra.mxu0 %v10479_v32  ;;  %v10548_v32 = vld [vmem:[%s14587_s10 + $0xe10] ss:$20 sps:$4 sm:$0xff]  }
 0x39b   :  { %7369 = vmatprep.subr.bf16.mxu0 %v10487_v33  ;;  %v10556_v33 = vld [vmem:[%s14587_s10 + $0xdec] ss:$20 sps:$4 sm:$0xff]  }
 0x39c   :  { %7409 = vmatpush1.bf16.msra.mxu1 %v10482_v34  ;;  %v10551_v34 = vld [vmem:[%s14587_s10 + $0xb68] ss:$20 sps:$4 sm:$0xff]  }
 0x39d   :  { %7410 = vmatprep.subr.bf16.mxu1 %v10490_v37  ;;  %v10559_v37 = vld [vmem:[%s14587_s10 + $0xb44] ss:$20 sps:$4 sm:$0xff]  }
 0x39e   :  { %7370 = vmatpush1.bf16.msra.mxu0 %v10485_v41  ;;  %v10554_v41 = vld [vmem:[%s14587_s10 + $0xde8] ss:$20 sps:$4 sm:$0xff]  }
 0x39f   :  { %7371 = vmatprep.subr.bf16.mxu0 %v10493_v28  ;;  %v10562_v28 = vld [vmem:[%s14587_s10 + $0xdc4] ss:$20 sps:$4 sm:$0xff]  }
 0x3a0   :  { %7411 = vmatpush1.bf16.msra.mxu1 %v10488_v36  ;;  %v4676_v36 = vld [vmem:[%s14588_s11] sm:$0x1f] }
 0x3a1   :  { %7412 = vmatprep.subr.bf16.mxu1 %v10496_v39  ;;  %v10557_v39 = vld [vmem:[%s14587_s10 + $0xb40] ss:$20 sps:$4 sm:$0xff]  }
 0x3a2   :  { %7372 = vmatpush1.bf16.msra.mxu0 %v10491_v35  ;;  %v10565_v35 = vld [vmem:[%s14587_s10 + $0x124] ss:$20 sps:$4 sm:$0xff]  }
 0x3a3   :  { %7373 = vmatprep.subr.bf16.mxu0 %v10499_v45  ;;  %v10560_v45 = vld [vmem:[%s14587_s10 + $0xdc0] ss:$20 sps:$4 sm:$0xff]  }
 0x3a4   :  { %7413 = vmatpush1.bf16.msra.mxu1 %v10494_v48  ;;  %v4681_v48 = vrot.slane %v4676_v36, %v11882_v10  ;;  %v10571_v10 = vld [vmem:[%s14587_s10 + $0xfc] ss:$20 sps:$4 sm:$0xff]  }
 0x3a5   :  { %7414 = vmatprep.subr.bf16.mxu1 %v10502_v50  ;;  %v10568_v50 = vld [vmem:[%s14587_s10 + $0x3a4] ss:$20 sps:$4 sm:$0xff]  }
 0x3a6   :  { %7374 = vmatpush1.bf16.msra.mxu0 %v10497_v46  ;;  %v10563_v46 = vld [vmem:[%s14587_s10 + $0x120] ss:$20 sps:$4 sm:$0xff]  }
 0x3a7   :  { %7375 = vmatprep.subr.bf16.mxu0 %v10505_v54  ;;  %v4685_v54 = vrot.slane %v4676_v36, %v11885_v11  ;;  %v13528_v11 = vpack.c.bf16 %v13290_v5, %v13290_v5  ;;  %v10577_v5 = vld [vmem:[%s14587_s10 + $0xd4] ss:$20 sps:$4 sm:$0xff]   ;;  %v10613_v36 = vld [vmem:[%s14587_s10 + $0x264] ss:$20 sps:$4 sm:$0xff]  }
 0x3a8   :  { %7415 = vmatpush1.bf16.msra.mxu1 %v10500_v55  ;;  %v13517_v55 = vpack.c.bf16 %v13286_v47, %v13286_v47  ;;  %v10574_v47 = vld [vmem:[%s14587_s10 + $0x37c] ss:$20 sps:$4 sm:$0xff]  }
 0x3a9   :  { %7416 = vmatprep.subr.bf16.mxu1 %v10508_v56 }
 0x3aa   :  { %7376 = vmatpush1.bf16.msra.mxu0 %v10503_v57  ;;  %v10566_v57 = vld [vmem:[%s14587_s10 + $0x3a0] ss:$20 sps:$4 sm:$0xff]  }
 0x3ab   :  { %7377 = vmatprep.subr.bf16.mxu0 %v10511_v7 }
 0x3ac   :  { %7417 = vmatpush1.bf16.msra.mxu1 %v10506_v58 }
 0x3ad   :  { %7418 = vmatprep.subr.bf16.mxu1 %v10514_v59 }
 0x3ae   :  { %7378 = vmatpush1.bf16.msra.mxu0 %v10509_v60  ;;  %v10569_v60 = vld [vmem:[%s14587_s10 + $0xf8] ss:$20 sps:$4 sm:$0xff]  }
 0x3af   :  { %7379 = vmatprep.subr.bf16.mxu0 %v10517_v61 }
 0x3b0   :  { %7419 = vmatpush1.bf16.msra.mxu1 %v10512_v62 }
 0x3b1   :  { %7420 = vmatprep.subr.bf16.mxu1 %v10520_v43 }
 0x3b2   :  { %7380 = vmatpush2.bf16.msra.mxu0 %v10515_v0 }
 0x3b3   :  { %7381 = vmatprep.subr.bf16.mxu0 %v10523_v1  ;;  %v10572_v1 = vld [vmem:[%s14587_s10 + $0x378] ss:$20 sps:$4 sm:$0xff]  }
 0x3b4   :  { %7421 = vmatpush2.bf16.msra.mxu1 %v10518_v25 }
 0x3b5   :  { %7422 = vmatprep.subr.bf16.mxu1 %v10526_v2  ;;  %v10580_v2 = vld [vmem:[%s14587_s10 + $0x354] ss:$20 sps:$4 sm:$0xff]  }
 0x3b6   :  { %7382 = vmatpush2.bf16.msra.mxu0 %v10521_v53 }
 0x3b7   :  { %7383 = vmatprep.subr.bf16.mxu0 %v10529_v44 }
 0x3b8   :  { %7423 = vmatpush2.bf16.msra.mxu1 %v10524_v63  ;;  %v10575_v63 = vld [vmem:[%s14587_s10 + $0xd0] ss:$20 sps:$4 sm:$0xff]  }
 0x3b9   :  { %7424 = vmatprep.subr.bf16.mxu1 %v10532_v3  ;;  %v10583_v3 = vld [vmem:[%s14587_s10 + $0xac] ss:$20 sps:$4 sm:$0xff]  }
 0x3ba   :  { %7384 = vmatpush2.bf16.msra.mxu0 %v10527_v38 }
 0x3bb   :  { %7385 = vmatprep.subr.bf16.mxu0 %v10535_v4  ;;  %v10578_v4 = vld [vmem:[%s14587_s10 + $0x350] ss:$20 sps:$4 sm:$0xff]  }
 0x3bc   :  { %7425 = vmatpush2.bf16.msra.mxu1 %v10530_v6  ;;  %v10586_v6 = vld [vmem:[%s14587_s10 + $0x32c] ss:$20 sps:$4 sm:$0xff]  }
 0x3bd   :  { %7426 = vmatprep.subr.bf16.mxu1 %v10538_v8  ;;  %v10581_v8 = vld [vmem:[%s14587_s10 + $0xa8] ss:$20 sps:$4 sm:$0xff]  }
 0x3be   :  { %7386 = vmatpush2.bf16.msra.mxu0 %v10533_v14  ;;  %v10589_v14 = vld [vmem:[%s14587_s10 + $0x84] ss:$20 sps:$4 sm:$0xff]  }
 0x3bf   :  { %7387 = vmatprep.subr.bf16.mxu0 %v10541_v16  ;;  %v10584_v16 = vld [vmem:[%s14587_s10 + $0x328] ss:$20 sps:$4 sm:$0xff]  }
 0x3c0   :  { %7427 = vmatpush2.bf16.msra.mxu1 %v10536_v20  ;;  %v10592_v20 = vld [vmem:[%s14587_s10 + $0x304] ss:$20 sps:$4 sm:$0xff]  }
 0x3c1   :  { %7428 = vmatprep.subr.bf16.mxu1 %v10544_v49  ;;  %v10587_v49 = vld [vmem:[%s14587_s10 + $0x80] ss:$20 sps:$4 sm:$0xff]  }
 0x3c2   :  { %7388 = vmatpush2.bf16.msra.mxu0 %v10539_v12  ;;  %v10595_v12 = vld [vmem:[%s14587_s10 + $0x5c] ss:$20 sps:$4 sm:$0xff]  }
 0x3c3   :  { %7389 = vmatprep.subr.bf16.mxu0 %v10547_v24  ;;  %v10590_v24 = vld [vmem:[%s14587_s10 + $0x300] ss:$20 sps:$4 sm:$0xff]  }
 0x3c4   :  { %7429 = vmatpush2.bf16.msra.mxu1 %v10542_v26  ;;  %v10598_v26 = vld [vmem:[%s14587_s10 + $0x2dc] ss:$20 sps:$4 sm:$0xff]  }
 0x3c5   :  { %7430 = vmatprep.subr.bf16.mxu1 %v10550_v29  ;;  %v10593_v29 = vld [vmem:[%s14587_s10 + $0x58] ss:$20 sps:$4 sm:$0xff]  }
 0x3c6   :  { %7390 = vmatpush2.bf16.msra.mxu0 %v10545_v30  ;;  %v10601_v30 = vld [vmem:[%s14587_s10 + $0x34] ss:$20 sps:$4 sm:$0xff]  }
 0x3c7   :  { %7391 = vmatprep.subr.bf16.mxu0 %v10553_v31  ;;  %v10596_v31 = vld [vmem:[%s14587_s10 + $0x2d8] ss:$20 sps:$4 sm:$0xff]  }
 0x3c8   :  { %7431 = vmatpush2.bf16.msra.mxu1 %v10548_v32  ;;  %v10604_v32 = vld [vmem:[%s14587_s10 + $0x2b4] ss:$20 sps:$4 sm:$0xff]  }
 0x3c9   :  { %7432 = vmatprep.subr.bf16.mxu1 %v10556_v33  ;;  %v10599_v33 = vld [vmem:[%s14587_s10 + $0x30] ss:$20 sps:$4 sm:$0xff]  }
 0x3ca   :  { %7392 = vmatpush2.bf16.msra.mxu0 %v10551_v34  ;;  %v10607_v34 = vld [vmem:[%s14587_s10 + $0xc] ss:$20 sps:$4 sm:$0xff]  }
 0x3cb   :  { %7393 = vmatprep.subr.bf16.mxu0 %v10559_v37  ;;  %v10602_v37 = vld [vmem:[%s14587_s10 + $0x2b0] ss:$20 sps:$4 sm:$0xff]  }
 0x3cc   :  { %7433 = vmatpush2.bf16.msra.mxu1 %v10554_v41  ;;  %v10610_v41 = vld [vmem:[%s14587_s10 + $0x28c] ss:$20 sps:$4 sm:$0xff]  }
 0x3cd   :  { %7434 = vmatprep.subr.bf16.mxu1 %v10562_v28  ;;  %v10605_v28 = vld [vmem:[%s14587_s10 + $0x8] ss:$20 sps:$4 sm:$0xff]  }
 0x3ce   :  { %7394 = vmatpush2.bf16.msra.mxu0 %v10557_v39  ;;  %v10608_v39 = vld [vmem:[%s14587_s10 + $0x288] ss:$20 sps:$4 sm:$0xff]  }
 0x3cf   :  { %7445 = vmatprep.subr.bf16.mxu0 %v10565_v35  ;;  %v7233_v56 = vpop.f32.mrf.mxu0  ;;  %v7274_v59 = vpop.f32.mrf.mxu1  ;;  %v10616_v35 = vld [vmem:[%s14587_s10 + $0x4e4] ss:$20 sps:$4 sm:$0xff]  }
 0x3d0   :  { %7435 = vmatpush2.bf16.msra.mxu1 %v10560_v45  ;;  %v7234_v7 = vadd.f32 %v7233_v56, %v4681_v48  ;;  %v10611_v45 = vld [vmem:[%s14587_s10 + $0x260] ss:$20 sps:$4 sm:$0xff]   ;;  %v10619_v48 = vld [vmem:[%s14587_s10 + $0x23c] ss:$20 sps:$4 sm:$0xff]   ;;  %v10620_v56 = vld [vmem:[%s14587_s10 + $0x4b8] ss:$20 sps:$4 sm:$0xff]  }
 0x3d1   :  { %7396 = vmatmul.mubr.bf16.vlgmr.msra.gmra.mxu0 %v13517_v55  ;;  %7486 = vmatprep.subr.bf16.mxu1 %v10568_v50  ;;  %v7235_v58 = vpop.f32.mrf.mxu0  ;;  %v7276_v0 = vpop.f32.mrf.mxu1  ;;  %v10614_v50 = vld [vmem:[%s14587_s10 + $0x4e0] ss:$20 sps:$4 sm:$0xff]  }
 0x3d2   :  { %7446 = vmatpush1.bf16.msra.mxu0 %v10563_v46  ;;  %7477 = vmatprep.mubr.bf16.mxu0 %v13068_v19  ;;  %v7236_v61 = vadd.f32 %v7235_v58, %v4685_v54  ;;  %v13537_v62 = vadd.f32 %v7274_v59, %v7234_v7  ;;  %v10622_v46 = vld [vmem:[%s14587_s10 + $0x4bc] ss:$20 sps:$4 sm:$0xff]   ;;  %v10617_v54 = vld [vmem:[%s14587_s10 + $0x238] ss:$20 sps:$4 sm:$0xff]  }
 0x3d3   :  { %7437 = vmatmul.mubr.bf16.vlgmr.msra.gmra.mxu1 %v13528_v11  ;;  %7447 = vmatprep.subr.bf16.mxu0 %v10571_v10  ;;  %v7237_v43 = vpop.f32.mrf.mxu0  ;;  %v7278_v44 = vpop.f32.mrf.mxu1  ;;  %v10625_v10 = vld [vmem:[%s14587_s10 + $0x214] ss:$20 sps:$4 sm:$0xff]   ;;  %v10623_v7 = vld [vmem:[%s14587_s10 + $0x210] ss:$20 sps:$4 sm:$0xff]   ;;  %v10634_v59 = vld [vmem:[%s14587_s10 + $0x46c] ss:$20 sps:$4 sm:$0xff]  }
 0x3d4   :  { %7487 = vmatpush1.bf16.msra.mxu1 %v10566_v57  ;;  %7518 = vmatprep.mubr.bf16.mxu1 %v13079_v21  ;;  %v13547_v25 = vadd.f32 %v7276_v0, %v7236_v61  ;;  %v10628_v57 = vld [vmem:[%s14587_s10 + $0x494] ss:$20 sps:$4 sm:$0xff]   ;;  %v10626_v58 = vld [vmem:[%s14587_s10 + $0x490] ss:$20 sps:$4 sm:$0xff]   ;;  %v10641_v44 = vld [vmem:[%s14587_s10 + $0x198] ss:$20 sps:$4 sm:$0xff]  }
 0x3d5   :  { %7488 = vmatprep.subr.bf16.mxu1 %v10574_v47  ;;  %v7238_v53 = vpop.f32.mrf.mxu0  ;;  %v7279_v38 = vpop.f32.mrf.mxu1  ;;  %v10631_v47 = vld [vmem:[%s14587_s10 + $0x1ec] ss:$20 sps:$4 sm:$0xff]   ;;  %v10637_v61 = vld [vmem:[%s14587_s10 + $0x1c4] ss:$20 sps:$4 sm:$0xff]  }
 0x3d6   :  { %7448 = vmatpush1.bf16.msra.mxu0 %v10569_v60  ;;  %v10629_v60 = vld [vmem:[%s14587_s10 + $0x1e8] ss:$20 sps:$4 sm:$0xff]   ;;  %v10640_v43 = vld [vmem:[%s14587_s10 + $0x444] ss:$20 sps:$4 sm:$0xff]   ;;  %v10635_v0 = vld [vmem:[%s14587_s10 + $0x1c0] ss:$20 sps:$4 sm:$0xff]  }
 0x3d7   :  { %7449 = vmatprep.subr.bf16.mxu0 %v10577_v5  ;;  %v10632_v5 = vld [vmem:[%s14587_s10 + $0x468] ss:$20 sps:$4 sm:$0xff]  }
 0x3d8   :  { %7489 = vmatpush1.bf16.msra.mxu1 %v10572_v1  ;;  %v10643_v1 = vld [vmem:[%s14587_s10 + $0x19c] ss:$20 sps:$4 sm:$0xff]   ;;  %v10652_v38 = vld [vmem:[%s14587_s10 + $0x3f4] ss:$20 sps:$4 sm:$0xff]  }
 0x3d9   :  { %7490 = vmatprep.subr.bf16.mxu1 %v10580_v2  ;;  %v10638_v2 = vld [vmem:[%s14587_s10 + $0x440] ss:$20 sps:$4 sm:$0xff]   ;;  %v10646_v53 = vld [vmem:[%s14587_s10 + $0x41c] ss:$20 sps:$4 sm:$0xff]  }
 0x3da   :  { %7450 = vmatpush1.bf16.msra.mxu0 %v10575_v63  ;;  %v10649_v63 = vld [vmem:[%s14587_s10 + $0x174] ss:$20 sps:$4 sm:$0xff]  }
 0x3db   :  { %7451 = vmatprep.subr.bf16.mxu0 %v10583_v3  ;;  %v10644_v3 = vld [vmem:[%s14587_s10 + $0x418] ss:$20 sps:$4 sm:$0xff]  }
 0x3dc   :  { %7491 = vmatpush1.bf16.msra.mxu1 %v10578_v4  ;;  %v10647_v4 = vld [vmem:[%s14587_s10 + $0x170] ss:$20 sps:$4 sm:$0xff]  }
 0x3dd   :  { %7492 = vmatprep.subr.bf16.mxu1 %v10586_v6  ;;  %v10655_v6 = vld [vmem:[%s14587_s10 + $0x14c] ss:$20 sps:$4 sm:$0xff]  }
 0x3de   :  { %7452 = vmatpush1.bf16.msra.mxu0 %v10581_v8  ;;  %v10650_v8 = vld [vmem:[%s14587_s10 + $0x3f0] ss:$20 sps:$4 sm:$0xff]  }
 0x3df   :  { %7453 = vmatprep.subr.bf16.mxu0 %v10589_v14  ;;  %v10658_v14 = vld [vmem:[%s14587_s10 + $0x3cc] ss:$20 sps:$4 sm:$0xff]  }
 0x3e0   :  { %7493 = vmatpush1.bf16.msra.mxu1 %v10584_v16  ;;  %v10653_v16 = vld [vmem:[%s14587_s10 + $0x148] ss:$20 sps:$4 sm:$0xff]  }
 0x3e1   :  { %7494 = vmatprep.subr.bf16.mxu1 %v10592_v20  ;;  %v10661_v20 = vld [vmem:[%s14587_s10 + $0x624] ss:$20 sps:$4 sm:$0xff]  }
 0x3e2   :  { %7454 = vmatpush1.bf16.msra.mxu0 %v10587_v49  ;;  %v10656_v49 = vld [vmem:[%s14587_s10 + $0x3c8] ss:$20 sps:$4 sm:$0xff]  }
 0x3e3   :  { %7455 = vmatprep.subr.bf16.mxu0 %v10595_v12  ;;  %v10664_v12 = vld [vmem:[%s14587_s10 + $0x8a4] ss:$20 sps:$4 sm:$0xff]  }
 0x3e4   :  { %7495 = vmatpush1.bf16.msra.mxu1 %v10590_v24  ;;  %v10659_v24 = vld [vmem:[%s14587_s10 + $0x620] ss:$20 sps:$4 sm:$0xff]  }
 0x3e5   :  { %7496 = vmatprep.subr.bf16.mxu1 %v10598_v26  ;;  %v10667_v26 = vld [vmem:[%s14587_s10 + $0x5fc] ss:$20 sps:$4 sm:$0xff]  }
 0x3e6   :  { %7456 = vmatpush1.bf16.msra.mxu0 %v10593_v29  ;;  %v10662_v29 = vld [vmem:[%s14587_s10 + $0x8a0] ss:$20 sps:$4 sm:$0xff]  }
 0x3e7   :  { %7457 = vmatprep.subr.bf16.mxu0 %v10601_v30  ;;  %v10670_v30 = vld [vmem:[%s14587_s10 + $0x87c] ss:$20 sps:$4 sm:$0xff]  }
 0x3e8   :  { %7497 = vmatpush1.bf16.msra.mxu1 %v10596_v31  ;;  %v10665_v31 = vld [vmem:[%s14587_s10 + $0x5f8] ss:$20 sps:$4 sm:$0xff]  }
 0x3e9   :  { %7498 = vmatprep.subr.bf16.mxu1 %v10604_v32  ;;  %v10673_v32 = vld [vmem:[%s14587_s10 + $0x5d4] ss:$20 sps:$4 sm:$0xff]  }
 0x3ea   :  { %7458 = vmatpush1.bf16.msra.mxu0 %v10599_v33  ;;  %v10668_v33 = vld [vmem:[%s14587_s10 + $0x878] ss:$20 sps:$4 sm:$0xff]  }
 0x3eb   :  { %7459 = vmatprep.subr.bf16.mxu0 %v10607_v34  ;;  %v10676_v34 = vld [vmem:[%s14587_s10 + $0x854] ss:$20 sps:$4 sm:$0xff]  }
 0x3ec   :  { %7499 = vmatpush1.bf16.msra.mxu1 %v10602_v37  ;;  %v10671_v37 = vld [vmem:[%s14587_s10 + $0x5d0] ss:$20 sps:$4 sm:$0xff]  }
 0x3ed   :  { %7500 = vmatprep.subr.bf16.mxu1 %v10610_v41  ;;  %v10679_v41 = vld [vmem:[%s14587_s10 + $0x5ac] ss:$20 sps:$4 sm:$0xff]  }
 0x3ee   :  { %7460 = vmatpush1.bf16.msra.mxu0 %v10605_v28  ;;  %v10674_v28 = vld [vmem:[%s14587_s10 + $0x850] ss:$20 sps:$4 sm:$0xff]  }
 0x3ef   :  { %7461 = vmatprep.subr.bf16.mxu0 %v10613_v36  ;;  %v10682_v36 = vld [vmem:[%s14587_s10 + $0x82c] ss:$20 sps:$4 sm:$0xff]  }
 0x3f0   :  { %7501 = vmatpush1.bf16.msra.mxu1 %v10608_v39  ;;  %v10677_v39 = vld [vmem:[%s14587_s10 + $0x5a8] ss:$20 sps:$4 sm:$0xff]  }
 0x3f1   :  { %7502 = vmatprep.subr.bf16.mxu1 %v10616_v35  ;;  %v10685_v35 = vld [vmem:[%s14587_s10 + $0x584] ss:$20 sps:$4 sm:$0xff]  }
 0x3f2   :  { %7462 = vmatpush2.bf16.msra.mxu0 %v10611_v45  ;;  %v10680_v45 = vld [vmem:[%s14587_s10 + $0x828] ss:$20 sps:$4 sm:$0xff]  }
 0x3f3   :  { %7463 = vmatprep.subr.bf16.mxu0 %v10619_v48  ;;  %v10688_v48 = vld [vmem:[%s14587_s10 + $0x804] ss:$20 sps:$4 sm:$0xff]  }
 0x3f4   :  { %7503 = vmatpush2.bf16.msra.mxu1 %v10614_v50  ;;  %v10683_v50 = vld [vmem:[%s14587_s10 + $0x580] ss:$20 sps:$4 sm:$0xff]  }
 0x3f5   :  { %7504 = vmatprep.subr.bf16.mxu1 %v10622_v46  ;;  %v10691_v46 = vld [vmem:[%s14587_s10 + $0x55c] ss:$20 sps:$4 sm:$0xff]  }
 0x3f6   :  { %7464 = vmatpush2.bf16.msra.mxu0 %v10617_v54  ;;  %v10686_v54 = vld [vmem:[%s14587_s10 + $0x800] ss:$20 sps:$4 sm:$0xff]  }
 0x3f7   :  { %7465 = vmatprep.subr.bf16.mxu0 %v10625_v10  ;;  %v10694_v10 = vld [vmem:[%s14587_s10 + $0x7dc] ss:$20 sps:$4 sm:$0xff]  }
 0x3f8   :  { %7505 = vmatpush2.bf16.msra.mxu1 %v10620_v56  ;;  %v10689_v56 = vld [vmem:[%s14587_s10 + $0x558] ss:$20 sps:$4 sm:$0xff]  }
 0x3f9   :  { %7506 = vmatprep.subr.bf16.mxu1 %v10628_v57  ;;  %v10697_v57 = vld [vmem:[%s14587_s10 + $0x534] ss:$20 sps:$4 sm:$0xff]  }
 0x3fa   :  { %7466 = vmatpush2.bf16.msra.mxu0 %v10623_v7  ;;  %v10692_v7 = vld [vmem:[%s14587_s10 + $0x7d8] ss:$20 sps:$4 sm:$0xff]  }
 0x3fb   :  { %7467 = vmatprep.subr.bf16.mxu0 %v10631_v47  ;;  %v10700_v47 = vld [vmem:[%s14587_s10 + $0x7b4] ss:$20 sps:$4 sm:$0xff]  }
 0x3fc   :  { %7507 = vmatpush2.bf16.msra.mxu1 %v10626_v58  ;;  %v10695_v58 = vld [vmem:[%s14587_s10 + $0x530] ss:$20 sps:$4 sm:$0xff]  }
 0x3fd   :  { %7508 = vmatprep.subr.bf16.mxu1 %v10634_v59  ;;  %v10703_v59 = vld [vmem:[%s14587_s10 + $0x50c] ss:$20 sps:$4 sm:$0xff]  }
 0x3fe   :  { %7468 = vmatpush2.bf16.msra.mxu0 %v10629_v60  ;;  %v10698_v60 = vld [vmem:[%s14587_s10 + $0x7b0] ss:$20 sps:$4 sm:$0xff]  }
 0x3ff   :  { %7469 = vmatprep.subr.bf16.mxu0 %v10637_v61  ;;  %v10706_v61 = vld [vmem:[%s14587_s10 + $0x78c] ss:$20 sps:$4 sm:$0xff]  }
 0x400   :  { %7509 = vmatpush2.bf16.msra.mxu1 %v10632_v5  ;;  %v10701_v5 = vld [vmem:[%s14587_s10 + $0x508] ss:$20 sps:$4 sm:$0xff]  }
 0x401   :  { %7510 = vmatprep.subr.bf16.mxu1 %v10640_v43  ;;  %v10709_v43 = vld [vmem:[%s14587_s10 + $0x764] ss:$20 sps:$4 sm:$0xff]  }
 0x402   :  { %7470 = vmatpush2.bf16.msra.mxu0 %v10635_v0  ;;  %v10704_v0 = vld [vmem:[%s14587_s10 + $0x788] ss:$20 sps:$4 sm:$0xff]  }
 0x403   :  { %7471 = vmatprep.subr.bf16.mxu0 %v10643_v1  ;;  %v10712_v1 = vld [vmem:[%s14587_s10 + $0x9e4] ss:$20 sps:$4 sm:$0xff]  }
 0x404   :  { %7511 = vmatpush2.bf16.msra.mxu1 %v10638_v2  ;;  %v10707_v2 = vld [vmem:[%s14587_s10 + $0x760] ss:$20 sps:$4 sm:$0xff]  }
 0x405   :  { %7512 = vmatprep.subr.bf16.mxu1 %v10646_v53  ;;  %v10715_v53 = vld [vmem:[%s14587_s10 + $0x73c] ss:$20 sps:$4 sm:$0xff]  }
 0x406   :  { %7472 = vmatpush2.bf16.msra.mxu0 %v10641_v44  ;;  %v10710_v44 = vld [vmem:[%s14587_s10 + $0x9e0] ss:$20 sps:$4 sm:$0xff]  }
 0x407   :  { %7473 = vmatprep.subr.bf16.mxu0 %v10649_v63  ;;  %v10718_v63 = vld [vmem:[%s14587_s10 + $0x9bc] ss:$20 sps:$4 sm:$0xff]  }
 0x408   :  { %7513 = vmatpush2.bf16.msra.mxu1 %v10644_v3  ;;  %v10713_v3 = vld [vmem:[%s14587_s10 + $0x738] ss:$20 sps:$4 sm:$0xff]  }
 0x409   :  { %7514 = vmatprep.subr.bf16.mxu1 %v10652_v38  ;;  %v10721_v38 = vld [vmem:[%s14587_s10 + $0x714] ss:$20 sps:$4 sm:$0xff]  }
 0x40a   :  { %7474 = vmatpush2.bf16.msra.mxu0 %v10647_v4  ;;  %v10716_v4 = vld [vmem:[%s14587_s10 + $0x9b8] ss:$20 sps:$4 sm:$0xff]  }
 0x40b   :  { %7475 = vmatprep.subr.bf16.mxu0 %v10655_v6  ;;  %v10724_v6 = vld [vmem:[%s14587_s10 + $0x994] ss:$20 sps:$4 sm:$0xff]  }
 0x40c   :  { %7515 = vmatpush2.bf16.msra.mxu1 %v10650_v8  ;;  %v10719_v8 = vld [vmem:[%s14587_s10 + $0x710] ss:$20 sps:$4 sm:$0xff]  }
 0x40d   :  { %7516 = vmatprep.subr.bf16.mxu1 %v10658_v14  ;;  %v10727_v14 = vld [vmem:[%s14587_s10 + $0x6ec] ss:$20 sps:$4 sm:$0xff]  }
 0x40e   :  { %7476 = vmatpush2.bf16.msra.mxu0 %v10653_v16  ;;  %v10722_v16 = vld [vmem:[%s14587_s10 + $0x990] ss:$20 sps:$4 sm:$0xff]  }
 0x40f   :  { %7527 = vmatprep.subr.bf16.mxu0 %v10661_v20  ;;  %v10730_v20 = vld [vmem:[%s14587_s10 + $0x96c] ss:$20 sps:$4 sm:$0xff]  }
 0x410   :  { %7517 = vmatpush2.bf16.msra.mxu1 %v10656_v49  ;;  %v10725_v49 = vld [vmem:[%s14587_s10 + $0x6e8] ss:$20 sps:$4 sm:$0xff]  }
 0x411   :  { %7478 = vmatmul.mubr.bf16.vlgmr.msra.gmra.mxu0 %v13073_v51  ;;  %7568 = vmatprep.subr.bf16.mxu1 %v10664_v12  ;;  %v10733_v12 = vld [vmem:[%s14587_s10 + $0x6c4] ss:$20 sps:$4 sm:$0xff]  }
 0x412   :  { %7528 = vmatpush1.bf16.msra.mxu0 %v10659_v24  ;;  %7559 = vmatprep.mubr.bf16.mxu0 %v13295_v13  ;;  %v10728_v24 = vld [vmem:[%s14587_s10 + $0x968] ss:$20 sps:$4 sm:$0xff]  }
 0x413   :  { %7519 = vmatmul.mubr.bf16.vlgmr.msra.gmra.mxu1 %v13085_v22  ;;  %7529 = vmatprep.subr.bf16.mxu0 %v10667_v26  ;;  %v10736_v26 = vld [vmem:[%s14587_s10 + $0x944] ss:$20 sps:$4 sm:$0xff]  }
 0x414   :  { %7569 = vmatpush1.bf16.msra.mxu1 %v10662_v29  ;;  %7600 = vmatprep.mubr.bf16.mxu1 %v13305_v9  ;;  %v10731_v29 = vld [vmem:[%s14587_s10 + $0x6c0] ss:$20 sps:$4 sm:$0xff]  }
 0x415   :  { %7570 = vmatprep.subr.bf16.mxu1 %v10670_v30  ;;  %v10739_v30 = vld [vmem:[%s14587_s10 + $0x69c] ss:$20 sps:$4 sm:$0xff]  }
 0x416   :  { %7530 = vmatpush1.bf16.msra.mxu0 %v10665_v31  ;;  %v10734_v31 = vld [vmem:[%s14587_s10 + $0x940] ss:$20 sps:$4 sm:$0xff]  }
 0x417   :  { %7531 = vmatprep.subr.bf16.mxu0 %v10673_v32  ;;  %v10742_v32 = vld [vmem:[%s14587_s10 + $0x91c] ss:$20 sps:$4 sm:$0xff]  }
 0x418   :  { %7571 = vmatpush1.bf16.msra.mxu1 %v10668_v33  ;;  %v10737_v33 = vld [vmem:[%s14587_s10 + $0x698] ss:$20 sps:$4 sm:$0xff]  }
 0x419   :  { %7572 = vmatprep.subr.bf16.mxu1 %v10676_v34  ;;  %v10745_v34 = vld [vmem:[%s14587_s10 + $0x674] ss:$20 sps:$4 sm:$0xff]  }
 0x41a   :  { %7532 = vmatpush1.bf16.msra.mxu0 %v10671_v37  ;;  %v10740_v37 = vld [vmem:[%s14587_s10 + $0x918] ss:$20 sps:$4 sm:$0xff]  }
 0x41b   :  { %7533 = vmatprep.subr.bf16.mxu0 %v10679_v41  ;;  %v10748_v41 = vld [vmem:[%s14587_s10 + $0x8f4] ss:$20 sps:$4 sm:$0xff]  }
 0x41c   :  { %7573 = vmatpush1.bf16.msra.mxu1 %v10674_v28  ;;  %v10743_v28 = vld [vmem:[%s14587_s10 + $0x670] ss:$20 sps:$4 sm:$0xff]  }
 0x41d   :  { %7574 = vmatprep.subr.bf16.mxu1 %v10682_v36  ;;  %v10751_v36 = vld [vmem:[%s14587_s10 + $0x64c] ss:$20 sps:$4 sm:$0xff]  }
 0x41e   :  { %7534 = vmatpush1.bf16.msra.mxu0 %v10677_v39  ;;  %v10746_v39 = vld [vmem:[%s14587_s10 + $0x8f0] ss:$20 sps:$4 sm:$0xff]  }
 0x41f   :  { %7535 = vmatprep.subr.bf16.mxu0 %v10685_v35  ;;  %v10754_v35 = vld [vmem:[%s14587_s10 + $0x8cc] ss:$20 sps:$4 sm:$0xff]  }
 0x420   :  { %7575 = vmatpush1.bf16.msra.mxu1 %v10680_v45  ;;  %v10749_v45 = vld [vmem:[%s14587_s10 + $0x648] ss:$20 sps:$4 sm:$0xff]  }
 0x421   :  { %7576 = vmatprep.subr.bf16.mxu1 %v10688_v48  ;;  %v10757_v48 = vld [vmem:[%s14587_s10 + $0xb24] ss:$20 sps:$4 sm:$0xff]  }
 0x422   :  { %7536 = vmatpush1.bf16.msra.mxu0 %v10683_v50  ;;  %v10752_v50 = vld [vmem:[%s14587_s10 + $0x8c8] ss:$20 sps:$4 sm:$0xff]  }
 0x423   :  { %7537 = vmatprep.subr.bf16.mxu0 %v10691_v46  ;;  %v10760_v46 = vld [vmem:[%s14587_s10 + $0xda4] ss:$20 sps:$4 sm:$0xff]  }
 0x424   :  { %7577 = vmatpush1.bf16.msra.mxu1 %v10686_v54  ;;  %v10755_v54 = vld [vmem:[%s14587_s10 + $0xb20] ss:$20 sps:$4 sm:$0xff]  }
 0x425   :  { %7578 = vmatprep.subr.bf16.mxu1 %v10694_v10  ;;  %v10763_v10 = vld [vmem:[%s14587_s10 + $0xafc] ss:$20 sps:$4 sm:$0xff]  }
 0x426   :  { %7538 = vmatpush1.bf16.msra.mxu0 %v10689_v56  ;;  %v10758_v56 = vld [vmem:[%s14587_s10 + $0xda0] ss:$20 sps:$4 sm:$0xff]  }
 0x427   :  { %7539 = vmatprep.subr.bf16.mxu0 %v10697_v57 }
 0x428   :  { %7579 = vmatpush1.bf16.msra.mxu1 %v10692_v7  ;;  %v10766_v7 = vld [vmem:[%s14587_s10 + $0xd7c] ss:$20 sps:$4 sm:$0xff]  }
 0x429   :  { %7580 = vmatprep.subr.bf16.mxu1 %v10700_v47 }
 0x42a   :  { %7540 = vmatpush1.bf16.msra.mxu0 %v10695_v58  ;;  %v10761_v58 = vld [vmem:[%s14587_s10 + $0xaf8] ss:$20 sps:$4 sm:$0xff]  }
 0x42b   :  { %7541 = vmatprep.subr.bf16.mxu0 %v10703_v59 }
 0x42c   :  { %7581 = vmatpush1.bf16.msra.mxu1 %v10698_v60 }
 0x42d   :  { %7582 = vmatprep.subr.bf16.mxu1 %v10706_v61  ;;  %v10769_v61 = vld [vmem:[%s14587_s10 + $0xad4] ss:$20 sps:$4 sm:$0xff]  }
 0x42e   :  { %7542 = vmatpush1.bf16.msra.mxu0 %v10701_v5 }
 0x42f   :  { %7543 = vmatprep.subr.bf16.mxu0 %v10709_v43 }
 0x430   :  { %7583 = vmatpush1.bf16.msra.mxu1 %v10704_v0 }
 0x431   :  { %7584 = vmatprep.subr.bf16.mxu1 %v10712_v1 }
 0x432   :  { %7544 = vmatpush2.bf16.msra.mxu0 %v10707_v2  ;;  %v10772_v2 = vld [vmem:[%s14587_s10 + $0xd54] ss:$20 sps:$4 sm:$0xff]  }
 0x433   :  { %7545 = vmatprep.subr.bf16.mxu0 %v10715_v53 }
 0x434   :  { %7585 = vmatpush2.bf16.msra.mxu1 %v10710_v44 }
 0x435   :  { %7586 = vmatprep.subr.bf16.mxu1 %v10718_v63 }
 0x436   :  { %7546 = vmatpush2.bf16.msra.mxu0 %v10713_v3  ;;  %v10775_v3 = vld [vmem:[%s14587_s10 + $0xaac] ss:$20 sps:$4 sm:$0xff]  }
 0x437   :  { %7547 = vmatprep.subr.bf16.mxu0 %v10721_v38  ;;  %v10770_v38 = vld [vmem:[%s14587_s10 + $0xd50] ss:$20 sps:$4 sm:$0xff]  }
 0x438   :  { %7587 = vmatpush2.bf16.msra.mxu1 %v10716_v4 }
 0x439   :  { %7588 = vmatprep.subr.bf16.mxu1 %v10724_v6  ;;  %v10778_v6 = vld [vmem:[%s14587_s10 + $0xd2c] ss:$20 sps:$4 sm:$0xff]  }
 0x43a   :  { %7548 = vmatpush2.bf16.msra.mxu0 %v10719_v8  ;;  %v10773_v8 = vld [vmem:[%s14587_s10 + $0xaa8] ss:$20 sps:$4 sm:$0xff]  }
 0x43b   :  { %7549 = vmatprep.subr.bf16.mxu0 %v10727_v14  ;;  %v10781_v14 = vld [vmem:[%s14587_s10 + $0xa84] ss:$20 sps:$4 sm:$0xff]  }
 0x43c   :  { %7589 = vmatpush2.bf16.msra.mxu1 %v10722_v16  ;;  %v10776_v16 = vld [vmem:[%s14587_s10 + $0xd28] ss:$20 sps:$4 sm:$0xff]  }
 0x43d   :  { %7590 = vmatprep.subr.bf16.mxu1 %v10730_v20  ;;  %v10784_v20 = vld [vmem:[%s14587_s10 + $0xd04] ss:$20 sps:$4 sm:$0xff]  }
 0x43e   :  { %7550 = vmatpush2.bf16.msra.mxu0 %v10725_v49  ;;  %v10779_v49 = vld [vmem:[%s14587_s10 + $0xa80] ss:$20 sps:$4 sm:$0xff]  }
 0x43f   :  { %7551 = vmatprep.subr.bf16.mxu0 %v10733_v12  ;;  %v10787_v12 = vld [vmem:[%s14587_s10 + $0xa5c] ss:$20 sps:$4 sm:$0xff]  }
 0x440   :  { %7591 = vmatpush2.bf16.msra.mxu1 %v10728_v24  ;;  %v10782_v24 = vld [vmem:[%s14587_s10 + $0xd00] ss:$20 sps:$4 sm:$0xff]  }
 0x441   :  { %7592 = vmatprep.subr.bf16.mxu1 %v10736_v26  ;;  %v10790_v26 = vld [vmem:[%s14587_s10 + $0xcdc] ss:$20 sps:$4 sm:$0xff]  }
 0x442   :  { %7552 = vmatpush2.bf16.msra.mxu0 %v10731_v29  ;;  %v10785_v29 = vld [vmem:[%s14587_s10 + $0xa58] ss:$20 sps:$4 sm:$0xff]  }
 0x443   :  { %7553 = vmatprep.subr.bf16.mxu0 %v10739_v30  ;;  %v10793_v30 = vld [vmem:[%s14587_s10 + $0xa34] ss:$20 sps:$4 sm:$0xff]  }
 0x444   :  { %7593 = vmatpush2.bf16.msra.mxu1 %v10734_v31  ;;  %v10788_v31 = vld [vmem:[%s14587_s10 + $0xcd8] ss:$20 sps:$4 sm:$0xff]  }
 0x445   :  { %7594 = vmatprep.subr.bf16.mxu1 %v10742_v32  ;;  %v10796_v32 = vld [vmem:[%s14587_s10 + $0xcb4] ss:$20 sps:$4 sm:$0xff]  }
 0x446   :  { %7554 = vmatpush2.bf16.msra.mxu0 %v10737_v33  ;;  %v10791_v33 = vld [vmem:[%s14587_s10 + $0xa30] ss:$20 sps:$4 sm:$0xff]  }
 0x447   :  { %7555 = vmatprep.subr.bf16.mxu0 %v10745_v34  ;;  %v10799_v34 = vld [vmem:[%s14587_s10 + $0xa0c] ss:$20 sps:$4 sm:$0xff]  }
 0x448   :  { %7595 = vmatpush2.bf16.msra.mxu1 %v10740_v37  ;;  %v10794_v37 = vld [vmem:[%s14587_s10 + $0xcb0] ss:$20 sps:$4 sm:$0xff]  }
 0x449   :  { %7596 = vmatprep.subr.bf16.mxu1 %v10748_v41  ;;  %v10802_v41 = vld [vmem:[%s14587_s10 + $0xc8c] ss:$20 sps:$4 sm:$0xff]  }
 0x44a   :  { %7556 = vmatpush2.bf16.msra.mxu0 %v10743_v28  ;;  %v10797_v28 = vld [vmem:[%s14587_s10 + $0xa08] ss:$20 sps:$4 sm:$0xff]  }
 0x44b   :  { %7557 = vmatprep.subr.bf16.mxu0 %v10751_v36  ;;  %v10805_v36 = vld [vmem:[%s14587_s10 + $0xc64] ss:$20 sps:$4 sm:$0xff]  }
 0x44c   :  { %7597 = vmatpush2.bf16.msra.mxu1 %v10746_v39  ;;  %v10800_v39 = vld [vmem:[%s14587_s10 + $0xc88] ss:$20 sps:$4 sm:$0xff]  }
 0x44d   :  { %7598 = vmatprep.subr.bf16.mxu1 %v10754_v35  ;;  %v10808_v35 = vld [vmem:[%s14587_s10 + $0xee4] ss:$20 sps:$4 sm:$0xff]  }
 0x44e   :  { %7558 = vmatpush2.bf16.msra.mxu0 %v10749_v45  ;;  %v10803_v45 = vld [vmem:[%s14587_s10 + $0xc60] ss:$20 sps:$4 sm:$0xff]  }
 0x44f   :  { %7609 = vmatprep.subr.bf16.mxu0 %v10757_v48  ;;  %v10811_v48 = vld [vmem:[%s14587_s10 + $0xc3c] ss:$20 sps:$4 sm:$0xff]  }
 0x450   :  { %7599 = vmatpush2.bf16.msra.mxu1 %v10752_v50  ;;  %v10806_v50 = vld [vmem:[%s14587_s10 + $0xee0] ss:$20 sps:$4 sm:$0xff]  }
 0x451   :  { %7560 = vmatmul.mubr.bf16.vlgmr.msra.gmra.mxu0 %v13300_v17  ;;  %v7315_v57 = vpop.f32.mrf.mxu0  ;;  %7650 = vmatprep.subr.bf16.mxu1 %v10760_v46  ;;  %v10814_v46 = vld [vmem:[%s14587_s10 + $0xebc] ss:$20 sps:$4 sm:$0xff]  }
 0x452   :  { %v7316_v47 = vadd.f32 %v7315_v57, %v13537_v62  ;;  %7610 = vmatpush1.bf16.msra.mxu0 %v10755_v54  ;;  %7641 = vmatprep.mubr.bf16.mxu0 %v13314_v18  ;;  %v10764_v62 = vld [vmem:[%s14587_s10 + $0xd78] ss:$20 sps:$4 sm:$0xff]   ;;  %v10820_v57 = vld [vmem:[%s14587_s10 + $0xe94] ss:$20 sps:$4 sm:$0xff]  }
 0x453   :  { %7601 = vmatmul.mubr.bf16.vlgmr.msra.gmra.mxu1 %v13316_v23  ;;  %v7317_v59 = vpop.f32.mrf.mxu0  ;;  %v7356_v60 = vpop.f32.mrf.mxu1  ;;  %7611 = vmatprep.subr.bf16.mxu0 %v10763_v10  ;;  %v10809_v54 = vld [vmem:[%s14587_s10 + $0xc38] ss:$20 sps:$4 sm:$0xff]   ;;  %v10817_v10 = vld [vmem:[%s14587_s10 + $0xc14] ss:$20 sps:$4 sm:$0xff]  }
 0x454   :  { %v7318_v5 = vadd.f32 %v7317_v59, %v13547_v25  ;;  %v13939_v43 = vadd.f32 %v7356_v60, %v7316_v47  ;;  %7651 = vmatpush1.bf16.msra.mxu1 %v10758_v56  ;;  %7682 = vmatprep.mubr.bf16.mxu1 %v13327_v27  ;;  %v10767_v25 = vld [vmem:[%s14587_s10 + $0xad0] ss:$20 sps:$4 sm:$0xff]   ;;  %v10812_v56 = vld [vmem:[%s14587_s10 + $0xeb8] ss:$20 sps:$4 sm:$0xff]   ;;  %v10821_v60 = vld [vmem:[%s14587_s10 + $0xbe8] ss:$20 sps:$4 sm:$0xff]  }
 0x455   :  { %v7319_v0 = vpop.f32.mrf.mxu0  ;;  %v7358_v1 = vpop.f32.mrf.mxu1  ;;  %7652 = vmatprep.subr.bf16.mxu1 %v10766_v7  ;;  %v10815_v7 = vld [vmem:[%s14587_s10 + $0xc10] ss:$20 sps:$4 sm:$0xff]   ;;  %v10823_v47 = vld [vmem:[%s14587_s10 + $0xbec] ss:$20 sps:$4 sm:$0xff]  }
 0x456   :  { %v13948_v53 = vadd.f32 %v7358_v1, %v7318_v5  ;;  %7612 = vmatpush1.bf16.msra.mxu0 %v10761_v58  ;;  %v10818_v58 = vld [vmem:[%s14587_s10 + $0xe90] ss:$20 sps:$4 sm:$0xff]   ;;  %v10826_v59 = vld [vmem:[%s14587_s10 + $0xe6c] ss:$20 sps:$4 sm:$0xff]   ;;  %v10824_v5 = vld [vmem:[%s14587_s10 + $0xe68] ss:$20 sps:$4 sm:$0xff]  }
 0x457   :  { %v7320_v44 = vpop.f32.mrf.mxu0  ;;  %v7360_v63 = vpop.f32.mrf.mxu1  ;;  %7613 = vmatprep.subr.bf16.mxu0 %v10769_v61  ;;  %v10829_v61 = vld [vmem:[%s14587_s10 + $0xbc4] ss:$20 sps:$4 sm:$0xff]   ;;  %v10827_v0 = vld [vmem:[%s14587_s10 + $0xbc0] ss:$20 sps:$4 sm:$0xff]   ;;  %v10835_v1 = vld [vmem:[%s14587_s10 + $0xb9c] ss:$20 sps:$4 sm:$0xff]  }
 0x458   :  { %7653 = vmatpush1.bf16.msra.mxu1 %v10764_v62  ;;  %v10832_v62 = vld [vmem:[%s14587_s10 + $0xe44] ss:$20 sps:$4 sm:$0xff]   ;;  %v10841_v63 = vld [vmem:[%s14587_s10 + $0xb74] ss:$20 sps:$4 sm:$0xff]  }
 0x459   :  { %v7361_v4 = vpop.f32.mrf.mxu1  ;;  %7654 = vmatprep.subr.bf16.mxu1 %v10772_v2  ;;  %v10830_v2 = vld [vmem:[%s14587_s10 + $0xe40] ss:$20 sps:$4 sm:$0xff]   ;;  %v10833_v44 = vld [vmem:[%s14587_s10 + $0xb98] ss:$20 sps:$4 sm:$0xff]  }
 0x45a   :  { %7614 = vmatpush1.bf16.msra.mxu0 %v10767_v25  ;;  %v10838_v25 = vld [vmem:[%s14587_s10 + $0xe1c] ss:$20 sps:$4 sm:$0xff]  }
 0x45b   :  { %7615 = vmatprep.subr.bf16.mxu0 %v10775_v3  ;;  %v10836_v3 = vld [vmem:[%s14587_s10 + $0xe18] ss:$20 sps:$4 sm:$0xff]   ;;  %v10839_v4 = vld [vmem:[%s14587_s10 + $0xb70] ss:$20 sps:$4 sm:$0xff]  }
 0x45c   :  { %7655 = vmatpush1.bf16.msra.mxu1 %v10770_v38  ;;  %v10844_v38 = vld [vmem:[%s14587_s10 + $0xdf4] ss:$20 sps:$4 sm:$0xff]  }
 0x45d   :  { %7656 = vmatprep.subr.bf16.mxu1 %v10778_v6  ;;  %v10847_v6 = vld [vmem:[%s14587_s10 + $0xb4c] ss:$20 sps:$4 sm:$0xff]  }
 0x45e   :  { %7616 = vmatpush1.bf16.msra.mxu0 %v10773_v8  ;;  %v10842_v8 = vld [vmem:[%s14587_s10 + $0xdf0] ss:$20 sps:$4 sm:$0xff]  }
 0x45f   :  { %7617 = vmatprep.subr.bf16.mxu0 %v10781_v14  ;;  %v10850_v14 = vld [vmem:[%s14587_s10 + $0xdcc] ss:$20 sps:$4 sm:$0xff]  }
 0x460   :  { %7657 = vmatpush1.bf16.msra.mxu1 %v10776_v16  ;;  %v10845_v16 = vld [vmem:[%s14587_s10 + $0xb48] ss:$20 sps:$4 sm:$0xff]  }
 0x461   :  { %7658 = vmatprep.subr.bf16.mxu1 %v10784_v20  ;;  %v10851_v20 = vld [vmem:[%s14587_s10 + $0x268] ss:$20 sps:$4 sm:$0xff]  }
 0x462   :  { %7618 = vmatpush1.bf16.msra.mxu0 %v10779_v49  ;;  %v10848_v49 = vld [vmem:[%s14587_s10 + $0xdc8] ss:$20 sps:$4 sm:$0xff]  }
 0x463   :  { %7619 = vmatprep.subr.bf16.mxu0 %v10787_v12  ;;  %v10853_v12 = vld [vmem:[%s14587_s10 + $0x768] ss:$20 sps:$4 sm:$0xff]  }
 0x464   :  { %7659 = vmatpush1.bf16.msra.mxu1 %v10782_v24  ;;  %v10852_v24 = vld [vmem:[%s14587_s10 + $0x128] ss:$20 sps:$4 sm:$0xff]  }
 0x465   :  { %7660 = vmatprep.subr.bf16.mxu1 %v10790_v26  ;;  %v10855_v26 = vld [vmem:[%s14587_s10 + $0x240] ss:$20 sps:$4 sm:$0xff]  }
 0x466   :  { %7620 = vmatpush1.bf16.msra.mxu0 %v10785_v29  ;;  %v10854_v29 = vld [vmem:[%s14587_s10 + $0x628] ss:$20 sps:$4 sm:$0xff]  }
 0x467   :  { %7621 = vmatprep.subr.bf16.mxu0 %v10793_v30 }
 0x468   :  { %7661 = vmatpush1.bf16.msra.mxu1 %v10788_v31  ;;  %v10857_v31 = vld [vmem:[%s14587_s10 + $0x740] ss:$20 sps:$4 sm:$0xff]  }
 0x469   :  { %7662 = vmatprep.subr.bf16.mxu1 %v10796_v32 }
 0x46a   :  { %7622 = vmatpush1.bf16.msra.mxu0 %v10791_v33  ;;  %v10856_v33 = vld [vmem:[%s14587_s10 + $0x100] ss:$20 sps:$4 sm:$0xff]  }
 0x46b   :  { %7623 = vmatprep.subr.bf16.mxu0 %v10799_v34 }
 0x46c   :  { %7663 = vmatpush1.bf16.msra.mxu1 %v10794_v37 }
 0x46d   :  { %7664 = vmatprep.subr.bf16.mxu1 %v10802_v41  ;;  %v10859_v41 = vld [vmem:[%s14587_s10 + $0x218] ss:$20 sps:$4 sm:$0xff]  }
 0x46e   :  { %7624 = vmatpush1.bf16.msra.mxu0 %v10797_v28 }
 0x46f   :  { %7625 = vmatprep.subr.bf16.mxu0 %v10805_v36 }
 0x470   :  { %7665 = vmatpush1.bf16.msra.mxu1 %v10800_v39  ;;  %v10861_v39 = vld [vmem:[%s14587_s10 + $0x718] ss:$20 sps:$4 sm:$0xff]  }
 0x471   :  { %7666 = vmatprep.subr.bf16.mxu1 %v10808_v35  ;;  %v10860_v35 = vld [vmem:[%s14587_s10 + $0xd8] ss:$20 sps:$4 sm:$0xff]  }
 0x472   :  { %7626 = vmatpush2.bf16.msra.mxu0 %v10803_v45 }
 0x473   :  { %7627 = vmatprep.subr.bf16.mxu0 %v10811_v48 }
 0x474   :  { %7667 = vmatpush2.bf16.msra.mxu1 %v10806_v50  ;;  %v10862_v50 = vld [vmem:[%s14587_s10 + $0x5d8] ss:$20 sps:$4 sm:$0xff]  }
 0x475   :  { %7668 = vmatprep.subr.bf16.mxu1 %v10814_v46 }
 0x476   :  { %7628 = vmatpush2.bf16.msra.mxu0 %v10809_v54  ;;  %v10865_v54 = vld [vmem:[%s14587_s10 + $0x6f0] ss:$20 sps:$4 sm:$0xff]  }
 0x477   :  { %7629 = vmatprep.subr.bf16.mxu0 %v10817_v10  ;;  %v10864_v10 = vld [vmem:[%s14587_s10 + $0xb0] ss:$20 sps:$4 sm:$0xff]  }
 0x478   :  { %7669 = vmatpush2.bf16.msra.mxu1 %v10812_v56  ;;  %v10867_v56 = vld [vmem:[%s14587_s10 + $0x1c8] ss:$20 sps:$4 sm:$0xff]  }
 0x479   :  { %7670 = vmatprep.subr.bf16.mxu1 %v10820_v57  ;;  %v10866_v57 = vld [vmem:[%s14587_s10 + $0x5b0] ss:$20 sps:$4 sm:$0xff]  }
 0x47a   :  { %7630 = vmatpush2.bf16.msra.mxu0 %v10815_v7  ;;  %v10869_v7 = vld [vmem:[%s14587_s10 + $0x6c8] ss:$20 sps:$4 sm:$0xff]  }
 0x47b   :  { %7631 = vmatprep.subr.bf16.mxu0 %v10823_v47  ;;  %v10868_v47 = vld [vmem:[%s14587_s10 + $0x88] ss:$20 sps:$4 sm:$0xff]  }
 0x47c   :  { %7671 = vmatpush2.bf16.msra.mxu1 %v10818_v58  ;;  %v10871_v58 = vld [vmem:[%s14587_s10 + $0x1a0] ss:$20 sps:$4 sm:$0xff]  }
 0x47d   :  { %7672 = vmatprep.subr.bf16.mxu1 %v10826_v59  ;;  %v10870_v59 = vld [vmem:[%s14587_s10 + $0x588] ss:$20 sps:$4 sm:$0xff]  }
 0x47e   :  { %7632 = vmatpush2.bf16.msra.mxu0 %v10821_v60  ;;  %v10873_v60 = vld [vmem:[%s14587_s10 + $0x6a0] ss:$20 sps:$4 sm:$0xff]  }
 0x47f   :  { %7633 = vmatprep.subr.bf16.mxu0 %v10829_v61  ;;  %v10872_v61 = vld [vmem:[%s14587_s10 + $0x60] ss:$20 sps:$4 sm:$0xff]  }
 0x480   :  { %7673 = vmatpush2.bf16.msra.mxu1 %v10824_v5  ;;  %v10875_v5 = vld [vmem:[%s14587_s10 + $0x178] ss:$20 sps:$4 sm:$0xff]  }
 0x481   :  { %7674 = vmatprep.subr.bf16.mxu1 %v10832_v62  ;;  %v10874_v62 = vld [vmem:[%s14587_s10 + $0x560] ss:$20 sps:$4 sm:$0xff]  }
 0x482   :  { %7634 = vmatpush2.bf16.msra.mxu0 %v10827_v0  ;;  %v10877_v0 = vld [vmem:[%s14587_s10 + $0x678] ss:$20 sps:$4 sm:$0xff]  }
 0x483   :  { %7635 = vmatprep.subr.bf16.mxu0 %v10835_v1  ;;  %v10876_v1 = vld [vmem:[%s14587_s10 + $0x38] ss:$20 sps:$4 sm:$0xff]  }
 0x484   :  { %7675 = vmatpush2.bf16.msra.mxu1 %v10830_v2  ;;  %v10879_v2 = vld [vmem:[%s14587_s10 + $0x150] ss:$20 sps:$4 sm:$0xff]  }
 0x485   :  { %7676 = vmatprep.subr.bf16.mxu1 %v10838_v25  ;;  %v10878_v25 = vld [vmem:[%s14587_s10 + $0x538] ss:$20 sps:$4 sm:$0xff]  }
 0x486   :  { %7636 = vmatpush2.bf16.msra.mxu0 %v10833_v44  ;;  %v10881_v44 = vld [vmem:[%s14587_s10 + $0x650] ss:$20 sps:$4 sm:$0xff]  }
 0x487   :  { %7637 = vmatprep.subr.bf16.mxu0 %v10841_v63  ;;  %v10880_v63 = vld [vmem:[%s14587_s10 + $0x10] ss:$20 sps:$4 sm:$0xff]  }
 0x488   :  { %7677 = vmatpush2.bf16.msra.mxu1 %v10836_v3  ;;  %v10883_v3 = vld [vmem:[%s14587_s10 + $0x4e8] ss:$20 sps:$4 sm:$0xff]  }
 0x489   :  { %7678 = vmatprep.subr.bf16.mxu1 %v10844_v38  ;;  %v10882_v38 = vld [vmem:[%s14587_s10 + $0x510] ss:$20 sps:$4 sm:$0xff]  }
 0x48a   :  { %7638 = vmatpush2.bf16.msra.mxu0 %v10839_v4  ;;  %v10885_v4 = vld [vmem:[%s14587_s10 + $0xc68] ss:$20 sps:$4 sm:$0xff]  }
 0x48b   :  { %7639 = vmatprep.subr.bf16.mxu0 %v10847_v6  ;;  %v10884_v6 = vld [vmem:[%s14587_s10 + $0x3a8] ss:$20 sps:$4 sm:$0xff]  }
 0x48c   :  { %7679 = vmatpush2.bf16.msra.mxu1 %v10842_v8  ;;  %v10887_v8 = vld [vmem:[%s14587_s10 + $0x4c0] ss:$20 sps:$4 sm:$0xff]  }
 0x48d   :  { %7680 = vmatprep.subr.bf16.mxu1 %v10850_v14  ;;  %v10886_v14 = vld [vmem:[%s14587_s10 + $0xb28] ss:$20 sps:$4 sm:$0xff]  }
 0x48e   :  { %7640 = vmatpush2.bf16.msra.mxu0 %v10845_v16  ;;  %v10889_v16 = vld [vmem:[%s14587_s10 + $0xc40] ss:$20 sps:$4 sm:$0xff]  }
 0x48f   :  { %9437 = vmatprep.subr.bf16.mxu0 %v10851_v20  ;;  %v10888_v20 = vld [vmem:[%s14587_s10 + $0x380] ss:$20 sps:$4 sm:$0xff]  }
 0x490   :  { %7681 = vmatpush2.bf16.msra.mxu1 %v10848_v49  ;;  %v10891_v49 = vld [vmem:[%s14587_s10 + $0x498] ss:$20 sps:$4 sm:$0xff]  }
 0x491   :  { %v7397_v30 = vpop.f32.mrf.mxu0  ;;  %7642 = vmatmul.mubr.bf16.vlgmr.msra.gmra.mxu0 %v13517_v55  ;;  %9481 = vmatprep.subr.bf16.mxu1 %v10853_v12  ;;  %v10895_v12 = vld [vmem:[%s14587_s10 + $0x470] ss:$20 sps:$4 sm:$0xff]  }
 0x492   :  { %v7398_v32 = vadd.f32 %v7397_v30, %v13939_v43  ;;  %9438 = vmatpush3.bf16.msra.mxu0 %v10852_v24  ;;  %7723 = vmatprep.mubr.bf16.mxu0 %v13068_v19  ;;  %v10858_v19 = vld [vmem:[%s14587_s10 + $0x600] ss:$20 sps:$4 sm:$0xff]   ;;  %v10897_v24 = vld [vmem:[%s14587_s10 + $0xbf0] ss:$20 sps:$4 sm:$0xff]  }
 0x493   :  { %v14136_v34 = vpop.f32.mrf.mxu0  ;;  %v7438_v37 = vpop.f32.mrf.mxu1  ;;  %7683 = vmatmul.mubr.bf16.vlgmr.msra.gmra.mxu1 %v13528_v11  ;;  %9439 = vmatprep.subr.bf16.mxu0 %v10855_v26  ;;  %v10896_v26 = vld [vmem:[%s14587_s10 + $0x330] ss:$20 sps:$4 sm:$0xff]  }
 0x494   :  { %v14142_v28 = vadd.f32 %v7438_v37, %v7398_v32  ;;  %9482 = vmatpush3.bf16.msra.mxu1 %v10854_v29  ;;  %7803 = vmatprep.mubr.bf16.mxu1 %v13295_v13  ;;  %v10863_v13 = vld [vmem:[%s14587_s10 + $0x1f0] ss:$20 sps:$4 sm:$0xff]   ;;  %v10899_v29 = vld [vmem:[%s14587_s10 + $0x448] ss:$20 sps:$4 sm:$0xff]  }
 0x495   :  { %v7401_v43 = vpop.f32.mrf.mxu0  ;;  %v14148_v36 = vpop.f32.mrf.mxu1  ;;  %9483 = vmatprep.subr.bf16.mxu1 %v10857_v31  ;;  %v10898_v30 = vld [vmem:[%s14587_s10 + $0xab0] ss:$20 sps:$4 sm:$0xff]   ;;  %v10901_v31 = vld [vmem:[%s14587_s10 + $0xbc8] ss:$20 sps:$4 sm:$0xff]  }
 0x496   :  { %9440 = vmatpush3.bf16.msra.mxu0 %v10856_v33  ;;  %v10900_v32 = vld [vmem:[%s14587_s10 + $0x308] ss:$20 sps:$4 sm:$0xff]   ;;  %v10903_v33 = vld [vmem:[%s14587_s10 + $0x420] ss:$20 sps:$4 sm:$0xff]   ;;  %v10907_v43 = vld [vmem:[%s14587_s10 + $0x3f8] ss:$20 sps:$4 sm:$0xff]  }
 0x497   :  { %v7402_v45 = vpop.f32.mrf.mxu0  ;;  %v7442_v48 = vpop.f32.mrf.mxu1  ;;  %9441 = vmatprep.subr.bf16.mxu0 %v10859_v41  ;;  %v10902_v37 = vld [vmem:[%s14587_s10 + $0xa88] ss:$20 sps:$4 sm:$0xff]   ;;  %v10905_v41 = vld [vmem:[%s14587_s10 + $0xba0] ss:$20 sps:$4 sm:$0xff]  }
 0x498   :  { %9484 = vmatpush3.bf16.msra.mxu1 %v10858_v19  ;;  %v10904_v19 = vld [vmem:[%s14587_s10 + $0x2e0] ss:$20 sps:$4 sm:$0xff]   ;;  %v7400_v45 = vadd.f32 %v14136_v34, %v13948_v53  ;;  %v10908_v48 = vld [vmem:[%s14587_s10 + $0x2b8] ss:$20 sps:$4 sm:$0xff]   ;;  %v10913_v53 = vld [vmem:[%s14587_s10 + $0xb50] ss:$20 sps:$4 sm:$0xff]  }
 0x499   :  { %v7443_v46 = vpop.f32.mrf.mxu1  ;;  %9485 = vmatprep.subr.bf16.mxu1 %v10861_v39  ;;  %v10906_v39 = vld [vmem:[%s14587_s10 + $0xa60] ss:$20 sps:$4 sm:$0xff]  }
 0x49a   :  { %9442 = vmatpush3.bf16.msra.mxu0 %v10860_v35  ;;  %v10909_v35 = vld [vmem:[%s14587_s10 + $0xb78] ss:$20 sps:$4 sm:$0xff]   ;;  %v7441_v34 = vadd.f32 %v14148_v36, %v7400_v45  ;;  %v10912_v46 = vld [vmem:[%s14587_s10 + $0x290] ss:$20 sps:$4 sm:$0xff]   ;;  %v7931_v45 = vmax.f32 %v14142_v28, 0.0 }
 0x49b   :  { %9443 = vmatprep.subr.bf16.mxu0 %v10863_v13  ;;  %v10911_v13 = vld [vmem:[%s14587_s10 + $0x3d0] ss:$20 sps:$4 sm:$0xff]   ;;  %v10917_v36 = vld [vmem:[%s14589_s12 + $0x78] sm:$0xff]   ;;  %v10950_v28 = vld [vmem:[%s14587_s10 + $0xd80] ss:$20 sps:$4 sm:$0xff]  }
 0x49c   :  { %9486 = vmatpush3.bf16.msra.mxu1 %v10862_v50  ;;  %v10910_v50 = vld [vmem:[%s14587_s10 + $0xa38] ss:$20 sps:$4 sm:$0xff]  }
 0x49d   :  { %9487 = vmatprep.subr.bf16.mxu1 %v10865_v54  ;;  %v10915_v54 = vld [vmem:[%s14587_s10 + $0x9e8] ss:$20 sps:$4 sm:$0xff]  }
 0x49e   :  { %9444 = vmatpush3.bf16.msra.mxu0 %v10864_v10  ;;  %v10914_v10 = vld [vmem:[%s14587_s10 + $0xa10] ss:$20 sps:$4 sm:$0xff]  }
 0x49f   :  { %9445 = vmatprep.subr.bf16.mxu0 %v10867_v56  ;;  %v7932_v56 = vmax.f32 %v7441_v34, 0.0  ;;  %v10954_v34 = vld [vmem:[%s14587_s10 + $0xd30] ss:$20 sps:$4 sm:$0xff]  }
 0x4a0   :  { %9488 = vmatpush3.bf16.msra.mxu1 %v10866_v57  ;;  %v14331_v57 = vld [vmem:[%s14588_s11] sm:$0x1f]  ;;  %s10989_s11 = scalar_lea.vmem %s8401_s26, 32 }
 0x4a1   :  { %9489 = vmatprep.subr.bf16.mxu1 %v10869_v7  ;;  %v4689_v7 = vrot.slane %v14331_v57, %v12047_v42  ;;  %v10921_v42 = vld [vmem:[%s14589_s12 + $0x70] sm:$0xff]   ;;  %p10990_p0 = scmp.ne.s32.totalorder %s8401_s26, %s10989_s11  ;;  %p10995_p2 = scmp.lt.s32.totalorder %s10989_s11, %s10989_s11 }
 0x4a2   :  { %9446 = vmatpush3.bf16.msra.mxu0 %v10868_v47  ;;  %v10916_v47 = vld [vmem:[%s14587_s10 + $0x8a8] ss:$20 sps:$4 sm:$0xff]  }
 0x4a3   :  { %9447 = vmatprep.subr.bf16.mxu0 %v10871_v58  ;;  %v10919_v58 = vld [vmem:[%s14587_s10 + $0x9c0] ss:$20 sps:$4 sm:$0xff]   ;;  %p10996_p3 = por %p10995_p2, %p10994_p1 }
 0x4a4   :  { %9490 = vmatpush3.bf16.msra.mxu1 %v10870_v59  ;;  %v4693_v59 = vrot.slane %v14331_v57, %v12065_v40  ;;  %v10920_v40 = vld [vmem:[%s14587_s10 + $0x880] ss:$20 sps:$4 sm:$0xff]  }
 0x4a5   :  { %9491 = vmatprep.subr.bf16.mxu1 %v10873_v60  ;;  %v10918_v60 = vld [vmem:[%s14589_s12 + $0x38] sm:$0xff]   ;;  %p10997_p4 = pnand %p10996_p3, %p10990_p0 }
 0x4a6   :  { %9448 = vmatpush3.bf16.msra.mxu0 %v10872_v61 }
 0x4a7   :  { %9449 = vmatprep.subr.bf16.mxu0 %v10875_v5  ;;  %v7937_v5 = vpack.c.bf16 %v7932_v56, %v7932_v56  ;;  %v10959_v56 = vld [vmem:[%s14587_s10 + $0xdf8] ss:$20 sps:$4 sm:$0xff]  }
 0x4a8   :  { %9492 = vmatpush3.bf16.msra.mxu1 %v10874_v62 }
 0x4a9   :  { %9493 = vmatprep.subr.bf16.mxu1 %v10877_v0 }
 0x4aa   :  { %9450 = vmatpush3.bf16.msra.mxu0 %v10876_v1 }
 0x4ab   :  { %9451 = vmatprep.subr.bf16.mxu0 %v10879_v2 }
 0x4ac   :  { %9494 = vmatpush3.bf16.msra.mxu1 %v10878_v25 }
 0x4ad   :  { %9495 = vmatprep.subr.bf16.mxu1 %v10881_v44 }
 0x4ae   :  { %9452 = vmatpush3.bf16.msra.mxu0 %v10880_v63 }
 0x4af   :  { %9459 = vmatprep.subr.bf16.mxu0 %v10883_v3 }
 0x4b0   :  { %9496 = vmatpush3.bf16.msra.mxu1 %v10882_v38  ;;  %v10924_v38 = vld [vmem:[%s14587_s10 + $0x858] ss:$20 sps:$4 sm:$0xff]  }
 0x4b1   :  { %7724 = vmatmul.mubr.bf16.vlgmr.msra.gmra.mxu0 %v13073_v51  ;;  %9525 = vmatprep.subr.bf16.mxu1 %v10885_v4  ;;  %v10890_v51 = vld [vmem:[%s14587_s10 + $0xb00] ss:$20 sps:$4 sm:$0xff]  }
 0x4b2   :  { %9460 = vmatpush3.bf16.msra.mxu0 %v10884_v6  ;;  %7763 = vmatprep.mubr.bf16.mxu0 %v13079_v21  ;;  %v10893_v21 = vld [vmem:[%s14587_s10 + $0xc18] ss:$20 sps:$4 sm:$0xff]  }
 0x4b3   :  { %7804 = vmatmul.mubr.bf16.vlgmr.msra.gmra.mxu1 %v13300_v17  ;;  %9461 = vmatprep.subr.bf16.mxu0 %v10887_v8  ;;  %v10892_v17 = vld [vmem:[%s14587_s10 + $0x358] ss:$20 sps:$4 sm:$0xff]   ;;  %v10927_v8 = vld [vmem:[%s14587_s10 + $0x970] ss:$20 sps:$4 sm:$0xff]  }
 0x4b4   :  { %9526 = vmatpush3.bf16.msra.mxu1 %v10886_v14  ;;  %7883 = vmatprep.mubr.bf16.mxu1 %v13314_v18  ;;  %v10894_v18 = vld [vmem:[%s14587_s10 + $0xad8] ss:$20 sps:$4 sm:$0xff]  }
 0x4b5   :  { %9527 = vmatprep.subr.bf16.mxu1 %v10889_v16  ;;  %v10926_v14 = vld [vmem:[%s14589_s12 + $0x28] sm:$0xff]  }
 0x4b6   :  { %9462 = vmatpush3.bf16.msra.mxu0 %v10888_v20  ;;  %v10929_v20 = vld [vmem:[%s14589_s12 + $0x60] sm:$0xff]  }
 0x4b7   :  { %9463 = vmatprep.subr.bf16.mxu0 %v10891_v49  ;;  %v10928_v49 = vld [vmem:[%s14587_s10 + $0x830] ss:$20 sps:$4 sm:$0xff]  }
 0x4b8   :  { %9528 = vmatpush3.bf16.msra.mxu1 %v10890_v51  ;;  %v10931_v51 = vld [vmem:[%s14587_s10 + $0x948] ss:$20 sps:$4 sm:$0xff]  }
 0x4b9   :  { %9529 = vmatprep.subr.bf16.mxu1 %v10893_v21  ;;  %v10930_v21 = vld [vmem:[%s14589_s12 + $0x20] sm:$0xff]  }
 0x4ba   :  { %9464 = vmatpush3.bf16.msra.mxu0 %v10892_v17  ;;  %v10933_v17 = vld [vmem:[%s14589_s12 + $0x58] sm:$0xff]  }
 0x4bb   :  { %9465 = vmatprep.subr.bf16.mxu0 %v10895_v12  ;;  %v10932_v12 = vld [vmem:[%s14587_s10 + $0x808] ss:$20 sps:$4 sm:$0xff]  }
 0x4bc   :  { %9530 = vmatpush3.bf16.msra.mxu1 %v10894_v18  ;;  %v10935_v18 = vld [vmem:[%s14587_s10 + $0x920] ss:$20 sps:$4 sm:$0xff]  }
 0x4bd   :  { %9531 = vmatprep.subr.bf16.mxu1 %v10897_v24  ;;  %v10934_v24 = vld [vmem:[%s14589_s12 + $0x18] sm:$0xff]  }
 0x4be   :  { %9466 = vmatpush3.bf16.msra.mxu0 %v10896_v26  ;;  %v10937_v26 = vld [vmem:[%s14589_s12 + $0x50] sm:$0xff]  }
 0x4bf   :  { %9467 = vmatprep.subr.bf16.mxu0 %v10899_v29  ;;  %v10936_v29 = vld [vmem:[%s14587_s10 + $0x7e0] ss:$20 sps:$4 sm:$0xff]  }
 0x4c0   :  { %9532 = vmatpush3.bf16.msra.mxu1 %v10898_v30  ;;  %v10939_v30 = vld [vmem:[%s14587_s10 + $0x8f8] ss:$20 sps:$4 sm:$0xff]  }
 0x4c1   :  { %9533 = vmatprep.subr.bf16.mxu1 %v10901_v31  ;;  %v10938_v31 = vld [vmem:[%s14589_s12 + $0x10] sm:$0xff]  }
 0x4c2   :  { %9468 = vmatpush3.bf16.msra.mxu0 %v10900_v32  ;;  %v10941_v32 = vld [vmem:[%s14589_s12 + $0x48] sm:$0xff]  }
 0x4c3   :  { %9469 = vmatprep.subr.bf16.mxu0 %v10903_v33  ;;  %v10940_v33 = vld [vmem:[%s14587_s10 + $0x7b8] ss:$20 sps:$4 sm:$0xff]  }
 0x4c4   :  { %9534 = vmatpush3.bf16.msra.mxu1 %v10902_v37  ;;  %v10943_v37 = vld [vmem:[%s14587_s10 + $0x8d0] ss:$20 sps:$4 sm:$0xff]  }
 0x4c5   :  { %9535 = vmatprep.subr.bf16.mxu1 %v10905_v41  ;;  %v10942_v41 = vld [vmem:[%s14589_s12 + $0x8] sm:$0xff]  }
 0x4c6   :  { %9470 = vmatpush3.bf16.msra.mxu0 %v10904_v19  ;;  %v10945_v19 = vld [vmem:[%s14589_s12 + $0x40] sm:$0xff]  }
 0x4c7   :  { %9471 = vmatprep.subr.bf16.mxu0 %v10907_v43  ;;  %v10944_v43 = vld [vmem:[%s14587_s10 + $0x790] ss:$20 sps:$4 sm:$0xff]  }
 0x4c8   :  { %9536 = vmatpush3.bf16.msra.mxu1 %v10906_v39  ;;  %v10947_v39 = vld [vmem:[%s14587_s10 + $0xee8] ss:$20 sps:$4 sm:$0xff]  }
 0x4c9   :  { %9537 = vmatprep.subr.bf16.mxu1 %v10909_v35  ;;  %v10946_v35 = vld [vmem:[%s14589_s12] sm:$0xff]  }
 0x4ca   :  { %9472 = vmatpush3.bf16.msra.mxu0 %v10908_v48  ;;  %v10948_v48 = vld [vmem:[%s14587_s10 + $0xda8] ss:$20 sps:$4 sm:$0xff]  }
 0x4cb   :  { %9473 = vmatprep.subr.bf16.mxu0 %v10911_v13  ;;  %v10949_v13 = vld [vmem:[%s14587_s10 + $0xec0] ss:$20 sps:$4 sm:$0xff]  }
 0x4cc   :  { %9538 = vmatpush3.bf16.msra.mxu1 %v10910_v50  ;;  %v7936_v50 = vpack.c.bf16 %v7931_v45, %v7931_v45 }
 0x4cd   :  { %9539 = vmatprep.subr.bf16.mxu1 %v10913_v53  ;;  %v10951_v53 = vld [vmem:[%s14587_s10 + $0xe98] ss:$20 sps:$4 sm:$0xff]  }
 0x4ce   :  { %9474 = vmatpush3.bf16.msra.mxu0 %v10912_v46  ;;  %v10955_v46 = vld [vmem:[%s14587_s10 + $0xe48] ss:$20 sps:$4 sm:$0xff]  }
 0x4cf   :  { %9503 = vmatprep.subr.bf16.mxu0 %v10915_v54  ;;  %v10956_v54 = vld [vmem:[%s14587_s10 + $0xd08] ss:$20 sps:$4 sm:$0xff]  }
 0x4d0   :  { %9540 = vmatpush3.bf16.msra.mxu1 %v10914_v10  ;;  %v10957_v10 = vld [vmem:[%s14587_s10 + $0xe20] ss:$20 sps:$4 sm:$0xff]  }
 0x4d1   :  { %v7479_v61 = vpop.f32.mrf.mxu0  ;;  %7764 = vmatmul.mubr.bf16.vlgmr.msra.gmra.mxu0 %v13085_v22  ;;  %9569 = vmatprep.subr.bf16.mxu1 %v10917_v36  ;;  %v10923_v22 = vld [vmem:[%s14587_s10 + $0x998] ss:$20 sps:$4 sm:$0xff]   ;;  %v10958_v36 = vld [vmem:[%s14587_s10 + $0xce0] ss:$20 sps:$4 sm:$0xff]  }
 0x4d2   :  { %v7480_v62 = vadd.f32 %v7479_v61, %v4689_v7  ;;  %9504 = vmatpush3.bf16.msra.mxu0 %v10916_v47  ;;  %7843 = vmatprep.mubr.bf16.mxu0 %v13305_v9  ;;  %v10922_v9 = vld [vmem:[%s14589_s12 + $0x30] sm:$0xff]   ;;  %v10960_v7 = vld [vmem:[%s14587_s10 + $0xcb8] ss:$20 sps:$4 sm:$0xff]  }
 0x4d3   :  { %v7481_v0 = vpop.f32.mrf.mxu0  ;;  %v7520_v1 = vpop.f32.mrf.mxu1  ;;  %7884 = vmatmul.mubr.bf16.vlgmr.msra.gmra.mxu1 %v13517_v55  ;;  %9505 = vmatprep.subr.bf16.mxu0 %v10919_v58  ;;  %v10925_v55 = vld [vmem:[%s14589_s12 + $0x68] sm:$0xff]   ;;  %v10961_v47 = vld [vmem:[%s14587_s10 + $0xdd0] ss:$20 sps:$4 sm:$0xff]  }
 0x4d4   :  { %v7482_v2 = vadd.f32 %v7481_v0, %v4693_v59  ;;  %v14358_v25 = vadd.f32 %v7520_v1, %v7480_v62  ;;  %9570 = vmatpush3.bf16.msra.mxu1 %v10918_v60  ;;  %8300 = vmatprep.mubr.bf16.mxu1 %v7937_v5  ;;  %v10962_v58 = vld [vmem:[%s14587_s10 + $0xc90] ss:$20 sps:$4 sm:$0xff]   ;;  %v10963_v59 = vld [vmem:[%s14589_s12 + $0xf8] sm:$0xff]   ;;  %v10967_v0 = vld [vmem:[%s14589_s12 + $0xe8] sm:$0xff]  }
 0x4d5   :  { %v7483_v44 = vpop.f32.mrf.mxu0  ;;  %v7522_v63 = vpop.f32.mrf.mxu1  ;;  %9571 = vmatprep.subr.bf16.mxu1 %v10921_v42  ;;  %v10964_v60 = vld [vmem:[%s14589_s12 + $0xb8] sm:$0xff]   ;;  %v10965_v61 = vld [vmem:[%s14589_s12 + $0xf0] sm:$0xff]  }
 0x4d6   :  { %v14366_v3 = vadd.f32 %v7522_v63, %v7482_v2  ;;  %9506 = vmatpush3.bf16.msra.mxu0 %v10920_v40  ;;  %v10966_v5 = vld [vmem:[%s14589_s12 + $0xb0] sm:$0xff]   ;;  %v10968_v2 = vld [vmem:[%s14589_s12 + $0xa8] sm:$0xff]   ;;  %v10969_v44 = vld [vmem:[%s14589_s12 + $0xe0] sm:$0xff]  }
 0x4d7   :  { %v7484_v4 = vpop.f32.mrf.mxu0  ;;  %v7524_v6 = vpop.f32.mrf.mxu1  ;;  %9507 = vmatprep.subr.bf16.mxu0 %v10923_v22 }
 0x4d8   :  { %9572 = vmatpush3.bf16.msra.mxu1 %v10922_v9  ;;  %v10972_v4 = vld [vmem:[%s14589_s12 + $0x98] sm:$0xff]   ;;  %v10973_v6 = vld [vmem:[%s14589_s12 + $0xd0] sm:$0xff]  }
 0x4d9   :  { %v7525_v16 = vpop.f32.mrf.mxu1  ;;  %9573 = vmatprep.subr.bf16.mxu1 %v10925_v55  ;;  %v10970_v55 = vld [vmem:[%s14589_s12 + $0xa0] sm:$0xff]  }
 0x4da   :  { %9508 = vmatpush3.bf16.msra.mxu0 %v10924_v38  ;;  %v10971_v38 = vld [vmem:[%s14589_s12 + $0xd8] sm:$0xff]   ;;  %v10976_v16 = vld [vmem:[%s14589_s12 + $0x88] sm:$0xff]  }
 0x4db   :  { %9509 = vmatprep.subr.bf16.mxu0 %v10927_v8  ;;  %v10974_v8 = vld [vmem:[%s14589_s12 + $0x90] sm:$0xff]  }
 0x4dc   :  { %9574 = vmatpush3.bf16.msra.mxu1 %v10926_v14  ;;  %v10975_v14 = vld [vmem:[%s14589_s12 + $0xc8] sm:$0xff]  }
 0x4dd   :  { %9575 = vmatprep.subr.bf16.mxu1 %v10929_v20  ;;  %v10977_v20 = vld [vmem:[%s14589_s12 + $0xc0] sm:$0xff]  }
 0x4de   :  { %9510 = vmatpush3.bf16.msra.mxu0 %v10928_v49  ;;  %v10978_v49 = vld [vmem:[%s14589_s12 + $0x80] sm:$0xff]  }
 0x4df   :  { %9511 = vmatprep.subr.bf16.mxu0 %v10931_v51  ;;  %v10979_v51 = vld [vmem:[%s14589_s12 + $0x138] sm:$0xff]  }
 0x4e0   :  { %9576 = vmatpush3.bf16.msra.mxu1 %v10930_v21  ;;  %v10980_v21 = vld [vmem:[%s14589_s12 + $0x130] sm:$0xff]  }
 0x4e1   :  { %9577 = vmatprep.subr.bf16.mxu1 %v10933_v17  ;;  %v10981_v17 = vld [vmem:[%s14589_s12 + $0x128] sm:$0xff]  }
 0x4e2   :  { %9512 = vmatpush3.bf16.msra.mxu0 %v10932_v12  ;;  %v10982_v12 = vld [vmem:[%s14589_s12 + $0x120] sm:$0xff]  }
 0x4e3   :  { %9513 = vmatprep.subr.bf16.mxu0 %v10935_v18  ;;  %v10983_v18 = vld [vmem:[%s14589_s12 + $0x118] sm:$0xff]  }
 0x4e4   :  { %9578 = vmatpush3.bf16.msra.mxu1 %v10934_v24 }
 0x4e5   :  { %9579 = vmatprep.subr.bf16.mxu1 %v10937_v26 }
 0x4e6   :  { %9514 = vmatpush3.bf16.msra.mxu0 %v10936_v29  ;;  %v10984_v29 = vld [vmem:[%s14589_s12 + $0x110] sm:$0xff]  }
 0x4e7   :  { %9515 = vmatprep.subr.bf16.mxu0 %v10939_v30 }
 0x4e8   :  { %9580 = vmatpush3.bf16.msra.mxu1 %v10938_v31 }
 0x4e9   :  { %9581 = vmatprep.subr.bf16.mxu1 %v10941_v32 }
 0x4ea   :  { %9516 = vmatpush3.bf16.msra.mxu0 %v10940_v33 }
 0x4eb   :  { %9517 = vmatprep.subr.bf16.mxu0 %v10943_v37 }
 0x4ec   :  { %9582 = vmatpush3.bf16.msra.mxu1 %v10942_v41 }
 0x4ed   :  { %9583 = vmatprep.subr.bf16.mxu1 %v10945_v19 }
 0x4ee   :  { %9518 = vmatpush3.bf16.msra.mxu0 %v10944_v43 }
 0x4ef   :  { %9547 = vmatprep.subr.bf16.mxu0 %v10947_v39 }
 0x4f0   :  { %9584 = vmatpush3.bf16.msra.mxu1 %v10946_v35 }
 0x4f1   :  { %7844 = vmatmul.mubr.bf16.vlgmr.msra.gmra.mxu0 %v13316_v23  ;;  %9622 = vmatprep.subr.bf16.mxu1 %v11012_v15  ;;  %v10952_v23 = vld [vmem:[%s14587_s10 + $0xd58] ss:$20 sps:$4 sm:$0xff]  }
 0x4f2   :  { %9548 = vmatpush3.bf16.msra.mxu0 %v10948_v48  ;;  %7923 = vmatprep.mubr.bf16.mxu0 %v13327_v27  ;;  %v10953_v27 = vld [vmem:[%s14587_s10 + $0xe70] ss:$20 sps:$4 sm:$0xff]  }
 0x4f3   :  { %8301 = vmatmul.mubr.bf16.vlgmr.msra.gmra.mxu1 %v7936_v50  ;;  %9549 = vmatprep.subr.bf16.mxu0 %v10949_v13  ;;  %v10986_v50 = vld [vmem:[%s14589_s12 + $0x100] sm:$0xff]  }
 0x4f4   :  { %9623 = vmatpush3.bf16.msra.mxu1 %v10979_v51  ;;  %9638 = vmatprep.mubr.msk.bf16.mxu1 %vm11014_vm0, %v11012_v15 }
 0x4f5   :  { %9624 = vmatprep.subr.bf16.mxu1 %v11012_v15 }
 0x4f6   :  { %9550 = vmatpush3.bf16.msra.mxu0 %v10950_v28 }
 0x4f7   :  { %9551 = vmatprep.subr.bf16.mxu0 %v10951_v53 }
 0x4f8   :  { %9625 = vmatpush3.bf16.msra.mxu1 %v10980_v21 }
 0x4f9   :  { %9626 = vmatprep.subr.bf16.mxu1 %v11012_v15 }
 0x4fa   :  { %9552 = vmatpush3.bf16.msra.mxu0 %v10952_v23 }
 0x4fb   :  { %9553 = vmatprep.subr.bf16.mxu0 %v10953_v27 }
 0x4fc   :  { %9627 = vmatpush3.bf16.msra.mxu1 %v10981_v17 }
 0x4fd   :  { %9628 = vmatprep.subr.bf16.mxu1 %v11012_v15 }
 0x4fe   :  { %9554 = vmatpush3.bf16.msra.mxu0 %v10954_v34 }
 0x4ff   :  { %9555 = vmatprep.subr.bf16.mxu0 %v10955_v46 }
 0x500   :  { %9629 = vmatpush3.bf16.msra.mxu1 %v10982_v12 }
 0x501   :  { %9630 = vmatprep.subr.bf16.mxu1 %v11012_v15 }
 0x502   :  { %9556 = vmatpush3.bf16.msra.mxu0 %v10956_v54 }
 0x503   :  { %9557 = vmatprep.subr.bf16.mxu0 %v10957_v10 }
 0x504   :  { %9631 = vmatpush3.bf16.msra.mxu1 %v10983_v18 }
 0x505   :  { %9632 = vmatprep.subr.bf16.mxu1 %v11012_v15 }
 0x506   :  { %9558 = vmatpush3.bf16.msra.mxu0 %v10958_v36 }
 0x507   :  { %9559 = vmatprep.subr.bf16.mxu0 %v10959_v56 }
 0x508   :  { %9633 = vmatpush3.bf16.msra.mxu1 %v10984_v29 }
 0x509   :  { %9634 = vmatprep.subr.bf16.mxu1 %v11012_v15 }
 0x50a   :  { %9560 = vmatpush3.bf16.msra.mxu0 %v10960_v7 }
 0x50b   :  { %9561 = vmatprep.subr.bf16.mxu0 %v10961_v47 }
 0x50e   :  { %9562 = vmatpush3.bf16.msra.mxu0 %v10962_v58 }
 0x50f   :  { %9591 = vmatprep.subr.bf16.mxu0 %v10963_v59 }
 0x511   :  { %v7561_v42 = vpop.f32.mrf.mxu0  ;;  %7924 = vmatmul.mubr.bf16.vlgmr.msra.gmra.mxu0 %v13528_v11 }
 0x512   :  { %9592 = vmatpush3.bf16.msra.mxu0 %v10964_v60  ;;  %v7562_v24 = vadd.f32 %v7561_v42, %v14358_v25  ;;  %v10985_v25 = vld [vmem:[%s14589_s12 + $0x108] sm:$0xff]   ;;  %v4697_v60 = vrot.slane %v14331_v57, %v12078_v52 }
 0x513   :  { %v7563_v62 = vpop.f32.mrf.mxu0  ;;  %v7602_v40 = vpop.f32.mrf.mxu1  ;;  %9593 = vmatprep.subr.bf16.mxu0 %v10965_v61  ;;  %9635 = vmatpush3.bf16.msra.mxu1 %v10985_v25 }
 0x514   :  { %v7564_v26 = vadd.f32 %v7563_v62, %v14366_v3  ;;  %v7603_v30 = vadd.f32 %v7602_v40, %v7562_v24  ;;  %9636 = vmatprep.subr.bf16.mxu1 %v11012_v15 }
 0x515   :  { %v7565_v1 = vpop.f32.mrf.mxu0  ;;  %v7604_v22 = vpop.f32.mrf.mxu1 }
 0x516   :  { %9594 = vmatpush3.bf16.msra.mxu0 %v10966_v5  ;;  %v7605_v32 = vadd.f32 %v7604_v22, %v7564_v26 }
 0x517   :  { %v7566_v11 = vpop.f32.mrf.mxu0  ;;  %v7606_v9 = vpop.f32.mrf.mxu1  ;;  %9595 = vmatprep.subr.bf16.mxu0 %v10967_v0  ;;  %9637 = vmatpush3.bf16.msra.mxu1 %v10986_v50 }
 0x519   :  { %v7607_v63 = vpop.f32.mrf.mxu1 }
 0x51a   :  { %9596 = vmatpush3.bf16.msra.mxu0 %v10968_v2 }
 0x51b   :  { %9597 = vmatprep.subr.bf16.mxu0 %v10969_v44 }
 0x51e   :  { %9598 = vmatpush3.bf16.msra.mxu0 %v10970_v55 }
 0x51f   :  { %9599 = vmatprep.subr.bf16.mxu0 %v10971_v38 }
 0x522   :  { %9600 = vmatpush3.bf16.msra.mxu0 %v10972_v4 }
 0x523   :  { %9601 = vmatprep.subr.bf16.mxu0 %v10973_v6 }
 0x526   :  { %9602 = vmatpush3.bf16.msra.mxu0 %v10974_v8 }
 0x527   :  { %9603 = vmatprep.subr.bf16.mxu0 %v10975_v14 }
 0x52a   :  { %9604 = vmatpush3.bf16.msra.mxu0 %v10976_v16 }
 0x52b   :  { %9605 = vmatprep.subr.bf16.mxu0 %v10977_v20 }
 0x52e   :  { %9606 = vmatpush3.bf16.msra.mxu0 %v10978_v49 }
 0x551   :  { %v7643_v31 = vpop.f32.mrf.mxu0 }
 0x552   :  { %v7644_v33 = vadd.f32 %v7643_v31, %v7603_v30  ;;  %v9330_v30 = vld [vmem:[%s14590_s13] ss:$0 sm:$0xff] }
 0x553   :  { %v7645_v37 = vpop.f32.mrf.mxu0  ;;  %v7684_v41 = vpop.f32.mrf.mxu1 }
 0x554   :  { %v7646_v19 = vadd.f32 %v7645_v37, %v7605_v32  ;;  %v7685_v43 = vadd.f32 %v7684_v41, %v7644_v33 }
 0x555   :  { %v7647_v3 = vpop.f32.mrf.mxu0  ;;  %v7686_v39 = vpop.f32.mrf.mxu1 }
 0x556   :  { %v7687_v35 = vadd.f32 %v7686_v39, %v7646_v19  ;;  %v7933_v45 = vmax.f32 %v7685_v43, 0.0 }
 0x557   :  { %v7648_v48 = vpop.f32.mrf.mxu0  ;;  %v7688_v13 = vpop.f32.mrf.mxu1 }
 0x558   :  { %v7934_v28 = vmax.f32 %v7687_v35, 0.0  ;;  %v7938_v27 = vpack.c.bf16 %v7933_v45, %v7933_v45 }
 0x559   :  { %v7689_v53 = vpop.f32.mrf.mxu1 }
 0x55a   :  { %v7939_v23 = vpack.c.bf16 %v7934_v28, %v7934_v28 }
 0x55c   :  { %8340 = vmatprep.mubr.bf16.mxu0 %v7939_v23 }
 0x55d   :  { %8341 = vmatmul.mubr.bf16.vlgmr.msra.gmra.mxu0 %v7938_v27 }
 0x571   :  { %v9453_v34 = vpop.f32.mrf.mxu0 }
 0x573   :  { %v9454_v46 = vpop.f32.mrf.mxu0  ;;  %v9497_v54 = vpop.f32.mrf.mxu1 }
 0x574   :  { %v9455_v10 = vadd.f32 %v9454_v46, %v9453_v34 }
 0x575   :  { %v9456_v36 = vpop.f32.mrf.mxu0  ;;  %v9498_v56 = vpop.f32.mrf.mxu1 }
 0x576   :  { %v9499_v7 = vadd.f32 %v9498_v56, %v9497_v54  ;;  %v7726_v62 = vadd.f32 %v9455_v10, %v4697_v60 }
 0x577   :  { %v9457_v47 = vpop.f32.mrf.mxu0  ;;  %v9500_v58 = vpop.f32.mrf.mxu1 }
 0x579   :  { %v9501_v59 = vpop.f32.mrf.mxu1 }
 0x591   :  { %v9475_v61 = vpop.f32.mrf.mxu0 }
 0x593   :  { %v9476_v42 = vpop.f32.mrf.mxu0  ;;  %v9541_v5 = vpop.f32.mrf.mxu1 }
 0x594   :  { %v9477_v15 = vadd.f32 %v9476_v42, %v9475_v61 }
 0x595   :  { %v9478_v40 = vpop.f32.mrf.mxu0  ;;  %v9542_v0 = vpop.f32.mrf.mxu1 }
 0x596   :  { %v7766_v1 = vadd.f32 %v9477_v15, %v7726_v62  ;;  %v9543_v49 = vadd.f32 %v9542_v0, %v9541_v5 }
 0x597   :  { %v9479_v22 = vpop.f32.mrf.mxu0  ;;  %v9544_v2 = vpop.f32.mrf.mxu1 }
 0x598   :  { %v7806_v11 = vadd.f32 %v9499_v7, %v7766_v1 }
 0x599   :  { %v9545_v9 = vpop.f32.mrf.mxu1 }
 0x5b1   :  { %v9519_v44 = vpop.f32.mrf.mxu0 }
 0x5b3   :  { %v9520_v63 = vpop.f32.mrf.mxu0  ;;  %v9585_v55 = vpop.f32.mrf.mxu1 }
 0x5b4   :  { %v9521_v14 = vadd.f32 %v9520_v63, %v9519_v44 }
 0x5b5   :  { %v9522_v38 = vpop.f32.mrf.mxu0  ;;  %v9586_v4 = vpop.f32.mrf.mxu1 }
 0x5b6   :  { %v9587_v6 = vadd.f32 %v9586_v4, %v9585_v55  ;;  %v7846_v16 = vadd.f32 %v9521_v14, %v7806_v11 }
 0x5b7   :  { %v9523_v8 = vpop.f32.mrf.mxu0  ;;  %v9588_v52 = vpop.f32.mrf.mxu1 }
 0x5b8   :  { %v7886_v21 = vadd.f32 %v9543_v49, %v7846_v16  ;;  %v8303_v33 = vadd.f32 %v9587_v6, %v9330_v30 }
 0x5b9   :  { %v9589_v57 = vpop.f32.mrf.mxu1 }
 0x5d1   :  { %v9563_v20 = vpop.f32.mrf.mxu0 }
 0x5d3   :  { %v9564_v51 = vpop.f32.mrf.mxu0 }
 0x5d4   :  { %v9565_v17 = vadd.f32 %v9564_v51, %v9563_v20 }
 0x5d5   :  { %v9566_v12 = vpop.f32.mrf.mxu0 }
 0x5d6   :  { %v7926_v18 = vadd.f32 %v9565_v17, %v7886_v21 }
 0x5d7   :  { %v9567_v24 = vpop.f32.mrf.mxu0 }
 0x5d8   :  { %v7935_v26 = vmax.f32 %v7926_v18, 0.0 }
 0x5da   :  { %v7940_v29 = vpack.c.bf16 %v7935_v26, %v7935_v26 }
 0x5dc   :  { %9639 = vmatmul.mubr.bf16.vlgmr.msra.gmra.mxu1 %v7940_v29 }
 0x61d   :  { %v9607_v31 = vpop.f32.mrf.mxu0 }
 0x61f   :  { %v9608_v32 = vpop.f32.mrf.mxu0 }
 0x620   :  { %v9609_v37 = vadd.f32 %v9608_v32, %v9607_v31 }
 0x621   :  { %v9610_v41 = vpop.f32.mrf.mxu0 }
 0x622   :  { %v8343_v25 = vadd.f32 %v9609_v37, %v8303_v33 }
 0x623   :  { %v9611_v19 = vpop.f32.mrf.mxu0 }
 0x69c   :  { %v8382_v43 = vpop.f32.mrf.mxu1 }
 0x69d   :  { %v8383_v3 = vadd.f32 %v8382_v43, %v8343_v25 }
 0x69e   :  { %v9640_v39 = vpop.f32.mrf.mxu1 }
 0x69f   :  { %8389 = vst.msk [vmem:[#allocation2] sm:$0x3] %vm8388_vm1, %v8383_v3 }
 0x6a0   :  { %v8385_v35 = vpop.f32.mrf.mxu1 }
 0x6a1   :  { %11000 = shalt.err (!%p10997_p4)
}
 0x6a2   :  { %8403 = dma.vmem_to_hbm [thread:$0]  %s8401_s26, 32, %s14593_s16, [#allocation3]   ;;  %v9641_v45 = vpop.f32.mrf.mxu1 }
 0x6a3   :  { %11009 = dma.done.wait [#allocation3], 32  }
 0x6a4   :  { %11010 = vsyncadd [#allocation3], 4294967264 }
 0x6a5   :  { %8411 = vsyncpa [#allocation3], 1 }

</bundles_post_ra>
